<compile_context>
chip_gen: v7x
topology: tpu7x:2x2x1
jax: 0.10.0
libtpu: 0.0.40
codegen_flags: <defaults>
</compile_context>

<pallas_src>
from functools import partial

import numpy as np
import jax
import jax.numpy as jnp
from jax.experimental import pallas as pl
from jax.experimental.pallas import tpu as pltpu


# ------------------------- Pallas kernels -------------------------

def _conv_bn_lrelu_kernel(x_ref, w_ref, s_ref, t_ref, o_ref):
    # x_ref: (bm, K) bf16 im2col patches; w_ref: (K, 128) bf16; s/t: (1, 128) f32.
    acc = jnp.dot(x_ref[...], w_ref[...], preferred_element_type=jnp.float32)
    y = acc * s_ref[...] + t_ref[...]                 # conv bias + BatchNorm (eval) folded
    o_ref[...] = jnp.where(y > 0, y, 0.1 * y).astype(o_ref.dtype)   # LeakyReLU(0.1)


def _conv3_conv4_fc_kernel(p3_ref, w3_ref, s3_ref, t3_ref,
                           g4_ref, w4_ref, s4_ref, t4_ref,
                           fcw_ref, fcb_ref, o_ref, *, batch):
    # ---- conv3: im2col GEMM + folded BN + LeakyReLU(0.1) ----
    a3 = jnp.dot(p3_ref[...], w3_ref[...], preferred_element_type=jnp.float32)
    a3 = a3 * s3_ref[...] + t3_ref[...]
    a3 = jnp.where(a3 > 0, a3, 0.1 * a3).astype(jnp.bfloat16)       # (B*8*8, 128)

    # ---- conv4 as implicit GEMM: per-tap 0/1 gather matmul replaces HBM im2col ----
    n_out = batch * 16                                              # B*4*4 output pixels
    acc = jnp.zeros((n_out, 128), jnp.float32)
    for tap in range(16):                                           # 4x4 kernel taps
        g_t = g4_ref[tap * n_out:(tap + 1) * n_out, :]              # (n_out, B*64) 0/1
        p_t = jnp.dot(g_t, a3, preferred_element_type=jnp.float32)  # gathered patch rows
        w_t = w4_ref[tap * 128:(tap + 1) * 128, :]                  # (128, 128) tap weight
        acc = acc + jnp.dot(p_t.astype(jnp.bfloat16), w_t,
                            preferred_element_type=jnp.float32)
    y4 = acc * s4_ref[...] + t4_ref[...]
    y4 = jnp.where(y4 > 0, y4, 0.1 * y4)                            # (B*16, 128) f32

    # ---- Dropout(0.4) is eval-mode identity; Linear(2048, 1) + Sigmoid fused here ----
    # fcw_ref is the FC weight pre-permuted to (h*w, C) so no NCHW transpose is needed.
    for b in range(batch):
        pb = y4[b * 16:(b + 1) * 16, :] * fcw_ref[...]              # (16, 128)
        zb = jnp.sum(pb, keepdims=True) + fcb_ref[...]              # (1, 1)
        o_ref[b:b + 1, :] = 1.0 / (1.0 + jnp.exp(-zb))              # Sigmoid


# ------------------------- Pallas wrappers -------------------------

def conv_bn_lrelu(patches, w_mat, scale, shift, *, block_rows):
    M, K = patches.shape
    N = w_mat.shape[1]
    assert M % block_rows == 0 and block_rows % 8 == 0
    grid = (M // block_rows,)
    return pl.pallas_call(
        _conv_bn_lrelu_kernel,
        out_shape=jax.ShapeDtypeStruct((M, N), jnp.bfloat16),
        grid_spec=pltpu.PrefetchScalarGridSpec(
            num_scalar_prefetch=0,
            grid=grid,
            in_specs=[
                pl.BlockSpec((block_rows, K), lambda i: (i, 0)),
                pl.BlockSpec((K, N), lambda i: (0, 0)),
                pl.BlockSpec((1, N), lambda i: (0, 0)),
                pl.BlockSpec((1, N), lambda i: (0, 0)),
            ],
            out_specs=pl.BlockSpec((block_rows, N), lambda i: (i, 0)),
        ),
        compiler_params=pltpu.CompilerParams(dimension_semantics=("parallel",)),
    )(patches, w_mat, scale, shift)


def conv3_conv4_fc(p3, w3, s3, t3, g4, w4, s4, t4, fcw, fcb, *, batch):
    # Single invocation, all operands VMEM-resident (~1.7 MB total).
    return pl.pallas_call(
        partial(_conv3_conv4_fc_kernel, batch=batch),
        out_shape=jax.ShapeDtypeStruct((batch, 1), jnp.float32),
    )(p3, w3, s3, t3, g4, w4, s4, t4, fcw, fcb)


# ------------------------- JAX glue (im2col, init, forward) -------------------------

def im2col(x, k, stride, pad):
    # x: (B, H, W, C) NHWC.  Runs inside jit (fused with the surrounding program).
    x = jnp.pad(x, ((0, 0), (pad, pad), (pad, pad), (0, 0)))
    B, Hp, Wp, C = x.shape
    Ho = (Hp - k) // stride + 1
    Wo = (Wp - k) // stride + 1
    cols = []
    for i in range(k):
        for j in range(k):
            cols.append(x[:, i:i + stride * Ho:stride, j:j + stride * Wo:stride, :])
    patches = jnp.concatenate(cols, axis=-1)          # column order (kh, kw, ci)
    return patches.reshape(B * Ho * Wo, k * k * C)


def build_conv4_gather(batch):
    # 0/1 matrix so conv4's im2col becomes a matmul inside the fused tail kernel.
    # Row (tap * B*4*4 + m) selects the act3 row feeding tap (dy,dx) of output pixel m
    # (zero row => padding contribution).
    Hi = Wi = 8
    Ho = Wo = 4
    k, stride, pad = 4, 2, 1
    n_out = batch * Ho * Wo
    n_in = batch * Hi * Wi
    G = np.zeros((k * k * n_out, n_in), np.float32)
    for dy in range(k):
        for dx in range(k):
            t = dy * k + dx
            for b in range(batch):
                for oy in range(Ho):
                    for ox in range(Wo):
                        m = (b * Ho + oy) * Wo + ox
                        iy = stride * oy + dy - pad
                        ix = stride * ox + dx - pad
                        if 0 <= iy < Hi and 0 <= ix < Wi:
                            r = (b * Hi + iy) * Wi + ix
                            G[t * n_out + m, r] = 1.0
    return jnp.asarray(G, jnp.bfloat16)               # 0/1 exact in bf16


def init_params(key):
    # Raw PyTorch-equivalent parameters (eval-mode BN with fresh running stats).
    ks = jax.random.split(key, 16)
    C = 128

    def conv_p(kw_, kb_, kg_, kbt_, cin, ksz):
        fan_in = cin * ksz * ksz
        bound = 1.0 / jnp.sqrt(fan_in)
        w = jax.random.uniform(kw_, (C, cin, ksz, ksz), jnp.float32, -bound, bound)
        b = jax.random.uniform(kb_, (C,), jnp.float32, -bound, bound)
        gamma = 1.0 + 0.1 * jax.random.normal(kg_, (C,), jnp.float32)
        beta = 0.1 * jax.random.normal(kbt_, (C,), jnp.float32)
        rmean = jnp.zeros((C,), jnp.float32)
        rvar = jnp.ones((C,), jnp.float32)
        return (w, b, gamma, beta, rmean, rvar)

    params = {
        "conv1": conv_p(ks[0], ks[1], ks[2], ks[3], 1, 3),
        "conv2": conv_p(ks[4], ks[5], ks[6], ks[7], 128, 4),
        "conv3": conv_p(ks[8], ks[9], ks[10], ks[11], 128, 4),
        "conv4": conv_p(ks[12], ks[13], ks[14], ks[15], 128, 4),
    }
    kf1, kf2 = jax.random.split(jax.random.fold_in(key, 99))
    bound = 1.0 / jnp.sqrt(2048.0)
    fc_w = jax.random.uniform(kf1, (1, 2048), jnp.float32, -bound, bound)  # PyTorch (out, in)
    fc_b = jax.random.uniform(kf2, (1,), jnp.float32, -bound, bound)
    params["fc"] = (fc_w, fc_b)
    return params


def prepare_params(raw, batch):
    """One-time (init) folding of conv/BN/FC parameters into kernel-ready constants."""
    eps = 1e-5
    prep = {}
    for name in ("conv1", "conv2", "conv3", "conv4"):
        w, b, gamma, beta, rmean, rvar = raw[name]
        c_out = w.shape[0]
        # PyTorch (C_out, C_in, kh, kw) -> (kh*kw*C_in, C_out), matching im2col / tap order.
        w_mat = jnp.transpose(w, (2, 3, 1, 0)).reshape(-1, c_out).astype(jnp.bfloat16)
        s = gamma / jnp.sqrt(rvar + eps)              # BN eval: (z + b - rm)/sqrt(rv+eps)*g + beta
        shift = (b - rmean) * s + beta
        prep[name] = (w_mat,
                      s.reshape(1, -1).astype(jnp.float32),
                      shift.reshape(1, -1).astype(jnp.float32))
    fc_w, fc_b = raw["fc"]
    # PyTorch flattens (C, H, W); our conv4 output rows are (b, h, w) with C in lanes,
    # so pre-permute the FC weight to (h*w, C) once at init.
    prep["fc_w_hwc"] = fc_w.reshape(128, 16).T.astype(jnp.float32)   # (16, 128)
    prep["fc_b"] = fc_b.reshape(1, 1).astype(jnp.float32)
    prep["gather4"] = build_conv4_gather(batch)
    return prep


def discriminator_forward(img_nchw, prep):
    # img: (B, 1, 32, 32) NCHW -> NHWC, bf16 for the MXU (accumulation stays f32).
    b = img_nchw.shape[0]
    x = jnp.transpose(img_nchw, (0, 2, 3, 1)).astype(jnp.bfloat16)

    w1, s1, t1 = prep["conv1"]
    p1 = im2col(x, 3, 1, 1)                                          # (B*32*32, 9)
    a1 = conv_bn_lrelu(p1, w1, s1, t1, block_rows=p1.shape[0] // 2)  # (B*32*32, 128) bf16
    a1 = a1.reshape(b, 32, 32, 128)

    w2, s2, t2 = prep["conv2"]
    p2 = im2col(a1, 4, 2, 1)                                         # (B*16*16, 2048)
    a2 = conv_bn_lrelu(p2, w2, s2, t2, block_rows=p2.shape[0] // 2)  # (B*16*16, 128) bf16
    a2 = a2.reshape(b, 16, 16, 128)

    # conv3 + conv4 + Dropout(eval id) + Linear + Sigmoid fused in one kernel.
    # TODO(synk): training-mode dropout/batch-stat BN randomness is not reproducible
    # deterministically; eval-mode semantics are implemented.
    w3, s3, t3 = prep["conv3"]
    w4, s4, t4 = prep["conv4"]
    p3 = im2col(a2, 4, 2, 1)                                         # (B*8*8, 2048)
    return conv3_conv4_fc(p3, w3, s3, t3, prep["gather4"], w4, s4, t4,
                          prep["fc_w_hwc"], prep["fc_b"], batch=b)


if __name__ == "__main__":
    BATCH = 2
    key = jax.random.PRNGKey(0)
    raw = init_params(key)
    prep = prepare_params(raw, BATCH)                 # hoisted constant prep (runs once)
    # Input spatial must be 32x32 so that 128 * 4 * 4 == 2048 matches the view().
    img = jax.random.normal(jax.random.fold_in(key, 7), (BATCH, 1, 32, 32), jnp.float32)

    forward = jax.jit(discriminator_forward)
    validity = jax.block_until_ready(forward(img, prep))

    assert validity.shape == (BATCH, 1)
    assert bool(jnp.all((validity > 0.0) & (validity < 1.0)))
    print("KERNEL_OK")
</pallas_src>

<mosaic_0001>
module attributes {stable_mosaic.version = 11 : i64} {
  func.func @_conv_bn_lrelu_kernel(%arg0: i32, %arg1: memref<1024x9xbf16, #tpu.memory_space<vmem>>, %arg2: memref<9x128xbf16, #tpu.memory_space<vmem>>, %arg3: memref<1x128xf32, #tpu.memory_space<vmem>>, %arg4: memref<1x128xf32, #tpu.memory_space<vmem>>, %arg5: memref<1024x128xbf16, #tpu.memory_space<vmem>>) attributes {dimension_semantics = [#tpu.dimension_semantics<parallel>], iteration_bounds = array<i64: 2>, scalar_prefetch = 0 : i64, scratch_operands = 0 : i64, tpu.core_type = #tpu.core_type<tc>, window_params = [{transform_indices = @transform_0, window_bounds = array<i64: 1024, 9>}, {pipeline_mode = #tpu.pipeline_mode<synchronous>, transform_indices = @transform_1, window_bounds = array<i64: 9, 128>}, {pipeline_mode = #tpu.pipeline_mode<synchronous>, transform_indices = @transform_2, window_bounds = array<i64: 1, 128>}, {pipeline_mode = #tpu.pipeline_mode<synchronous>, transform_indices = @transform_3, window_bounds = array<i64: 1, 128>}, {transform_indices = @transform_4, window_bounds = array<i64: 1024, 128>}]} {
    %c0 = arith.constant 0 : index
    %c0_0 = arith.constant 0 : index
    %0 = vector.load %arg1[%c0, %c0_0] : memref<1024x9xbf16, #tpu.memory_space<vmem>>, vector<1024x9xbf16>
    %c0_1 = arith.constant 0 : index
    %c0_2 = arith.constant 0 : index
    %1 = vector.load %arg2[%c0_1, %c0_2] : memref<9x128xbf16, #tpu.memory_space<vmem>>, vector<9x128xbf16>
    %cst = arith.constant dense<0.000000e+00> : vector<1024x128xf32>
    %2 = tpu.matmul %0, %1, %cst {dimension_numbers = #tpu.dot_dimension_numbers<[1], [0], [0], [1], [0, 0, 1, 1], [], []>} : vector<1024x9xbf16>, vector<9x128xbf16>, vector<1024x128xf32> -> vector<1024x128xf32>
    %c0_3 = arith.constant 0 : index
    %c0_4 = arith.constant 0 : index
    %3 = vector.load %arg3[%c0_3, %c0_4] : memref<1x128xf32, #tpu.memory_space<vmem>>, vector<1x128xf32>
    %4 = vector.broadcast %3 : vector<1x128xf32> to vector<1024x128xf32>
    %5 = arith.mulf %2, %4 : vector<1024x128xf32>
    %c0_5 = arith.constant 0 : index
    %c0_6 = arith.constant 0 : index
    %6 = vector.load %arg4[%c0_5, %c0_6] : memref<1x128xf32, #tpu.memory_space<vmem>>, vector<1x128xf32>
    %7 = vector.broadcast %6 : vector<1x128xf32> to vector<1024x128xf32>
    %8 = arith.addf %5, %7 : vector<1024x128xf32>
    %cst_7 = arith.constant 0.000000e+00 : f32
    %9 = vector.broadcast %cst_7 : f32 to vector<1024x128xf32>
    %10 = arith.cmpf ogt, %8, %9 : vector<1024x128xf32>
    %cst_8 = arith.constant 1.000000e-01 : f32
    %11 = vector.broadcast %cst_8 : f32 to vector<1024x128xf32>
    %12 = arith.mulf %11, %8 : vector<1024x128xf32>
    %13 = arith.select %10, %8, %12 : vector<1024x128xi1>, vector<1024x128xf32>
    %14 = arith.truncf %13 : vector<1024x128xf32> to vector<1024x128xbf16>
    %c0_9 = arith.constant 0 : index
    %c0_10 = arith.constant 0 : index
    %15 = vector.load %arg5[%c0_9, %c0_10] : memref<1024x128xbf16, #tpu.memory_space<vmem>>, vector<1024x128xbf16>
    tpu.vector_store %arg5[%c0_9, %c0_10], %14 {strides = array<i32>} : memref<1024x128xbf16, #tpu.memory_space<vmem>>, vector<1024x128xbf16>,
    return
  }
  func.func @transform_0(%arg0: i32) -> (i32, i32) {
    %c0_i32 = arith.constant 0 : i32
    %c0_i32_0 = arith.constant 0 : i32
    return %arg0, %c0_i32 : i32, i32
  }
  func.func @transform_1(%arg0: i32) -> (i32, i32) {
    %c0_i32 = arith.constant 0 : i32
    %c0_i32_0 = arith.constant 0 : i32
    %c0_i32_1 = arith.constant 0 : i32
    return %c0_i32, %c0_i32_0 : i32, i32
  }
  func.func @transform_2(%arg0: i32) -> (i32, i32) {
    %c0_i32 = arith.constant 0 : i32
    %c0_i32_0 = arith.constant 0 : i32
    %c0_i32_1 = arith.constant 0 : i32
    return %c0_i32, %c0_i32_0 : i32, i32
  }
  func.func @transform_3(%arg0: i32) -> (i32, i32) {
    %c0_i32 = arith.constant 0 : i32
    %c0_i32_0 = arith.constant 0 : i32
    %c0_i32_1 = arith.constant 0 : i32
    return %c0_i32, %c0_i32_0 : i32, i32
  }
  func.func @transform_4(%arg0: i32) -> (i32, i32) {
    %c0_i32 = arith.constant 0 : i32
    %c0_i32_0 = arith.constant 0 : i32
    return %arg0, %c0_i32 : i32, i32
  }
}

module attributes {stable_mosaic.version = 11 : i64} {
  func.func @_conv_bn_lrelu_kernel(%arg0: i32, %arg1: memref<256x2048xbf16, #tpu.memory_space<vmem>>, %arg2: memref<2048x128xbf16, #tpu.memory_space<vmem>>, %arg3: memref<1x128xf32, #tpu.memory_space<vmem>>, %arg4: memref<1x128xf32, #tpu.memory_space<vmem>>, %arg5: memref<256x128xbf16, #tpu.memory_space<vmem>>) attributes {dimension_semantics = [#tpu.dimension_semantics<parallel>], iteration_bounds = array<i64: 2>, scalar_prefetch = 0 : i64, scratch_operands = 0 : i64, tpu.core_type = #tpu.core_type<tc>, window_params = [{transform_indices = @transform_0, window_bounds = array<i64: 256, 2048>}, {pipeline_mode = #tpu.pipeline_mode<synchronous>, transform_indices = @transform_1, window_bounds = array<i64: 2048, 128>}, {pipeline_mode = #tpu.pipeline_mode<synchronous>, transform_indices = @transform_2, window_bounds = array<i64: 1, 128>}, {pipeline_mode = #tpu.pipeline_mode<synchronous>, transform_indices = @transform_3, window_bounds = array<i64: 1, 128>}, {transform_indices = @transform_4, window_bounds = array<i64: 256, 128>}]} {
    %c0 = arith.constant 0 : index
    %c0_0 = arith.constant 0 : index
    %0 = vector.load %arg1[%c0, %c0_0] : memref<256x2048xbf16, #tpu.memory_space<vmem>>, vector<256x2048xbf16>
    %c0_1 = arith.constant 0 : index
    %c0_2 = arith.constant 0 : index
    %1 = vector.load %arg2[%c0_1, %c0_2] : memref<2048x128xbf16, #tpu.memory_space<vmem>>, vector<2048x128xbf16>
    %cst = arith.constant dense<0.000000e+00> : vector<256x128xf32>
    %2 = tpu.matmul %0, %1, %cst {dimension_numbers = #tpu.dot_dimension_numbers<[1], [0], [0], [1], [0, 0, 1, 1], [], []>} : vector<256x2048xbf16>, vector<2048x128xbf16>, vector<256x128xf32> -> vector<256x128xf32>
    %c0_3 = arith.constant 0 : index
    %c0_4 = arith.constant 0 : index
    %3 = vector.load %arg3[%c0_3, %c0_4] : memref<1x128xf32, #tpu.memory_space<vmem>>, vector<1x128xf32>
    %4 = vector.broadcast %3 : vector<1x128xf32> to vector<256x128xf32>
    %5 = arith.mulf %2, %4 : vector<256x128xf32>
    %c0_5 = arith.constant 0 : index
    %c0_6 = arith.constant 0 : index
    %6 = vector.load %arg4[%c0_5, %c0_6] : memref<1x128xf32, #tpu.memory_space<vmem>>, vector<1x128xf32>
    %7 = vector.broadcast %6 : vector<1x128xf32> to vector<256x128xf32>
    %8 = arith.addf %5, %7 : vector<256x128xf32>
    %cst_7 = arith.constant 0.000000e+00 : f32
    %9 = vector.broadcast %cst_7 : f32 to vector<256x128xf32>
    %10 = arith.cmpf ogt, %8, %9 : vector<256x128xf32>
    %cst_8 = arith.constant 1.000000e-01 : f32
    %11 = vector.broadcast %cst_8 : f32 to vector<256x128xf32>
    %12 = arith.mulf %11, %8 : vector<256x128xf32>
    %13 = arith.select %10, %8, %12 : vector<256x128xi1>, vector<256x128xf32>
    %14 = arith.truncf %13 : vector<256x128xf32> to vector<256x128xbf16>
    %c0_9 = arith.constant 0 : index
    %c0_10 = arith.constant 0 : index
    %15 = vector.load %arg5[%c0_9, %c0_10] : memref<256x128xbf16, #tpu.memory_space<vmem>>, vector<256x128xbf16>
    tpu.vector_store %arg5[%c0_9, %c0_10], %14 {strides = array<i32>} : memref<256x128xbf16, #tpu.memory_space<vmem>>, vector<256x128xbf16>,
    return
  }
  func.func @transform_0(%arg0: i32) -> (i32, i32) {
    %c0_i32 = arith.constant 0 : i32
    %c0_i32_0 = arith.constant 0 : i32
    return %arg0, %c0_i32 : i32, i32
  }
  func.func @transform_1(%arg0: i32) -> (i32, i32) {
    %c0_i32 = arith.constant 0 : i32
    %c0_i32_0 = arith.constant 0 : i32
    %c0_i32_1 = arith.constant 0 : i32
    return %c0_i32, %c0_i32_0 : i32, i32
  }
  func.func @transform_2(%arg0: i32) -> (i32, i32) {
    %c0_i32 = arith.constant 0 : i32
    %c0_i32_0 = arith.constant 0 : i32
    %c0_i32_1 = arith.constant 0 : i32
    return %c0_i32, %c0_i32_0 : i32, i32
  }
  func.func @transform_3(%arg0: i32) -> (i32, i32) {
    %c0_i32 = arith.constant 0 : i32
    %c0_i32_0 = arith.constant 0 : i32
    %c0_i32_1 = arith.constant 0 : i32
    return %c0_i32, %c0_i32_0 : i32, i32
  }
  func.func @transform_4(%arg0: i32) -> (i32, i32) {
    %c0_i32 = arith.constant 0 : i32
    %c0_i32_0 = arith.constant 0 : i32
    return %arg0, %c0_i32 : i32, i32
  }
}

module attributes {stable_mosaic.version = 11 : i64} {
  func.func @_conv3_conv4_fc_kernel(%arg0: memref<128x2048xbf16, #tpu.memory_space<vmem>>, %arg1: memref<2048x128xbf16, #tpu.memory_space<vmem>>, %arg2: memref<1x128xf32, #tpu.memory_space<vmem>>, %arg3: memref<1x128xf32, #tpu.memory_space<vmem>>, %arg4: memref<512x128xbf16, #tpu.memory_space<vmem>>, %arg5: memref<2048x128xbf16, #tpu.memory_space<vmem>>, %arg6: memref<1x128xf32, #tpu.memory_space<vmem>>, %arg7: memref<1x128xf32, #tpu.memory_space<vmem>>, %arg8: memref<16x128xf32, #tpu.memory_space<vmem>>, %arg9: memref<1x1xf32, #tpu.memory_space<vmem>>, %arg10: memref<2x1xf32, #tpu.memory_space<vmem>>) attributes {dimension_semantics = [], scalar_prefetch = 0 : i64, scratch_operands = 0 : i64, tpu.core_type = #tpu.core_type<tc>} {
    %c0 = arith.constant 0 : index
    %c0_0 = arith.constant 0 : index
    %0 = vector.load %arg0[%c0, %c0_0] : memref<128x2048xbf16, #tpu.memory_space<vmem>>, vector<128x2048xbf16>
    %c0_1 = arith.constant 0 : index
    %c0_2 = arith.constant 0 : index
    %1 = vector.load %arg1[%c0_1, %c0_2] : memref<2048x128xbf16, #tpu.memory_space<vmem>>, vector<2048x128xbf16>
    %cst = arith.constant dense<0.000000e+00> : vector<128x128xf32>
    %2 = tpu.matmul %0, %1, %cst {dimension_numbers = #tpu.dot_dimension_numbers<[1], [0], [0], [1], [0, 0, 1, 1], [], []>} : vector<128x2048xbf16>, vector<2048x128xbf16>, vector<128x128xf32> -> vector<128x128xf32>
    %c0_3 = arith.constant 0 : index
    %c0_4 = arith.constant 0 : index
    %3 = vector.load %arg2[%c0_3, %c0_4] : memref<1x128xf32, #tpu.memory_space<vmem>>, vector<1x128xf32>
    %4 = vector.broadcast %3 : vector<1x128xf32> to vector<128x128xf32>
    %5 = arith.mulf %2, %4 : vector<128x128xf32>
    %c0_5 = arith.constant 0 : index
    %c0_6 = arith.constant 0 : index
    %6 = vector.load %arg3[%c0_5, %c0_6] : memref<1x128xf32, #tpu.memory_space<vmem>>, vector<1x128xf32>
    %7 = vector.broadcast %6 : vector<1x128xf32> to vector<128x128xf32>
    %8 = arith.addf %5, %7 : vector<128x128xf32>
    %cst_7 = arith.constant 0.000000e+00 : f32
    %9 = vector.broadcast %cst_7 : f32 to vector<128x128xf32>
    %10 = arith.cmpf ogt, %8, %9 : vector<128x128xf32>
    %cst_8 = arith.constant 1.000000e-01 : f32
    %11 = vector.broadcast %cst_8 : f32 to vector<128x128xf32>
    %12 = arith.mulf %11, %8 : vector<128x128xf32>
    %13 = arith.select %10, %8, %12 : vector<128x128xi1>, vector<128x128xf32>
    %14 = arith.truncf %13 : vector<128x128xf32> to vector<128x128xbf16>
    %cst_9 = arith.constant 0.000000e+00 : f32
    %15 = vector.broadcast %cst_9 : f32 to vector<32x128xf32>
    %c0_10 = arith.constant 0 : index
    %c0_11 = arith.constant 0 : index
    %16 = vector.load %arg4[%c0_10, %c0_11] : memref<512x128xbf16, #tpu.memory_space<vmem>>, vector<32x128xbf16>
    %cst_12 = arith.constant dense<0.000000e+00> : vector<32x128xf32>
    %17 = tpu.matmul %16, %14, %cst_12 {dimension_numbers = #tpu.dot_dimension_numbers<[1], [0], [0], [1], [0, 0, 1, 1], [], []>} : vector<32x128xbf16>, vector<128x128xbf16>, vector<32x128xf32> -> vector<32x128xf32>
    %c0_13 = arith.constant 0 : index
    %c0_14 = arith.constant 0 : index
    %18 = vector.load %arg5[%c0_13, %c0_14] : memref<2048x128xbf16, #tpu.memory_space<vmem>>, vector<128x128xbf16>
    %19 = arith.truncf %17 : vector<32x128xf32> to vector<32x128xbf16>
    %cst_15 = arith.constant dense<0.000000e+00> : vector<32x128xf32>
    %20 = tpu.matmul %19, %18, %cst_15 {dimension_numbers = #tpu.dot_dimension_numbers<[1], [0], [0], [1], [0, 0, 1, 1], [], []>} : vector<32x128xbf16>, vector<128x128xbf16>, vector<32x128xf32> -> vector<32x128xf32>
    %21 = arith.addf %15, %20 : vector<32x128xf32>
    %c32 = arith.constant 32 : index
    %c0_16 = arith.constant 0 : index
    %22 = vector.load %arg4[%c32, %c0_16] : memref<512x128xbf16, #tpu.memory_space<vmem>>, vector<32x128xbf16>
    %cst_17 = arith.constant dense<0.000000e+00> : vector<32x128xf32>
    %23 = tpu.matmul %22, %14, %cst_17 {dimension_numbers = #tpu.dot_dimension_numbers<[1], [0], [0], [1], [0, 0, 1, 1], [], []>} : vector<32x128xbf16>, vector<128x128xbf16>, vector<32x128xf32> -> vector<32x128xf32>
    %c128 = arith.constant 128 : index
    %c0_18 = arith.constant 0 : index
    %24 = vector.load %arg5[%c128, %c0_18] : memref<2048x128xbf16, #tpu.memory_space<vmem>>, vector<128x128xbf16>
    %25 = arith.truncf %23 : vector<32x128xf32> to vector<32x128xbf16>
    %cst_19 = arith.constant dense<0.000000e+00> : vector<32x128xf32>
    %26 = tpu.matmul %25, %24, %cst_19 {dimension_numbers = #tpu.dot_dimension_numbers<[1], [0], [0], [1], [0, 0, 1, 1], [], []>} : vector<32x128xbf16>, vector<128x128xbf16>, vector<32x128xf32> -> vector<32x128xf32>
    %27 = arith.addf %21, %26 : vector<32x128xf32>
    %c64 = arith.constant 64 : index
    %c0_20 = arith.constant 0 : index
    %28 = vector.load %arg4[%c64, %c0_20] : memref<512x128xbf16, #tpu.memory_space<vmem>>, vector<32x128xbf16>
    %cst_21 = arith.constant dense<0.000000e+00> : vector<32x128xf32>
    %29 = tpu.matmul %28, %14, %cst_21 {dimension_numbers = #tpu.dot_dimension_numbers<[1], [0], [0], [1], [0, 0, 1, 1], [], []>} : vector<32x128xbf16>, vector<128x128xbf16>, vector<32x128xf32> -> vector<32x128xf32>
    %c256 = arith.constant 256 : index
    %c0_22 = arith.constant 0 : index
    %30 = vector.load %arg5[%c256, %c0_22] : memref<2048x128xbf16, #tpu.memory_space<vmem>>, vector<128x128xbf16>
    %31 = arith.truncf %29 : vector<32x128xf32> to vector<32x128xbf16>
    %cst_23 = arith.constant dense<0.000000e+00> : vector<32x128xf32>
    %32 = tpu.matmul %31, %30, %cst_23 {dimension_numbers = #tpu.dot_dimension_numbers<[1], [0], [0], [1], [0, 0, 1, 1], [], []>} : vector<32x128xbf16>, vector<128x128xbf16>, vector<32x128xf32> -> vector<32x128xf32>
    %33 = arith.addf %27, %32 : vector<32x128xf32>
    %c96 = arith.constant 96 : index
    %c0_24 = arith.constant 0 : index
    %34 = vector.load %arg4[%c96, %c0_24] : memref<512x128xbf16, #tpu.memory_space<vmem>>, vector<32x128xbf16>
    %cst_25 = arith.constant dense<0.000000e+00> : vector<32x128xf32>
    %35 = tpu.matmul %34, %14, %cst_25 {dimension_numbers = #tpu.dot_dimension_numbers<[1], [0], [0], [1], [0, 0, 1, 1], [], []>} : vector<32x128xbf16>, vector<128x128xbf16>, vector<32x128xf32> -> vector<32x128xf32>
    %c384 = arith.constant 384 : index
    %c0_26 = arith.constant 0 : index
    %36 = vector.load %arg5[%c384, %c0_26] : memref<2048x128xbf16, #tpu.memory_space<vmem>>, vector<128x128xbf16>
    %37 = arith.truncf %35 : vector<32x128xf32> to vector<32x128xbf16>
    %cst_27 = arith.constant dense<0.000000e+00> : vector<32x128xf32>
    %38 = tpu.matmul %37, %36, %cst_27 {dimension_numbers = #tpu.dot_dimension_numbers<[1], [0], [0], [1], [0, 0, 1, 1], [], []>} : vector<32x128xbf16>, vector<128x128xbf16>, vector<32x128xf32> -> vector<32x128xf32>
    %39 = arith.addf %33, %38 : vector<32x128xf32>
    %c128_28 = arith.constant 128 : index
    %c0_29 = arith.constant 0 : index
    %40 = vector.load %arg4[%c128_28, %c0_29] : memref<512x128xbf16, #tpu.memory_space<vmem>>, vector<32x128xbf16>
    %cst_30 = arith.constant dense<0.000000e+00> : vector<32x128xf32>
    %41 = tpu.matmul %40, %14, %cst_30 {dimension_numbers = #tpu.dot_dimension_numbers<[1], [0], [0], [1], [0, 0, 1, 1], [], []>} : vector<32x128xbf16>, vector<128x128xbf16>, vector<32x128xf32> -> vector<32x128xf32>
    %c512 = arith.constant 512 : index
    %c0_31 = arith.constant 0 : index
    %42 = vector.load %arg5[%c512, %c0_31] : memref<2048x128xbf16, #tpu.memory_space<vmem>>, vector<128x128xbf16>
    %43 = arith.truncf %41 : vector<32x128xf32> to vector<32x128xbf16>
    %cst_32 = arith.constant dense<0.000000e+00> : vector<32x128xf32>
    %44 = tpu.matmul %43, %42, %cst_32 {dimension_numbers = #tpu.dot_dimension_numbers<[1], [0], [0], [1], [0, 0, 1, 1], [], []>} : vector<32x128xbf16>, vector<128x128xbf16>, vector<32x128xf32> -> vector<32x128xf32>
    %45 = arith.addf %39, %44 : vector<32x128xf32>
    %c160 = arith.constant 160 : index
    %c0_33 = arith.constant 0 : index
    %46 = vector.load %arg4[%c160, %c0_33] : memref<512x128xbf16, #tpu.memory_space<vmem>>, vector<32x128xbf16>
    %cst_34 = arith.constant dense<0.000000e+00> : vector<32x128xf32>
    %47 = tpu.matmul %46, %14, %cst_34 {dimension_numbers = #tpu.dot_dimension_numbers<[1], [0], [0], [1], [0, 0, 1, 1], [], []>} : vector<32x128xbf16>, vector<128x128xbf16>, vector<32x128xf32> -> vector<32x128xf32>
    %c640 = arith.constant 640 : index
    %c0_35 = arith.constant 0 : index
    %48 = vector.load %arg5[%c640, %c0_35] : memref<2048x128xbf16, #tpu.memory_space<vmem>>, vector<128x128xbf16>
    %49 = arith.truncf %47 : vector<32x128xf32> to vector<32x128xbf16>
    %cst_36 = arith.constant dense<0.000000e+00> : vector<32x128xf32>
    %50 = tpu.matmul %49, %48, %cst_36 {dimension_numbers = #tpu.dot_dimension_numbers<[1], [0], [0], [1], [0, 0, 1, 1], [], []>} : vector<32x128xbf16>, vector<128x128xbf16>, vector<32x128xf32> -> vector<32x128xf32>
    %51 = arith.addf %45, %50 : vector<32x128xf32>
    %c192 = arith.constant 192 : index
    %c0_37 = arith.constant 0 : index
    %52 = vector.load %arg4[%c192, %c0_37] : memref<512x128xbf16, #tpu.memory_space<vmem>>, vector<32x128xbf16>
    %cst_38 = arith.constant dense<0.000000e+00> : vector<32x128xf32>
    %53 = tpu.matmul %52, %14, %cst_38 {dimension_numbers = #tpu.dot_dimension_numbers<[1], [0], [0], [1], [0, 0, 1, 1], [], []>} : vector<32x128xbf16>, vector<128x128xbf16>, vector<32x128xf32> -> vector<32x128xf32>
    %c768 = arith.constant 768 : index
    %c0_39 = arith.constant 0 : index
    %54 = vector.load %arg5[%c768, %c0_39] : memref<2048x128xbf16, #tpu.memory_space<vmem>>, vector<128x128xbf16>
    %55 = arith.truncf %53 : vector<32x128xf32> to vector<32x128xbf16>
    %cst_40 = arith.constant dense<0.000000e+00> : vector<32x128xf32>
    %56 = tpu.matmul %55, %54, %cst_40 {dimension_numbers = #tpu.dot_dimension_numbers<[1], [0], [0], [1], [0, 0, 1, 1], [], []>} : vector<32x128xbf16>, vector<128x128xbf16>, vector<32x128xf32> -> vector<32x128xf32>
    %57 = arith.addf %51, %56 : vector<32x128xf32>
    %c224 = arith.constant 224 : index
    %c0_41 = arith.constant 0 : index
    %58 = vector.load %arg4[%c224, %c0_41] : memref<512x128xbf16, #tpu.memory_space<vmem>>, vector<32x128xbf16>
    %cst_42 = arith.constant dense<0.000000e+00> : vector<32x128xf32>
    %59 = tpu.matmul %58, %14, %cst_42 {dimension_numbers = #tpu.dot_dimension_numbers<[1], [0], [0], [1], [0, 0, 1, 1], [], []>} : vector<32x128xbf16>, vector<128x128xbf16>, vector<32x128xf32> -> vector<32x128xf32>
    %c896 = arith.constant 896 : index
    %c0_43 = arith.constant 0 : index
    %60 = vector.load %arg5[%c896, %c0_43] : memref<2048x128xbf16, #tpu.memory_space<vmem>>, vector<128x128xbf16>
    %61 = arith.truncf %59 : vector<32x128xf32> to vector<32x128xbf16>
    %cst_44 = arith.constant dense<0.000000e+00> : vector<32x128xf32>
    %62 = tpu.matmul %61, %60, %cst_44 {dimension_numbers = #tpu.dot_dimension_numbers<[1], [0], [0], [1], [0, 0, 1, 1], [], []>} : vector<32x128xbf16>, vector<128x128xbf16>, vector<32x128xf32> -> vector<32x128xf32>
    %63 = arith.addf %57, %62 : vector<32x128xf32>
    %c256_45 = arith.constant 256 : index
    %c0_46 = arith.constant 0 : index
    %64 = vector.load %arg4[%c256_45, %c0_46] : memref<512x128xbf16, #tpu.memory_space<vmem>>, vector<32x128xbf16>
    %cst_47 = arith.constant dense<0.000000e+00> : vector<32x128xf32>
    %65 = tpu.matmul %64, %14, %cst_47 {dimension_numbers = #tpu.dot_dimension_numbers<[1], [0], [0], [1], [0, 0, 1, 1], [], []>} : vector<32x128xbf16>, vector<128x128xbf16>, vector<32x128xf32> -> vector<32x128xf32>
    %c1024 = arith.constant 1024 : index
    %c0_48 = arith.constant 0 : index
    %66 = vector.load %arg5[%c1024, %c0_48] : memref<2048x128xbf16, #tpu.memory_space<vmem>>, vector<128x128xbf16>
    %67 = arith.truncf %65 : vector<32x128xf32> to vector<32x128xbf16>
    %cst_49 = arith.constant dense<0.000000e+00> : vector<32x128xf32>
    %68 = tpu.matmul %67, %66, %cst_49 {dimension_numbers = #tpu.dot_dimension_numbers<[1], [0], [0], [1], [0, 0, 1, 1], [], []>} : vector<32x128xbf16>, vector<128x128xbf16>, vector<32x128xf32> -> vector<32x128xf32>
    %69 = arith.addf %63, %68 : vector<32x128xf32>
    %c288 = arith.constant 288 : index
    %c0_50 = arith.constant 0 : index
    %70 = vector.load %arg4[%c288, %c0_50] : memref<512x128xbf16, #tpu.memory_space<vmem>>, vector<32x128xbf16>
    %cst_51 = arith.constant dense<0.000000e+00> : vector<32x128xf32>
    %71 = tpu.matmul %70, %14, %cst_51 {dimension_numbers = #tpu.dot_dimension_numbers<[1], [0], [0], [1], [0, 0, 1, 1], [], []>} : vector<32x128xbf16>, vector<128x128xbf16>, vector<32x128xf32> -> vector<32x128xf32>
    %c1152 = arith.constant 1152 : index
    %c0_52 = arith.constant 0 : index
    %72 = vector.load %arg5[%c1152, %c0_52] : memref<2048x128xbf16, #tpu.memory_space<vmem>>, vector<128x128xbf16>
    %73 = arith.truncf %71 : vector<32x128xf32> to vector<32x128xbf16>
    %cst_53 = arith.constant dense<0.000000e+00> : vector<32x128xf32>
    %74 = tpu.matmul %73, %72, %cst_53 {dimension_numbers = #tpu.dot_dimension_numbers<[1], [0], [0], [1], [0, 0, 1, 1], [], []>} : vector<32x128xbf16>, vector<128x128xbf16>, vector<32x128xf32> -> vector<32x128xf32>
    %75 = arith.addf %69, %74 : vector<32x128xf32>
    %c320 = arith.constant 320 : index
    %c0_54 = arith.constant 0 : index
    %76 = vector.load %arg4[%c320, %c0_54] : memref<512x128xbf16, #tpu.memory_space<vmem>>, vector<32x128xbf16>
    %cst_55 = arith.constant dense<0.000000e+00> : vector<32x128xf32>
    %77 = tpu.matmul %76, %14, %cst_55 {dimension_numbers = #tpu.dot_dimension_numbers<[1], [0], [0], [1], [0, 0, 1, 1], [], []>} : vector<32x128xbf16>, vector<128x128xbf16>, vector<32x128xf32> -> vector<32x128xf32>
    %c1280 = arith.constant 1280 : index
    %c0_56 = arith.constant 0 : index
    %78 = vector.load %arg5[%c1280, %c0_56] : memref<2048x128xbf16, #tpu.memory_space<vmem>>, vector<128x128xbf16>
    %79 = arith.truncf %77 : vector<32x128xf32> to vector<32x128xbf16>
    %cst_57 = arith.constant dense<0.000000e+00> : vector<32x128xf32>
    %80 = tpu.matmul %79, %78, %cst_57 {dimension_numbers = #tpu.dot_dimension_numbers<[1], [0], [0], [1], [0, 0, 1, 1], [], []>} : vector<32x128xbf16>, vector<128x128xbf16>, vector<32x128xf32> -> vector<32x128xf32>
    %81 = arith.addf %75, %80 : vector<32x128xf32>
    %c352 = arith.constant 352 : index
    %c0_58 = arith.constant 0 : index
    %82 = vector.load %arg4[%c352, %c0_58] : memref<512x128xbf16, #tpu.memory_space<vmem>>, vector<32x128xbf16>
    %cst_59 = arith.constant dense<0.000000e+00> : vector<32x128xf32>
    %83 = tpu.matmul %82, %14, %cst_59 {dimension_numbers = #tpu.dot_dimension_numbers<[1], [0], [0], [1], [0, 0, 1, 1], [], []>} : vector<32x128xbf16>, vector<128x128xbf16>, vector<32x128xf32> -> vector<32x128xf32>
    %c1408 = arith.constant 1408 : index
    %c0_60 = arith.constant 0 : index
    %84 = vector.load %arg5[%c1408, %c0_60] : memref<2048x128xbf16, #tpu.memory_space<vmem>>, vector<128x128xbf16>
    %85 = arith.truncf %83 : vector<32x128xf32> to vector<32x128xbf16>
    %cst_61 = arith.constant dense<0.000000e+00> : vector<32x128xf32>
    %86 = tpu.matmul %85, %84, %cst_61 {dimension_numbers = #tpu.dot_dimension_numbers<[1], [0], [0], [1], [0, 0, 1, 1], [], []>} : vector<32x128xbf16>, vector<128x128xbf16>, vector<32x128xf32> -> vector<32x128xf32>
    %87 = arith.addf %81, %86 : vector<32x128xf32>
    %c384_62 = arith.constant 384 : index
    %c0_63 = arith.constant 0 : index
    %88 = vector.load %arg4[%c384_62, %c0_63] : memref<512x128xbf16, #tpu.memory_space<vmem>>, vector<32x128xbf16>
    %cst_64 = arith.constant dense<0.000000e+00> : vector<32x128xf32>
    %89 = tpu.matmul %88, %14, %cst_64 {dimension_numbers = #tpu.dot_dimension_numbers<[1], [0], [0], [1], [0, 0, 1, 1], [], []>} : vector<32x128xbf16>, vector<128x128xbf16>, vector<32x128xf32> -> vector<32x128xf32>
    %c1536 = arith.constant 1536 : index
    %c0_65 = arith.constant 0 : index
    %90 = vector.load %arg5[%c1536, %c0_65] : memref<2048x128xbf16, #tpu.memory_space<vmem>>, vector<128x128xbf16>
    %91 = arith.truncf %89 : vector<32x128xf32> to vector<32x128xbf16>
    %cst_66 = arith.constant dense<0.000000e+00> : vector<32x128xf32>
    %92 = tpu.matmul %91, %90, %cst_66 {dimension_numbers = #tpu.dot_dimension_numbers<[1], [0], [0], [1], [0, 0, 1, 1], [], []>} : vector<32x128xbf16>, vector<128x128xbf16>, vector<32x128xf32> -> vector<32x128xf32>
    %93 = arith.addf %87, %92 : vector<32x128xf32>
    %c416 = arith.constant 416 : index
    %c0_67 = arith.constant 0 : index
    %94 = vector.load %arg4[%c416, %c0_67] : memref<512x128xbf16, #tpu.memory_space<vmem>>, vector<32x128xbf16>
    %cst_68 = arith.constant dense<0.000000e+00> : vector<32x128xf32>
    %95 = tpu.matmul %94, %14, %cst_68 {dimension_numbers = #tpu.dot_dimension_numbers<[1], [0], [0], [1], [0, 0, 1, 1], [], []>} : vector<32x128xbf16>, vector<128x128xbf16>, vector<32x128xf32> -> vector<32x128xf32>
    %c1664 = arith.constant 1664 : index
    %c0_69 = arith.constant 0 : index
    %96 = vector.load %arg5[%c1664, %c0_69] : memref<2048x128xbf16, #tpu.memory_space<vmem>>, vector<128x128xbf16>
    %97 = arith.truncf %95 : vector<32x128xf32> to vector<32x128xbf16>
    %cst_70 = arith.constant dense<0.000000e+00> : vector<32x128xf32>
    %98 = tpu.matmul %97, %96, %cst_70 {dimension_numbers = #tpu.dot_dimension_numbers<[1], [0], [0], [1], [0, 0, 1, 1], [], []>} : vector<32x128xbf16>, vector<128x128xbf16>, vector<32x128xf32> -> vector<32x128xf32>
    %99 = arith.addf %93, %98 : vector<32x128xf32>
    %c448 = arith.constant 448 : index
    %c0_71 = arith.constant 0 : index
    %100 = vector.load %arg4[%c448, %c0_71] : memref<512x128xbf16, #tpu.memory_space<vmem>>, vector<32x128xbf16>
    %cst_72 = arith.constant dense<0.000000e+00> : vector<32x128xf32>
    %101 = tpu.matmul %100, %14, %cst_72 {dimension_numbers = #tpu.dot_dimension_numbers<[1], [0], [0], [1], [0, 0, 1, 1], [], []>} : vector<32x128xbf16>, vector<128x128xbf16>, vector<32x128xf32> -> vector<32x128xf32>
    %c1792 = arith.constant 1792 : index
    %c0_73 = arith.constant 0 : index
    %102 = vector.load %arg5[%c1792, %c0_73] : memref<2048x128xbf16, #tpu.memory_space<vmem>>, vector<128x128xbf16>
    %103 = arith.truncf %101 : vector<32x128xf32> to vector<32x128xbf16>
    %cst_74 = arith.constant dense<0.000000e+00> : vector<32x128xf32>
    %104 = tpu.matmul %103, %102, %cst_74 {dimension_numbers = #tpu.dot_dimension_numbers<[1], [0], [0], [1], [0, 0, 1, 1], [], []>} : vector<32x128xbf16>, vector<128x128xbf16>, vector<32x128xf32> -> vector<32x128xf32>
    %105 = arith.addf %99, %104 : vector<32x128xf32>
    %c480 = arith.constant 480 : index
    %c0_75 = arith.constant 0 : index
    %106 = vector.load %arg4[%c480, %c0_75] : memref<512x128xbf16, #tpu.memory_space<vmem>>, vector<32x128xbf16>
    %cst_76 = arith.constant dense<0.000000e+00> : vector<32x128xf32>
    %107 = tpu.matmul %106, %14, %cst_76 {dimension_numbers = #tpu.dot_dimension_numbers<[1], [0], [0], [1], [0, 0, 1, 1], [], []>} : vector<32x128xbf16>, vector<128x128xbf16>, vector<32x128xf32> -> vector<32x128xf32>
    %c1920 = arith.constant 1920 : index
    %c0_77 = arith.constant 0 : index
    %108 = vector.load %arg5[%c1920, %c0_77] : memref<2048x128xbf16, #tpu.memory_space<vmem>>, vector<128x128xbf16>
    %109 = arith.truncf %107 : vector<32x128xf32> to vector<32x128xbf16>
    %cst_78 = arith.constant dense<0.000000e+00> : vector<32x128xf32>
    %110 = tpu.matmul %109, %108, %cst_78 {dimension_numbers = #tpu.dot_dimension_numbers<[1], [0], [0], [1], [0, 0, 1, 1], [], []>} : vector<32x128xbf16>, vector<128x128xbf16>, vector<32x128xf32> -> vector<32x128xf32>
    %111 = arith.addf %105, %110 : vector<32x128xf32>
    %c0_79 = arith.constant 0 : index
    %c0_80 = arith.constant 0 : index
    %112 = vector.load %arg6[%c0_79, %c0_80] : memref<1x128xf32, #tpu.memory_space<vmem>>, vector<1x128xf32>
    %113 = vector.broadcast %112 : vector<1x128xf32> to vector<32x128xf32>
    %114 = arith.mulf %111, %113 : vector<32x128xf32>
    %c0_81 = arith.constant 0 : index
    %c0_82 = arith.constant 0 : index
    %115 = vector.load %arg7[%c0_81, %c0_82] : memref<1x128xf32, #tpu.memory_space<vmem>>, vector<1x128xf32>
    %116 = vector.broadcast %115 : vector<1x128xf32> to vector<32x128xf32>
    %117 = arith.addf %114, %116 : vector<32x128xf32>
    %cst_83 = arith.constant 0.000000e+00 : f32
    %118 = vector.broadcast %cst_83 : f32 to vector<32x128xf32>
    %119 = arith.cmpf ogt, %117, %118 : vector<32x128xf32>
    %cst_84 = arith.constant 1.000000e-01 : f32
    %120 = vector.broadcast %cst_84 : f32 to vector<32x128xf32>
    %121 = arith.mulf %120, %117 : vector<32x128xf32>
    %122 = arith.select %119, %117, %121 : vector<32x128xi1>, vector<32x128xf32>
    %123 = vector.extract_strided_slice %122 {offsets = [0, 0], sizes = [16, 128], strides = [1, 1]} : vector<32x128xf32> to vector<16x128xf32>
    %c0_85 = arith.constant 0 : index
    %c0_86 = arith.constant 0 : index
    %124 = vector.load %arg8[%c0_85, %c0_86] : memref<16x128xf32, #tpu.memory_space<vmem>>, vector<16x128xf32>
    %125 = arith.mulf %123, %124 : vector<16x128xf32>
    %126 = vector.shape_cast %125 : vector<16x128xf32> to vector<1x16x128xf32>
    %cst_87 = arith.constant dense<0.000000e+00> : vector<1xf32>
    %127 = vector.multi_reduction <add>, %126, %cst_87 [1, 2] : vector<1x16x128xf32> to vector<1xf32>
    %128 = vector.shape_cast %127 : vector<1xf32> to vector<1x1x1xf32>
    %129 = vector.extract %128[0, 0, 0] : f32 from vector<1x1x1xf32>
    %130 = vector.broadcast %129 : f32 to vector<1x1xf32>
    %c0_88 = arith.constant 0 : index
    %c0_89 = arith.constant 0 : index
    %131 = vector.load %arg9[%c0_88, %c0_89] : memref<1x1xf32, #tpu.memory_space<vmem>>, vector<1x1xf32>
    %132 = arith.addf %130, %131 : vector<1x1xf32>
    %cst_90 = arith.constant 0.000000e+00 : f32
    %133 = vector.broadcast %cst_90 : f32 to vector<1x1xf32>
    %134 = arith.subf %133, %132 : vector<1x1xf32>
    %135 = math.exp %134 : vector<1x1xf32>
    %cst_91 = arith.constant 1.000000e+00 : f32
    %136 = vector.broadcast %cst_91 : f32 to vector<1x1xf32>
    %137 = arith.addf %136, %135 : vector<1x1xf32>
    %cst_92 = arith.constant 1.000000e+00 : f32
    %138 = vector.broadcast %cst_92 : f32 to vector<1x1xf32>
    %139 = arith.divf %138, %137 : vector<1x1xf32>
    %c0_93 = arith.constant 0 : index
    %c0_94 = arith.constant 0 : index
    %140 = vector.load %arg10[%c0_93, %c0_94] : memref<2x1xf32, #tpu.memory_space<vmem>>, vector<1x1xf32>
    tpu.vector_store %arg10[%c0_93, %c0_94], %139 {strides = array<i32>} : memref<2x1xf32, #tpu.memory_space<vmem>>, vector<1x1xf32>,
    %141 = vector.extract_strided_slice %122 {offsets = [16, 0], sizes = [16, 128], strides = [1, 1]} : vector<32x128xf32> to vector<16x128xf32>
    %c0_95 = arith.constant 0 : index
    %c0_96 = arith.constant 0 : index
    %142 = vector.load %arg8[%c0_95, %c0_96] : memref<16x128xf32, #tpu.memory_space<vmem>>, vector<16x128xf32>
    %143 = arith.mulf %141, %142 : vector<16x128xf32>
    %144 = vector.shape_cast %143 : vector<16x128xf32> to vector<1x16x128xf32>
    %cst_97 = arith.constant dense<0.000000e+00> : vector<1xf32>
    %145 = vector.multi_reduction <add>, %144, %cst_97 [1, 2] : vector<1x16x128xf32> to vector<1xf32>
    %146 = vector.shape_cast %145 : vector<1xf32> to vector<1x1x1xf32>
    %147 = vector.extract %146[0, 0, 0] : f32 from vector<1x1x1xf32>
    %148 = vector.broadcast %147 : f32 to vector<1x1xf32>
    %c0_98 = arith.constant 0 : index
    %c0_99 = arith.constant 0 : index
    %149 = vector.load %arg9[%c0_98, %c0_99] : memref<1x1xf32, #tpu.memory_space<vmem>>, vector<1x1xf32>
    %150 = arith.addf %148, %149 : vector<1x1xf32>
    %cst_100 = arith.constant 0.000000e+00 : f32
    %151 = vector.broadcast %cst_100 : f32 to vector<1x1xf32>
    %152 = arith.subf %151, %150 : vector<1x1xf32>
    %153 = math.exp %152 : vector<1x1xf32>
    %cst_101 = arith.constant 1.000000e+00 : f32
    %154 = vector.broadcast %cst_101 : f32 to vector<1x1xf32>
    %155 = arith.addf %154, %153 : vector<1x1xf32>
    %cst_102 = arith.constant 1.000000e+00 : f32
    %156 = vector.broadcast %cst_102 : f32 to vector<1x1xf32>
    %157 = arith.divf %156, %155 : vector<1x1xf32>
    %c1 = arith.constant 1 : index
    %c0_103 = arith.constant 0 : index
    %158 = vector.load %arg10[%c1, %c0_103] : memref<2x1xf32, #tpu.memory_space<vmem>>, vector<1x1xf32>
    tpu.vector_store %arg10[%c1, %c0_103], %157 {strides = array<i32>} : memref<2x1xf32, #tpu.memory_space<vmem>>, vector<1x1xf32>,
    return
  }
}

</mosaic_0001>

<bundles_post_ra>
// kernel: discriminator_forward.3
= control target key start
LH: loop header
LB: loop body
LE: loop exit
PB: predicated region body
PF: predicated region fallthrough
CT: control target
= control target key end

     0   :  { %9 = vsyncpa [#allocation3], 0  ;;  %s4929_s0 = inlined_call_operand.vmem [shape: bf16[2048,9], index: 0, kind: input, shape index: {}]   ;;  %s4930_s1 = inlined_call_operand.hbm [shape: bf16[9,128], index: 1, kind: input, shape index: {}]   ;;  %s4931_s2 = inlined_call_operand.hbm [shape: f32[1,128], index: 2, kind: input, shape index: {}]   ;;  %s4932_s3 = inlined_call_operand.hbm [shape: f32[1,128], index: 3, kind: input, shape index: {}]   ;;  %s4933_s4 = inlined_call_operand.vmem [shape: bf16[2048,128], index: 4, kind: output, shape index: {}]  }
   0x1   :  { %10 = vsyncpa [#allocation5], 0  ;;  %s4047_s15 = smov 0  }
   0x2 LB: > { %s4016_s16 = smov [#allocation4]   ;;  %s2823_s18 = sadd.s32 4294967295, %s4014_s15   ;;  %s4014_s15 = sphi %s4047_s15, %s16_s15  }
   0x3   : > { %s162_s17 = sshll.u32 %s4016_s16, 4  ;;  %p2825_p0 = scmp.ge.s32.totalorder %s4014_s15, 1  ;;  %s163_s17 = int_to_ptr.vmem [resolvable:$true] %s162_s17 }
   0x4   : > { %p136_p1 = scmp.lt.s32.totalorder %s4014_s15, 3  ;;  %p4057_p2 = scmp.eq.s32.totalorder %s2823_s18, 0 }
   0x5   : > { %s4017_s21 = smov [#allocation2]   ;;  %s4018_s24 = smov [#allocation6]  }
   0x6   : > { %s4937_s19 = scalar_select %p4057_p2, 1, 0 }
   0x7   : > { %p4061_p3 = pnand %p2825_p0, %p136_p1  ;;  %s148_s22 = sshll.u32 %s4017_s21, 4  ;;  %s4073_s22 = int_to_ptr.vmem [resolvable:$true] %s148_s22 }
   0x8   : > { %s173_s25 = sshll.u32 %s4018_s24, 4  ;;  %s3916_s28 = scalar_lea.hbm %s4931_s2, 16  ;;  %s4075_s25 = int_to_ptr.vmem [resolvable:$true] %s173_s25 }
   0x9   : > { %s4938_s20 = scalar_select %p4061_p3, 1, 0 }
   0xa   : > { %p3819_p4 = pneg %p4061_p3  ;;  %p3917_p6 = scmp.ne.s32.totalorder %s4931_s2, %s3916_s28 }
   0xb   : > { %p3923_p10 = scmp.lt.u32.totalorder %s3916_s28, %s4931_s2 }
   0xc   : > { %p4069_p5 = pnand %p4057_p2, %p3819_p4 }
   0xe   : > { %p4085_p7 = pneg %p4069_p5 }
  0x10   : > { %p3919_p8 = pnand %p4085_p7, %p3917_p6 }
  0x12   : > { %p3920_p9 = pneg %p3919_p8 }
  0x14   : > { %p3925_p11 = pnand %p3923_p10, %p3920_p9 }
  0x16   : > { %3928 = shalt.err (!%p3925_p11)
}
  0x17   : > { %s3929_s8 = scalar_lea.vmem %s163_s17, 16  ;;  %s3936_s9 = scalar_lea.vmem %s163_s17, 32 }
  0x18   : > { %p3930_p12 = scmp.ne.s32.totalorder %s163_s17, %s3929_s8  ;;  %p3937_p1 = scmp.lt.s32.totalorder %s163_s17, %s163_s17 }
  0x19   : > { %p3938_p4 = scmp.lt.s32.totalorder %s3936_s9, %s3929_s8 }
  0x1a   : > { %p3932_p13 = pnand %p3930_p12, %p4085_p7 }
  0x1b   : > { %p3939_p2 = por %p3938_p4, %p3937_p1 }
  0x1c   : > { %p3933_p0 = pneg %p3932_p13 }
  0x1e   : > { %p3940_p3 = pnand %p3939_p2, %p3933_p0 }
  0x20   : > { %3943 = shalt.err (!%p3940_p3)
}
  0x21   : > { %3825 = dma.hbm_to_vmem [thread:$0]  (!%p4069_p5), %s4931_s2, 16, %s163_s17, [#allocation5]  }
  0x22   : > { %s3944_s14 = scalar_lea.hbm %s4930_s1, 128 }
  0x23   : > { %p3945_p6 = scmp.ne.s32.totalorder %s4930_s1, %s3944_s14  ;;  %p3951_p2 = scmp.lt.u32.totalorder %s3944_s14, %s4930_s1 }
  0x25   : > { %p3947_p8 = pnand %p3945_p6, %p4085_p7 }
  0x27   : > { %p3948_p9 = pneg %p3947_p8 }
  0x29   : > { %p3953_p3 = pnand %p3951_p2, %p3948_p9 }
  0x2b   : > { %3956 = shalt.err (!%p3953_p3)
}
  0x2c   : > { %s3957_s17 = scalar_lea.vmem %s4073_s22, 128  ;;  %p3965_p13 = scmp.lt.s32.totalorder %s4073_s22, %s4073_s22 }
  0x2d   : > { %p3958_p10 = scmp.ne.s32.totalorder %s4073_s22, %s3957_s17  ;;  %p3966_p0 = scmp.lt.s32.totalorder %s3957_s17, %s3957_s17 }
  0x2f   : > { %p3960_p11 = pnand %p3958_p10, %p4085_p7  ;;  %p3967_p1 = por %p3966_p0, %p3965_p13 }
  0x31   : > { %p3961_p12 = pneg %p3960_p11 }
  0x33   : > { %p3968_p4 = pnand %p3967_p1, %p3961_p12 }
  0x35   : > { %3971 = shalt.err (!%p3968_p4)
}
  0x36   : > { %s4019_s27 = smov 64   ;;  %s4020_s28 = smov 4  }
  0x37   : > { %3822 = dma.hbm_to_vmem [thread:$0]  (!%p4069_p5), %s4930_s1, 128, %s4073_s22, [#allocation3], %s4019_s27, %s4019_s27, %s4020_s28  }
  0x38   : > { %s3972_s8 = scalar_lea.hbm %s4932_s3, 16 }
  0x39   : > { %p3973_p6 = scmp.ne.s32.totalorder %s4932_s3, %s3972_s8  ;;  %p3979_p2 = scmp.lt.u32.totalorder %s3972_s8, %s4932_s3 }
  0x3b   : > { %p3975_p8 = pnand %p3973_p6, %p4085_p7 }
  0x3d   : > { %p3976_p9 = pneg %p3975_p8 }
  0x3f   : > { %p3981_p3 = pnand %p3979_p2, %p3976_p9 }
  0x41   : > { %3984 = shalt.err (!%p3981_p3)
}
  0x42   : > { %s3985_s22 = scalar_lea.vmem %s4075_s25, 16  ;;  %s3992_s13 = scalar_lea.vmem %s4075_s25, 32 }
  0x43   : > { %p3986_p10 = scmp.ne.s32.totalorder %s4075_s25, %s3985_s22  ;;  %p3993_p13 = scmp.lt.s32.totalorder %s4075_s25, %s4075_s25 }
  0x44   : > { %p3994_p0 = scmp.lt.s32.totalorder %s3992_s13, %s3985_s22 }
  0x45   : > { %p3988_p11 = pnand %p3986_p10, %p4085_p7 }
  0x46   : > { %p3995_p1 = por %p3994_p0, %p3993_p13 }
  0x47   : > { %p3989_p12 = pneg %p3988_p11 }
  0x49   : > { %p3996_p4 = pnand %p3995_p1, %p3989_p12 }
  0x4b   : > { %3999 = shalt.err (!%p3996_p4)
}
  0x4c   : > { %3828 = dma.hbm_to_vmem [thread:$0]  (!%p4069_p5), %s4932_s3, 16, %s4075_s25, [#allocation5]  }
  0x4d   : > { %p4941_p6 = scmp.ne.s32.totalorder %s4938_s20, 0 }
  0x4e   : > { %p4942_p7 = scmp.ne.s32.totalorder (!%p4941_p6), %s4937_s19, 0 }
  0x4f   : > { %195 = sbr.rel (%p4941_p6) target bundleno = 492 (0x1ec), region = 36 }
  0x56   : > { %4005 = dma.done.wait (%p4942_p7), [#allocation3], 128  }
  0x57   : > { %4007 = vsyncadd (%p4942_p7), [#allocation3], 4294967168 }
  0x58   : > { %4009 = dma.done.wait (%p4942_p7), [#allocation5], 32  }
  0x59   : > { %4011 = vsyncadd (%p4942_p7), [#allocation5], 4294967264  ;;  %vm890_vm0 = vcmask 1043456   ;;  %s2834_s23 = sshll.u32 %s2823_s18, 7  ;;  %vm891_vm1 = vcmask 1044480   ;;  %v4021_v0 = vmov 65535  }
  0x5a   : > { %p230_p5 = scmp.lt.s32.totalorder %s2834_s23, 255  ;;  %v892_v1 = vsel %vm890_vm0, 4294967295, %v4021_v0  ;;  %vm697_vm2 = vcmask 72704   ;;  %v3849_v3 = vld [vmem:[#allocation2] sm:$0x1f]  }
  0x5b   : > { %v893_v2 = vsel %vm891_vm1, %v892_v1, 0 }
  0x5c   : > { %s4944_s23 = smov (!%p230_p5, %s2834_s23), 255  ;;  %v895_v5 = vand.u32 %v3849_v3, %v893_v2 }
  0x5d   : > { %s2835_s20 = sshll.u32 %s4944_s23, 2 }
  0x5e   : > { %s4168_s19 = scalar_lea.vmem %s4929_s0, %s2835_s20  ;;  %3675 = vmatprep.subr.bf16.mxu0 %v895_v5  ;;  %3805 = vmatprep.subr.bf16.mxu1 %v895_v5  ;;  %s4323_s24 = scalar_lea.vmem %s4933_s4, %s2835_s20 }
  0x5f   : > { %v3850_v4 = vld [vmem:[%s4168_s19] sm:$0xff]   ;;  %v3852_v7 = vld [vmem:[%s4168_s19 + $0x8] sm:$0xff]   ;;  %3676 = vmatpush3.bf16.msra.mxu0 %v895_v5  ;;  %3806 = vmatpush3.bf16.msra.mxu1 %v895_v5  ;;  %v3854_v9 = vld [vmem:[%s4168_s19 + $0x10] sm:$0xff]  }
  0x60   : > { %v3851_v6 = vld [vmem:[%s4168_s19 + $0x100] sm:$0xff]   ;;  %3677 = vmatprep.mubr.msk.bf16.mxu0 %vm697_vm2, %v3850_v4  ;;  %v3853_v8 = vld [vmem:[%s4168_s19 + $0x108] sm:$0xff]   ;;  %v3855_v10 = vld [vmem:[%s4168_s19 + $0x110] sm:$0xff]  }
  0x61   : > { %3741 = vmatprep.mubr.msk.bf16.mxu1 %vm697_vm2, %v3851_v6  ;;  %v3856_v11 = vld [vmem:[%s4168_s19 + $0x18] sm:$0xff]   ;;  %v3858_v13 = vld [vmem:[%s4168_s19 + $0x20] sm:$0xff]   ;;  %v3860_v15 = vld [vmem:[%s4168_s19 + $0x28] sm:$0xff]  }
  0x62   : > { %3678 = vmatmul.mubr.msk.bf16.vlgmr.msra.gmra.mrb[0].mxu0 %vm697_vm2, %v3852_v7  ;;  %3742 = vmatmul.mubr.msk.bf16.vlgmr.msra.gmra.mrb[0].mxu1 %vm697_vm2, %v3853_v8  ;;  %v3857_v12 = vld [vmem:[%s4168_s19 + $0x118] sm:$0xff]   ;;  %v3859_v14 = vld [vmem:[%s4168_s19 + $0x120] sm:$0xff]   ;;  %v3861_v16 = vld [vmem:[%s4168_s19 + $0x128] sm:$0xff]  }
  0x63   : > { %3681 = vmatprep.mubr.msk.bf16.mxu0 %vm697_vm2, %v3854_v9  ;;  %3745 = vmatprep.mubr.msk.bf16.mxu1 %vm697_vm2, %v3855_v10  ;;  %v3862_v17 = vld [vmem:[%s4168_s19 + $0x30] sm:$0xff]   ;;  %v3864_v19 = vld [vmem:[%s4168_s19 + $0x38] sm:$0xff]   ;;  %v3866_v21 = vld [vmem:[%s4168_s19 + $0x40] sm:$0xff]  }
  0x64   : > { %v3863_v18 = vld [vmem:[%s4168_s19 + $0x130] sm:$0xff]   ;;  %v3865_v20 = vld [vmem:[%s4168_s19 + $0x138] sm:$0xff]   ;;  %v3867_v22 = vld [vmem:[%s4168_s19 + $0x140] sm:$0xff]  }
  0x65   : > { %v3868_v23 = vld [vmem:[%s4168_s19 + $0x48] sm:$0xff]   ;;  %v3870_v25 = vld [vmem:[%s4168_s19 + $0x50] sm:$0xff]   ;;  %v3872_v27 = vld [vmem:[%s4168_s19 + $0x58] sm:$0xff]  }
  0x66   : > { %v3869_v24 = vld [vmem:[%s4168_s19 + $0x148] sm:$0xff]   ;;  %v3871_v26 = vld [vmem:[%s4168_s19 + $0x150] sm:$0xff]   ;;  %v3873_v28 = vld [vmem:[%s4168_s19 + $0x158] sm:$0xff]  }
  0x67   : > { %v3874_v29 = vld [vmem:[%s4168_s19 + $0x60] sm:$0xff]   ;;  %v3876_v31 = vld [vmem:[%s4168_s19 + $0x68] sm:$0xff]   ;;  %v3878_v33 = vld [vmem:[%s4168_s19 + $0x70] sm:$0xff]  }
  0x68   : > { %v3875_v30 = vld [vmem:[%s4168_s19 + $0x160] sm:$0xff]   ;;  %v3877_v32 = vld [vmem:[%s4168_s19 + $0x168] sm:$0xff]   ;;  %v3879_v34 = vld [vmem:[%s4168_s19 + $0x170] sm:$0xff]  }
  0x69   : > { %v3880_v35 = vld [vmem:[%s4168_s19 + $0x78] sm:$0xff]   ;;  %v3882_v37 = vld [vmem:[%s4168_s19 + $0x80] sm:$0xff]   ;;  %v3884_v39 = vld [vmem:[%s4168_s19 + $0x88] sm:$0xff]  }
  0x6a   : > { %3682 = vmatmul.mubr.msk.bf16.gmra.mrb[4].mxu0 %vm697_vm2, %v3856_v11  ;;  %3746 = vmatmul.mubr.msk.bf16.gmra.mrb[4].mxu1 %vm697_vm2, %v3857_v12  ;;  %v3881_v36 = vld [vmem:[%s4168_s19 + $0x178] sm:$0xff]   ;;  %v3883_v38 = vld [vmem:[%s4168_s19 + $0x180] sm:$0xff]   ;;  %v3885_v40 = vld [vmem:[%s4168_s19 + $0x188] sm:$0xff]  }
  0x6b   : > { %3685 = vmatprep.mubr.msk.bf16.mxu0 %vm697_vm2, %v3858_v13  ;;  %3749 = vmatprep.mubr.msk.bf16.mxu1 %vm697_vm2, %v3859_v14  ;;  %v3886_v41 = vld [vmem:[%s4168_s19 + $0x90] sm:$0xff]   ;;  %v3888_v43 = vld [vmem:[%s4168_s19 + $0x98] sm:$0xff]   ;;  %v3890_v45 = vld [vmem:[%s4168_s19 + $0xa0] sm:$0xff]  }
  0x6c   : > { %v3887_v42 = vld [vmem:[%s4168_s19 + $0x190] sm:$0xff]   ;;  %v3889_v44 = vld [vmem:[%s4168_s19 + $0x198] sm:$0xff]   ;;  %v3891_v46 = vld [vmem:[%s4168_s19 + $0x1a0] sm:$0xff]  }
  0x6d   : > { %v3892_v47 = vld [vmem:[%s4168_s19 + $0xa8] sm:$0xff]   ;;  %v3894_v49 = vld [vmem:[%s4168_s19 + $0xb0] sm:$0xff]   ;;  %v3896_v51 = vld [vmem:[%s4168_s19 + $0xb8] sm:$0xff]  }
  0x6e   : > { %v3893_v48 = vld [vmem:[%s4168_s19 + $0x1a8] sm:$0xff]   ;;  %v3895_v50 = vld [vmem:[%s4168_s19 + $0x1b0] sm:$0xff]   ;;  %v3897_v52 = vld [vmem:[%s4168_s19 + $0x1b8] sm:$0xff]  }
  0x6f   : > { %v3898_v53 = vld [vmem:[%s4168_s19 + $0xc0] sm:$0xff]   ;;  %v3900_v55 = vld [vmem:[%s4168_s19 + $0xc8] sm:$0xff]   ;;  %v3902_v57 = vld [vmem:[%s4168_s19 + $0xd0] sm:$0xff]  }
  0x70   : > { %v3899_v54 = vld [vmem:[%s4168_s19 + $0x1c0] sm:$0xff]   ;;  %v3901_v56 = vld [vmem:[%s4168_s19 + $0x1c8] sm:$0xff]   ;;  %v3903_v58 = vld [vmem:[%s4168_s19 + $0x1d0] sm:$0xff]  }
  0x71   : > { %v3904_v59 = vld [vmem:[%s4168_s19 + $0xd8] sm:$0xff]   ;;  %v3906_v61 = vld [vmem:[%s4168_s19 + $0xe0] sm:$0xff]   ;;  %v3908_v63 = vld [vmem:[%s4168_s19 + $0xe8] sm:$0xff]  }
  0x72   : > { %3686 = vmatmul.mubr.msk.bf16.gmra.mrb[8].mxu0 %vm697_vm2, %v3860_v15  ;;  %3750 = vmatmul.mubr.msk.bf16.gmra.mrb[8].mxu1 %vm697_vm2, %v3861_v16  ;;  %v3905_v60 = vld [vmem:[%s4168_s19 + $0x1d8] sm:$0xff]   ;;  %v3907_v62 = vld [vmem:[%s4168_s19 + $0x1e0] sm:$0xff]   ;;  %v3909_v0 = vld [vmem:[%s4168_s19 + $0x1e8] sm:$0xff]  }
  0x73   : > { %3689 = vmatprep.mubr.msk.bf16.mxu0 %vm697_vm2, %v3862_v17  ;;  %3753 = vmatprep.mubr.msk.bf16.mxu1 %vm697_vm2, %v3863_v18  ;;  %v3910_v1 = vld [vmem:[%s4168_s19 + $0xf0] sm:$0xff]   ;;  %v3912_v3 = vld [vmem:[%s4168_s19 + $0xf8] sm:$0xff]   ;;  %v4298_v5 = vld [vmem:[#allocation4] ss:$0 sm:$0xff] }
  0x74   : > { %v3911_v2 = vld [vmem:[%s4168_s19 + $0x1f0] sm:$0xff]   ;;  %v3913_v4 = vld [vmem:[%s4168_s19 + $0x1f8] sm:$0xff]   ;;  %v4300_v7 = vld [vmem:[#allocation6] ss:$0 sm:$0xff] }
  0x7a   : > { %3690 = vmatmul.mubr.msk.bf16.gmra.mrb[12].mxu0 %vm697_vm2, %v3864_v19  ;;  %3754 = vmatmul.mubr.msk.bf16.gmra.mrb[12].mxu1 %vm697_vm2, %v3865_v20 }
  0x7b   : > { %3693 = vmatprep.mubr.msk.bf16.mxu0 %vm697_vm2, %v3866_v21  ;;  %3757 = vmatprep.mubr.msk.bf16.mxu1 %vm697_vm2, %v3867_v22 }
  0x82   : > { %3694 = vmatmul.mubr.msk.bf16.gmra.mrb[16].mxu0 %vm697_vm2, %v3868_v23  ;;  %3758 = vmatmul.mubr.msk.bf16.gmra.mrb[16].mxu1 %vm697_vm2, %v3869_v24 }
  0x83   : > { %3697 = vmatprep.mubr.msk.bf16.mxu0 %vm697_vm2, %v3870_v25  ;;  %3761 = vmatprep.mubr.msk.bf16.mxu1 %vm697_vm2, %v3871_v26 }
  0x8a   : > { %3698 = vmatmul.mubr.msk.bf16.gmra.mrb[20].mxu0 %vm697_vm2, %v3872_v27  ;;  %3762 = vmatmul.mubr.msk.bf16.gmra.mrb[20].mxu1 %vm697_vm2, %v3873_v28 }
  0x8b   : > { %3701 = vmatprep.mubr.msk.bf16.mxu0 %vm697_vm2, %v3874_v29  ;;  %3765 = vmatprep.mubr.msk.bf16.mxu1 %vm697_vm2, %v3875_v30 }
  0x92   : > { %3702 = vmatmul.mubr.msk.bf16.gmra.mrb[24].mxu0 %vm697_vm2, %v3876_v31  ;;  %3766 = vmatmul.mubr.msk.bf16.gmra.mrb[24].mxu1 %vm697_vm2, %v3877_v32 }
  0x93   : > { %3705 = vmatprep.mubr.msk.bf16.mxu0 %vm697_vm2, %v3878_v33  ;;  %3769 = vmatprep.mubr.msk.bf16.mxu1 %vm697_vm2, %v3879_v34 }
  0x9a   : > { %3706 = vmatmul.mubr.msk.bf16.gmra.mrb[28].mxu0 %vm697_vm2, %v3880_v35  ;;  %3770 = vmatmul.mubr.msk.bf16.gmra.mrb[28].mxu1 %vm697_vm2, %v3881_v36 }
  0x9b   : > { %3709 = vmatprep.mubr.msk.bf16.mxu0 %vm697_vm2, %v3882_v37  ;;  %3773 = vmatprep.mubr.msk.bf16.mxu1 %vm697_vm2, %v3883_v38 }
  0xa2   : > { %3710 = vmatmul.mubr.msk.bf16.gmra.mrb[32].mxu0 %vm697_vm2, %v3884_v39  ;;  %3774 = vmatmul.mubr.msk.bf16.gmra.mrb[32].mxu1 %vm697_vm2, %v3885_v40 }
  0xa3   : > { %3713 = vmatprep.mubr.msk.bf16.mxu0 %vm697_vm2, %v3886_v41  ;;  %3777 = vmatprep.mubr.msk.bf16.mxu1 %vm697_vm2, %v3887_v42 }
  0xaa   : > { %3714 = vmatmul.mubr.msk.bf16.gmra.mrb[36].mxu0 %vm697_vm2, %v3888_v43  ;;  %3778 = vmatmul.mubr.msk.bf16.gmra.mrb[36].mxu1 %vm697_vm2, %v3889_v44 }
  0xab   : > { %3717 = vmatprep.mubr.msk.bf16.mxu0 %vm697_vm2, %v3890_v45  ;;  %3781 = vmatprep.mubr.msk.bf16.mxu1 %vm697_vm2, %v3891_v46 }
  0xb2   : > { %3718 = vmatmul.mubr.msk.bf16.gmra.mrb[40].mxu0 %vm697_vm2, %v3892_v47  ;;  %3782 = vmatmul.mubr.msk.bf16.gmra.mrb[40].mxu1 %vm697_vm2, %v3893_v48 }
  0xb3   : > { %3721 = vmatprep.mubr.msk.bf16.mxu0 %vm697_vm2, %v3894_v49  ;;  %3785 = vmatprep.mubr.msk.bf16.mxu1 %vm697_vm2, %v3895_v50 }
  0xba   : > { %3722 = vmatmul.mubr.msk.bf16.gmra.mrb[44].mxu0 %vm697_vm2, %v3896_v51  ;;  %3786 = vmatmul.mubr.msk.bf16.gmra.mrb[44].mxu1 %vm697_vm2, %v3897_v52 }
  0xbb   : > { %3725 = vmatprep.mubr.msk.bf16.mxu0 %vm697_vm2, %v3898_v53  ;;  %3789 = vmatprep.mubr.msk.bf16.mxu1 %vm697_vm2, %v3899_v54 }
  0xc2   : > { %3726 = vmatmul.mubr.msk.bf16.gmra.mrb[48].mxu0 %vm697_vm2, %v3900_v55  ;;  %3790 = vmatmul.mubr.msk.bf16.gmra.mrb[48].mxu1 %vm697_vm2, %v3901_v56 }
  0xc3   : > { %3729 = vmatprep.mubr.msk.bf16.mxu0 %vm697_vm2, %v3902_v57  ;;  %3793 = vmatprep.mubr.msk.bf16.mxu1 %vm697_vm2, %v3903_v58 }
  0xca   : > { %3730 = vmatmul.mubr.msk.bf16.gmra.mrb[52].mxu0 %vm697_vm2, %v3904_v59  ;;  %3794 = vmatmul.mubr.msk.bf16.gmra.mrb[52].mxu1 %vm697_vm2, %v3905_v60 }
  0xcb   : > { %3733 = vmatprep.mubr.msk.bf16.mxu0 %vm697_vm2, %v3906_v61  ;;  %3797 = vmatprep.mubr.msk.bf16.mxu1 %vm697_vm2, %v3907_v62 }
  0xd2   : > { %3734 = vmatmul.mubr.msk.bf16.gmra.mrb[56].mxu0 %vm697_vm2, %v3908_v63  ;;  %3798 = vmatmul.mubr.msk.bf16.gmra.mrb[56].mxu1 %vm697_vm2, %v3909_v0 }
  0xd3   : > { %3737 = vmatprep.mubr.msk.bf16.mxu0 %vm697_vm2, %v3910_v1  ;;  %3801 = vmatprep.mubr.msk.bf16.mxu1 %vm697_vm2, %v3911_v2 }
  0xda   : > { %3738 = vmatmul.mubr.msk.bf16.gmra.mrb[60].mxu0 %vm697_vm2, %v3912_v3  ;;  %3802 = vmatmul.mubr.msk.bf16.gmra.mrb[60].mxu1 %vm697_vm2, %v3913_v4 }
 0x135   : > { %v3679_v6 = vpop.f32.mrb[0].mxu0  ;;  %v3743_v8 = vpop.f32.mrb[0].mxu1 }
 0x136   : > { %v1451_v9 = vmul.f32 %v3679_v6, %v4298_v5  ;;  %v1515_v10 = vmul.f32 %v3743_v8, %v4298_v5  ;;  %v931_v11 = vpop.f32.mrb[1].mxu0  ;;  %v1187_v12 = vpop.f32.mrb[1].mxu1 }
 0x137   : > { %v1449_v13 = vmul.f32 %v4298_v5, %v931_v11  ;;  %v1513_v14 = vmul.f32 %v4298_v5, %v1187_v12  ;;  %v3680_v15 = vpop.f32.mrb[2].mxu0  ;;  %v3744_v16 = vpop.f32.mrb[2].mxu1 }
 0x138   : > { %v1586_v17 = vadd.f32 %v4300_v7, %v1451_v9  ;;  %v1650_v18 = vadd.f32 %v4300_v7, %v1515_v10  ;;  %v1452_v19 = vmul.f32 %v3680_v15, %v4298_v5  ;;  %v1516_v20 = vmul.f32 %v3744_v16, %v4298_v5  ;;  %v934_v21 = vpop.f32.mrb[3].mxu0  ;;  %v1190_v22 = vpop.f32.mrb[3].mxu1 }
 0x139   : > { %v1584_v23 = vadd.f32 %v4300_v7, %v1449_v13  ;;  %v1648_v24 = vadd.f32 %v4300_v7, %v1513_v14  ;;  %v1450_v25 = vmul.f32 %v4298_v5, %v934_v21  ;;  %v1514_v26 = vmul.f32 %v4298_v5, %v1190_v22 }
 0x13a   : > { %vm1714_vm3 = vcmp.gt.f32.partialorder %v1586_v17, 0.0  ;;  %v1842_v27 = vmul.f32 0.1, %v1586_v17  ;;  %vm1778_vm4 = vcmp.gt.f32.partialorder %v1650_v18, 0.0  ;;  %v1906_v28 = vmul.f32 0.1, %v1650_v18 }
 0x13b   : > { %vm1712_vm5 = vcmp.gt.f32.partialorder %v1584_v23, 0.0  ;;  %v1840_v29 = vmul.f32 0.1, %v1584_v23  ;;  %vm1776_vm6 = vcmp.gt.f32.partialorder %v1648_v24, 0.0  ;;  %v1904_v30 = vmul.f32 0.1, %v1648_v24 }
 0x13c   : > { %v1970_v31 = vsel %vm1714_vm3, %v1586_v17, %v1842_v27  ;;  %v2034_v32 = vsel %vm1778_vm4, %v1650_v18, %v1906_v28  ;;  %v1587_v33 = vadd.f32 %v4300_v7, %v1452_v19  ;;  %v1651_v34 = vadd.f32 %v4300_v7, %v1516_v20 }
 0x13d   : > { %v1968_v35 = vsel %vm1712_vm5, %v1584_v23, %v1840_v29  ;;  %v2032_v36 = vsel %vm1776_vm6, %v1648_v24, %v1904_v30  ;;  %v1585_v37 = vadd.f32 %v4300_v7, %v1450_v25  ;;  %v1649_v38 = vadd.f32 %v4300_v7, %v1514_v26  ;;  %v3683_v39 = vpop.f32.mrb[4].mxu0  ;;  %v3747_v40 = vpop.f32.mrb[4].mxu1 }
 0x13e   : > { %vm1715_vm7 = vcmp.gt.f32.partialorder %v1587_v33, 0.0  ;;  %v1843_v41 = vmul.f32 0.1, %v1587_v33  ;;  %vm1779_vm8 = vcmp.gt.f32.partialorder %v1651_v34, 0.0  ;;  %v1907_v42 = vmul.f32 0.1, %v1651_v34 }
 0x13f   : > { %vm1713_vm9 = vcmp.gt.f32.partialorder %v1585_v37, 0.0  ;;  %v1841_v43 = vmul.f32 0.1, %v1585_v37  ;;  %vm1777_vm10 = vcmp.gt.f32.partialorder %v1649_v38, 0.0  ;;  %v1905_v44 = vmul.f32 0.1, %v1649_v38 }
 0x140   : > { %v1971_v45 = vsel %vm1715_vm7, %v1587_v33, %v1843_v41  ;;  %v2035_v46 = vsel %vm1779_vm8, %v1651_v34, %v1907_v42  ;;  %v1455_v47 = vmul.f32 %v3683_v39, %v4298_v5  ;;  %v1519_v48 = vmul.f32 %v3747_v40, %v4298_v5  ;;  %v947_v49 = vpop.f32.mrb[5].mxu0  ;;  %v1203_v50 = vpop.f32.mrb[5].mxu1 }
 0x141   : > { %v3235_v51 = vpack.c.bf16 %v1971_v45, %v1970_v31  ;;  %v3395_v52 = vpack.c.bf16 %v2035_v46, %v2034_v32  ;;  %v1969_v53 = vsel %vm1713_vm9, %v1585_v37, %v1841_v43  ;;  %v2033_v54 = vsel %vm1777_vm10, %v1649_v38, %v1905_v44  ;;  %v3684_v55 = vpop.f32.mrb[6].mxu0  ;;  %v3748_v56 = vpop.f32.mrb[6].mxu1 }
 0x142   : > { %v3230_v57 = vpack.c.bf16 %v1969_v53, %v1968_v35  ;;  %v3390_v58 = vpack.c.bf16 %v2033_v54, %v2032_v36  ;;  %v1590_v59 = vadd.f32 %v4300_v7, %v1455_v47  ;;  %v1654_v60 = vadd.f32 %v4300_v7, %v1519_v48  ;;  %v950_v61 = vpop.f32.mrb[7].mxu0  ;;  %v1206_v62 = vpop.f32.mrb[7].mxu1 }
 0x143   : > { %3547 = vst [vmem:[%s4323_s24 + $0x8] sm:$0xff] %v3235_v51   ;;  %3579 = vst [vmem:[%s4323_s24 + $0x108] sm:$0xff] %v3395_v52   ;;  %v1453_v63 = vmul.f32 %v4298_v5, %v947_v49  ;;  %v1517_v0 = vmul.f32 %v4298_v5, %v1203_v50  ;;  %v1456_v1 = vmul.f32 %v3684_v55, %v4298_v5 }
 0x144   : > { %v1520_v2 = vmul.f32 %v3748_v56, %v4298_v5  ;;  %3231 = vst [vmem:[%s4323_s24] sm:$0xff] %v3230_v57   ;;  %3578 = vst [vmem:[%s4323_s24 + $0x100] sm:$0xff] %v3390_v58   ;;  %vm1718_vm11 = vcmp.gt.f32.partialorder %v1590_v59, 0.0  ;;  %v1846_v3 = vmul.f32 0.1, %v1590_v59  ;;  %vm1782_vm12 = vcmp.gt.f32.partialorder %v1654_v60, 0.0 }
 0x145   : > { %v1910_v4 = vmul.f32 0.1, %v1654_v60  ;;  %v1588_v6 = vadd.f32 %v4300_v7, %v1453_v63  ;;  %v1652_v8 = vadd.f32 %v4300_v7, %v1517_v0  ;;  %v1591_v9 = vadd.f32 %v4300_v7, %v1456_v1  ;;  %v3687_v11 = vpop.f32.mrb[8].mxu0  ;;  %v3751_v12 = vpop.f32.mrb[8].mxu1 }
 0x146   : > { %v1655_v10 = vadd.f32 %v4300_v7, %v1520_v2  ;;  %v1974_v13 = vsel %vm1718_vm11, %v1590_v59, %v1846_v3  ;;  %v1454_v15 = vmul.f32 %v4298_v5, %v950_v61  ;;  %v1518_v16 = vmul.f32 %v4298_v5, %v1206_v62  ;;  %v963_v17 = vpop.f32.mrb[9].mxu0  ;;  %v1219_v18 = vpop.f32.mrb[9].mxu1 }
 0x147   : > { %v2038_v14 = vsel %vm1782_vm12, %v1654_v60, %v1910_v4  ;;  %vm1716_vm13 = vcmp.gt.f32.partialorder %v1588_v6, 0.0  ;;  %v1844_v19 = vmul.f32 0.1, %v1588_v6  ;;  %vm1780_vm14 = vcmp.gt.f32.partialorder %v1652_v8, 0.0  ;;  %v3688_v27 = vpop.f32.mrb[10].mxu0  ;;  %v3752_v28 = vpop.f32.mrb[10].mxu1 }
 0x148   : > { %v1908_v20 = vmul.f32 0.1, %v1652_v8  ;;  %vm1719_vm15 = vcmp.gt.f32.partialorder %v1591_v9, 0.0  ;;  %v1847_v21 = vmul.f32 0.1, %v1591_v9  ;;  %vm1783_vm0 = vcmp.gt.f32.partialorder %v1655_v10, 0.0 }
 0x149   : > { %v1911_v22 = vmul.f32 0.1, %v1655_v10  ;;  %v1972_v23 = vsel %vm1716_vm13, %v1588_v6, %v1844_v19  ;;  %v1589_v25 = vadd.f32 %v4300_v7, %v1454_v15  ;;  %v1653_v26 = vadd.f32 %v4300_v7, %v1518_v16  ;;  %v966_v33 = vpop.f32.mrb[11].mxu0  ;;  %v1222_v34 = vpop.f32.mrb[11].mxu1 }
 0x14a   : > { %v2036_v24 = vsel %vm1780_vm14, %v1652_v8, %v1908_v20  ;;  %v1975_v29 = vsel %vm1719_vm15, %v1591_v9, %v1847_v21  ;;  %v1459_v31 = vmul.f32 %v3687_v11, %v4298_v5  ;;  %v1523_v32 = vmul.f32 %v3751_v12, %v4298_v5 }
 0x14b   : > { %v2039_v30 = vsel %vm1783_vm0, %v1655_v10, %v1911_v22  ;;  %v3245_v35 = vpack.c.bf16 %v1975_v29, %v1974_v13  ;;  %vm1717_vm1 = vcmp.gt.f32.partialorder %v1589_v25, 0.0  ;;  %v1845_v37 = vmul.f32 0.1, %v1589_v25 }
 0x14c   : > { %v3405_v36 = vpack.c.bf16 %v2039_v30, %v2038_v14  ;;  %vm1781_vm2 = vcmp.gt.f32.partialorder %v1653_v26, 0.0  ;;  %v1909_v38 = vmul.f32 0.1, %v1653_v26  ;;  %v1594_v39 = vadd.f32 %v4300_v7, %v1459_v31 }
 0x14d   : > { %v1658_v40 = vadd.f32 %v4300_v7, %v1523_v32  ;;  %3549 = vst [vmem:[%s4323_s24 + $0x18] sm:$0xff] %v3245_v35   ;;  %v1973_v41 = vsel %vm1717_vm1, %v1589_v25, %v1845_v37  ;;  %v1457_v42 = vmul.f32 %v4298_v5, %v963_v17  ;;  %v1521_v43 = vmul.f32 %v4298_v5, %v1219_v18  ;;  %v3691_v45 = vpop.f32.mrb[12].mxu0  ;;  %v3755_v46 = vpop.f32.mrb[12].mxu1 }
 0x14e   : > { %3581 = vst [vmem:[%s4323_s24 + $0x118] sm:$0xff] %v3405_v36   ;;  %v1460_v44 = vmul.f32 %v3688_v27, %v4298_v5  ;;  %v3240_v47 = vpack.c.bf16 %v1973_v41, %v1972_v23  ;;  %v2037_v48 = vsel %vm1781_vm2, %v1653_v26, %v1909_v38  ;;  %vm1722_vm3 = vcmp.gt.f32.partialorder %v1594_v39, 0.0  ;;  %v979_v50 = vpop.f32.mrb[13].mxu0  ;;  %v1235_v51 = vpop.f32.mrb[13].mxu1 }
 0x14f   : > { %v1850_v49 = vmul.f32 0.1, %v1594_v39  ;;  %v3400_v52 = vpack.c.bf16 %v2037_v48, %v2036_v24  ;;  %vm1786_vm4 = vcmp.gt.f32.partialorder %v1658_v40, 0.0  ;;  %v1914_v53 = vmul.f32 0.1, %v1658_v40  ;;  %v3692_v55 = vpop.f32.mrb[14].mxu0 }
 0x150   : > { %v1592_v54 = vadd.f32 %v4300_v7, %v1457_v42  ;;  %v4355_v56 = vpop.f32.mrb[14].mxu1  ;;  %3548 = vst [vmem:[%s4323_s24 + $0x10] sm:$0xff] %v3240_v47   ;;  %v1656_v58 = vadd.f32 %v4300_v7, %v1521_v43  ;;  %v1595_v59 = vadd.f32 %v4300_v7, %v1460_v44  ;;  %v1524_v60 = vmul.f32 %v3752_v28, %v4298_v5  ;;  %v4361_v61 = vpop.f32.mrb[15].mxu0 }
 0x151   : > { %v1978_v57 = vsel %vm1722_vm3, %v1594_v39, %v1850_v49  ;;  %v4363_v62 = vpop.f32.mrb[15].mxu1  ;;  %3580 = vst [vmem:[%s4323_s24 + $0x110] sm:$0xff] %v3400_v52   ;;  %v2042_v63 = vsel %vm1786_vm4, %v1658_v40, %v1914_v53  ;;  %v1458_v1 = vmul.f32 %v4298_v5, %v966_v33  ;;  %v1522_v9 = vmul.f32 %v4298_v5, %v1222_v34 }
 0x152   : > { %vm1720_vm5 = vcmp.gt.f32.partialorder %v1592_v54, 0.0  ;;  %v1848_v0 = vmul.f32 0.1, %v1592_v54  ;;  %vm1784_vm6 = vcmp.gt.f32.partialorder %v1656_v58, 0.0  ;;  %v1912_v2 = vmul.f32 0.1, %v1656_v58 }
 0x153   : > { %vm1723_vm7 = vcmp.gt.f32.partialorder %v1595_v59, 0.0  ;;  %v1851_v3 = vmul.f32 0.1, %v1595_v59  ;;  %v1659_v6 = vadd.f32 %v4300_v7, %v1524_v60  ;;  %v1593_v8 = vadd.f32 %v4300_v7, %v1458_v1 }
 0x154   : > { %v1976_v4 = vsel %vm1720_vm5, %v1592_v54, %v1848_v0  ;;  %v2040_v10 = vsel %vm1784_vm6, %v1656_v58, %v1912_v2  ;;  %v1463_v12 = vmul.f32 %v3691_v45, %v4298_v5  ;;  %v1527_v13 = vmul.f32 %v3755_v46, %v4298_v5 }
 0x155   : > { %v1979_v11 = vsel %vm1723_vm7, %v1595_v59, %v1851_v3  ;;  %vm1787_vm8 = vcmp.gt.f32.partialorder %v1659_v6, 0.0  ;;  %v1915_v15 = vmul.f32 0.1, %v1659_v6  ;;  %vm1721_vm9 = vcmp.gt.f32.partialorder %v1593_v8, 0.0  ;;  %v3695_v16 = vpop.f32.mrb[16].mxu0  ;;  %v4372_v17 = vpop.f32.mrb[16].mxu1 }
 0x156   : > { %v3255_v14 = vpack.c.bf16 %v1979_v11, %v1978_v57  ;;  %v1849_v18 = vmul.f32 0.1, %v1593_v8  ;;  %v1657_v19 = vadd.f32 %v4300_v7, %v1522_v9  ;;  %v1598_v20 = vadd.f32 %v4300_v7, %v1463_v12  ;;  %v995_v22 = vpop.f32.mrb[17].mxu0  ;;  %v1251_v23 = vpop.f32.mrb[17].mxu1 }
 0x157   : > { %v1662_v21 = vadd.f32 %v4300_v7, %v1527_v13  ;;  %v2043_v24 = vsel %vm1787_vm8, %v1659_v6, %v1915_v15  ;;  %v1461_v25 = vmul.f32 %v4298_v5, %v979_v50  ;;  %v1525_v26 = vmul.f32 %v4298_v5, %v1235_v51  ;;  %v4381_v28 = vpop.f32.mrb[18].mxu0  ;;  %v4383_v29 = vpop.f32.mrb[18].mxu1 }
 0x158   : > { %3551 = vst [vmem:[%s4323_s24 + $0x28] sm:$0xff] %v3255_v14   ;;  %v1464_v27 = vmul.f32 %v3692_v55, %v4298_v5  ;;  %v3415_v30 = vpack.c.bf16 %v2043_v24, %v2042_v63  ;;  %v1977_v31 = vsel %vm1721_vm9, %v1593_v8, %v1849_v18  ;;  %vm1785_vm10 = vcmp.gt.f32.partialorder %v1657_v19, 0.0  ;;  %v4386_v33 = vpop.f32.mrb[19].mxu0  ;;  %v4388_v34 = vpop.f32.mrb[19].mxu1 }
 0x159   : > { %v1913_v32 = vmul.f32 0.1, %v1657_v19  ;;  %v3250_v35 = vpack.c.bf16 %v1977_v31, %v1976_v4  ;;  %vm1726_vm11 = vcmp.gt.f32.partialorder %v1598_v20, 0.0  ;;  %v1854_v36 = vmul.f32 0.1, %v1598_v20 }
 0x15a   : > { %vm1790_vm12 = vcmp.gt.f32.partialorder %v1662_v21, 0.0  ;;  %3583 = vst [vmem:[%s4323_s24 + $0x128] sm:$0xff] %v3415_v30   ;;  %v1918_v38 = vmul.f32 0.1, %v1662_v21  ;;  %v1596_v39 = vadd.f32 %v4300_v7, %v1461_v25  ;;  %v1660_v40 = vadd.f32 %v4300_v7, %v1525_v26 }
 0x15b   : > { %v2041_v37 = vsel %vm1785_vm10, %v1657_v19, %v1913_v32  ;;  %3550 = vst [vmem:[%s4323_s24 + $0x20] sm:$0xff] %v3250_v35   ;;  %v1982_v42 = vsel %vm1726_vm11, %v1598_v20, %v1854_v36  ;;  %v1599_v43 = vadd.f32 %v4300_v7, %v1464_v27  ;;  %v1528_v44 = vmul.f32 %v4355_v56, %v4298_v5 }
 0x15c   : > { %v3410_v41 = vpack.c.bf16 %v2041_v37, %v2040_v10  ;;  %v2046_v45 = vsel %vm1790_vm12, %v1662_v21, %v1918_v38  ;;  %vm1724_vm13 = vcmp.gt.f32.partialorder %v1596_v39, 0.0  ;;  %v1852_v46 = vmul.f32 0.1, %v1596_v39 }
 0x15d   : > { %vm1788_vm14 = vcmp.gt.f32.partialorder %v1660_v40, 0.0  ;;  %v1916_v47 = vmul.f32 0.1, %v1660_v40  ;;  %vm1727_vm15 = vcmp.gt.f32.partialorder %v1599_v43, 0.0  ;;  %v1855_v48 = vmul.f32 0.1, %v1599_v43 }
 0x15e   : > { %3582 = vst [vmem:[%s4323_s24 + $0x120] sm:$0xff] %v3410_v41   ;;  %v1663_v49 = vadd.f32 %v4300_v7, %v1528_v44  ;;  %v4399_v50 = vpop.f32.mrb[20].mxu0  ;;  %v1980_v51 = vsel %vm1724_vm13, %v1596_v39, %v1852_v46  ;;  %v1462_v52 = vmul.f32 %v4298_v5, %v4361_v61  ;;  %v1526_v53 = vmul.f32 %v4298_v5, %v4363_v62  ;;  %v4406_v55 = vpop.f32.mrb[20].mxu1 }
 0x15f   : > { %v1467_v54 = vmul.f32 %v3695_v16, %v4298_v5  ;;  %v4408_v56 = vpop.f32.mrb[21].mxu0  ;;  %v2044_v57 = vsel %vm1788_vm14, %v1660_v40, %v1916_v47  ;;  %v1983_v58 = vsel %vm1727_vm15, %v1599_v43, %v1855_v48  ;;  %v4410_v60 = vpop.f32.mrb[21].mxu1  ;;  %v1531_v6 = vmul.f32 %v4372_v17, %v4298_v5 }
 0x160   : > { %vm1791_vm0 = vcmp.gt.f32.partialorder %v1663_v49, 0.0  ;;  %v1919_v59 = vmul.f32 0.1, %v1663_v49  ;;  %v4412_v63 = vpop.f32.mrb[22].mxu0  ;;  %v3265_v0 = vpack.c.bf16 %v1983_v58, %v1982_v42  ;;  %v1597_v61 = vadd.f32 %v4300_v7, %v1462_v52  ;;  %v4417_v2 = vpop.f32.mrb[22].mxu1 }
 0x161   : > { %v1661_v62 = vadd.f32 %v4300_v7, %v1526_v53  ;;  %v1602_v1 = vadd.f32 %v4300_v7, %v1467_v54  ;;  %v4419_v3 = vpop.f32.mrb[23].mxu0  ;;  %v1465_v8 = vmul.f32 %v4298_v5, %v995_v22  ;;  %v1529_v9 = vmul.f32 %v4298_v5, %v1251_v23  ;;  %v4425_v10 = vpop.f32.mrb[23].mxu1 }
 0x162   : > { %v2047_v4 = vsel %vm1791_vm0, %v1663_v49, %v1919_v59  ;;  %3553 = vst [vmem:[%s4323_s24 + $0x38] sm:$0xff] %v3265_v0   ;;  %vm1725_vm1 = vcmp.gt.f32.partialorder %v1597_v61, 0.0  ;;  %v1853_v12 = vmul.f32 0.1, %v1597_v61  ;;  %v1666_v15 = vadd.f32 %v4300_v7, %v1531_v6 }
 0x163   : > { %v3425_v11 = vpack.c.bf16 %v2047_v4, %v2046_v45  ;;  %vm1789_vm2 = vcmp.gt.f32.partialorder %v1661_v62, 0.0  ;;  %v1917_v13 = vmul.f32 0.1, %v1661_v62  ;;  %vm1730_vm3 = vcmp.gt.f32.partialorder %v1602_v1, 0.0 }
 0x164   : > { %v1858_v14 = vmul.f32 0.1, %v1602_v1  ;;  %v1981_v16 = vsel %vm1725_vm1, %v1597_v61, %v1853_v12  ;;  %v1600_v17 = vadd.f32 %v4300_v7, %v1465_v8  ;;  %v1664_v18 = vadd.f32 %v4300_v7, %v1529_v9 }
 0x165   : > { %3585 = vst [vmem:[%s4323_s24 + $0x138] sm:$0xff] %v3425_v11   ;;  %v1468_v19 = vmul.f32 %v4381_v28, %v4298_v5  ;;  %v3260_v20 = vpack.c.bf16 %v1981_v16, %v1980_v51  ;;  %v2045_v21 = vsel %vm1789_vm2, %v1661_v62, %v1917_v13  ;;  %vm1794_vm4 = vcmp.gt.f32.partialorder %v1666_v15, 0.0  ;;  %v4434_v23 = vpop.f32.mrb[24].mxu0  ;;  %v4436_v24 = vpop.f32.mrb[24].mxu1 }
 0x166   : > { %v1986_v22 = vsel %vm1730_vm3, %v1602_v1, %v1858_v14  ;;  %v3420_v25 = vpack.c.bf16 %v2045_v21, %v2044_v57  ;;  %v1922_v26 = vmul.f32 0.1, %v1666_v15  ;;  %vm1728_vm5 = vcmp.gt.f32.partialorder %v1600_v17, 0.0  ;;  %v4438_v30 = vpop.f32.mrb[25].mxu0  ;;  %v4444_v35 = vpop.f32.mrb[25].mxu1 }
 0x167   : > { %v1856_v27 = vmul.f32 0.1, %v1600_v17  ;;  %3552 = vst [vmem:[%s4323_s24 + $0x30] sm:$0xff] %v3260_v20   ;;  %vm1792_vm6 = vcmp.gt.f32.partialorder %v1664_v18, 0.0  ;;  %v1920_v31 = vmul.f32 0.1, %v1664_v18  ;;  %v1603_v28 = vadd.f32 %v4300_v7, %v1468_v19 }
 0x168   : > { %v1532_v32 = vmul.f32 %v4383_v29, %v4298_v5  ;;  %v4446_v36 = vpop.f32.mrb[26].mxu0  ;;  %3584 = vst [vmem:[%s4323_s24 + $0x130] sm:$0xff] %v3420_v25   ;;  %v2050_v37 = vsel %vm1794_vm4, %v1666_v15, %v1922_v26  ;;  %v1466_v39 = vmul.f32 %v4298_v5, %v4386_v33  ;;  %v1530_v40 = vmul.f32 %v4298_v5, %v4388_v34  ;;  %v4454_v41 = vpop.f32.mrb[26].mxu1 }
 0x169   : > { %v1984_v38 = vsel %vm1728_vm5, %v1600_v17, %v1856_v27  ;;  %v4456_v42 = vpop.f32.mrb[27].mxu0  ;;  %v2048_v43 = vsel %vm1792_vm6, %v1664_v18, %v1920_v31  ;;  %vm1731_vm7 = vcmp.gt.f32.partialorder %v1603_v28, 0.0  ;;  %v1859_v29 = vmul.f32 0.1, %v1603_v28  ;;  %v4459_v45 = vpop.f32.mrb[27].mxu1 }
 0x16a   : > { %v1667_v44 = vadd.f32 %v4300_v7, %v1532_v32  ;;  %v1601_v46 = vadd.f32 %v4300_v7, %v1466_v39  ;;  %v1665_v47 = vadd.f32 %v4300_v7, %v1530_v40  ;;  %v1471_v33 = vmul.f32 %v4399_v50, %v4298_v5 }
 0x16b   : > { %v1535_v34 = vmul.f32 %v4406_v55, %v4298_v5  ;;  %v1987_v48 = vsel %vm1731_vm7, %v1603_v28, %v1859_v29  ;;  %v1469_v51 = vmul.f32 %v4298_v5, %v4408_v56  ;;  %v1533_v62 = vmul.f32 %v4298_v5, %v4410_v60 }
 0x16c   : > { %vm1795_vm8 = vcmp.gt.f32.partialorder %v1667_v44, 0.0  ;;  %v1923_v49 = vmul.f32 0.1, %v1667_v44  ;;  %v3275_v52 = vpack.c.bf16 %v1987_v48, %v1986_v22  ;;  %vm1729_vm9 = vcmp.gt.f32.partialorder %v1601_v46, 0.0 }
 0x16d   : > { %v1857_v53 = vmul.f32 0.1, %v1601_v46  ;;  %vm1793_vm10 = vcmp.gt.f32.partialorder %v1665_v47, 0.0  ;;  %v1921_v57 = vmul.f32 0.1, %v1665_v47  ;;  %v1606_v58 = vadd.f32 %v4300_v7, %v1471_v33  ;;  %v4471_v59 = vpop.f32.mrb[28].mxu0 }
 0x16e   : > { %v2051_v54 = vsel %vm1795_vm8, %v1667_v44, %v1923_v49  ;;  %v1670_v50 = vadd.f32 %v4300_v7, %v1535_v34  ;;  %v4473_v55 = vpop.f32.mrb[28].mxu1  ;;  %3555 = vst [vmem:[%s4323_s24 + $0x48] sm:$0xff] %v3275_v52   ;;  %v1604_v56 = vadd.f32 %v4300_v7, %v1469_v51  ;;  %v4479_v1 = vpop.f32.mrb[29].mxu0  ;;  %v1668_v18 = vadd.f32 %v4300_v7, %v1533_v62 }
 0x16f   : > { %v3435_v0 = vpack.c.bf16 %v2051_v54, %v2050_v37  ;;  %v1985_v61 = vsel %vm1729_vm9, %v1601_v46, %v1857_v53  ;;  %v4481_v4 = vpop.f32.mrb[29].mxu1  ;;  %v2049_v8 = vsel %vm1793_vm10, %v1665_v47, %v1921_v57  ;;  %vm1734_vm11 = vcmp.gt.f32.partialorder %v1606_v58, 0.0  ;;  %v4483_v11 = vpop.f32.mrb[30].mxu0 }
 0x170   : > { %v3270_v6 = vpack.c.bf16 %v1985_v61, %v1984_v38  ;;  %v1862_v9 = vmul.f32 0.1, %v1606_v58  ;;  %v4485_v12 = vpop.f32.mrb[30].mxu1  ;;  %v3430_v13 = vpack.c.bf16 %v2049_v8, %v2048_v43  ;;  %vm1798_vm12 = vcmp.gt.f32.partialorder %v1670_v50, 0.0  ;;  %v4488_v60 = vpop.f32.mrb[31].mxu0 }
 0x171   : > { %3587 = vst [vmem:[%s4323_s24 + $0x148] sm:$0xff] %v3435_v0   ;;  %v1926_v14 = vmul.f32 0.1, %v1670_v50  ;;  %vm1732_vm13 = vcmp.gt.f32.partialorder %v1604_v56, 0.0  ;;  %v4490_v15 = vpop.f32.mrb[31].mxu1  ;;  %v1472_v19 = vmul.f32 %v4412_v63, %v4298_v5  ;;  %v1536_v21 = vmul.f32 %v4417_v2, %v4298_v5 }
 0x172   : > { %3554 = vst [vmem:[%s4323_s24 + $0x40] sm:$0xff] %v3270_v6   ;;  %v1990_v16 = vsel %vm1734_vm11, %v1606_v58, %v1862_v9  ;;  %v1860_v17 = vmul.f32 0.1, %v1604_v56  ;;  %3586 = vst [vmem:[%s4323_s24 + $0x140] sm:$0xff] %v3430_v13   ;;  %v1470_v22 = vmul.f32 %v4298_v5, %v4419_v3  ;;  %v1534_v25 = vmul.f32 %v4298_v5, %v4425_v10 }
 0x173   : > { %v2054_v20 = vsel %vm1798_vm12, %v1670_v50, %v1926_v14  ;;  %vm1796_vm14 = vcmp.gt.f32.partialorder %v1668_v18, 0.0  ;;  %v1924_v27 = vmul.f32 0.1, %v1668_v18  ;;  %v1607_v31 = vadd.f32 %v4300_v7, %v1472_v19 }
 0x174   : > { %v1988_v26 = vsel %vm1732_vm13, %v1604_v56, %v1860_v17  ;;  %v1671_v28 = vadd.f32 %v4300_v7, %v1536_v21  ;;  %v1605_v63 = vadd.f32 %v4300_v7, %v1470_v22  ;;  %v1669_v32 = vadd.f32 %v4300_v7, %v1534_v25 }
 0x175   : > { %v1475_v2 = vmul.f32 %v4434_v23, %v4298_v5  ;;  %v2052_v37 = vsel %vm1796_vm14, %v1668_v18, %v1924_v27  ;;  %vm1735_vm15 = vcmp.gt.f32.partialorder %v1607_v31, 0.0  ;;  %v1863_v3 = vmul.f32 0.1, %v1607_v31  ;;  %v4511_v38 = vpop.f32.mrb[32].mxu0  ;;  %v4513_v39 = vpop.f32.mrb[32].mxu1 }
 0x176   : > { %v1539_v10 = vmul.f32 %v4436_v24, %v4298_v5  ;;  %vm1799_vm0 = vcmp.gt.f32.partialorder %v1671_v28, 0.0  ;;  %v1927_v40 = vmul.f32 0.1, %v1671_v28  ;;  %vm1733_vm1 = vcmp.gt.f32.partialorder %v1605_v63, 0.0  ;;  %v4516_v46 = vpop.f32.mrb[33].mxu0  ;;  %v4518_v47 = vpop.f32.mrb[33].mxu1 }
 0x177   : > { %v1861_v43 = vmul.f32 0.1, %v1605_v63  ;;  %v1991_v29 = vsel %vm1735_vm15, %v1607_v31, %v1863_v3  ;;  %vm1797_vm2 = vcmp.gt.f32.partialorder %v1669_v32, 0.0  ;;  %v1925_v44 = vmul.f32 0.1, %v1669_v32  ;;  %v4521_v49 = vpop.f32.mrb[34].mxu0 }
 0x178   : > { %v1610_v23 = vadd.f32 %v4300_v7, %v1475_v2  ;;  %v3285_v33 = vpack.c.bf16 %v1991_v29, %v1990_v16  ;;  %v2055_v24 = vsel %vm1799_vm0, %v1671_v28, %v1927_v40  ;;  %v1674_v48 = vadd.f32 %v4300_v7, %v1539_v10  ;;  %v4523_v51 = vpop.f32.mrb[34].mxu1  ;;  %v4525_v57 = vpop.f32.mrb[35].mxu0 }
 0x179   : > { %v1989_v34 = vsel %vm1733_vm1, %v1605_v63, %v1861_v43  ;;  %v3445_v52 = vpack.c.bf16 %v2055_v24, %v2054_v20  ;;  %v2053_v54 = vsel %vm1797_vm2, %v1669_v32, %v1925_v44  ;;  %v4527_v58 = vpop.f32.mrb[35].mxu1  ;;  %v1473_v56 = vmul.f32 %v4298_v5, %v4438_v30 }
 0x17a   : > { %v3280_v53 = vpack.c.bf16 %v1989_v34, %v1988_v26  ;;  %vm1738_vm3 = vcmp.gt.f32.partialorder %v1610_v23, 0.0  ;;  %3557 = vst [vmem:[%s4323_s24 + $0x58] sm:$0xff] %v3285_v33   ;;  %v3440_v50 = vpack.c.bf16 %v2053_v54, %v2052_v37  ;;  %v1866_v0 = vmul.f32 0.1, %v1610_v23 }
 0x17b   : > { %vm1802_vm4 = vcmp.gt.f32.partialorder %v1674_v48, 0.0  ;;  %v1930_v61 = vmul.f32 0.1, %v1674_v48  ;;  %3589 = vst [vmem:[%s4323_s24 + $0x158] sm:$0xff] %v3445_v52   ;;  %v1537_v62 = vmul.f32 %v4298_v5, %v4444_v35  ;;  %v1476_v6 = vmul.f32 %v4446_v36, %v4298_v5 }
 0x17c   : > { %3556 = vst [vmem:[%s4323_s24 + $0x50] sm:$0xff] %v3280_v53   ;;  %v1540_v8 = vmul.f32 %v4454_v41, %v4298_v5  ;;  %3588 = vst [vmem:[%s4323_s24 + $0x150] sm:$0xff] %v3440_v50   ;;  %v1994_v9 = vsel %vm1738_vm3, %v1610_v23, %v1866_v0  ;;  %v1474_v14 = vmul.f32 %v4298_v5, %v4456_v42 }
 0x17d   : > { %v2058_v13 = vsel %vm1802_vm4, %v1674_v48, %v1930_v61  ;;  %v1538_v16 = vmul.f32 %v4298_v5, %v4459_v45  ;;  %v1608_v30 = vadd.f32 %v4300_v7, %v1473_v56  ;;  %v1672_v17 = vadd.f32 %v4300_v7, %v1537_v62  ;;  %v4549_v18 = vpop.f32.mrb[36].mxu0  ;;  %v4551_v41 = vpop.f32.mrb[36].mxu1 }
 0x17e   : > { %v1611_v35 = vadd.f32 %v4300_v7, %v1476_v6  ;;  %v1675_v36 = vadd.f32 %v4300_v7, %v1540_v8  ;;  %v1609_v19 = vadd.f32 %v4300_v7, %v1474_v14  ;;  %v1479_v42 = vmul.f32 %v4471_v59, %v4298_v5  ;;  %v4559_v21 = vpop.f32.mrb[37].mxu0  ;;  %v4561_v22 = vpop.f32.mrb[37].mxu1 }
 0x17f   : > { %v1673_v20 = vadd.f32 %v4300_v7, %v1538_v16  ;;  %v1543_v45 = vmul.f32 %v4473_v55, %v4298_v5  ;;  %vm1736_vm5 = vcmp.gt.f32.partialorder %v1608_v30, 0.0  ;;  %v1864_v25 = vmul.f32 0.1, %v1608_v30  ;;  %v4563_v59 = vpop.f32.mrb[38].mxu0  ;;  %v4565_v55 = vpop.f32.mrb[38].mxu1 }
 0x180   : > { %vm1800_vm6 = vcmp.gt.f32.partialorder %v1672_v17, 0.0  ;;  %v1928_v26 = vmul.f32 0.1, %v1672_v17  ;;  %vm1739_vm7 = vcmp.gt.f32.partialorder %v1611_v35, 0.0  ;;  %v1867_v27 = vmul.f32 0.1, %v1611_v35 }
 0x181   : > { %vm1803_vm8 = vcmp.gt.f32.partialorder %v1675_v36, 0.0  ;;  %v1931_v31 = vmul.f32 0.1, %v1675_v36  ;;  %v1992_v28 = vsel %vm1736_vm5, %v1608_v30, %v1864_v25  ;;  %vm1737_vm9 = vcmp.gt.f32.partialorder %v1609_v19, 0.0  ;;  %v4567_v10 = vpop.f32.mrb[39].mxu0  ;;  %v4569_v40 = vpop.f32.mrb[39].mxu1 }
 0x182   : > { %v2056_v63 = vsel %vm1800_vm6, %v1672_v17, %v1928_v26  ;;  %v1865_v32 = vmul.f32 0.1, %v1609_v19  ;;  %v1995_v2 = vsel %vm1739_vm7, %v1611_v35, %v1867_v27  ;;  %vm1801_vm10 = vcmp.gt.f32.partialorder %v1673_v20, 0.0 }
 0x183   : > { %v2059_v37 = vsel %vm1803_vm8, %v1675_v36, %v1931_v31  ;;  %v1929_v3 = vmul.f32 0.1, %v1673_v20  ;;  %v3295_v43 = vpack.c.bf16 %v1995_v2, %v1994_v9  ;;  %v1614_v23 = vadd.f32 %v4300_v7, %v1479_v42 }
 0x184   : > { %v3455_v29 = vpack.c.bf16 %v2059_v37, %v2058_v13  ;;  %v1993_v44 = vsel %vm1737_vm9, %v1609_v19, %v1865_v32  ;;  %v1678_v34 = vadd.f32 %v4300_v7, %v1543_v45  ;;  %v1477_v48 = vmul.f32 %v4298_v5, %v4479_v1 }
 0x185   : > { %v3290_v33 = vpack.c.bf16 %v1993_v44, %v1992_v28  ;;  %v2057_v24 = vsel %vm1801_vm10, %v1673_v20, %v1929_v3  ;;  %3559 = vst [vmem:[%s4323_s24 + $0x68] sm:$0xff] %v3295_v43   ;;  %vm1742_vm11 = vcmp.gt.f32.partialorder %v1614_v23, 0.0  ;;  %v1870_v53 = vmul.f32 0.1, %v1614_v23  ;;  %v4579_v50 = vpop.f32.mrb[40].mxu0  ;;  %v4581_v0 = vpop.f32.mrb[40].mxu1 }
 0x186   : > { %3591 = vst [vmem:[%s4323_s24 + $0x168] sm:$0xff] %v3455_v29   ;;  %v3450_v52 = vpack.c.bf16 %v2057_v24, %v2056_v63  ;;  %v1541_v54 = vmul.f32 %v4298_v5, %v4481_v4  ;;  %vm1806_vm12 = vcmp.gt.f32.partialorder %v1678_v34, 0.0  ;;  %v1934_v61 = vmul.f32 0.1, %v1678_v34  ;;  %v4587_v62 = vpop.f32.mrb[41].mxu0  ;;  %v4589_v6 = vpop.f32.mrb[41].mxu1 }
 0x187   : > { %3558 = vst [vmem:[%s4323_s24 + $0x60] sm:$0xff] %v3290_v33   ;;  %v1612_v56 = vadd.f32 %v4300_v7, %v1477_v48  ;;  %v1480_v1 = vmul.f32 %v4483_v11, %v4298_v5  ;;  %v1998_v8 = vsel %vm1742_vm11, %v1614_v23, %v1870_v53  ;;  %v1544_v9 = vmul.f32 %v4485_v12, %v4298_v5  ;;  %v4597_v14 = vpop.f32.mrb[42].mxu0  ;;  %v4599_v16 = vpop.f32.mrb[42].mxu1 }
 0x188   : > { %3590 = vst [vmem:[%s4323_s24 + $0x160] sm:$0xff] %v3450_v52   ;;  %v1676_v4 = vadd.f32 %v4300_v7, %v1541_v54  ;;  %v1478_v13 = vmul.f32 %v4298_v5, %v4488_v60  ;;  %v2062_v30 = vsel %vm1806_vm12, %v1678_v34, %v1934_v61  ;;  %v4602_v35 = vpop.f32.mrb[43].mxu0  ;;  %v4604_v36 = vpop.f32.mrb[43].mxu1  ;;  %v1542_v45 = vmul.f32 %v4298_v5, %v4490_v15 }
 0x189   : > { %vm1740_vm13 = vcmp.gt.f32.partialorder %v1612_v56, 0.0  ;;  %v1868_v11 = vmul.f32 0.1, %v1612_v56  ;;  %v1615_v17 = vadd.f32 %v4300_v7, %v1480_v1  ;;  %v1679_v12 = vadd.f32 %v4300_v7, %v1544_v9 }
 0x18a   : > { %vm1804_vm14 = vcmp.gt.f32.partialorder %v1676_v4, 0.0  ;;  %v1932_v19 = vmul.f32 0.1, %v1676_v4  ;;  %v1613_v20 = vadd.f32 %v4300_v7, %v1478_v13  ;;  %v1677_v28 = vadd.f32 %v4300_v7, %v1542_v45 }
 0x18b   : > { %v1996_v60 = vsel %vm1740_vm13, %v1612_v56, %v1868_v11  ;;  %vm1743_vm15 = vcmp.gt.f32.partialorder %v1615_v17, 0.0  ;;  %v1871_v42 = vmul.f32 0.1, %v1615_v17  ;;  %vm1807_vm0 = vcmp.gt.f32.partialorder %v1679_v12, 0.0 }
 0x18c   : > { %v2060_v25 = vsel %vm1804_vm14, %v1676_v4, %v1932_v19  ;;  %v1935_v26 = vmul.f32 0.1, %v1679_v12  ;;  %vm1741_vm1 = vcmp.gt.f32.partialorder %v1613_v20, 0.0  ;;  %v1869_v31 = vmul.f32 0.1, %v1613_v20 }
 0x18d   : > { %v1999_v27 = vsel %vm1743_vm15, %v1615_v17, %v1871_v42  ;;  %v1483_v63 = vmul.f32 %v4511_v38, %v4298_v5  ;;  %v1547_v37 = vmul.f32 %v4513_v39, %v4298_v5  ;;  %v1481_v15 = vmul.f32 %v4298_v5, %v4516_v46  ;;  %v4617_v3 = vpop.f32.mrb[44].mxu0  ;;  %v4619_v43 = vpop.f32.mrb[44].mxu1 }
 0x18e   : > { %v3305_v32 = vpack.c.bf16 %v1999_v27, %v1998_v8  ;;  %v2063_v2 = vsel %vm1807_vm0, %v1679_v12, %v1935_v26  ;;  %v1997_v44 = vsel %vm1741_vm1, %v1613_v20, %v1869_v31  ;;  %vm1805_vm2 = vcmp.gt.f32.partialorder %v1677_v28, 0.0  ;;  %v4621_v33 = vpop.f32.mrb[45].mxu0  ;;  %v4623_v38 = vpop.f32.mrb[45].mxu1  ;;  %v4652_v26 = vld [vmem:[#allocation4] ss:$0 sm:$0xff] }
 0x18f   : > { %v3465_v29 = vpack.c.bf16 %v2063_v2, %v2062_v30  ;;  %v1933_v23 = vmul.f32 0.1, %v1677_v28  ;;  %v3300_v24 = vpack.c.bf16 %v1997_v44, %v1996_v60  ;;  %v1618_v39 = vadd.f32 %v4300_v7, %v1483_v63  ;;  %v4629_v48 = vpop.f32.mrb[46].mxu0  ;;  %v4631_v52 = vpop.f32.mrb[46].mxu1 }
 0x190   : > { %3561 = vst [vmem:[%s4323_s24 + $0x78] sm:$0xff] %v3305_v32   ;;  %v1682_v46 = vadd.f32 %v4300_v7, %v1547_v37  ;;  %v1616_v34 = vadd.f32 %v4300_v7, %v1481_v15  ;;  %v1545_v54 = vmul.f32 %v4298_v5, %v4518_v47  ;;  %v1484_v61 = vmul.f32 %v4521_v49, %v4298_v5  ;;  %v4640_v1 = vpop.f32.mrb[47].mxu0  ;;  %v4642_v8 = vpop.f32.mrb[47].mxu1 }
 0x191   : > { %3593 = vst [vmem:[%s4323_s24 + $0x178] sm:$0xff] %v3465_v29   ;;  %v2061_v53 = vsel %vm1805_vm2, %v1677_v28, %v1933_v23  ;;  %v1548_v56 = vmul.f32 %v4523_v51, %v4298_v5  ;;  %3560 = vst [vmem:[%s4323_s24 + $0x70] sm:$0xff] %v3300_v24   ;;  %vm1746_vm3 = vcmp.gt.f32.partialorder %v1618_v39, 0.0  ;;  %v1874_v9 = vmul.f32 0.1, %v1618_v39 }
 0x192   : > { %v3460_v4 = vpack.c.bf16 %v2061_v53, %v2060_v25  ;;  %vm1810_vm4 = vcmp.gt.f32.partialorder %v1682_v46, 0.0  ;;  %v1938_v13 = vmul.f32 0.1, %v1682_v46  ;;  %vm1744_vm5 = vcmp.gt.f32.partialorder %v1616_v34, 0.0  ;;  %v4674_v23 = vld [vmem:[#allocation6] ss:$0 sm:$0xff] }
 0x193   : > { %v1872_v30 = vmul.f32 0.1, %v1616_v34  ;;  %v1680_v47 = vadd.f32 %v4300_v7, %v1545_v54  ;;  %v2002_v11 = vsel %vm1746_vm3, %v1618_v39, %v1874_v9  ;;  %v1619_v49 = vadd.f32 %v4300_v7, %v1484_v61 }
 0x194   : > { %3592 = vst [vmem:[%s4323_s24 + $0x170] sm:$0xff] %v3460_v4   ;;  %v1683_v51 = vadd.f32 %v4300_v7, %v1548_v56  ;;  %v1482_v17 = vmul.f32 %v4298_v5, %v4525_v57  ;;  %v2066_v19 = vsel %vm1810_vm4, %v1682_v46, %v1938_v13  ;;  %v1546_v27 = vmul.f32 %v4652_v26, %v4527_v58 }
 0x195   : > { %v2000_v12 = vsel %vm1744_vm5, %v1616_v34, %v1872_v30  ;;  %vm1808_vm6 = vcmp.gt.f32.partialorder %v1680_v47, 0.0  ;;  %v1936_v20 = vmul.f32 0.1, %v1680_v47  ;;  %vm1747_vm7 = vcmp.gt.f32.partialorder %v1619_v49, 0.0  ;;  %v4658_v5 = vpop.f32.mrb[48].mxu0  ;;  %v4660_v57 = vpop.f32.mrb[48].mxu1 }
 0x196   : > { %v1875_v60 = vmul.f32 0.1, %v1619_v49  ;;  %vm1811_vm8 = vcmp.gt.f32.partialorder %v1683_v51, 0.0  ;;  %v1939_v42 = vmul.f32 0.1, %v1683_v51  ;;  %v1617_v25 = vadd.f32 %v4300_v7, %v1482_v17  ;;  %v4666_v2 = vpop.f32.mrb[49].mxu0 }
 0x197   : > { %v2064_v45 = vsel %vm1808_vm6, %v1680_v47, %v1936_v20  ;;  %v1487_v31 = vmul.f32 %v4652_v26, %v4549_v18  ;;  %v1551_v32 = vmul.f32 %v4652_v26, %v4551_v41  ;;  %v1485_v7 = vmul.f32 %v4652_v26, %v4559_v21  ;;  %v4668_v58 = vpop.f32.mrb[49].mxu1  ;;  %v4670_v29 = vpop.f32.mrb[50].mxu0 }
 0x198   : > { %v2003_v28 = vsel %vm1747_vm7, %v1619_v49, %v1875_v60  ;;  %v2067_v63 = vsel %vm1811_vm8, %v1683_v51, %v1939_v42  ;;  %vm1745_vm9 = vcmp.gt.f32.partialorder %v1617_v25, 0.0  ;;  %v1873_v15 = vmul.f32 0.1, %v1617_v25  ;;  %v4672_v44 = vpop.f32.mrb[50].mxu1  ;;  %v4680_v46 = vpop.f32.mrb[51].mxu0 }
 0x199   : > { %v3315_v37 = vpack.c.bf16 %v2003_v28, %v2002_v11  ;;  %v3475_v18 = vpack.c.bf16 %v2067_v63, %v2066_v19  ;;  %v1681_v41 = vadd.f32 %v4674_v23, %v1546_v27  ;;  %v1622_v21 = vadd.f32 %v4674_v23, %v1487_v31  ;;  %v4682_v34 = vpop.f32.mrb[51].mxu1 }
 0x19a   : > { %v1686_v24 = vadd.f32 %v4674_v23, %v1551_v32  ;;  %v1620_v39 = vadd.f32 %v4674_v23, %v1485_v7  ;;  %v2001_v53 = vsel %vm1745_vm9, %v1617_v25, %v1873_v15  ;;  %v1549_v54 = vmul.f32 %v4652_v26, %v4561_v22 }
 0x19b   : > { %3563 = vst [vmem:[%s4323_s24 + $0x88] sm:$0xff] %v3315_v37   ;;  %3595 = vst [vmem:[%s4323_s24 + $0x188] sm:$0xff] %v3475_v18   ;;  %v1488_v61 = vmul.f32 %v4652_v26, %v4563_v59  ;;  %v1552_v56 = vmul.f32 %v4652_v26, %v4565_v55  ;;  %v3310_v4 = vpack.c.bf16 %v2001_v53, %v2000_v12  ;;  %vm1809_vm10 = vcmp.gt.f32.partialorder %v1681_v41, 0.0 }
 0x19c   : > { %v1937_v9 = vmul.f32 0.1, %v1681_v41  ;;  %vm1750_vm11 = vcmp.gt.f32.partialorder %v1622_v21, 0.0  ;;  %v1878_v13 = vmul.f32 0.1, %v1622_v21  ;;  %vm1814_vm12 = vcmp.gt.f32.partialorder %v1686_v24, 0.0 }
 0x19d   : > { %v1942_v30 = vmul.f32 0.1, %v1686_v24  ;;  %vm1748_vm13 = vcmp.gt.f32.partialorder %v1620_v39, 0.0  ;;  %3562 = vst [vmem:[%s4323_s24 + $0x80] sm:$0xff] %v3310_v4   ;;  %v1876_v11 = vmul.f32 0.1, %v1620_v39  ;;  %v1684_v49 = vadd.f32 %v4674_v23, %v1549_v54 }
 0x19e   : > { %v2065_v47 = vsel %vm1809_vm10, %v1681_v41, %v1937_v9  ;;  %v1623_v22 = vadd.f32 %v4674_v23, %v1488_v61  ;;  %v4695_v59 = vpop.f32.mrb[52].mxu0  ;;  %v4697_v51 = vpop.f32.mrb[52].mxu1  ;;  %v2006_v17 = vsel %vm1750_vm11, %v1622_v21, %v1878_v13  ;;  %v1687_v12 = vadd.f32 %v4674_v23, %v1552_v56 }
 0x19f   : > { %v3470_v55 = vpack.c.bf16 %v2065_v47, %v2064_v45  ;;  %v2070_v19 = vsel %vm1814_vm12, %v1686_v24, %v1942_v30  ;;  %v4700_v20 = vpop.f32.mrb[53].mxu0  ;;  %v4702_v60 = vpop.f32.mrb[53].mxu1  ;;  %v2004_v42 = vsel %vm1748_vm13, %v1620_v39, %v1876_v11  ;;  %vm1812_vm14 = vcmp.gt.f32.partialorder %v1684_v49, 0.0 }
 0x1a0   : > { %v1940_v25 = vmul.f32 0.1, %v1684_v49  ;;  %vm1751_vm15 = vcmp.gt.f32.partialorder %v1623_v22, 0.0  ;;  %v4704_v27 = vpop.f32.mrb[54].mxu0  ;;  %v4706_v31 = vpop.f32.mrb[54].mxu1  ;;  %vm1815_vm0 = vcmp.gt.f32.partialorder %v1687_v12, 0.0  ;;  %v1486_v63 = vmul.f32 %v4652_v26, %v4567_v10 }
 0x1a1   : > { %3594 = vst [vmem:[%s4323_s24 + $0x180] sm:$0xff] %v3470_v55   ;;  %v1879_v28 = vmul.f32 0.1, %v1623_v22  ;;  %v1943_v45 = vmul.f32 0.1, %v1687_v12  ;;  %v4711_v32 = vpop.f32.mrb[55].mxu0  ;;  %v1550_v37 = vmul.f32 %v4652_v26, %v4569_v40  ;;  %v1491_v18 = vmul.f32 %v4652_v26, %v4579_v50 }
 0x1a2   : > { %v2068_v7 = vsel %vm1812_vm14, %v1684_v49, %v1940_v25  ;;  %v1555_v15 = vmul.f32 %v4652_v26, %v4581_v0  ;;  %v4719_v41 = vpop.f32.mrb[55].mxu1  ;;  %v1621_v10 = vadd.f32 %v4674_v23, %v1486_v63  ;;  %v1489_v39 = vmul.f32 %v4652_v26, %v4587_v62 }
 0x1a3   : > { %v2007_v21 = vsel %vm1751_vm15, %v1623_v22, %v1879_v28  ;;  %v2071_v24 = vsel %vm1815_vm0, %v1687_v12, %v1943_v45  ;;  %v1685_v40 = vadd.f32 %v4674_v23, %v1550_v37  ;;  %v1626_v61 = vadd.f32 %v4674_v23, %v1491_v18 }
 0x1a4   : > { %v3325_v53 = vpack.c.bf16 %v2007_v21, %v2006_v17  ;;  %v3485_v54 = vpack.c.bf16 %v2071_v24, %v2070_v19  ;;  %vm1749_vm1 = vcmp.gt.f32.partialorder %v1621_v10, 0.0  ;;  %v1877_v50 = vmul.f32 0.1, %v1621_v10 }
 0x1a5   : > { %v1690_v56 = vadd.f32 %v4674_v23, %v1555_v15  ;;  %v1624_v0 = vadd.f32 %v4674_v23, %v1489_v39  ;;  %vm1813_vm2 = vcmp.gt.f32.partialorder %v1685_v40, 0.0  ;;  %v1941_v4 = vmul.f32 0.1, %v1685_v40  ;;  %v4730_v30 = vpop.f32.mrb[56].mxu0  ;;  %v4732_v47 = vpop.f32.mrb[56].mxu1 }
 0x1a6   : > { %3565 = vst [vmem:[%s4323_s24 + $0x98] sm:$0xff] %v3325_v53   ;;  %3597 = vst [vmem:[%s4323_s24 + $0x198] sm:$0xff] %v3485_v54   ;;  %vm1754_vm3 = vcmp.gt.f32.partialorder %v1626_v61, 0.0  ;;  %v1882_v9 = vmul.f32 0.1, %v1626_v61  ;;  %v2005_v13 = vsel %vm1749_vm1, %v1621_v10, %v1877_v50  ;;  %v4734_v17 = vpop.f32.mrb[57].mxu0  ;;  %v1553_v28 = vmul.f32 %v4652_v26, %v4589_v6 }
 0x1a7   : > { %vm1818_vm4 = vcmp.gt.f32.partialorder %v1690_v56, 0.0  ;;  %v1946_v62 = vmul.f32 0.1, %v1690_v56  ;;  %vm1752_vm5 = vcmp.gt.f32.partialorder %v1624_v0, 0.0  ;;  %v3320_v11 = vpack.c.bf16 %v2005_v13, %v2004_v42  ;;  %v4736_v19 = vpop.f32.mrb[57].mxu1  ;;  %v4742_v63 = vpop.f32.mrb[58].mxu0 }
 0x1a8   : > { %v2069_v49 = vsel %vm1813_vm2, %v1685_v40, %v1941_v4  ;;  %v2010_v22 = vsel %vm1754_vm3, %v1626_v61, %v1882_v9  ;;  %v1880_v55 = vmul.f32 0.1, %v1624_v0  ;;  %v1492_v45 = vmul.f32 %v4652_v26, %v4597_v14  ;;  %v4744_v37 = vpop.f32.mrb[58].mxu1  ;;  %v4754_v6 = vpop.f32.mrb[59].mxu0 }
 0x1a9   : > { %v3480_v12 = vpack.c.bf16 %v2069_v49, %v2068_v7  ;;  %v2074_v25 = vsel %vm1818_vm4, %v1690_v56, %v1946_v62  ;;  %3564 = vst [vmem:[%s4323_s24 + $0x90] sm:$0xff] %v3320_v11   ;;  %v1556_v18 = vmul.f32 %v4652_v26, %v4599_v16  ;;  %v1490_v7 = vmul.f32 %v4652_v26, %v4602_v35  ;;  %v4756_v21 = vpop.f32.mrb[59].mxu1 }
 0x1aa   : > { %v2008_v42 = vsel %vm1752_vm5, %v1624_v0, %v1880_v55  ;;  %v1554_v15 = vmul.f32 %v4652_v26, %v4604_v36  ;;  %v1688_v14 = vadd.f32 %v4674_v23, %v1553_v28  ;;  %v1627_v24 = vadd.f32 %v4674_v23, %v1492_v45 }
 0x1ab   : > { %3596 = vst [vmem:[%s4323_s24 + $0x190] sm:$0xff] %v3480_v12   ;;  %v1495_v10 = vmul.f32 %v4652_v26, %v4617_v3  ;;  %v1559_v16 = vmul.f32 %v4652_v26, %v4619_v43  ;;  %v1691_v35 = vadd.f32 %v4674_v23, %v1556_v18  ;;  %v1625_v39 = vadd.f32 %v4674_v23, %v1490_v7 }
 0x1ac   : > { %v1689_v36 = vadd.f32 %v4674_v23, %v1554_v15  ;;  %v1493_v53 = vmul.f32 %v4652_v26, %v4621_v33  ;;  %vm1816_vm6 = vcmp.gt.f32.partialorder %v1688_v14, 0.0  ;;  %v1944_v54 = vmul.f32 0.1, %v1688_v14 }
 0x1ad   : > { %vm1755_vm7 = vcmp.gt.f32.partialorder %v1627_v24, 0.0  ;;  %v1883_v40 = vmul.f32 0.1, %v1627_v24  ;;  %vm1819_vm8 = vcmp.gt.f32.partialorder %v1691_v35, 0.0  ;;  %v1947_v61 = vmul.f32 0.1, %v1691_v35 }
 0x1ae   : > { %vm1753_vm9 = vcmp.gt.f32.partialorder %v1625_v39, 0.0  ;;  %v1881_v3 = vmul.f32 0.1, %v1625_v39  ;;  %v2072_v50 = vsel %vm1816_vm6, %v1688_v14, %v1944_v54  ;;  %vm1817_vm10 = vcmp.gt.f32.partialorder %v1689_v36, 0.0  ;;  %v4770_v0 = vpop.f32.mrb[60].mxu0  ;;  %v4772_v4 = vpop.f32.mrb[60].mxu1 }
 0x1af   : > { %v2011_v56 = vsel %vm1755_vm7, %v1627_v24, %v1883_v40  ;;  %v1945_v43 = vmul.f32 0.1, %v1689_v36  ;;  %v2075_v13 = vsel %vm1819_vm8, %v1691_v35, %v1947_v61  ;;  %v1630_v62 = vadd.f32 %v4674_v23, %v1495_v10  ;;  %v4775_v11 = vpop.f32.mrb[61].mxu0  ;;  %v4777_v49 = vpop.f32.mrb[61].mxu1 }
 0x1b0   : > { %v3335_v9 = vpack.c.bf16 %v2011_v56, %v2010_v22  ;;  %v2009_v33 = vsel %vm1753_vm9, %v1625_v39, %v1881_v3  ;;  %v3495_v55 = vpack.c.bf16 %v2075_v13, %v2074_v25  ;;  %v1694_v45 = vadd.f32 %v4674_v23, %v1559_v16  ;;  %v4780_v18 = vpop.f32.mrb[62].mxu0  ;;  %v4782_v7 = vpop.f32.mrb[62].mxu1 }
 0x1b1   : > { %v3330_v12 = vpack.c.bf16 %v2009_v33, %v2008_v42  ;;  %v2073_v28 = vsel %vm1817_vm10, %v1689_v36, %v1945_v43  ;;  %vm1758_vm11 = vcmp.gt.f32.partialorder %v1630_v62, 0.0  ;;  %v1886_v15 = vmul.f32 0.1, %v1630_v62  ;;  %v4786_v24 = vpop.f32.mrb[63].mxu0  ;;  %v4788_v10 = vpop.f32.mrb[63].mxu1 }
 0x1b2   : > { %3567 = vst [vmem:[%s4323_s24 + $0xa8] sm:$0xff] %v3335_v9   ;;  %v3490_v22 = vpack.c.bf16 %v2073_v28, %v2072_v50  ;;  %v1628_v14 = vadd.f32 %v4674_v23, %v1493_v53  ;;  %3599 = vst [vmem:[%s4323_s24 + $0x1a8] sm:$0xff] %v3495_v55   ;;  %vm1822_vm12 = vcmp.gt.f32.partialorder %v1694_v45, 0.0  ;;  %v1950_v25 = vmul.f32 0.1, %v1694_v45 }
 0x1b3   : > { %3566 = vst [vmem:[%s4323_s24 + $0xa0] sm:$0xff] %v3330_v12   ;;  %v1557_v42 = vmul.f32 %v4652_v26, %v4623_v38  ;;  %v1496_v16 = vmul.f32 %v4652_v26, %v4629_v48  ;;  %v2014_v35 = vsel %vm1758_vm11, %v1630_v62, %v1886_v15  ;;  %v1560_v36 = vmul.f32 %v4652_v26, %v4631_v52 }
 0x1b4   : > { %3598 = vst [vmem:[%s4323_s24 + $0x1a0] sm:$0xff] %v3490_v22   ;;  %vm1756_vm13 = vcmp.gt.f32.partialorder %v1628_v14, 0.0  ;;  %v1884_v39 = vmul.f32 0.1, %v1628_v14  ;;  %v2078_v53 = vsel %vm1822_vm12, %v1694_v45, %v1950_v25  ;;  %v1494_v61 = vmul.f32 %v4652_v26, %v4640_v1 }
 0x1b5   : > { %v1692_v54 = vadd.f32 %v4674_v23, %v1557_v42  ;;  %v1631_v40 = vadd.f32 %v4674_v23, %v1496_v16  ;;  %v1695_v38 = vadd.f32 %v4674_v23, %v1560_v36  ;;  %v1558_v48 = vmul.f32 %v4652_v26, %v4642_v8 }
 0x1b6   : > { %v2012_v3 = vsel %vm1756_vm13, %v1628_v14, %v1884_v39  ;;  %v1499_v50 = vmul.f32 %v4652_v26, %v4658_v5  ;;  %v1629_v9 = vadd.f32 %v4674_v23, %v1494_v61  ;;  %v1563_v8 = vmul.f32 %v4652_v26, %v4660_v57 }
 0x1b7   : > { %vm1820_vm14 = vcmp.gt.f32.partialorder %v1692_v54, 0.0  ;;  %v1948_v56 = vmul.f32 0.1, %v1692_v54  ;;  %vm1759_vm15 = vcmp.gt.f32.partialorder %v1631_v40, 0.0  ;;  %v1887_v52 = vmul.f32 0.1, %v1631_v40 }
 0x1b8   : > { %vm1823_vm0 = vcmp.gt.f32.partialorder %v1695_v38, 0.0  ;;  %v1951_v43 = vmul.f32 0.1, %v1695_v38  ;;  %v1693_v1 = vadd.f32 %v4674_v23, %v1558_v48  ;;  %v1634_v62 = vadd.f32 %v4674_v23, %v1499_v50 }
 0x1b9   : > { %v2076_v13 = vsel %vm1820_vm14, %v1692_v54, %v1948_v56  ;;  %v2015_v33 = vsel %vm1759_vm15, %v1631_v40, %v1887_v52  ;;  %vm1757_vm1 = vcmp.gt.f32.partialorder %v1629_v9, 0.0  ;;  %v1885_v12 = vmul.f32 0.1, %v1629_v9 }
 0x1ba   : > { %v3345_v5 = vpack.c.bf16 %v2015_v33, %v2014_v35  ;;  %v2079_v55 = vsel %vm1823_vm0, %v1695_v38, %v1951_v43  ;;  %vm1821_vm2 = vcmp.gt.f32.partialorder %v1693_v1, 0.0  ;;  %v1949_v45 = vmul.f32 0.1, %v1693_v1 }
 0x1bb   : > { %v3505_v28 = vpack.c.bf16 %v2079_v55, %v2078_v53  ;;  %vm1762_vm3 = vcmp.gt.f32.partialorder %v1634_v62, 0.0  ;;  %v2013_v22 = vsel %vm1757_vm1, %v1629_v9, %v1885_v12  ;;  %v1890_v15 = vmul.f32 0.1, %v1634_v62 }
 0x1bc   : > { %3569 = vst [vmem:[%s4323_s24 + $0xb8] sm:$0xff] %v3345_v5   ;;  %v1698_v14 = vadd.f32 %v4674_v23, %v1563_v8  ;;  %v1497_v25 = vmul.f32 %v4652_v26, %v4666_v2  ;;  %v3340_v57 = vpack.c.bf16 %v2013_v22, %v2012_v3  ;;  %v2077_v42 = vsel %vm1821_vm2, %v1693_v1, %v1949_v45 }
 0x1bd   : > { %3601 = vst [vmem:[%s4323_s24 + $0x1b8] sm:$0xff] %v3505_v28   ;;  %v1561_v16 = vmul.f32 %v4652_v26, %v4668_v58  ;;  %v1500_v35 = vmul.f32 %v4652_v26, %v4670_v29  ;;  %v3500_v39 = vpack.c.bf16 %v2077_v42, %v2076_v13  ;;  %v2018_v36 = vsel %vm1762_vm3, %v1634_v62, %v1890_v15 }
 0x1be   : > { %vm1826_vm4 = vcmp.gt.f32.partialorder %v1698_v14, 0.0  ;;  %v1954_v53 = vmul.f32 0.1, %v1698_v14  ;;  %3568 = vst [vmem:[%s4323_s24 + $0xb0] sm:$0xff] %v3340_v57   ;;  %v1632_v54 = vadd.f32 %v4674_v23, %v1497_v25  ;;  %v1564_v61 = vmul.f32 %v4652_v26, %v4672_v44 }
 0x1bf   : > { %v1696_v40 = vadd.f32 %v4674_v23, %v1561_v16  ;;  %v1635_v2 = vadd.f32 %v4674_v23, %v1500_v35  ;;  %3600 = vst [vmem:[%s4323_s24 + $0x1b0] sm:$0xff] %v3500_v39   ;;  %v1498_v58 = vmul.f32 %v4652_v26, %v4680_v46  ;;  %v1562_v29 = vmul.f32 %v4652_v26, %v4682_v34 }
 0x1c0   : > { %v2082_v3 = vsel %vm1826_vm4, %v1698_v14, %v1954_v53  ;;  %v1503_v38 = vmul.f32 %v4652_v26, %v4695_v59  ;;  %vm1760_vm5 = vcmp.gt.f32.partialorder %v1632_v54, 0.0  ;;  %v1888_v48 = vmul.f32 0.1, %v1632_v54 }
 0x1c1   : > { %vm1824_vm6 = vcmp.gt.f32.partialorder %v1696_v40, 0.0  ;;  %v1952_v50 = vmul.f32 0.1, %v1696_v40  ;;  %vm1763_vm7 = vcmp.gt.f32.partialorder %v1635_v2, 0.0  ;;  %v1891_v56 = vmul.f32 0.1, %v1635_v2 }
 0x1c2   : > { %v1699_v52 = vadd.f32 %v4674_v23, %v1564_v61  ;;  %v1633_v44 = vadd.f32 %v4674_v23, %v1498_v58  ;;  %v2016_v43 = vsel %vm1760_vm5, %v1632_v54, %v1888_v48  ;;  %v1697_v46 = vadd.f32 %v4674_v23, %v1562_v29 }
 0x1c3   : > { %v2080_v9 = vsel %vm1824_vm6, %v1696_v40, %v1952_v50  ;;  %v1638_v34 = vadd.f32 %v4674_v23, %v1503_v38  ;;  %v2019_v1 = vsel %vm1763_vm7, %v1635_v2, %v1891_v56  ;;  %v1567_v55 = vmul.f32 %v4652_v26, %v4697_v51 }
 0x1c4   : > { %vm1827_vm8 = vcmp.gt.f32.partialorder %v1699_v52, 0.0  ;;  %v1955_v59 = vmul.f32 0.1, %v1699_v52  ;;  %vm1761_vm9 = vcmp.gt.f32.partialorder %v1633_v44, 0.0  ;;  %v3355_v13 = vpack.c.bf16 %v2019_v1, %v2018_v36 }
 0x1c5   : > { %v1889_v33 = vmul.f32 0.1, %v1633_v44  ;;  %vm1825_vm10 = vcmp.gt.f32.partialorder %v1697_v46, 0.0  ;;  %v1953_v62 = vmul.f32 0.1, %v1697_v46  ;;  %vm1766_vm11 = vcmp.gt.f32.partialorder %v1638_v34, 0.0 }
 0x1c6   : > { %v2083_v8 = vsel %vm1827_vm8, %v1699_v52, %v1955_v59  ;;  %v1894_v5 = vmul.f32 0.1, %v1638_v34  ;;  %3571 = vst [vmem:[%s4323_s24 + $0xc8] sm:$0xff] %v3355_v13   ;;  %v1501_v22 = vmul.f32 %v4652_v26, %v4700_v20  ;;  %v1702_v57 = vadd.f32 %v4674_v23, %v1567_v55 }
 0x1c7   : > { %v3515_v12 = vpack.c.bf16 %v2083_v8, %v2082_v3  ;;  %v2017_v28 = vsel %vm1761_vm9, %v1633_v44, %v1889_v33  ;;  %v2081_v45 = vsel %vm1825_vm10, %v1697_v46, %v1953_v62  ;;  %v1565_v16 = vmul.f32 %v4652_v26, %v4702_v60 }
 0x1c8   : > { %v3350_v15 = vpack.c.bf16 %v2017_v28, %v2016_v43  ;;  %v3510_v14 = vpack.c.bf16 %v2081_v45, %v2080_v9  ;;  %v2022_v25 = vsel %vm1766_vm11, %v1638_v34, %v1894_v5  ;;  %v1636_v42 = vadd.f32 %v4674_v23, %v1501_v22 }
 0x1c9   : > { %3603 = vst [vmem:[%s4323_s24 + $0x1c8] sm:$0xff] %v3515_v12   ;;  %v1504_v51 = vmul.f32 %v4652_v26, %v4704_v27  ;;  %v1568_v35 = vmul.f32 %v4652_v26, %v4706_v31  ;;  %vm1830_vm12 = vcmp.gt.f32.partialorder %v1702_v57, 0.0  ;;  %v1958_v20 = vmul.f32 0.1, %v1702_v57 }
 0x1ca   : > { %3570 = vst [vmem:[%s4323_s24 + $0xc0] sm:$0xff] %v3350_v15   ;;  %3602 = vst [vmem:[%s4323_s24 + $0x1c0] sm:$0xff] %v3510_v14   ;;  %v1502_v39 = vmul.f32 %v4652_v26, %v4711_v32  ;;  %v1566_v36 = vmul.f32 %v4652_v26, %v4719_v41  ;;  %vm1764_vm13 = vcmp.gt.f32.partialorder %v1636_v42, 0.0  ;;  %v1892_v53 = vmul.f32 0.1, %v1636_v42 }
 0x1cb   : > { %v1700_v60 = vadd.f32 %v4674_v23, %v1565_v16  ;;  %v1639_v54 = vadd.f32 %v4674_v23, %v1504_v51  ;;  %v2086_v27 = vsel %vm1830_vm12, %v1702_v57, %v1958_v20  ;;  %v1703_v40 = vadd.f32 %v4674_v23, %v1568_v35 }
 0x1cc   : > { %v1637_v31 = vadd.f32 %v4674_v23, %v1502_v39  ;;  %v1701_v2 = vadd.f32 %v4674_v23, %v1566_v36  ;;  %v2020_v61 = vsel %vm1764_vm13, %v1636_v42, %v1892_v53  ;;  %v1507_v56 = vmul.f32 %v4652_v26, %v4730_v30 }
 0x1cd   : > { %vm1828_vm14 = vcmp.gt.f32.partialorder %v1700_v60, 0.0  ;;  %v1956_v3 = vmul.f32 0.1, %v1700_v60  ;;  %vm1767_vm15 = vcmp.gt.f32.partialorder %v1639_v54, 0.0  ;;  %v1895_v32 = vmul.f32 0.1, %v1639_v54 }
 0x1ce   : > { %vm1831_vm0 = vcmp.gt.f32.partialorder %v1703_v40, 0.0  ;;  %v1959_v41 = vmul.f32 0.1, %v1703_v40  ;;  %vm1765_vm1 = vcmp.gt.f32.partialorder %v1637_v31, 0.0  ;;  %v1893_v29 = vmul.f32 0.1, %v1637_v31 }
 0x1cf   : > { %v2084_v58 = vsel %vm1828_vm14, %v1700_v60, %v1956_v3  ;;  %vm1829_vm2 = vcmp.gt.f32.partialorder %v1701_v2, 0.0  ;;  %v1957_v38 = vmul.f32 0.1, %v1701_v2  ;;  %v2023_v48 = vsel %vm1767_vm15, %v1639_v54, %v1895_v32 }
 0x1d0   : > { %v2087_v50 = vsel %vm1831_vm0, %v1703_v40, %v1959_v41  ;;  %v1571_v52 = vmul.f32 %v4652_v26, %v4732_v47  ;;  %v3365_v44 = vpack.c.bf16 %v2023_v48, %v2022_v25  ;;  %v2021_v9 = vsel %vm1765_vm1, %v1637_v31, %v1893_v29 }
 0x1d1   : > { %v3525_v43 = vpack.c.bf16 %v2087_v50, %v2086_v27  ;;  %v2085_v46 = vsel %vm1829_vm2, %v1701_v2, %v1957_v38  ;;  %v3360_v34 = vpack.c.bf16 %v2021_v9, %v2020_v61  ;;  %v1642_v59 = vadd.f32 %v4674_v23, %v1507_v56 }
 0x1d2   : > { %v3520_v1 = vpack.c.bf16 %v2085_v46, %v2084_v58  ;;  %v1706_v13 = vadd.f32 %v4674_v23, %v1571_v52  ;;  %3573 = vst [vmem:[%s4323_s24 + $0xd8] sm:$0xff] %v3365_v44   ;;  %v1505_v30 = vmul.f32 %v4652_v26, %v4734_v17  ;;  %v1569_v33 = vmul.f32 %v4652_v26, %v4736_v19 }
 0x1d3   : > { %3605 = vst [vmem:[%s4323_s24 + $0x1d8] sm:$0xff] %v3525_v43   ;;  %v1508_v47 = vmul.f32 %v4652_v26, %v4742_v63  ;;  %v1572_v62 = vmul.f32 %v4652_v26, %v4744_v37  ;;  %3572 = vst [vmem:[%s4323_s24 + $0xd0] sm:$0xff] %v3360_v34   ;;  %vm1770_vm3 = vcmp.gt.f32.partialorder %v1642_v59, 0.0  ;;  %v1898_v8 = vmul.f32 0.1, %v1642_v59 }
 0x1d4   : > { %3604 = vst [vmem:[%s4323_s24 + $0x1d0] sm:$0xff] %v3520_v1   ;;  %vm1834_vm4 = vcmp.gt.f32.partialorder %v1706_v13, 0.0  ;;  %v1962_v5 = vmul.f32 0.1, %v1706_v13  ;;  %v1640_v55 = vadd.f32 %v4674_v23, %v1505_v30  ;;  %v1704_v12 = vadd.f32 %v4674_v23, %v1569_v33 }
 0x1d5   : > { %v1643_v17 = vadd.f32 %v4674_v23, %v1508_v47  ;;  %v1707_v19 = vadd.f32 %v4674_v23, %v1572_v62  ;;  %v1506_v63 = vmul.f32 %v4652_v26, %v4754_v6  ;;  %v1570_v37 = vmul.f32 %v4652_v26, %v4756_v21 }
 0x1d6   : > { %v2026_v28 = vsel %vm1770_vm3, %v1642_v59, %v1898_v8  ;;  %v2090_v45 = vsel %vm1834_vm4, %v1706_v13, %v1962_v5  ;;  %vm1768_vm5 = vcmp.gt.f32.partialorder %v1640_v55, 0.0  ;;  %v1896_v22 = vmul.f32 0.1, %v1640_v55 }
 0x1d7   : > { %vm1771_vm6 = vcmp.gt.f32.partialorder %v1643_v17, 0.0  ;;  %v1899_v15 = vmul.f32 0.1, %v1643_v17  ;;  %vm1835_vm7 = vcmp.gt.f32.partialorder %v1707_v19, 0.0  ;;  %v1963_v14 = vmul.f32 0.1, %v1707_v19 }
 0x1d8   : > { %vm1832_vm8 = vcmp.gt.f32.partialorder %v1704_v12, 0.0  ;;  %v1960_v25 = vmul.f32 0.1, %v1704_v12  ;;  %v1641_v57 = vadd.f32 %v4674_v23, %v1506_v63  ;;  %v1705_v42 = vadd.f32 %v4674_v23, %v1570_v37 }
 0x1d9   : > { %v2027_v6 = vsel %vm1771_vm6, %v1643_v17, %v1899_v15  ;;  %v2091_v16 = vsel %vm1835_vm7, %v1707_v19, %v1963_v14  ;;  %v1511_v21 = vmul.f32 %v4652_v26, %v4770_v0  ;;  %v1575_v51 = vmul.f32 %v4652_v26, %v4772_v4 }
 0x1da   : > { %v3375_v35 = vpack.c.bf16 %v2027_v6, %v2026_v28  ;;  %v3535_v20 = vpack.c.bf16 %v2091_v16, %v2090_v45  ;;  %vm1769_vm9 = vcmp.gt.f32.partialorder %v1641_v57, 0.0  ;;  %v1897_v39 = vmul.f32 0.1, %v1641_v57 }
 0x1db   : > { %v2024_v36 = vsel %vm1768_vm5, %v1640_v55, %v1896_v22  ;;  %vm1833_vm10 = vcmp.gt.f32.partialorder %v1705_v42, 0.0  ;;  %v1961_v53 = vmul.f32 0.1, %v1705_v42  ;;  %v1646_v60 = vadd.f32 %v4674_v23, %v1511_v21 }
 0x1dc   : > { %v2088_v54 = vsel %vm1832_vm8, %v1704_v12, %v1960_v25  ;;  %3575 = vst [vmem:[%s4323_s24 + $0xe8] sm:$0xff] %v3375_v35   ;;  %3607 = vst [vmem:[%s4323_s24 + $0x1e8] sm:$0xff] %v3535_v20   ;;  %v2025_v0 = vsel %vm1769_vm9, %v1641_v57, %v1897_v39  ;;  %v1509_v4 = vmul.f32 %v4652_v26, %v4775_v11 }
 0x1dd   : > { %v1512_v27 = vmul.f32 %v4652_v26, %v4780_v18  ;;  %v3370_v40 = vpack.c.bf16 %v2025_v0, %v2024_v36  ;;  %v2089_v31 = vsel %vm1833_vm10, %v1705_v42, %v1961_v53  ;;  %v1710_v2 = vadd.f32 %v4674_v23, %v1575_v51 }
 0x1de   : > { %v1573_v61 = vmul.f32 %v4652_v26, %v4777_v49  ;;  %v3530_v3 = vpack.c.bf16 %v2089_v31, %v2088_v54  ;;  %v1644_v32 = vadd.f32 %v4674_v23, %v1509_v4  ;;  %v1902_v41 = vmul.f32 0.1, %v1646_v60 }
 0x1df   : > { %3574 = vst [vmem:[%s4323_s24 + $0xe0] sm:$0xff] %v3370_v40   ;;  %v1647_v58 = vadd.f32 %v4674_v23, %v1512_v27  ;;  %v1576_v11 = vmul.f32 %v4652_v26, %v4782_v7  ;;  %vm1774_vm11 = vcmp.gt.f32.partialorder %v1646_v60, 0.0  ;;  %v1510_v18 = vmul.f32 %v4652_v26, %v4786_v24 }
 0x1e0   : > { %3606 = vst [vmem:[%s4323_s24 + $0x1e0] sm:$0xff] %v3530_v3   ;;  %v1966_v29 = vmul.f32 0.1, %v1710_v2  ;;  %v1708_v38 = vadd.f32 %v4674_v23, %v1573_v61  ;;  %v1900_v48 = vmul.f32 0.1, %v1644_v32  ;;  %v1574_v52 = vmul.f32 %v4652_v26, %v4788_v10 }
 0x1e1   : > { %vm1775_vm12 = vcmp.gt.f32.partialorder %v1647_v58, 0.0  ;;  %v1903_v49 = vmul.f32 0.1, %v1647_v58  ;;  %v1711_v50 = vadd.f32 %v4674_v23, %v1576_v11  ;;  %v1645_v56 = vadd.f32 %v4674_v23, %v1510_v18 }
 0x1e2   : > { %v2030_v7 = vsel %vm1774_vm11, %v1646_v60, %v1902_v41  ;;  %vm1838_vm13 = vcmp.gt.f32.partialorder %v1710_v2, 0.0  ;;  %vm1772_vm14 = vcmp.gt.f32.partialorder %v1644_v32, 0.0  ;;  %v1964_v9 = vmul.f32 0.1, %v1708_v38 }
 0x1e3   : > { %v2031_v44 = vsel %vm1775_vm12, %v1647_v58, %v1903_v49  ;;  %vm1839_vm15 = vcmp.gt.f32.partialorder %v1711_v50, 0.0  ;;  %v1967_v24 = vmul.f32 0.1, %v1711_v50  ;;  %vm1773_vm0 = vcmp.gt.f32.partialorder %v1645_v56, 0.0 }
 0x1e4   : > { %v3385_v43 = vpack.c.bf16 %v2031_v44, %v2030_v7  ;;  %v1901_v46 = vmul.f32 0.1, %v1645_v56  ;;  %v1709_v34 = vadd.f32 %v4674_v23, %v1574_v52  ;;  %v2094_v1 = vsel %vm1838_vm13, %v1710_v2, %v1966_v29 }
 0x1e5   : > { %v2028_v59 = vsel %vm1772_vm14, %v1644_v32, %v1900_v48  ;;  %vm1836_vm1 = vcmp.gt.f32.partialorder %v1708_v38, 0.0  ;;  %v2095_v26 = vsel %vm1839_vm15, %v1711_v50, %v1967_v24 }
 0x1e6   : > { %3577 = vst [vmem:[%s4323_s24 + $0xf8] sm:$0xff] %v3385_v43   ;;  %v3545_v10 = vpack.c.bf16 %v2095_v26, %v2094_v1  ;;  %v2029_v13 = vsel %vm1773_vm0, %v1645_v56, %v1901_v46  ;;  %vm1837_vm2 = vcmp.gt.f32.partialorder %v1709_v34, 0.0  ;;  %v1965_v30 = vmul.f32 0.1, %v1709_v34 }
 0x1e7   : > { %v3380_v33 = vpack.c.bf16 %v2029_v13, %v2028_v59  ;;  %v2092_v47 = vsel %vm1836_vm1, %v1708_v38, %v1964_v9 }
 0x1e8   : > { %3609 = vst [vmem:[%s4323_s24 + $0x1f8] sm:$0xff] %v3545_v10   ;;  %v2093_v62 = vsel %vm1837_vm2, %v1709_v34, %v1965_v30 }
 0x1e9   : > { %3576 = vst [vmem:[%s4323_s24 + $0xf0] sm:$0xff] %v3380_v33   ;;  %v3540_v8 = vpack.c.bf16 %v2093_v62, %v2092_v47 }
 0x1eb   : > { %3608 = vst [vmem:[%s4323_s24 + $0x1f0] sm:$0xff] %v3540_v8  }
 0x1ec PF: > { %s16_s15 = sadd.s32 1, %s4014_s15  }
 0x1ed   : > { %p13_p8 = scmp.ge.s32.totalorder %s16_s15, 4  }
 0x1ef   :  { %15 = sbr.rel (!%p13_p8) target bundleno = 2 (0x2), region = 79 }
 0x1f6   :  { %2758 = vsyncpa [#allocation3], 1 }
 0x1f7   :  { %2760 = vsyncpa [#allocation3 + $0x1], 1 }
 0x1f8   :  { %2761 = vsyncpa [#allocation5], 1 }

// kernel: discriminator_forward.4
= control target key start
LH: loop header
LB: loop body
LE: loop exit
PB: predicated region body
PF: predicated region fallthrough
CT: control target
= control target key end

     0   :  { %s6066_s15 = smov 0   ;;  %s7167_s0 = inlined_call_operand.vmem [shape: bf16[512,2048], index: 0, kind: input, shape index: {}]   ;;  %s7168_s1 = inlined_call_operand.vmem [shape: bf16[2048,128], index: 1, kind: input, shape index: {}]   ;;  %s7169_s2 = inlined_call_operand.vmem [shape: f32[1,128], index: 2, kind: input, shape index: {}]   ;;  %s7170_s3 = inlined_call_operand.vmem [shape: f32[1,128], index: 3, kind: input, shape index: {}]   ;;  %s7171_s4 = inlined_call_operand.vmem [shape: bf16[512,128], index: 4, kind: output, shape index: {}]  }
   0x1 LB: > { %s4443_s16 = sadd.s32 4294967295, %s6039_s15   ;;  %p4447_p0 = scmp.ge.s32.totalorder %s6039_s15, 1  ;;  %s6039_s15 = sphi %s6066_s15, %s14_s15  }
   0x2   : > { %p164_p1 = scmp.lt.s32.totalorder %s6039_s15, 3 }
   0x4   : > { %p165_p2 = pnand %p4447_p0, %p164_p1 }
   0x5   : > { %v5905_v0 = vld [vmem:[%s7168_s1 + $0x40] sm:$0xff] (!%p165_p2)   ;;  %v5909_v4 = vld [vmem:[%s7168_s1 + $0x48] sm:$0xff] (!%p165_p2)   ;;  %v5913_v8 = vld [vmem:[%s7168_s1 + $0x50] sm:$0xff] (!%p165_p2)   ;;  %s4448_s25 = sshll.u32 (!%p165_p2), %s4443_s16, 5 }
   0x6   : > { %168 = sbr.rel (%p165_p2) target bundleno = 775 (0x307), region = 36  ;;  %v5906_v1 = vld [vmem:[%s7168_s1 + $0xc0] sm:$0xff] (!%p165_p2)   ;;  %5001 = vmatprep.subr.bf16.mxu0 (!%p165_p2), %v5905_v0  ;;  %v5910_v5 = vld [vmem:[%s7168_s1 + $0xc8] sm:$0xff] (!%p165_p2)   ;;  %v5914_v9 = vld [vmem:[%s7168_s1 + $0xd0] sm:$0xff] (!%p165_p2)   ;;  %p192_p3 = scmp.lt.s32.totalorder (!%p165_p2), %s4448_s25, 63 }
   0x7   : > { %v5907_v2 = vld [vmem:[%s7168_s1] sm:$0xff] (!%p165_p2)   ;;  %5113 = vmatprep.subr.bf16.mxu1 (!%p165_p2), %v5906_v1  ;;  %v5911_v6 = vld [vmem:[%s7168_s1 + $0x8] sm:$0xff] (!%p165_p2)   ;;  %v5915_v10 = vld [vmem:[%s7168_s1 + $0x10] sm:$0xff] (!%p165_p2)  }
   0x8   : > { %v5908_v3 = vld [vmem:[%s7168_s1 + $0x80] sm:$0xff] (!%p165_p2)   ;;  %5002 = vmatpush3.bf16.msra.mxu0 (!%p165_p2), %v5907_v2  ;;  %v5912_v7 = vld [vmem:[%s7168_s1 + $0x88] sm:$0xff] (!%p165_p2)   ;;  %v5916_v11 = vld [vmem:[%s7168_s1 + $0x90] sm:$0xff] (!%p165_p2)  }
   0x9   : > { %5114 = vmatpush3.bf16.msra.mxu1 (!%p165_p2), %v5908_v3  ;;  %5003 = vmatprep.subr.bf16.mxu0 (!%p165_p2), %v5909_v4  ;;  %v5917_v12 = vld [vmem:[%s7168_s1 + $0x58] sm:$0xff] (!%p165_p2)   ;;  %v5921_v16 = vld [vmem:[%s7168_s1 + $0x60] sm:$0xff] (!%p165_p2)   ;;  %v5925_v20 = vld [vmem:[%s7168_s1 + $0x68] sm:$0xff] (!%p165_p2)  }
   0xa   : > { %5115 = vmatprep.subr.bf16.mxu1 (!%p165_p2), %v5910_v5  ;;  %v5918_v13 = vld [vmem:[%s7168_s1 + $0xd8] sm:$0xff] (!%p165_p2)   ;;  %v5922_v17 = vld [vmem:[%s7168_s1 + $0xe0] sm:$0xff] (!%p165_p2)   ;;  %v5926_v21 = vld [vmem:[%s7168_s1 + $0xe8] sm:$0xff] (!%p165_p2)  }
   0xb   : > { %v5919_v14 = vld [vmem:[%s7168_s1 + $0x18] sm:$0xff] (!%p165_p2)   ;;  %v5923_v18 = vld [vmem:[%s7168_s1 + $0x20] sm:$0xff] (!%p165_p2)   ;;  %v5927_v22 = vld [vmem:[%s7168_s1 + $0x28] sm:$0xff] (!%p165_p2)  }
   0xc   : > { %5004 = vmatpush3.bf16.msra.mxu0 (!%p165_p2), %v5911_v6  ;;  %v5920_v15 = vld [vmem:[%s7168_s1 + $0x98] sm:$0xff] (!%p165_p2)   ;;  %v5924_v19 = vld [vmem:[%s7168_s1 + $0xa0] sm:$0xff] (!%p165_p2)   ;;  %v5928_v23 = vld [vmem:[%s7168_s1 + $0xa8] sm:$0xff] (!%p165_p2)  }
   0xd   : > { %5116 = vmatpush3.bf16.msra.mxu1 %v5912_v7  ;;  %5005 = vmatprep.subr.bf16.mxu0 %v5913_v8  ;;  %s7173_s25 = smov (!%p192_p3, %s4448_s25), 63  ;;  %v5929_v24 = vld [vmem:[%s7168_s1 + $0x70] sm:$0xff]   ;;  %v5933_v28 = vld [vmem:[%s7168_s1 + $0x78] sm:$0xff]   ;;  %v5937_v40 = vld [vmem:[%s7168_s1 + $0x140] sm:$0xff]  }
   0xe   : > { %5117 = vmatprep.subr.bf16.mxu1 %v5914_v9  ;;  %v5930_v25 = vld [vmem:[%s7168_s1 + $0xf0] sm:$0xff]   ;;  %s4873_s23 = sshll.u32 %s7173_s25, 6  ;;  %v5934_v29 = vld [vmem:[%s7168_s1 + $0xf8] sm:$0xff]   ;;  %v5938_v41 = vld [vmem:[%s7168_s1 + $0x100] sm:$0xff]   ;;  %s4452_s24 = sshll.u32 %s7173_s25, 2 }
   0xf   : > { %v5931_v26 = vld [vmem:[%s7168_s1 + $0x30] sm:$0xff]   ;;  %s6172_s7 = scalar_lea.vmem %s7167_s0, %s4873_s23  ;;  %v5935_v30 = vld [vmem:[%s7168_s1 + $0x38] sm:$0xff]   ;;  %v5939_v42 = vld [vmem:[%s7168_s1 + $0x1c0] sm:$0xff]   ;;  %s7058_s28 = scalar_lea.vmem %s7171_s4, %s4452_s24 }
  0x10   : > { %5006 = vmatpush3.bf16.msra.mxu0 %v5915_v10  ;;  %v5932_v27 = vld [vmem:[%s7168_s1 + $0xb0] sm:$0xff]   ;;  %v5936_v31 = vld [vmem:[%s7168_s1 + $0xb8] sm:$0xff]   ;;  %v205_v32 = vld [vmem:[%s6172_s7] sm:$0xff] }
  0x11   : > { %5118 = vmatpush3.bf16.msra.mxu1 %v5916_v11  ;;  %5007 = vmatprep.subr.bf16.mxu0 %v5917_v12  ;;  %v213_v33 = vld [vmem:[%s6172_s7 + $0x40] sm:$0xff]  ;;  %v206_v34 = vld [vmem:[%s6172_s7 + $0x8] sm:$0xff]  ;;  %v5945_v2 = vld [vmem:[%s7168_s1 + $0x150] sm:$0xff]  }
  0x12   : > { %5119 = vmatprep.subr.bf16.mxu1 %v5918_v13  ;;  %v4453_v35 = vcombine.low %v205_v32, %v213_v33  ;;  %v4454_v36 = vcombine.high %v205_v32, %v213_v33  ;;  %v214_v37 = vld [vmem:[%s6172_s7 + $0x48] sm:$0xff]  ;;  %v5940_v43 = vld [vmem:[%s7168_s1 + $0x180] sm:$0xff]   ;;  %v5946_v4 = vld [vmem:[%s7168_s1 + $0x110] sm:$0xff]  }
  0x13   : > { %v4455_v38 = vcombine.low %v206_v34, %v214_v37  ;;  %v4456_v39 = vcombine.high %v206_v34, %v214_v37  ;;  %v221_v44 = vld [vmem:[%s6172_s7 + $0x80] sm:$0xff]  ;;  %v222_v47 = vld [vmem:[%s6172_s7 + $0x88] sm:$0xff]  ;;  %v5947_v7 = vld [vmem:[%s7168_s1 + $0x1d0] sm:$0xff]  }
  0x14   : > { %5008 = vmatpush3.bf16.msra.mxu0 %v5919_v14  ;;  %2797 = vmatprep.mubr.bf16.mxu0 %v4454_v36  ;;  %v229_v45 = vld [vmem:[%s6172_s7 + $0xc0] sm:$0xff]  ;;  %v230_v48 = vld [vmem:[%s6172_s7 + $0xc8] sm:$0xff]  ;;  %v5948_v9 = vld [vmem:[%s7168_s1 + $0x190] sm:$0xff]  }
  0x15   : > { %5120 = vmatpush3.bf16.msra.mxu1 %v5920_v15  ;;  %5009 = vmatprep.subr.bf16.mxu0 %v5921_v16  ;;  %v4470_v46 = vcombine.high %v221_v44, %v229_v45  ;;  %v237_v49 = vld [vmem:[%s6172_s7 + $0x100] sm:$0xff]  ;;  %v4472_v50 = vcombine.high %v222_v47, %v230_v48  ;;  %v238_v52 = vld [vmem:[%s6172_s7 + $0x108] sm:$0xff]  ;;  %v4469_v54 = vcombine.low %v221_v44, %v229_v45  ;;  %v5949_v14 = vld [vmem:[%s7168_s1 + $0x158] sm:$0xff]  }
  0x16   : > { %5121 = vmatprep.subr.bf16.mxu1 %v5922_v17  ;;  %2958 = vmatprep.mubr.bf16.mxu1 %v4456_v39  ;;  %v245_v51 = vld [vmem:[%s6172_s7 + $0x140] sm:$0xff]  ;;  %v246_v53 = vld [vmem:[%s6172_s7 + $0x148] sm:$0xff]  ;;  %v4471_v56 = vcombine.low %v222_v47, %v230_v48  ;;  %v5950_v15 = vld [vmem:[%s7168_s1 + $0x118] sm:$0xff]  }
  0x17   : > { %v5941_v55 = vld [vmem:[%s7168_s1 + $0x148] sm:$0xff]   ;;  %v4486_v57 = vcombine.high %v237_v49, %v245_v51  ;;  %v4488_v59 = vcombine.high %v238_v52, %v246_v53  ;;  %v253_v62 = vld [vmem:[%s6172_s7 + $0x180] sm:$0xff]  ;;  %v4485_v3 = vcombine.low %v237_v49, %v245_v51  ;;  %v4487_v5 = vcombine.low %v238_v52, %v246_v53  ;;  %v5951_v17 = vld [vmem:[%s7168_s1 + $0x1d8] sm:$0xff]  }
  0x18   : > { %5010 = vmatpush3.bf16.msra.mxu0 %v5923_v18  ;;  %v5942_v58 = vld [vmem:[%s7168_s1 + $0x108] sm:$0xff]   ;;  %v261_v63 = vld [vmem:[%s6172_s7 + $0x1c0] sm:$0xff]  ;;  %v5962_v47 = vld [vmem:[%s7168_s1 + $0x130] sm:$0xff]  }
  0x19   : > { %5122 = vmatpush3.bf16.msra.mxu1 %v5924_v19  ;;  %5011 = vmatprep.subr.bf16.mxu0 %v5925_v20  ;;  %v5943_v60 = vld [vmem:[%s7168_s1 + $0x1c8] sm:$0xff]   ;;  %v4502_v6 = vcombine.high %v253_v62, %v261_v63  ;;  %v269_v10 = vld [vmem:[%s6172_s7 + $0x200] sm:$0xff]  ;;  %v4501_v16 = vcombine.low %v253_v62, %v261_v63  ;;  %v5952_v20 = vld [vmem:[%s7168_s1 + $0x198] sm:$0xff]  }
  0x1a   : > { %5123 = vmatprep.subr.bf16.mxu1 %v5926_v21  ;;  %v5944_v61 = vld [vmem:[%s7168_s1 + $0x188] sm:$0xff]   ;;  %v277_v11 = vld [vmem:[%s6172_s7 + $0x240] sm:$0xff]  ;;  %v5963_v48 = vld [vmem:[%s7168_s1 + $0x1f0] sm:$0xff]  }
  0x1b   : > { %v254_v0 = vld [vmem:[%s6172_s7 + $0x188] sm:$0xff]  ;;  %v4518_v19 = vcombine.high %v269_v10, %v277_v11  ;;  %v5964_v49 = vld [vmem:[%s7168_s1 + $0x1b0] sm:$0xff]   ;;  %v325_v51 = vld [vmem:[%s6172_s7 + $0x3c0] sm:$0xff] }
  0x1c   : > { %5012 = vmatpush3.bf16.msra.mxu0 %v5927_v22  ;;  %v262_v1 = vld [vmem:[%s6172_s7 + $0x1c8] sm:$0xff]  ;;  %v285_v22 = vld [vmem:[%s6172_s7 + $0x280] sm:$0xff] }
  0x1d   : > { %5124 = vmatpush3.bf16.msra.mxu1 %v5928_v23  ;;  %5013 = vmatprep.subr.bf16.mxu0 %v5929_v24  ;;  %v4504_v8 = vcombine.high %v254_v0, %v262_v1  ;;  %v270_v12 = vld [vmem:[%s6172_s7 + $0x208] sm:$0xff]  ;;  %v4503_v18 = vcombine.low %v254_v0, %v262_v1  ;;  %v293_v23 = vld [vmem:[%s6172_s7 + $0x2c0] sm:$0xff] }
  0x1e   : > { %5125 = vmatprep.subr.bf16.mxu1 %v5930_v25  ;;  %v278_v13 = vld [vmem:[%s6172_s7 + $0x248] sm:$0xff]  ;;  %v5953_v24 = vld [vmem:[%s7168_s1 + $0x160] sm:$0xff]   ;;  %v4534_v32 = vcombine.high %v285_v22, %v293_v23 }
  0x1f   : > { %v4520_v21 = vcombine.high %v270_v12, %v278_v13  ;;  %v286_v25 = vld [vmem:[%s6172_s7 + $0x288] sm:$0xff]  ;;  %v333_v62 = vld [vmem:[%s6172_s7 + $0x400] sm:$0xff] }
  0x20   : > { %5014 = vmatpush3.bf16.msra.mxu0 %v5931_v26  ;;  %v294_v26 = vld [vmem:[%s6172_s7 + $0x2c8] sm:$0xff]  ;;  %v341_v63 = vld [vmem:[%s6172_s7 + $0x440] sm:$0xff] }
  0x21   : > { %5126 = vmatpush3.bf16.msra.mxu1 %v5932_v27  ;;  %5015 = vmatprep.subr.bf16.mxu0 %v5933_v28  ;;  %v5954_v27 = vld [vmem:[%s7168_s1 + $0x120] sm:$0xff]   ;;  %v4536_v33 = vcombine.high %v286_v25, %v294_v26  ;;  %v5957_v34 = vld [vmem:[%s7168_s1 + $0x168] sm:$0xff]  }
  0x22   : > { %5127 = vmatprep.subr.bf16.mxu1 %v5934_v29  ;;  %v5955_v28 = vld [vmem:[%s7168_s1 + $0x1e0] sm:$0xff]   ;;  %v5958_v36 = vld [vmem:[%s7168_s1 + $0x128] sm:$0xff]  }
  0x23   : > { %v5956_v29 = vld [vmem:[%s7168_s1 + $0x1a0] sm:$0xff]   ;;  %v5959_v37 = vld [vmem:[%s7168_s1 + $0x1e8] sm:$0xff]  }
  0x24   : > { %5016 = vmatpush3.bf16.msra.mxu0 %v5935_v30  ;;  %v4517_v30 = vcombine.low %v269_v10, %v277_v11  ;;  %v5960_v39 = vld [vmem:[%s7168_s1 + $0x1a8] sm:$0xff]  }
  0x25   : > { %5128 = vmatpush3.bf16.msra.mxu1 %v5936_v31  ;;  %5225 = vmatprep.subr.bf16.mxu0 %v5937_v40  ;;  %v4519_v31 = vcombine.low %v270_v12, %v278_v13  ;;  %v302_v40 = vld [vmem:[%s6172_s7 + $0x308] sm:$0xff]  ;;  %v4581_v12 = vcombine.low %v333_v62, %v341_v63 }
  0x26   : > { %5337 = vmatprep.subr.bf16.mxu1 %v5939_v42  ;;  %v4533_v42 = vcombine.low %v285_v22, %v293_v23  ;;  %v318_v52 = vld [vmem:[%s6172_s7 + $0x388] sm:$0xff] }
  0x27   : > { %2798 = vmatmul.mubr.bf16.vlgmr.msra.gmra.mrb[0].mxu0 %v4453_v35  ;;  %v301_v35 = vld [vmem:[%s6172_s7 + $0x300] sm:$0xff]  ;;  %v326_v53 = vld [vmem:[%s6172_s7 + $0x3c8] sm:$0xff] }
  0x28   : > { %2959 = vmatmul.mubr.bf16.vlgmr.msra.gmra.mrb[0].mxu1 %v4455_v38  ;;  %5226 = vmatpush3.bf16.msra.mxu0 %v5938_v41  ;;  %v309_v38 = vld [vmem:[%s6172_s7 + $0x340] sm:$0xff]  ;;  %v310_v41 = vld [vmem:[%s6172_s7 + $0x348] sm:$0xff] }
  0x29   : > { %5338 = vmatpush3.bf16.msra.mxu1 %v5940_v43  ;;  %2805 = vmatprep.mubr.bf16.mxu0 %v4470_v46  ;;  %v4535_v43 = vcombine.low %v286_v25, %v294_v26  ;;  %v4550_v44 = vcombine.high %v301_v35, %v309_v38  ;;  %v4552_v45 = vcombine.high %v302_v40, %v310_v41  ;;  %v5961_v46 = vld [vmem:[%s7168_s1 + $0x170] sm:$0xff]   ;;  %v334_v0 = vld [vmem:[%s6172_s7 + $0x408] sm:$0xff]  ;;  %v389_v25 = vld [vmem:[%s6172_s7 + $0x5c0] sm:$0xff] }
  0x2a   : > { %2966 = vmatprep.mubr.bf16.mxu1 %v4472_v50  ;;  %5227 = vmatprep.subr.bf16.mxu0 %v5941_v55  ;;  %v317_v50 = vld [vmem:[%s6172_s7 + $0x380] sm:$0xff]  ;;  %v5965_v55 = vld [vmem:[%s7168_s1 + $0x178] sm:$0xff]   ;;  %v342_v1 = vld [vmem:[%s6172_s7 + $0x448] sm:$0xff] }
  0x2b   : > { %5339 = vmatprep.subr.bf16.mxu1 %v5943_v60  ;;  %v5967_v60 = vld [vmem:[%s7168_s1 + $0x1f8] sm:$0xff]   ;;  %v350_v10 = vld [vmem:[%s6172_s7 + $0x488] sm:$0xff]  ;;  %v4583_v13 = vcombine.low %v334_v0, %v342_v1 }
  0x2c   : > { %5228 = vmatpush3.bf16.msra.mxu0 %v5942_v58  ;;  %v5966_v58 = vld [vmem:[%s7168_s1 + $0x138] sm:$0xff]   ;;  %v358_v11 = vld [vmem:[%s6172_s7 + $0x4c8] sm:$0xff] }
  0x2d   : > { %5340 = vmatpush3.bf16.msra.mxu1 %v5944_v61  ;;  %5229 = vmatprep.subr.bf16.mxu0 %v5945_v2  ;;  %v5968_v61 = vld [vmem:[%s7168_s1 + $0x1b8] sm:$0xff]   ;;  %v5969_v2 = vld [vmem:[%s7168_s1 + $0x240] sm:$0xff]   ;;  %v382_v26 = vld [vmem:[%s6172_s7 + $0x588] sm:$0xff] }
  0x2e   : > { %5341 = vmatprep.subr.bf16.mxu1 %v5947_v7  ;;  %v4584_v7 = vcombine.high %v334_v0, %v342_v1  ;;  %v207_v0 = vld [vmem:[%s6172_s7 + $0x10] sm:$0xff] }
  0x2f   : > { %2806 = vmatmul.mubr.bf16.gmra.mrb[4].mxu0 %v4469_v54  ;;  %v4549_v54 = vcombine.low %v301_v35, %v309_v38  ;;  %v406_v35 = vld [vmem:[%s6172_s7 + $0x648] sm:$0xff]  ;;  %v215_v1 = vld [vmem:[%s6172_s7 + $0x50] sm:$0xff] }
  0x30   : > { %2967 = vmatmul.mubr.bf16.gmra.mrb[4].mxu1 %v4471_v56  ;;  %2813 = vmatprep.mubr.bf16.mxu0 %v4486_v57  ;;  %v4551_v56 = vcombine.low %v302_v40, %v310_v41  ;;  %v4566_v57 = vcombine.high %v317_v50, %v325_v51  ;;  %v413_v40 = vld [vmem:[%s6172_s7 + $0x680] sm:$0xff] }
  0x31   : > { %2974 = vmatprep.mubr.bf16.mxu1 %v4488_v59  ;;  %5230 = vmatpush3.bf16.msra.mxu0 %v5946_v4  ;;  %v4568_v59 = vcombine.high %v318_v52, %v326_v53  ;;  %v4567_v4 = vcombine.low %v318_v52, %v326_v53  ;;  %v421_v41 = vld [vmem:[%s6172_s7 + $0x6c0] sm:$0xff] }
  0x32   : > { %5342 = vmatpush3.bf16.msra.mxu1 %v5948_v9  ;;  %5231 = vmatprep.subr.bf16.mxu0 %v5949_v14  ;;  %v357_v9 = vld [vmem:[%s6172_s7 + $0x4c0] sm:$0xff]  ;;  %v4661_v52 = vcombine.low %v413_v40, %v421_v41 }
  0x33   : > { %5343 = vmatprep.subr.bf16.mxu1 %v5951_v17  ;;  %v373_v17 = vld [vmem:[%s6172_s7 + $0x540] sm:$0xff] }
  0x35   : > { %5232 = vmatpush3.bf16.msra.mxu0 %v5950_v15  ;;  %v4600_v15 = vcombine.high %v350_v10, %v358_v11 }
  0x36   : > { %5344 = vmatpush3.bf16.msra.mxu1 %v5952_v20  ;;  %5233 = vmatprep.subr.bf16.mxu0 %v5953_v24  ;;  %v381_v24 = vld [vmem:[%s6172_s7 + $0x580] sm:$0xff] }
  0x37   : > { %2814 = vmatmul.mubr.bf16.gmra.mrb[8].mxu0 %v4485_v3  ;;  %5345 = vmatprep.subr.bf16.mxu1 %v5955_v28  ;;  %v4565_v3 = vcombine.low %v317_v50, %v325_v51  ;;  %v430_v50 = vld [vmem:[%s6172_s7 + $0x708] sm:$0xff] }
  0x38   : > { %2975 = vmatmul.mubr.bf16.gmra.mrb[8].mxu1 %v4487_v5  ;;  %2821 = vmatprep.mubr.bf16.mxu0 %v4502_v6  ;;  %v4582_v5 = vcombine.high %v333_v62, %v341_v63  ;;  %v5971_v6 = vld [vmem:[%s7168_s1 + $0x2c0] sm:$0xff]   ;;  %v438_v51 = vld [vmem:[%s6172_s7 + $0x748] sm:$0xff] }
  0x39   : > { %2982 = vmatprep.mubr.bf16.mxu1 %v4504_v8  ;;  %5234 = vmatpush3.bf16.msra.mxu0 %v5954_v27  ;;  %v349_v8 = vld [vmem:[%s6172_s7 + $0x480] sm:$0xff]  ;;  %v390_v27 = vld [vmem:[%s6172_s7 + $0x5c8] sm:$0xff] }
  0x3a   : > { %5346 = vmatpush3.bf16.msra.mxu1 %v5956_v29  ;;  %5235 = vmatprep.subr.bf16.mxu0 %v5957_v34  ;;  %v4598_v14 = vcombine.high %v349_v8, %v357_v9  ;;  %v4597_v20 = vcombine.low %v349_v8, %v357_v9  ;;  %v398_v34 = vld [vmem:[%s6172_s7 + $0x608] sm:$0xff]  ;;  %v223_v8 = vld [vmem:[%s6172_s7 + $0x90] sm:$0xff] }
  0x3b   : > { %5347 = vmatprep.subr.bf16.mxu1 %v5959_v37  ;;  %v4631_v37 = vcombine.low %v382_v26, %v390_v27  ;;  %v231_v9 = vld [vmem:[%s6172_s7 + $0xd0] sm:$0xff] }
  0x3d   : > { %5236 = vmatpush3.bf16.msra.mxu0 %v5958_v36  ;;  %v4629_v36 = vcombine.low %v381_v24, %v389_v25 }
  0x3e   : > { %5348 = vmatpush3.bf16.msra.mxu1 %v5960_v39  ;;  %5237 = vmatprep.subr.bf16.mxu0 %v5961_v46  ;;  %v4648_v39 = vcombine.high %v398_v34, %v406_v35  ;;  %v4662_v46 = vcombine.high %v413_v40, %v421_v41  ;;  %v264_v40 = vld [vmem:[%s6172_s7 + $0x1d8] sm:$0xff] }
  0x3f   : > { %2822 = vmatmul.mubr.bf16.gmra.mrb[12].mxu0 %v4501_v16  ;;  %5349 = vmatprep.subr.bf16.mxu1 %v5963_v48  ;;  %v365_v16 = vld [vmem:[%s6172_s7 + $0x500] sm:$0xff]  ;;  %v5984_v41 = vld [vmem:[%s7168_s1 + $0x298] sm:$0xff]  }
  0x40   : > { %2983 = vmatmul.mubr.bf16.gmra.mrb[12].mxu1 %v4503_v18  ;;  %2829 = vmatprep.mubr.bf16.mxu0 %v4518_v19  ;;  %v366_v18 = vld [vmem:[%s6172_s7 + $0x508] sm:$0xff]  ;;  %v4614_v22 = vcombine.high %v365_v16, %v373_v17  ;;  %v4613_v28 = vcombine.low %v365_v16, %v373_v17  ;;  %v429_v48 = vld [vmem:[%s6172_s7 + $0x700] sm:$0xff]  ;;  %v4474_v16 = vcombine.high %v223_v8, %v231_v9 }
  0x41   : > { %2990 = vmatprep.mubr.bf16.mxu1 %v4520_v21  ;;  %5238 = vmatpush3.bf16.msra.mxu0 %v5962_v47  ;;  %v374_v19 = vld [vmem:[%s6172_s7 + $0x548] sm:$0xff]  ;;  %v4599_v21 = vcombine.low %v350_v10, %v358_v11  ;;  %v4457_v10 = vcombine.low %v207_v0, %v215_v1  ;;  %v224_v11 = vld [vmem:[%s6172_s7 + $0x98] sm:$0xff] }
  0x42   : > { %5350 = vmatpush3.bf16.msra.mxu1 %v5964_v49  ;;  %5239 = vmatprep.subr.bf16.mxu0 %v5965_v55  ;;  %v4616_v23 = vcombine.high %v366_v18, %v374_v19  ;;  %v4615_v29 = vcombine.low %v366_v18, %v374_v19  ;;  %v437_v49 = vld [vmem:[%s6172_s7 + $0x740] sm:$0xff]  ;;  %v4680_v55 = vcombine.high %v430_v50, %v438_v51  ;;  %v5973_v18 = vld [vmem:[%s7168_s1 + $0x248] sm:$0xff]  }
  0x43   : > { %5351 = vmatprep.subr.bf16.mxu1 %v5967_v60  ;;  %v4677_v60 = vcombine.low %v429_v48, %v437_v49  ;;  %v5975_v19 = vld [vmem:[%s7168_s1 + $0x2c8] sm:$0xff]  }
  0x45   : > { %5240 = vmatpush3.bf16.msra.mxu0 %v5966_v58  ;;  %v446_v58 = vld [vmem:[%s6172_s7 + $0x788] sm:$0xff] }
  0x46   : > { %5352 = vmatpush3.bf16.msra.mxu1 %v5968_v61  ;;  %5449 = vmatprep.subr.bf16.mxu0 %v5969_v2  ;;  %v4679_v61 = vcombine.low %v430_v50, %v438_v51  ;;  %v208_v2 = vld [vmem:[%s6172_s7 + $0x18] sm:$0xff]  ;;  %v5989_v50 = vld [vmem:[%s7168_s1 + $0x268] sm:$0xff]  }
  0x47   : > { %2830 = vmatmul.mubr.bf16.gmra.mrb[16].mxu0 %v4517_v30  ;;  %5561 = vmatprep.subr.bf16.mxu1 %v5971_v6  ;;  %v4630_v30 = vcombine.high %v381_v24, %v389_v25  ;;  %v4458_v6 = vcombine.high %v207_v0, %v215_v1  ;;  %v5977_v24 = vld [vmem:[%s7168_s1 + $0x250] sm:$0xff]   ;;  %v240_v25 = vld [vmem:[%s6172_s7 + $0x118] sm:$0xff]  ;;  %v5991_v51 = vld [vmem:[%s7168_s1 + $0x2e8] sm:$0xff]  }
  0x48   : > { %2991 = vmatmul.mubr.bf16.gmra.mrb[16].mxu1 %v4519_v31  ;;  %2837 = vmatprep.mubr.bf16.mxu0 %v4534_v32  ;;  %v4632_v31 = vcombine.high %v382_v26, %v390_v27  ;;  %v397_v32 = vld [vmem:[%s6172_s7 + $0x600] sm:$0xff]  ;;  %v248_v26 = vld [vmem:[%s6172_s7 + $0x158] sm:$0xff]  ;;  %v5979_v27 = vld [vmem:[%s7168_s1 + $0x2d0] sm:$0xff]  }
  0x49   : > { %2998 = vmatprep.mubr.bf16.mxu1 %v4536_v33  ;;  %v405_v33 = vld [vmem:[%s6172_s7 + $0x640] sm:$0xff]  ;;  %v5994_v0 = vld [vmem:[%s7168_s1 + $0x230] sm:$0xff]  }
  0x4a   : > { %v4646_v38 = vcombine.high %v397_v32, %v405_v33  ;;  %v5996_v1 = vld [vmem:[%s7168_s1 + $0x2b0] sm:$0xff]  }
  0x4f   : > { %2838 = vmatmul.mubr.bf16.gmra.mrb[20].mxu0 %v4533_v42  ;;  %v414_v42 = vld [vmem:[%s6172_s7 + $0x688] sm:$0xff] }
  0x50   : > { %2999 = vmatmul.mubr.bf16.gmra.mrb[20].mxu1 %v4535_v43  ;;  %2845 = vmatprep.mubr.bf16.mxu0 %v4550_v44  ;;  %v422_v43 = vld [vmem:[%s6172_s7 + $0x6c8] sm:$0xff]  ;;  %v4645_v44 = vcombine.low %v397_v32, %v405_v33  ;;  %v5978_v32 = vld [vmem:[%s7168_s1 + $0x210] sm:$0xff]  }
  0x51   : > { %3006 = vmatprep.mubr.bf16.mxu1 %v4552_v45  ;;  %v4647_v45 = vcombine.low %v398_v34, %v406_v35  ;;  %v4664_v47 = vcombine.high %v414_v42, %v422_v43  ;;  %v4663_v53 = vcombine.low %v414_v42, %v422_v43  ;;  %v5980_v33 = vld [vmem:[%s7168_s1 + $0x290] sm:$0xff]   ;;  %v5981_v34 = vld [vmem:[%s7168_s1 + $0x258] sm:$0xff]   ;;  %v5985_v42 = vld [vmem:[%s7168_s1 + $0x260] sm:$0xff]  }
  0x52   : > { %v5983_v35 = vld [vmem:[%s7168_s1 + $0x2d8] sm:$0xff]  }
  0x57   : > { %2846 = vmatmul.mubr.bf16.gmra.mrb[24].mxu0 %v4549_v54  ;;  %v4678_v54 = vcombine.high %v429_v48, %v437_v49  ;;  %v5986_v48 = vld [vmem:[%s7168_s1 + $0x220] sm:$0xff]  }
  0x58   : > { %3007 = vmatmul.mubr.bf16.gmra.mrb[24].mxu1 %v4551_v56  ;;  %2853 = vmatprep.mubr.bf16.mxu0 %v4566_v57  ;;  %v445_v56 = vld [vmem:[%s6172_s7 + $0x780] sm:$0xff] }
  0x59   : > { %3014 = vmatprep.mubr.bf16.mxu1 %v4568_v59  ;;  %v453_v57 = vld [vmem:[%s6172_s7 + $0x7c0] sm:$0xff]  ;;  %v454_v59 = vld [vmem:[%s6172_s7 + $0x7c8] sm:$0xff] }
  0x5a   : > { %v4694_v62 = vcombine.high %v445_v56, %v453_v57  ;;  %v4696_v63 = vcombine.high %v446_v58, %v454_v59  ;;  %v5988_v49 = vld [vmem:[%s7168_s1 + $0x2a0] sm:$0xff]  }
  0x5f   : > { %2854 = vmatmul.mubr.bf16.gmra.mrb[28].mxu0 %v4565_v3  ;;  %v216_v3 = vld [vmem:[%s6172_s7 + $0x58] sm:$0xff] }
  0x60   : > { %3015 = vmatmul.mubr.bf16.gmra.mrb[28].mxu1 %v4567_v4  ;;  %2861 = vmatprep.mubr.bf16.mxu0 %v4582_v5  ;;  %v4693_v4 = vcombine.low %v445_v56, %v453_v57  ;;  %v4695_v5 = vcombine.low %v446_v58, %v454_v59  ;;  %v280_v56 = vld [vmem:[%s6172_s7 + $0x258] sm:$0xff]  ;;  %v5992_v57 = vld [vmem:[%s7168_s1 + $0x2a8] sm:$0xff]   ;;  %v5993_v58 = vld [vmem:[%s7168_s1 + $0x270] sm:$0xff]  }
  0x61   : > { %3022 = vmatprep.mubr.bf16.mxu1 %v4584_v7  ;;  %v4460_v7 = vcombine.high %v208_v2, %v216_v3 }
  0x67   : > { %2862 = vmatmul.mubr.bf16.gmra.mrb[32].mxu0 %v4581_v12  ;;  %v232_v12 = vld [vmem:[%s6172_s7 + $0xd8] sm:$0xff] }
  0x68   : > { %3023 = vmatmul.mubr.bf16.gmra.mrb[32].mxu1 %v4583_v13  ;;  %2869 = vmatprep.mubr.bf16.mxu0 %v4598_v14  ;;  %v4459_v13 = vcombine.low %v208_v2, %v216_v3  ;;  %v5970_v14 = vld [vmem:[%s7168_s1 + $0x200] sm:$0xff]   ;;  %v4476_v17 = vcombine.high %v224_v11, %v232_v12  ;;  %v5997_v2 = vld [vmem:[%s7168_s1 + $0x278] sm:$0xff]  }
  0x69   : > { %3030 = vmatprep.mubr.bf16.mxu1 %v4600_v15  ;;  %v5972_v15 = vld [vmem:[%s7168_s1 + $0x280] sm:$0xff]   ;;  %v5999_v3 = vld [vmem:[%s7168_s1 + $0x2f8] sm:$0xff]  }
  0x6f   : > { %2870 = vmatmul.mubr.bf16.gmra.mrb[36].mxu0 %v4597_v20  ;;  %v239_v20 = vld [vmem:[%s6172_s7 + $0x110] sm:$0xff] }
  0x70   : > { %3031 = vmatmul.mubr.bf16.gmra.mrb[36].mxu1 %v4599_v21  ;;  %2877 = vmatprep.mubr.bf16.mxu0 %v4614_v22  ;;  %v5974_v21 = vld [vmem:[%s7168_s1 + $0x208] sm:$0xff]   ;;  %v247_v22 = vld [vmem:[%s6172_s7 + $0x150] sm:$0xff] }
  0x71   : > { %3038 = vmatprep.mubr.bf16.mxu1 %v4616_v23  ;;  %v5976_v23 = vld [vmem:[%s7168_s1 + $0x288] sm:$0xff]   ;;  %v4489_v43 = vcombine.low %v239_v20, %v247_v22 }
  0x77   : > { %2878 = vmatmul.mubr.bf16.gmra.mrb[40].mxu0 %v4613_v28  ;;  %v4473_v28 = vcombine.low %v223_v8, %v231_v9  ;;  %v296_v8 = vld [vmem:[%s6172_s7 + $0x2d8] sm:$0xff] }
  0x78   : > { %3039 = vmatmul.mubr.bf16.gmra.mrb[40].mxu1 %v4615_v29  ;;  %2885 = vmatprep.mubr.bf16.mxu0 %v4630_v30  ;;  %v4475_v29 = vcombine.low %v224_v11, %v232_v12  ;;  %v4490_v30 = vcombine.high %v239_v20, %v247_v22  ;;  %v6000_v9 = vld [vmem:[%s7168_s1 + $0x2b8] sm:$0xff]   ;;  %v6003_v12 = vld [vmem:[%s7168_s1 + $0x3c0] sm:$0xff]  }
  0x79   : > { %3046 = vmatprep.mubr.bf16.mxu1 %v4632_v31  ;;  %v4492_v31 = vcombine.high %v240_v25, %v248_v26 }
  0x7f   : > { %2886 = vmatmul.mubr.bf16.gmra.mrb[44].mxu0 %v4629_v36  ;;  %v255_v36 = vld [vmem:[%s6172_s7 + $0x190] sm:$0xff] }
  0x80   : > { %3047 = vmatmul.mubr.bf16.gmra.mrb[44].mxu1 %v4631_v37  ;;  %2893 = vmatprep.mubr.bf16.mxu0 %v4646_v38  ;;  %v263_v37 = vld [vmem:[%s6172_s7 + $0x1d0] sm:$0xff]  ;;  %v256_v38 = vld [vmem:[%s6172_s7 + $0x198] sm:$0xff] }
  0x81   : > { %3054 = vmatprep.mubr.bf16.mxu1 %v4648_v39  ;;  %v5982_v39 = vld [vmem:[%s7168_s1 + $0x218] sm:$0xff]   ;;  %v4505_v59 = vcombine.low %v255_v36, %v263_v37 }
  0x87   : > { %2894 = vmatmul.mubr.bf16.gmra.mrb[48].mxu0 %v4645_v44  ;;  %v5987_v44 = vld [vmem:[%s7168_s1 + $0x2e0] sm:$0xff]  }
  0x88   : > { %3055 = vmatmul.mubr.bf16.gmra.mrb[48].mxu1 %v4647_v45  ;;  %2901 = vmatprep.mubr.bf16.mxu0 %v4662_v46  ;;  %v4491_v45 = vcombine.low %v240_v25, %v248_v26  ;;  %v4506_v46 = vcombine.high %v255_v36, %v263_v37  ;;  %v327_v25 = vld [vmem:[%s6172_s7 + $0x3d0] sm:$0xff]  ;;  %v320_v26 = vld [vmem:[%s6172_s7 + $0x398] sm:$0xff] }
  0x89   : > { %3062 = vmatprep.mubr.bf16.mxu1 %v4664_v47  ;;  %v4508_v47 = vcombine.high %v256_v38, %v264_v40 }
  0x8f   : > { %2902 = vmatmul.mubr.bf16.gmra.mrb[52].mxu0 %v4661_v52  ;;  %v271_v52 = vld [vmem:[%s6172_s7 + $0x210] sm:$0xff] }
  0x90   : > { %3063 = vmatmul.mubr.bf16.gmra.mrb[52].mxu1 %v4663_v53  ;;  %2909 = vmatprep.mubr.bf16.mxu0 %v4678_v54  ;;  %v279_v53 = vld [vmem:[%s6172_s7 + $0x250] sm:$0xff]  ;;  %v272_v54 = vld [vmem:[%s6172_s7 + $0x218] sm:$0xff] }
  0x91   : > { %3070 = vmatprep.mubr.bf16.mxu1 %v4680_v55  ;;  %v5990_v55 = vld [vmem:[%s7168_s1 + $0x228] sm:$0xff]   ;;  %v4521_v11 = vcombine.low %v271_v52, %v279_v53 }
  0x97   : > { %2910 = vmatmul.mubr.bf16.gmra.mrb[56].mxu0 %v4677_v60  ;;  %v5995_v60 = vld [vmem:[%s7168_s1 + $0x2f0] sm:$0xff]  }
  0x98   : > { %3071 = vmatmul.mubr.bf16.gmra.mrb[56].mxu1 %v4679_v61  ;;  %2917 = vmatprep.mubr.bf16.mxu0 %v4694_v62  ;;  %v4507_v61 = vcombine.low %v256_v38, %v264_v40  ;;  %v4522_v62 = vcombine.high %v271_v52, %v279_v53  ;;  %v351_v40 = vld [vmem:[%s6172_s7 + $0x490] sm:$0xff] }
  0x99   : > { %3078 = vmatprep.mubr.bf16.mxu1 %v4696_v63  ;;  %v4524_v63 = vcombine.high %v272_v54, %v280_v56 }
  0x9f   : > { %2918 = vmatmul.mubr.bf16.gmra.mrb[60].mxu0 %v4693_v4  ;;  %v287_v4 = vld [vmem:[%s6172_s7 + $0x290] sm:$0xff] }
  0xa0   : > { %3079 = vmatmul.mubr.bf16.gmra.mrb[60].mxu1 %v4695_v5  ;;  %3119 = vmatprep.mubr.bf16.mxu0 %v4458_v6  ;;  %v295_v5 = vld [vmem:[%s6172_s7 + $0x2d0] sm:$0xff]  ;;  %v288_v6 = vld [vmem:[%s6172_s7 + $0x298] sm:$0xff] }
  0xa1   : > { %3280 = vmatprep.mubr.bf16.mxu1 %v4460_v7  ;;  %v5998_v7 = vld [vmem:[%s7168_s1 + $0x238] sm:$0xff]   ;;  %v4537_v20 = vcombine.low %v287_v4, %v295_v5 }
  0xa7   : > { %3120 = vmatmul.mubr.bf16.vlgmr.msra.gmra.mrb[64].mxu0 %v4457_v10  ;;  %v6001_v10 = vld [vmem:[%s7168_s1 + $0x340] sm:$0xff]  }
  0xa8   : > { %3281 = vmatmul.mubr.bf16.vlgmr.msra.gmra.mrb[64].mxu1 %v4459_v13  ;;  %5450 = vmatpush3.bf16.msra.mxu0 %v5970_v14  ;;  %v4523_v13 = vcombine.low %v272_v54, %v280_v56  ;;  %v4538_v14 = vcombine.high %v287_v4, %v295_v5  ;;  %v383_v56 = vld [vmem:[%s6172_s7 + $0x590] sm:$0xff]  ;;  %v408_v4 = vld [vmem:[%s6172_s7 + $0x658] sm:$0xff] }
  0xa9   : > { %5562 = vmatpush3.bf16.msra.mxu1 %v5972_v15  ;;  %3127 = vmatprep.mubr.bf16.mxu0 %v4474_v16  ;;  %v4540_v15 = vcombine.high %v288_v6, %v296_v8  ;;  %v303_v16 = vld [vmem:[%s6172_s7 + $0x310] sm:$0xff] }
  0xaa   : > { %3288 = vmatprep.mubr.bf16.mxu1 %v4476_v17  ;;  %5451 = vmatprep.subr.bf16.mxu0 %v5973_v18  ;;  %v311_v17 = vld [vmem:[%s6172_s7 + $0x350] sm:$0xff]  ;;  %v304_v18 = vld [vmem:[%s6172_s7 + $0x318] sm:$0xff] }
  0xab   : > { %5563 = vmatprep.subr.bf16.mxu1 %v5975_v19  ;;  %v312_v19 = vld [vmem:[%s6172_s7 + $0x358] sm:$0xff]  ;;  %v4554_v22 = vcombine.high %v303_v16, %v311_v17 }
  0xac   : > { %5452 = vmatpush3.bf16.msra.mxu0 %v5974_v21  ;;  %v4539_v21 = vcombine.low %v288_v6, %v296_v8 }
  0xad   : > { %5564 = vmatpush3.bf16.msra.mxu1 %v5976_v23  ;;  %5453 = vmatprep.subr.bf16.mxu0 %v5977_v24  ;;  %v4556_v23 = vcombine.high %v304_v18, %v312_v19  ;;  %v319_v24 = vld [vmem:[%s6172_s7 + $0x390] sm:$0xff] }
  0xae   : > { %5565 = vmatprep.subr.bf16.mxu1 %v5979_v27  ;;  %v328_v27 = vld [vmem:[%s6172_s7 + $0x3d8] sm:$0xff]  ;;  %v4569_v36 = vcombine.low %v319_v24, %v327_v25 }
  0xaf   : > { %3128 = vmatmul.mubr.bf16.gmra.mrb[68].mxu0 %v4473_v28  ;;  %v4553_v28 = vcombine.low %v303_v16, %v311_v17  ;;  %v4571_v37 = vcombine.low %v320_v26, %v328_v27 }
  0xb0   : > { %3289 = vmatmul.mubr.bf16.gmra.mrb[68].mxu1 %v4475_v29  ;;  %3135 = vmatprep.mubr.bf16.mxu0 %v4490_v30  ;;  %v4555_v29 = vcombine.low %v304_v18, %v312_v19  ;;  %v4570_v30 = vcombine.high %v319_v24, %v327_v25  ;;  %v416_v25 = vld [vmem:[%s6172_s7 + $0x698] sm:$0xff] }
  0xb1   : > { %3296 = vmatprep.mubr.bf16.mxu1 %v4492_v31  ;;  %5454 = vmatpush3.bf16.msra.mxu0 %v5978_v32  ;;  %v4572_v31 = vcombine.high %v320_v26, %v328_v27  ;;  %v335_v32 = vld [vmem:[%s6172_s7 + $0x410] sm:$0xff]  ;;  %v424_v26 = vld [vmem:[%s6172_s7 + $0x6d8] sm:$0xff] }
  0xb2   : > { %5566 = vmatpush3.bf16.msra.mxu1 %v5980_v33  ;;  %5455 = vmatprep.subr.bf16.mxu0 %v5981_v34  ;;  %v343_v33 = vld [vmem:[%s6172_s7 + $0x450] sm:$0xff]  ;;  %v336_v34 = vld [vmem:[%s6172_s7 + $0x418] sm:$0xff] }
  0xb3   : > { %5567 = vmatprep.subr.bf16.mxu1 %v5983_v35  ;;  %v344_v35 = vld [vmem:[%s6172_s7 + $0x458] sm:$0xff]  ;;  %v4586_v38 = vcombine.high %v335_v32, %v343_v33 }
  0xb5   : > { %5456 = vmatpush3.bf16.msra.mxu0 %v5982_v39  ;;  %v4588_v39 = vcombine.high %v336_v34, %v344_v35 }
  0xb6   : > { %5568 = vmatpush3.bf16.msra.mxu1 %v5984_v41  ;;  %5457 = vmatprep.subr.bf16.mxu0 %v5985_v42  ;;  %v359_v41 = vld [vmem:[%s6172_s7 + $0x4d0] sm:$0xff]  ;;  %v352_v42 = vld [vmem:[%s6172_s7 + $0x498] sm:$0xff] }
  0xb7   : > { %3136 = vmatmul.mubr.bf16.gmra.mrb[72].mxu0 %v4489_v43  ;;  %5569 = vmatprep.subr.bf16.mxu1 %v5987_v44  ;;  %v360_v43 = vld [vmem:[%s6172_s7 + $0x4d8] sm:$0xff]  ;;  %v4585_v44 = vcombine.low %v335_v32, %v343_v33  ;;  %v4601_v52 = vcombine.low %v351_v40, %v359_v41 }
  0xb8   : > { %3297 = vmatmul.mubr.bf16.gmra.mrb[72].mxu1 %v4491_v45  ;;  %3143 = vmatprep.mubr.bf16.mxu0 %v4506_v46  ;;  %v4587_v45 = vcombine.low %v336_v34, %v344_v35  ;;  %v4602_v46 = vcombine.high %v351_v40, %v359_v41  ;;  %v4603_v53 = vcombine.low %v352_v42, %v360_v43 }
  0xb9   : > { %3304 = vmatprep.mubr.bf16.mxu1 %v4508_v47  ;;  %5458 = vmatpush3.bf16.msra.mxu0 %v5986_v48  ;;  %v4604_v47 = vcombine.high %v352_v42, %v360_v43  ;;  %v367_v48 = vld [vmem:[%s6172_s7 + $0x510] sm:$0xff] }
  0xba   : > { %5570 = vmatpush3.bf16.msra.mxu1 %v5988_v49  ;;  %5459 = vmatprep.subr.bf16.mxu0 %v5989_v50  ;;  %v375_v49 = vld [vmem:[%s6172_s7 + $0x550] sm:$0xff]  ;;  %v368_v50 = vld [vmem:[%s6172_s7 + $0x518] sm:$0xff] }
  0xbb   : > { %5571 = vmatprep.subr.bf16.mxu1 %v5991_v51  ;;  %v376_v51 = vld [vmem:[%s6172_s7 + $0x558] sm:$0xff]  ;;  %v4618_v54 = vcombine.high %v367_v48, %v375_v49 }
  0xbd   : > { %5460 = vmatpush3.bf16.msra.mxu0 %v5990_v55  ;;  %v4620_v55 = vcombine.high %v368_v50, %v376_v51 }
  0xbe   : > { %5572 = vmatpush3.bf16.msra.mxu1 %v5992_v57  ;;  %5461 = vmatprep.subr.bf16.mxu0 %v5993_v58  ;;  %v391_v57 = vld [vmem:[%s6172_s7 + $0x5d0] sm:$0xff]  ;;  %v384_v58 = vld [vmem:[%s6172_s7 + $0x598] sm:$0xff] }
  0xbf   : > { %3144 = vmatmul.mubr.bf16.gmra.mrb[76].mxu0 %v4505_v59  ;;  %5573 = vmatprep.subr.bf16.mxu1 %v5995_v60  ;;  %v392_v59 = vld [vmem:[%s6172_s7 + $0x5d8] sm:$0xff]  ;;  %v4617_v60 = vcombine.low %v367_v48, %v375_v49 }
  0xc0   : > { %3305 = vmatmul.mubr.bf16.gmra.mrb[76].mxu1 %v4507_v61  ;;  %3151 = vmatprep.mubr.bf16.mxu0 %v4522_v62  ;;  %v4619_v61 = vcombine.low %v368_v50, %v376_v51  ;;  %v4634_v62 = vcombine.high %v383_v56, %v391_v57  ;;  %v440_v48 = vld [vmem:[%s6172_s7 + $0x758] sm:$0xff] }
  0xc1   : > { %3312 = vmatprep.mubr.bf16.mxu1 %v4524_v63  ;;  %5462 = vmatpush3.bf16.msra.mxu0 %v5994_v0  ;;  %v4636_v63 = vcombine.high %v384_v58, %v392_v59  ;;  %v399_v0 = vld [vmem:[%s6172_s7 + $0x610] sm:$0xff] }
  0xc2   : > { %5574 = vmatpush3.bf16.msra.mxu1 %v5996_v1  ;;  %5463 = vmatprep.subr.bf16.mxu0 %v5997_v2  ;;  %v407_v1 = vld [vmem:[%s6172_s7 + $0x650] sm:$0xff] }
  0xc3   : > { %5575 = vmatprep.subr.bf16.mxu1 %v5999_v3  ;;  %v400_v3 = vld [vmem:[%s6172_s7 + $0x618] sm:$0xff] }
  0xc4   : > { %v4652_v16 = vcombine.high %v400_v3, %v408_v4  ;;  %v4651_v33 = vcombine.low %v400_v3, %v408_v4  ;;  %v455_v3 = vld [vmem:[%s6172_s7 + $0x7d0] sm:$0xff] }
  0xc5   : > { %5464 = vmatpush3.bf16.msra.mxu0 %v5998_v7  ;;  %v4633_v7 = vcombine.low %v383_v56, %v391_v57 }
  0xc6   : > { %5576 = vmatpush3.bf16.msra.mxu1 %v6000_v9  ;;  %5673 = vmatprep.subr.bf16.mxu0 %v6001_v10 }
  0xc7   : > { %3152 = vmatmul.mubr.bf16.gmra.mrb[80].mxu0 %v4521_v11  ;;  %5785 = vmatprep.subr.bf16.mxu1 %v6003_v12  ;;  %v4635_v11 = vcombine.low %v384_v58, %v392_v59  ;;  %v4650_v12 = vcombine.high %v399_v0, %v407_v1 }
  0xc8   : > { %3313 = vmatmul.mubr.bf16.gmra.mrb[80].mxu1 %v4523_v13  ;;  %3159 = vmatprep.mubr.bf16.mxu0 %v4538_v14 }
  0xc9   : > { %3320 = vmatprep.mubr.bf16.mxu1 %v4540_v15 }
  0xcf   : > { %3160 = vmatmul.mubr.bf16.gmra.mrb[84].mxu0 %v4537_v20 }
  0xd0   : > { %3321 = vmatmul.mubr.bf16.gmra.mrb[84].mxu1 %v4539_v21  ;;  %3167 = vmatprep.mubr.bf16.mxu0 %v4554_v22  ;;  %v415_v22 = vld [vmem:[%s6172_s7 + $0x690] sm:$0xff] }
  0xd1   : > { %3328 = vmatprep.mubr.bf16.mxu1 %v4556_v23  ;;  %v423_v23 = vld [vmem:[%s6172_s7 + $0x6d0] sm:$0xff] }
  0xd2   : > { %v4666_v34 = vcombine.high %v415_v22, %v423_v23  ;;  %v4665_v51 = vcombine.low %v415_v22, %v423_v23 }
  0xd7   : > { %3168 = vmatmul.mubr.bf16.gmra.mrb[88].mxu0 %v4553_v28 }
  0xd8   : > { %3329 = vmatmul.mubr.bf16.gmra.mrb[88].mxu1 %v4555_v29  ;;  %3175 = vmatprep.mubr.bf16.mxu0 %v4570_v30  ;;  %v4649_v29 = vcombine.low %v399_v0, %v407_v1 }
  0xd9   : > { %3336 = vmatprep.mubr.bf16.mxu1 %v4572_v31 }
  0xdf   : > { %3176 = vmatmul.mubr.bf16.gmra.mrb[92].mxu0 %v4569_v36 }
  0xe0   : > { %3337 = vmatmul.mubr.bf16.gmra.mrb[92].mxu1 %v4571_v37  ;;  %3183 = vmatprep.mubr.bf16.mxu0 %v4586_v38  ;;  %v4668_v38 = vcombine.high %v416_v25, %v424_v26 }
  0xe1   : > { %3344 = vmatprep.mubr.bf16.mxu1 %v4588_v39 }
  0xe7   : > { %3184 = vmatmul.mubr.bf16.gmra.mrb[96].mxu0 %v4585_v44  ;;  %v431_v44 = vld [vmem:[%s6172_s7 + $0x710] sm:$0xff] }
  0xe8   : > { %3345 = vmatmul.mubr.bf16.gmra.mrb[96].mxu1 %v4587_v45  ;;  %3191 = vmatprep.mubr.bf16.mxu0 %v4602_v46  ;;  %v439_v45 = vld [vmem:[%s6172_s7 + $0x750] sm:$0xff] }
  0xe9   : > { %3352 = vmatprep.mubr.bf16.mxu1 %v4604_v47  ;;  %v432_v47 = vld [vmem:[%s6172_s7 + $0x718] sm:$0xff]  ;;  %v4682_v56 = vcombine.high %v431_v44, %v439_v45 }
  0xef   : > { %3192 = vmatmul.mubr.bf16.gmra.mrb[100].mxu0 %v4601_v52 }
  0xf0   : > { %3353 = vmatmul.mubr.bf16.gmra.mrb[100].mxu1 %v4603_v53  ;;  %3199 = vmatprep.mubr.bf16.mxu0 %v4618_v54 }
  0xf1   : > { %3360 = vmatprep.mubr.bf16.mxu1 %v4620_v55  ;;  %v4667_v55 = vcombine.low %v416_v25, %v424_v26  ;;  %v209_v26 = vld [vmem:[%s6172_s7 + $0x20] sm:$0xff] }
  0xf7   : > { %3200 = vmatmul.mubr.bf16.gmra.mrb[104].mxu0 %v4617_v60  ;;  %v4684_v60 = vcombine.high %v432_v47, %v440_v48 }
  0xf8   : > { %3361 = vmatmul.mubr.bf16.gmra.mrb[104].mxu1 %v4619_v61  ;;  %3207 = vmatprep.mubr.bf16.mxu0 %v4634_v62 }
  0xf9   : > { %3368 = vmatprep.mubr.bf16.mxu1 %v4636_v63 }
  0xfa   : > { %v5017_v2 = vpop.f32.mrb[0].mxu0 }
  0xfb   : > { %v5129_v5 = vpop.f32.mrb[0].mxu1  ;;  %v5018_v6 = vpop.f32.mrb[1].mxu0 }
  0xfc   : > { %v5019_v8 = vadd.f32 %v5018_v6, %v5017_v2  ;;  %v5130_v9 = vpop.f32.mrb[1].mxu1  ;;  %v5020_v10 = vpop.f32.mrb[2].mxu0  ;;  %v447_v2 = vld [vmem:[%s6172_s7 + $0x790] sm:$0xff]  ;;  %v456_v6 = vld [vmem:[%s6172_s7 + $0x7d8] sm:$0xff] }
  0xfd   : > { %v5131_v13 = vadd.f32 %v5130_v9, %v5129_v5  ;;  %v5132_v14 = vpop.f32.mrb[2].mxu1  ;;  %v5021_v15 = vpop.f32.mrb[3].mxu0  ;;  %v448_v5 = vld [vmem:[%s6172_s7 + $0x798] sm:$0xff]  ;;  %v4681_v9 = vcombine.low %v431_v44, %v439_v45 }
  0xfe   : > { %v5022_v17 = vadd.f32 %v5021_v15, %v5020_v10  ;;  %v5133_v18 = vpop.f32.mrb[3].mxu1 }
  0xff   : > { %v6494_v19 = vadd.f32 %v5131_v13, %v5019_v8  ;;  %v5134_v20 = vadd.f32 %v5133_v18, %v5132_v14  ;;  %3208 = vmatmul.mubr.bf16.gmra.mrb[108].mxu0 %v4633_v7  ;;  %v4683_v13 = vcombine.low %v432_v47, %v440_v48  ;;  %v4698_v14 = vcombine.high %v447_v2, %v455_v3 }
 0x100   : > { %3369 = vmatmul.mubr.bf16.gmra.mrb[108].mxu1 %v4635_v11  ;;  %3215 = vmatprep.mubr.bf16.mxu0 %v4650_v12  ;;  %v4700_v18 = vcombine.high %v448_v5, %v456_v6 }
 0x101   : > { %v6496_v21 = vadd.f32 %v5134_v20, %v5022_v17  ;;  %3376 = vmatprep.mubr.bf16.mxu1 %v4652_v16 }
 0x102   : > { %v5023_v24 = vpop.f32.mrb[4].mxu0 }
 0x103   : > { %v5135_v27 = vpop.f32.mrb[4].mxu1  ;;  %v5024_v28 = vpop.f32.mrb[5].mxu0 }
 0x104   : > { %v5025_v30 = vadd.f32 %v5024_v28, %v5023_v24  ;;  %v5136_v31 = vpop.f32.mrb[5].mxu1  ;;  %v5026_v32 = vpop.f32.mrb[6].mxu0 }
 0x105   : > { %v5137_v35 = vadd.f32 %v5136_v31, %v5135_v27  ;;  %v5138_v36 = vpop.f32.mrb[6].mxu1  ;;  %v5027_v37 = vpop.f32.mrb[7].mxu0  ;;  %v217_v27 = vld [vmem:[%s6172_s7 + $0x60] sm:$0xff] }
 0x106   : > { %v5028_v39 = vadd.f32 %v5027_v37, %v5026_v32  ;;  %v5139_v40 = vpop.f32.mrb[7].mxu1  ;;  %v4699_v37 = vcombine.low %v448_v5, %v456_v6 }
 0x107   : > { %v6502_v41 = vadd.f32 %v5137_v35, %v5025_v30  ;;  %v5140_v42 = vadd.f32 %v5139_v40, %v5138_v36  ;;  %3216 = vmatmul.mubr.bf16.gmra.mrb[112].mxu0 %v4649_v29  ;;  %v210_v29 = vld [vmem:[%s6172_s7 + $0x28] sm:$0xff] }
 0x108   : > { %3377 = vmatmul.mubr.bf16.gmra.mrb[112].mxu1 %v4651_v33  ;;  %3223 = vmatprep.mubr.bf16.mxu0 %v4666_v34  ;;  %v218_v30 = vld [vmem:[%s6172_s7 + $0x68] sm:$0xff]  ;;  %v4697_v33 = vcombine.low %v447_v2, %v455_v3 }
 0x109   : > { %v6504_v43 = vadd.f32 %v5140_v42, %v5028_v39  ;;  %3384 = vmatprep.mubr.bf16.mxu1 %v4668_v38  ;;  %v4462_v38 = vcombine.high %v209_v26, %v217_v27  ;;  %v4464_v44 = vcombine.high %v210_v29, %v218_v30 }
 0x10a   : > { %v5029_v46 = vpop.f32.mrb[8].mxu0 }
 0x10b   : > { %v5141_v49 = vpop.f32.mrb[8].mxu1  ;;  %v5030_v50 = vpop.f32.mrb[9].mxu0 }
 0x10c   : > { %v5031_v52 = vadd.f32 %v5030_v50, %v5029_v46  ;;  %v5142_v53 = vpop.f32.mrb[9].mxu1  ;;  %v5032_v54 = vpop.f32.mrb[10].mxu0 }
 0x10d   : > { %v5143_v57 = vadd.f32 %v5142_v53, %v5141_v49  ;;  %v5144_v58 = vpop.f32.mrb[10].mxu1  ;;  %v5033_v59 = vpop.f32.mrb[11].mxu0 }
 0x10e   : > { %v5034_v61 = vadd.f32 %v5033_v59, %v5032_v54  ;;  %v5145_v62 = vpop.f32.mrb[11].mxu1 }
 0x10f   : > { %v6510_v63 = vadd.f32 %v5143_v57, %v5031_v52  ;;  %v5146_v0 = vadd.f32 %v5145_v62, %v5144_v58  ;;  %3224 = vmatmul.mubr.bf16.gmra.mrb[116].mxu0 %v4665_v51  ;;  %v6531_v51 = vld [vmem:[%s6172_s7 + $0xa0] sm:$0xff]  ;;  %v234_v57 = vld [vmem:[%s6172_s7 + $0xe8] sm:$0xff] }
 0x110   : > { %3385 = vmatmul.mubr.bf16.gmra.mrb[116].mxu1 %v4667_v55  ;;  %3231 = vmatprep.mubr.bf16.mxu0 %v4682_v56  ;;  %v6534_v52 = vld [vmem:[%s6172_s7 + $0xe0] sm:$0xff]  ;;  %v4461_v55 = vcombine.low %v209_v26, %v217_v27  ;;  %v226_v56 = vld [vmem:[%s6172_s7 + $0xa8] sm:$0xff]  ;;  %v6011_v26 = vld [vmem:[%s7168_s1 + $0x3d0] sm:$0xff]  }
 0x111   : > { %v6512_v1 = vadd.f32 %v5146_v0, %v5034_v61  ;;  %3392 = vmatprep.mubr.bf16.mxu1 %v4684_v60  ;;  %v4463_v61 = vcombine.low %v210_v29, %v218_v30  ;;  %v6002_v62 = vld [vmem:[%s7168_s1 + $0x300] sm:$0xff]   ;;  %v4478_v5 = vcombine.high %v6531_v51, %v6534_v52  ;;  %v4477_v29 = vcombine.low %v6531_v51, %v6534_v52 }
 0x112   : > { %v5035_v4 = vpop.f32.mrb[12].mxu0  ;;  %v6601_v51 = vld [vmem:[%s6172_s7 + $0x1a0] sm:$0xff] }
 0x113   : > { %v5147_v7 = vpop.f32.mrb[12].mxu1  ;;  %v5036_v8 = vpop.f32.mrb[13].mxu0 }
 0x114   : > { %v5037_v10 = vadd.f32 %v5036_v8, %v5035_v4  ;;  %v5148_v11 = vpop.f32.mrb[13].mxu1  ;;  %v5038_v12 = vpop.f32.mrb[14].mxu0  ;;  %v6004_v4 = vld [vmem:[%s7168_s1 + $0x380] sm:$0xff]   ;;  %v4480_v8 = vcombine.high %v226_v56, %v234_v57 }
 0x115   : > { %v5149_v15 = vadd.f32 %v5148_v11, %v5147_v7  ;;  %v5150_v16 = vpop.f32.mrb[14].mxu1  ;;  %v5039_v17 = vpop.f32.mrb[15].mxu0 }
 0x116   : > { %v5040_v20 = vadd.f32 %v5039_v17, %v5038_v12  ;;  %v5151_v22 = vpop.f32.mrb[15].mxu1  ;;  %v6007_v12 = vld [vmem:[%s7168_s1 + $0x3c8] sm:$0xff]  }
 0x117   : > { %v6518_v23 = vadd.f32 %v5149_v15, %v5037_v10  ;;  %v5152_v24 = vadd.f32 %v5151_v22, %v5150_v16  ;;  %3232 = vmatmul.mubr.bf16.gmra.mrb[120].mxu0 %v4681_v9  ;;  %v6005_v9 = vld [vmem:[%s7168_s1 + $0x348] sm:$0xff]   ;;  %v6563_v16 = vld [vmem:[%s6172_s7 + $0x160] sm:$0xff] }
 0x118   : > { %3393 = vmatmul.mubr.bf16.gmra.mrb[120].mxu1 %v4683_v13  ;;  %3239 = vmatprep.mubr.bf16.mxu0 %v4698_v14  ;;  %v6555_v13 = vld [vmem:[%s6172_s7 + $0x120] sm:$0xff]  ;;  %v6006_v14 = vld [vmem:[%s7168_s1 + $0x308] sm:$0xff]  }
 0x119   : > { %v6520_v25 = vadd.f32 %v5152_v24, %v5040_v20  ;;  %3400 = vmatprep.mubr.bf16.mxu1 %v4700_v18  ;;  %v6008_v17 = vld [vmem:[%s7168_s1 + $0x388] sm:$0xff]   ;;  %v6009_v18 = vld [vmem:[%s7168_s1 + $0x350] sm:$0xff]  }
 0x11a   : > { %v5041_v28 = vpop.f32.mrb[16].mxu0  ;;  %v6572_v22 = vld [vmem:[%s6172_s7 + $0x128] sm:$0xff] }
 0x11b   : > { %v5153_v31 = vpop.f32.mrb[16].mxu1  ;;  %v5042_v32 = vpop.f32.mrb[17].mxu0  ;;  %v6575_v24 = vld [vmem:[%s6172_s7 + $0x168] sm:$0xff] }
 0x11c   : > { %v5043_v34 = vadd.f32 %v5042_v32, %v5041_v28  ;;  %v5154_v35 = vpop.f32.mrb[17].mxu1  ;;  %v5044_v36 = vpop.f32.mrb[18].mxu0 }
 0x11d   : > { %v5155_v39 = vadd.f32 %v5154_v35, %v5153_v31  ;;  %v5156_v40 = vpop.f32.mrb[18].mxu1  ;;  %v5045_v42 = vpop.f32.mrb[19].mxu0 }
 0x11e   : > { %v5046_v45 = vadd.f32 %v5045_v42, %v5044_v36  ;;  %v5157_v46 = vpop.f32.mrb[19].mxu1 }
 0x11f   : > { %v6526_v47 = vadd.f32 %v5155_v39, %v5043_v34  ;;  %v5158_v48 = vadd.f32 %v5157_v46, %v5156_v40  ;;  %3240 = vmatmul.mubr.bf16.gmra.mrb[124].mxu0 %v4697_v33  ;;  %v4479_v33 = vcombine.low %v226_v56, %v234_v57  ;;  %v4494_v34 = vcombine.high %v6555_v13, %v6563_v16  ;;  %v6010_v39 = vld [vmem:[%s7168_s1 + $0x310] sm:$0xff]   ;;  %v6615_v57 = vld [vmem:[%s6172_s7 + $0x1e8] sm:$0xff] }
 0x120   : > { %3401 = vmatmul.mubr.bf16.gmra.mrb[124].mxu1 %v4699_v37  ;;  %3441 = vmatprep.mubr.bf16.mxu0 %v4462_v38  ;;  %v4496_v38 = vcombine.high %v6572_v22, %v6575_v24 }
 0x121   : > { %v6528_v49 = vadd.f32 %v5158_v48, %v5046_v45  ;;  %3602 = vmatprep.mubr.bf16.mxu1 %v4464_v44  ;;  %v6012_v44 = vld [vmem:[%s7168_s1 + $0x390] sm:$0xff]   ;;  %v6013_v45 = vld [vmem:[%s7168_s1 + $0x358] sm:$0xff]  }
 0x122   : > { %v5047_v50 = vpop.f32.mrb[20].mxu0 }
 0x123   : > { %v5159_v53 = vpop.f32.mrb[20].mxu1  ;;  %v5048_v54 = vpop.f32.mrb[21].mxu0 }
 0x124   : > { %v5049_v58 = vadd.f32 %v5048_v54, %v5047_v50  ;;  %v5160_v59 = vpop.f32.mrb[21].mxu1  ;;  %v5050_v60 = vpop.f32.mrb[22].mxu0  ;;  %v6015_v50 = vld [vmem:[%s7168_s1 + $0x3d8] sm:$0xff]   ;;  %v6609_v54 = vld [vmem:[%s6172_s7 + $0x1a8] sm:$0xff] }
 0x125   : > { %v5161_v0 = vadd.f32 %v5160_v59, %v5159_v53  ;;  %v5162_v2 = vpop.f32.mrb[22].mxu1  ;;  %v5051_v3 = vpop.f32.mrb[23].mxu0  ;;  %v6606_v53 = vld [vmem:[%s6172_s7 + $0x1e0] sm:$0xff] }
 0x126   : > { %v5052_v6 = vadd.f32 %v5051_v3, %v5050_v60  ;;  %v5163_v7 = vpop.f32.mrb[23].mxu1  ;;  %v6017_v59 = vld [vmem:[%s7168_s1 + $0x360] sm:$0xff]  }
 0x127   : > { %v6549_v10 = vadd.f32 %v5161_v0, %v5049_v58  ;;  %v5164_v11 = vadd.f32 %v5163_v7, %v5162_v2  ;;  %3442 = vmatmul.mubr.bf16.vlgmr.msra.gmra.mrb[128].mxu0 %v4461_v55  ;;  %v6014_v55 = vld [vmem:[%s7168_s1 + $0x318] sm:$0xff]   ;;  %v6019_v0 = vld [vmem:[%s7168_s1 + $0x3e0] sm:$0xff]  }
 0x128   : > { %3603 = vmatmul.mubr.bf16.vlgmr.msra.gmra.mrb[128].mxu1 %v4463_v61  ;;  %5674 = vmatpush3.bf16.msra.mxu0 %v6002_v62  ;;  %v6016_v58 = vld [vmem:[%s7168_s1 + $0x398] sm:$0xff]   ;;  %v4493_v62 = vcombine.low %v6555_v13, %v6563_v16  ;;  %v6020_v16 = vld [vmem:[%s7168_s1 + $0x3a0] sm:$0xff]  }
 0x129   : > { %v6560_v15 = vadd.f32 %v5164_v11, %v5052_v6  ;;  %5786 = vmatpush3.bf16.msra.mxu1 %v6004_v4  ;;  %3449 = vmatprep.mubr.bf16.mxu0 %v4478_v5  ;;  %v4495_v5 = vcombine.low %v6572_v22, %v6575_v24  ;;  %v4510_v6 = vcombine.high %v6601_v51, %v6606_v53  ;;  %v6023_v22 = vld [vmem:[%s7168_s1 + $0x3e8] sm:$0xff]   ;;  %v6649_v24 = vld [vmem:[%s6172_s7 + $0x220] sm:$0xff] }
 0x12a   : > { %v5053_v20 = vpop.f32.mrb[24].mxu0  ;;  %3610 = vmatprep.mubr.bf16.mxu1 %v4480_v8  ;;  %5675 = vmatprep.subr.bf16.mxu0 %v6005_v9  ;;  %v4512_v11 = vcombine.high %v6609_v54, %v6615_v57 }
 0x12b   : > { %v5165_v27 = vpop.f32.mrb[24].mxu1  ;;  %v5054_v28 = vpop.f32.mrb[25].mxu0  ;;  %5787 = vmatprep.subr.bf16.mxu1 %v6007_v12  ;;  %v6018_v12 = vld [vmem:[%s7168_s1 + $0x320] sm:$0xff]  }
 0x12c   : > { %v5055_v30 = vadd.f32 %v5054_v28, %v5053_v20  ;;  %v5166_v31 = vpop.f32.mrb[25].mxu1  ;;  %v5056_v32 = vpop.f32.mrb[26].mxu0  ;;  %5676 = vmatpush3.bf16.msra.mxu0 %v6006_v14  ;;  %v6657_v28 = vld [vmem:[%s6172_s7 + $0x228] sm:$0xff] }
 0x12d   : > { %v5167_v35 = vadd.f32 %v5166_v31, %v5165_v27  ;;  %v5168_v36 = vpop.f32.mrb[26].mxu1  ;;  %v5057_v37 = vpop.f32.mrb[27].mxu0  ;;  %5788 = vmatpush3.bf16.msra.mxu1 %v6008_v17  ;;  %5677 = vmatprep.subr.bf16.mxu0 %v6009_v18  ;;  %v6021_v17 = vld [vmem:[%s7168_s1 + $0x368] sm:$0xff]   ;;  %v6654_v27 = vld [vmem:[%s6172_s7 + $0x260] sm:$0xff] }
 0x12e   : > { %v5058_v40 = vadd.f32 %v5057_v37, %v5056_v32  ;;  %v5169_v42 = vpop.f32.mrb[27].mxu1  ;;  %5789 = vmatprep.subr.bf16.mxu1 %v6011_v26  ;;  %v6663_v31 = vld [vmem:[%s6172_s7 + $0x268] sm:$0xff]  ;;  %v6027_v37 = vld [vmem:[%s7168_s1 + $0x3f0] sm:$0xff]  }
 0x12f   : > { %v6595_v46 = vadd.f32 %v5167_v35, %v5055_v30  ;;  %v5170_v48 = vadd.f32 %v5169_v42, %v5168_v36  ;;  %3450 = vmatmul.mubr.bf16.gmra.mrb[132].mxu0 %v4477_v29  ;;  %v6022_v29 = vld [vmem:[%s7168_s1 + $0x328] sm:$0xff]   ;;  %v4509_v36 = vcombine.low %v6601_v51, %v6606_v53  ;;  %v4511_v42 = vcombine.low %v6609_v54, %v6615_v57  ;;  %v6026_v53 = vld [vmem:[%s7168_s1 + $0x330] sm:$0xff]   ;;  %v6029_v57 = vld [vmem:[%s7168_s1 + $0x378] sm:$0xff]  }
 0x130   : > { %3611 = vmatmul.mubr.bf16.gmra.mrb[132].mxu1 %v4479_v33  ;;  %3457 = vmatprep.mubr.bf16.mxu0 %v4494_v34  ;;  %v6024_v32 = vld [vmem:[%s7168_s1 + $0x3a8] sm:$0xff]   ;;  %v6025_v33 = vld [vmem:[%s7168_s1 + $0x370] sm:$0xff]   ;;  %v4528_v51 = vcombine.high %v6657_v28, %v6663_v31 }
 0x131   : > { %v6603_v52 = vadd.f32 %v5170_v48, %v5058_v40  ;;  %3618 = vmatprep.mubr.bf16.mxu1 %v4496_v38  ;;  %5678 = vmatpush3.bf16.msra.mxu0 %v6010_v39  ;;  %v6028_v54 = vld [vmem:[%s7168_s1 + $0x3b0] sm:$0xff]  }
 0x132   : > { %v5059_v56 = vpop.f32.mrb[28].mxu0  ;;  %5790 = vmatpush3.bf16.msra.mxu1 %v6012_v44  ;;  %5679 = vmatprep.subr.bf16.mxu0 %v6013_v45  ;;  %v4526_v44 = vcombine.high %v6649_v24, %v6654_v27 }
 0x133   : > { %v5171_v60 = vpop.f32.mrb[28].mxu1  ;;  %v5060_v61 = vpop.f32.mrb[29].mxu0  ;;  %5791 = vmatprep.subr.bf16.mxu1 %v6015_v50 }
 0x134   : > { %v5061_v2 = vadd.f32 %v5060_v61, %v5059_v56  ;;  %v5172_v3 = vpop.f32.mrb[29].mxu1  ;;  %v5062_v4 = vpop.f32.mrb[30].mxu0 }
 0x135   : > { %v5173_v7 = vadd.f32 %v5172_v3, %v5171_v60  ;;  %v5174_v8 = vpop.f32.mrb[30].mxu1  ;;  %v5063_v9 = vpop.f32.mrb[31].mxu0  ;;  %5680 = vmatpush3.bf16.msra.mxu0 %v6014_v55  ;;  %v6031_v60 = vld [vmem:[%s7168_s1 + $0x3f8] sm:$0xff]  }
 0x136   : > { %v5064_v13 = vadd.f32 %v5063_v9, %v5062_v4  ;;  %v5175_v14 = vpop.f32.mrb[31].mxu1  ;;  %5792 = vmatpush3.bf16.msra.mxu1 %v6016_v58  ;;  %5681 = vmatprep.subr.bf16.mxu0 %v6017_v59  ;;  %v290_v4 = vld [vmem:[%s6172_s7 + $0x2a8] sm:$0xff]  ;;  %v4525_v9 = vcombine.low %v6649_v24, %v6654_v27 }
 0x137   : > { %v6643_v18 = vadd.f32 %v5173_v7, %v5061_v2  ;;  %v5176_v20 = vadd.f32 %v5175_v14, %v5174_v8  ;;  %3458 = vmatmul.mubr.bf16.gmra.mrb[136].mxu0 %v4493_v62  ;;  %5793 = vmatprep.subr.bf16.mxu1 %v6019_v0  ;;  %v289_v62 = vld [vmem:[%s6172_s7 + $0x2a0] sm:$0xff]  ;;  %v6030_v2 = vld [vmem:[%s7168_s1 + $0x338] sm:$0xff]   ;;  %v4527_v14 = vcombine.low %v6657_v28, %v6663_v31 }
 0x138   : > { %3619 = vmatmul.mubr.bf16.gmra.mrb[136].mxu1 %v4495_v5  ;;  %3465 = vmatprep.mubr.bf16.mxu0 %v4510_v6  ;;  %v297_v0 = vld [vmem:[%s6172_s7 + $0x2e0] sm:$0xff]  ;;  %v298_v5 = vld [vmem:[%s6172_s7 + $0x2e8] sm:$0xff]  ;;  %v6032_v6 = vld [vmem:[%s7168_s1 + $0x3b8] sm:$0xff]  }
 0x139   : > { %v6651_v26 = vadd.f32 %v5176_v20, %v5064_v13  ;;  %3626 = vmatprep.mubr.bf16.mxu1 %v4512_v11  ;;  %5682 = vmatpush3.bf16.msra.mxu0 %v6018_v12  ;;  %v305_v31 = vld [vmem:[%s6172_s7 + $0x320] sm:$0xff] }
 0x13a   : > { %v5065_v30 = vpop.f32.mrb[32].mxu0  ;;  %5794 = vmatpush3.bf16.msra.mxu1 %v6020_v16  ;;  %5683 = vmatprep.subr.bf16.mxu0 %v6021_v17  ;;  %v4542_v16 = vcombine.high %v289_v62, %v297_v0 }
 0x13b   : > { %v5177_v34 = vpop.f32.mrb[32].mxu1  ;;  %v5066_v35 = vpop.f32.mrb[33].mxu0  ;;  %5795 = vmatprep.subr.bf16.mxu1 %v6023_v22 }
 0x13c   : > { %v5067_v38 = vadd.f32 %v5066_v35, %v5065_v30  ;;  %v5178_v39 = vpop.f32.mrb[33].mxu1  ;;  %v5068_v40 = vpop.f32.mrb[34].mxu0  ;;  %v306_v35 = vld [vmem:[%s6172_s7 + $0x328] sm:$0xff] }
 0x13d   : > { %v5179_v45 = vadd.f32 %v5178_v39, %v5177_v34  ;;  %v5180_v48 = vpop.f32.mrb[34].mxu1  ;;  %v5069_v50 = vpop.f32.mrb[35].mxu0  ;;  %5684 = vmatpush3.bf16.msra.mxu0 %v6022_v29  ;;  %v4544_v29 = vcombine.high %v290_v4, %v298_v5  ;;  %v4541_v39 = vcombine.low %v289_v62, %v297_v0  ;;  %v321_v62 = vld [vmem:[%s6172_s7 + $0x3a0] sm:$0xff] }
 0x13e   : > { %v5070_v55 = vadd.f32 %v5069_v50, %v5068_v40  ;;  %v5181_v56 = vpop.f32.mrb[35].mxu1  ;;  %5796 = vmatpush3.bf16.msra.mxu1 %v6024_v32  ;;  %5685 = vmatprep.subr.bf16.mxu0 %v6025_v33  ;;  %v313_v33 = vld [vmem:[%s6172_s7 + $0x360] sm:$0xff] }
 0x13f   : > { %v6691_v58 = vadd.f32 %v5179_v45, %v5067_v38  ;;  %v5182_v59 = vadd.f32 %v5181_v56, %v5180_v48  ;;  %3466 = vmatmul.mubr.bf16.gmra.mrb[140].mxu0 %v4509_v36  ;;  %5797 = vmatprep.subr.bf16.mxu1 %v6027_v37  ;;  %v314_v36 = vld [vmem:[%s6172_s7 + $0x368] sm:$0xff]  ;;  %v4543_v45 = vcombine.low %v290_v4, %v298_v5  ;;  %v329_v0 = vld [vmem:[%s6172_s7 + $0x3e0] sm:$0xff] }
 0x140   : > { %3627 = vmatmul.mubr.bf16.gmra.mrb[140].mxu1 %v4511_v42  ;;  %3473 = vmatprep.mubr.bf16.mxu0 %v4526_v44  ;;  %v4558_v48 = vcombine.high %v305_v31, %v313_v33  ;;  %v330_v4 = vld [vmem:[%s6172_s7 + $0x3e8] sm:$0xff] }
 0x141   : > { %v6696_v61 = vadd.f32 %v5182_v59, %v5070_v55  ;;  %3634 = vmatprep.mubr.bf16.mxu1 %v4528_v51  ;;  %5686 = vmatpush3.bf16.msra.mxu0 %v6026_v53  ;;  %v4560_v55 = vcombine.high %v306_v35, %v314_v36 }
 0x142   : > { %v5071_v3 = vpop.f32.mrb[36].mxu0  ;;  %5798 = vmatpush3.bf16.msra.mxu1 %v6028_v54  ;;  %5687 = vmatprep.subr.bf16.mxu0 %v6029_v57 }
 0x143   : > { %v5183_v7 = vpop.f32.mrb[36].mxu1  ;;  %v5072_v8 = vpop.f32.mrb[37].mxu0  ;;  %5799 = vmatprep.subr.bf16.mxu1 %v6031_v60 }
 0x144   : > { %v5073_v11 = vadd.f32 %v5072_v8, %v5071_v3  ;;  %v5184_v12 = vpop.f32.mrb[37].mxu1  ;;  %v5074_v13 = vpop.f32.mrb[38].mxu0  ;;  %v322_v3 = vld [vmem:[%s6172_s7 + $0x3a8] sm:$0xff] }
 0x145   : > { %v5185_v17 = vadd.f32 %v5184_v12, %v5183_v7  ;;  %v5186_v20 = vpop.f32.mrb[38].mxu1  ;;  %v5075_v22 = vpop.f32.mrb[39].mxu0  ;;  %5688 = vmatpush3.bf16.msra.mxu0 %v6030_v2  ;;  %v4557_v7 = vcombine.low %v305_v31, %v313_v33  ;;  %v4559_v12 = vcombine.low %v306_v35, %v314_v36  ;;  %v337_v31 = vld [vmem:[%s6172_s7 + $0x420] sm:$0xff]  ;;  %v338_v35 = vld [vmem:[%s6172_s7 + $0x428] sm:$0xff] }
 0x146   : > { %v5076_v30 = vadd.f32 %v5075_v22, %v5074_v13  ;;  %v5187_v32 = vpop.f32.mrb[39].mxu1  ;;  %5800 = vmatpush3.bf16.msra.mxu1 %v6032_v6  ;;  %v4574_v13 = vcombine.high %v321_v62, %v329_v0  ;;  %v345_v33 = vld [vmem:[%s6172_s7 + $0x460] sm:$0xff]  ;;  %v346_v36 = vld [vmem:[%s6172_s7 + $0x468] sm:$0xff] }
 0x147   : > { %v6712_v24 = vadd.f32 %v5185_v17, %v5073_v11  ;;  %v5188_v27 = vadd.f32 %v5187_v32, %v5186_v20  ;;  %3474 = vmatmul.mubr.bf16.gmra.mrb[144].mxu0 %v4525_v9  ;;  %v4576_v20 = vcombine.high %v322_v3, %v330_v4 }
 0x148   : > { %3635 = vmatmul.mubr.bf16.gmra.mrb[144].mxu1 %v4527_v14  ;;  %3481 = vmatprep.mubr.bf16.mxu0 %v4542_v16 }
 0x149   : > { %v6714_v28 = vadd.f32 %v5188_v27, %v5076_v30  ;;  %3642 = vmatprep.mubr.bf16.mxu1 %v4544_v29 }
 0x14a   : > { %v5077_v34 = vpop.f32.mrb[40].mxu0 }
 0x14b   : > { %v5189_v37 = vpop.f32.mrb[40].mxu1  ;;  %v5078_v38 = vpop.f32.mrb[41].mxu0 }
 0x14c   : > { %v5079_v40 = vadd.f32 %v5078_v38, %v5077_v34  ;;  %v5190_v42 = vpop.f32.mrb[41].mxu1  ;;  %v5080_v44 = vpop.f32.mrb[42].mxu0 }
 0x14d   : > { %v5191_v50 = vadd.f32 %v5190_v42, %v5189_v37  ;;  %v5192_v51 = vpop.f32.mrb[42].mxu1  ;;  %v5081_v53 = vpop.f32.mrb[43].mxu0 }
 0x14e   : > { %v5082_v56 = vadd.f32 %v5081_v53, %v5080_v44  ;;  %v5193_v54 = vpop.f32.mrb[43].mxu1 }
 0x14f   : > { %v6720_v57 = vadd.f32 %v5191_v50, %v5079_v40  ;;  %v5194_v59 = vadd.f32 %v5193_v54, %v5192_v51  ;;  %3482 = vmatmul.mubr.bf16.gmra.mrb[148].mxu0 %v4541_v39  ;;  %v4573_v39 = vcombine.low %v321_v62, %v329_v0  ;;  %v353_v0 = vld [vmem:[%s6172_s7 + $0x4a0] sm:$0xff] }
 0x150   : > { %3643 = vmatmul.mubr.bf16.gmra.mrb[148].mxu1 %v4543_v45  ;;  %3489 = vmatprep.mubr.bf16.mxu0 %v4558_v48  ;;  %v4575_v45 = vcombine.low %v322_v3, %v330_v4  ;;  %v4590_v48 = vcombine.high %v337_v31, %v345_v33  ;;  %v361_v3 = vld [vmem:[%s6172_s7 + $0x4e0] sm:$0xff] }
 0x151   : > { %v6722_v60 = vadd.f32 %v5194_v59, %v5082_v56  ;;  %3650 = vmatprep.mubr.bf16.mxu1 %v4560_v55  ;;  %v4592_v55 = vcombine.high %v338_v35, %v346_v36 }
 0x152   : > { %v5083_v2 = vpop.f32.mrb[44].mxu0 }
 0x153   : > { %v5195_v5 = vpop.f32.mrb[44].mxu1  ;;  %v5084_v6 = vpop.f32.mrb[45].mxu0 }
 0x154   : > { %v5085_v8 = vadd.f32 %v5084_v6, %v5083_v2  ;;  %v5196_v9 = vpop.f32.mrb[45].mxu1  ;;  %v5086_v11 = vpop.f32.mrb[46].mxu0  ;;  %v362_v6 = vld [vmem:[%s6172_s7 + $0x4e8] sm:$0xff] }
 0x155   : > { %v5197_v14 = vadd.f32 %v5196_v9, %v5195_v5  ;;  %v5198_v16 = vpop.f32.mrb[46].mxu1  ;;  %v5087_v17 = vpop.f32.mrb[47].mxu0  ;;  %v354_v5 = vld [vmem:[%s6172_s7 + $0x4a8] sm:$0xff]  ;;  %v4589_v9 = vcombine.low %v337_v31, %v345_v33  ;;  %v369_v33 = vld [vmem:[%s6172_s7 + $0x520] sm:$0xff] }
 0x156   : > { %v5088_v22 = vadd.f32 %v5087_v17, %v5086_v11  ;;  %v5199_v29 = vpop.f32.mrb[47].mxu1 }
 0x157   : > { %v6728_v30 = vadd.f32 %v5197_v14, %v5085_v8  ;;  %v5200_v32 = vadd.f32 %v5199_v29, %v5198_v16  ;;  %3490 = vmatmul.mubr.bf16.gmra.mrb[152].mxu0 %v4557_v7  ;;  %v4591_v14 = vcombine.low %v338_v35, %v346_v36  ;;  %v4606_v16 = vcombine.high %v353_v0, %v361_v3  ;;  %v377_v35 = vld [vmem:[%s6172_s7 + $0x560] sm:$0xff] }
 0x158   : > { %3651 = vmatmul.mubr.bf16.gmra.mrb[152].mxu1 %v4559_v12  ;;  %3497 = vmatprep.mubr.bf16.mxu0 %v4574_v13  ;;  %v4608_v29 = vcombine.high %v354_v5, %v362_v6 }
 0x159   : > { %v6730_v27 = vadd.f32 %v5200_v32, %v5088_v22  ;;  %3658 = vmatprep.mubr.bf16.mxu1 %v4576_v20 }
 0x15a   : > { %v5089_v34 = vpop.f32.mrb[48].mxu0 }
 0x15b   : > { %v5201_v37 = vpop.f32.mrb[48].mxu1  ;;  %v5090_v38 = vpop.f32.mrb[49].mxu0 }
 0x15c   : > { %v5091_v40 = vadd.f32 %v5090_v38, %v5089_v34  ;;  %v5202_v42 = vpop.f32.mrb[49].mxu1  ;;  %v5092_v44 = vpop.f32.mrb[50].mxu0 }
 0x15d   : > { %v5203_v50 = vadd.f32 %v5202_v42, %v5201_v37  ;;  %v5204_v51 = vpop.f32.mrb[50].mxu1  ;;  %v5093_v53 = vpop.f32.mrb[51].mxu0 }
 0x15e   : > { %v5094_v56 = vadd.f32 %v5093_v53, %v5092_v44  ;;  %v5205_v54 = vpop.f32.mrb[51].mxu1  ;;  %v4607_v53 = vcombine.low %v354_v5, %v362_v6  ;;  %v393_v5 = vld [vmem:[%s6172_s7 + $0x5e0] sm:$0xff] }
 0x15f   : > { %v6736_v59 = vadd.f32 %v5203_v50, %v5091_v40  ;;  %v5206_v2 = vadd.f32 %v5205_v54, %v5204_v51  ;;  %3498 = vmatmul.mubr.bf16.gmra.mrb[156].mxu0 %v4573_v39  ;;  %v370_v39 = vld [vmem:[%s6172_s7 + $0x528] sm:$0xff] }
 0x160   : > { %3659 = vmatmul.mubr.bf16.gmra.mrb[156].mxu1 %v4575_v45  ;;  %3505 = vmatprep.mubr.bf16.mxu0 %v4590_v48  ;;  %v378_v40 = vld [vmem:[%s6172_s7 + $0x568] sm:$0xff]  ;;  %v4605_v45 = vcombine.low %v353_v0, %v361_v3  ;;  %v385_v3 = vld [vmem:[%s6172_s7 + $0x5a0] sm:$0xff] }
 0x161   : > { %v6738_v62 = vadd.f32 %v5206_v2, %v5094_v56  ;;  %3666 = vmatprep.mubr.bf16.mxu1 %v4592_v55  ;;  %v4622_v55 = vcombine.high %v369_v33, %v377_v35 }
 0x162   : > { %v5095_v4 = vpop.f32.mrb[52].mxu0 }
 0x163   : > { %v5207_v7 = vpop.f32.mrb[52].mxu1  ;;  %v5096_v8 = vpop.f32.mrb[53].mxu0 }
 0x164   : > { %v5097_v11 = vadd.f32 %v5096_v8, %v5095_v4  ;;  %v5208_v12 = vpop.f32.mrb[53].mxu1  ;;  %v5098_v13 = vpop.f32.mrb[54].mxu0  ;;  %v4624_v4 = vcombine.high %v370_v39, %v378_v40 }
 0x165   : > { %v5209_v17 = vadd.f32 %v5208_v12, %v5207_v7  ;;  %v5210_v20 = vpop.f32.mrb[54].mxu1  ;;  %v5099_v22 = vpop.f32.mrb[55].mxu0  ;;  %v386_v12 = vld [vmem:[%s6172_s7 + $0x5a8] sm:$0xff] }
 0x166   : > { %v5100_v32 = vadd.f32 %v5099_v22, %v5098_v13  ;;  %v5211_v34 = vpop.f32.mrb[55].mxu1  ;;  %v394_v13 = vld [vmem:[%s6172_s7 + $0x5e8] sm:$0xff] }
 0x167   : > { %v6744_v37 = vadd.f32 %v5209_v17, %v5097_v11  ;;  %v5212_v38 = vadd.f32 %v5211_v34, %v5210_v20  ;;  %3506 = vmatmul.mubr.bf16.gmra.mrb[160].mxu0 %v4589_v9  ;;  %v4621_v17 = vcombine.low %v369_v33, %v377_v35  ;;  %v4638_v34 = vcombine.high %v385_v3, %v393_v5  ;;  %v401_v35 = vld [vmem:[%s6172_s7 + $0x620] sm:$0xff] }
 0x168   : > { %3667 = vmatmul.mubr.bf16.gmra.mrb[160].mxu1 %v4591_v14  ;;  %3513 = vmatprep.mubr.bf16.mxu0 %v4606_v16 }
 0x169   : > { %v6746_v31 = vadd.f32 %v5212_v38, %v5100_v32  ;;  %3674 = vmatprep.mubr.bf16.mxu1 %v4608_v29  ;;  %v4623_v32 = vcombine.low %v370_v39, %v378_v40  ;;  %v409_v39 = vld [vmem:[%s6172_s7 + $0x660] sm:$0xff] }
 0x16a   : > { %v5101_v36 = vpop.f32.mrb[56].mxu0 }
 0x16b   : > { %v5213_v42 = vpop.f32.mrb[56].mxu1  ;;  %v5102_v44 = vpop.f32.mrb[57].mxu0 }
 0x16c   : > { %v5103_v48 = vadd.f32 %v5102_v44, %v5101_v36  ;;  %v5214_v50 = vpop.f32.mrb[57].mxu1  ;;  %v5104_v51 = vpop.f32.mrb[58].mxu0  ;;  %v4640_v44 = vcombine.high %v386_v12, %v394_v13 }
 0x16d   : > { %v5215_v56 = vadd.f32 %v5214_v50, %v5213_v42  ;;  %v5216_v54 = vpop.f32.mrb[58].mxu1  ;;  %v5105_v2 = vpop.f32.mrb[59].mxu0 }
 0x16e   : > { %v5106_v7 = vadd.f32 %v5105_v2, %v5104_v51  ;;  %v5217_v8 = vpop.f32.mrb[59].mxu1  ;;  %v4637_v2 = vcombine.low %v385_v3, %v393_v5 }
 0x16f   : > { %v6752_v9 = vadd.f32 %v5215_v56, %v5103_v48  ;;  %v5218_v11 = vadd.f32 %v5217_v8, %v5216_v54  ;;  %3514 = vmatmul.mubr.bf16.gmra.mrb[164].mxu0 %v4605_v45 }
 0x170   : > { %3675 = vmatmul.mubr.bf16.gmra.mrb[164].mxu1 %v4607_v53  ;;  %3521 = vmatprep.mubr.bf16.mxu0 %v4622_v55  ;;  %v402_v53 = vld [vmem:[%s6172_s7 + $0x628] sm:$0xff] }
 0x171   : > { %v6754_v0 = vadd.f32 %v5218_v11, %v5106_v7  ;;  %3682 = vmatprep.mubr.bf16.mxu1 %v4624_v4  ;;  %v410_v55 = vld [vmem:[%s6172_s7 + $0x668] sm:$0xff]  ;;  %v4639_v11 = vcombine.low %v386_v12, %v394_v13  ;;  %v417_v12 = vld [vmem:[%s6172_s7 + $0x6a0] sm:$0xff] }
 0x172   : > { %v5107_v6 = vpop.f32.mrb[60].mxu0  ;;  %v425_v13 = vld [vmem:[%s6172_s7 + $0x6e0] sm:$0xff] }
 0x173   : > { %v5219_v14 = vpop.f32.mrb[60].mxu1  ;;  %v5108_v16 = vpop.f32.mrb[61].mxu0 }
 0x174   : > { %v5109_v20 = vadd.f32 %v5108_v16, %v5107_v6  ;;  %v5220_v22 = vpop.f32.mrb[61].mxu1  ;;  %v5110_v29 = vpop.f32.mrb[62].mxu0  ;;  %v4654_v6 = vcombine.high %v401_v35, %v409_v39 }
 0x175   : > { %v5221_v38 = vadd.f32 %v5220_v22, %v5219_v14  ;;  %v5222_v36 = vpop.f32.mrb[62].mxu1  ;;  %v5111_v42 = vpop.f32.mrb[63].mxu0 }
 0x176   : > { %v5112_v45 = vadd.f32 %v5111_v42, %v5110_v29  ;;  %v5223_v48 = vpop.f32.mrb[63].mxu1  ;;  %v418_v42 = vld [vmem:[%s6172_s7 + $0x6a8] sm:$0xff] }
 0x177   : > { %v6760_v50 = vadd.f32 %v5221_v38, %v5109_v20  ;;  %v5224_v51 = vadd.f32 %v5223_v48, %v5222_v36  ;;  %3522 = vmatmul.mubr.bf16.gmra.mrb[168].mxu0 %v4621_v17  ;;  %v4656_v20 = vcombine.high %v402_v53, %v410_v55  ;;  %v4653_v48 = vcombine.low %v401_v35, %v409_v39 }
 0x178   : > { %3683 = vmatmul.mubr.bf16.gmra.mrb[168].mxu1 %v4623_v32  ;;  %3529 = vmatprep.mubr.bf16.mxu0 %v4638_v34 }
 0x179   : > { %v6762_v33 = vadd.f32 %v5224_v51, %v5112_v45  ;;  %3690 = vmatprep.mubr.bf16.mxu1 %v4640_v44  ;;  %v426_v44 = vld [vmem:[%s6172_s7 + $0x6e8] sm:$0xff] }
 0x17a   : > { %v5241_v40 = vpop.f32.mrb[64].mxu0 }
 0x17b   : > { %v5353_v56 = vpop.f32.mrb[64].mxu1  ;;  %v5242_v54 = vpop.f32.mrb[65].mxu0 }
 0x17c   : > { %v5243_v4 = vadd.f32 %v5242_v54, %v5241_v40  ;;  %v5354_v7 = vpop.f32.mrb[65].mxu1  ;;  %v5244_v8 = vpop.f32.mrb[66].mxu0  ;;  %v4655_v54 = vcombine.low %v402_v53, %v410_v55  ;;  %v433_v53 = vld [vmem:[%s6172_s7 + $0x720] sm:$0xff] }
 0x17d   : > { %v5355_v14 = vadd.f32 %v5354_v7, %v5353_v56  ;;  %v5356_v16 = vpop.f32.mrb[66].mxu1  ;;  %v5245_v17 = vpop.f32.mrb[67].mxu0  ;;  %v441_v55 = vld [vmem:[%s6172_s7 + $0x760] sm:$0xff] }
 0x17e   : > { %v3122_v22 = vadd.f32 %v5243_v4, %v6494_v19  ;;  %v5246_v29 = vadd.f32 %v5245_v17, %v5244_v8  ;;  %v5357_v32 = vpop.f32.mrb[67].mxu1  ;;  %v4672_v8 = vcombine.high %v418_v42, %v426_v44 }
 0x17f   : > { %v5358_v34 = vadd.f32 %v5357_v32, %v5356_v16  ;;  %3530 = vmatmul.mubr.bf16.gmra.mrb[172].mxu0 %v4637_v2  ;;  %v4670_v2 = vcombine.high %v417_v12, %v425_v13 }
 0x180   : > { %v6769_v3 = vadd.f32 %v5355_v14, %v3122_v22  ;;  %v3125_v5 = vadd.f32 %v5246_v29, %v6496_v21  ;;  %3691 = vmatmul.mubr.bf16.gmra.mrb[172].mxu1 %v4639_v11  ;;  %3537 = vmatprep.mubr.bf16.mxu0 %v4654_v6  ;;  %v434_v22 = vld [vmem:[%s6172_s7 + $0x728] sm:$0xff] }
 0x181   : > { %3698 = vmatprep.mubr.bf16.mxu1 %v4656_v20  ;;  %v442_v29 = vld [vmem:[%s6172_s7 + $0x768] sm:$0xff] }
 0x182   : > { %v6774_v38 = vadd.f32 %v5358_v34, %v3125_v5  ;;  %v5247_v36 = vpop.f32.mrb[68].mxu0  ;;  %v4669_v34 = vcombine.low %v417_v12, %v425_v13 }
 0x183   : > { %v5359_v45 = vpop.f32.mrb[68].mxu1  ;;  %v5248_v19 = vpop.f32.mrb[69].mxu0 }
 0x184   : > { %v5249_v51 = vadd.f32 %v5248_v19, %v5247_v36  ;;  %v5360_v40 = vpop.f32.mrb[69].mxu1  ;;  %v5250_v56 = vpop.f32.mrb[70].mxu0  ;;  %v4671_v19 = vcombine.low %v418_v42, %v426_v44  ;;  %v449_v42 = vld [vmem:[%s6172_s7 + $0x7a0] sm:$0xff] }
 0x185   : > { %v5361_v21 = vadd.f32 %v5360_v40, %v5359_v45  ;;  %v5362_v4 = vpop.f32.mrb[70].mxu1  ;;  %v5251_v7 = vpop.f32.mrb[71].mxu0  ;;  %v457_v44 = vld [vmem:[%s6172_s7 + $0x7e0] sm:$0xff] }
 0x186   : > { %v3130_v11 = vadd.f32 %v5249_v51, %v6502_v41  ;;  %v5252_v6 = vadd.f32 %v5251_v7, %v5250_v56  ;;  %v5363_v14 = vpop.f32.mrb[71].mxu1  ;;  %v4688_v56 = vcombine.high %v434_v22, %v442_v29 }
 0x187   : > { %v5364_v16 = vadd.f32 %v5363_v14, %v5362_v4  ;;  %3538 = vmatmul.mubr.bf16.gmra.mrb[176].mxu0 %v4653_v48  ;;  %v4686_v48 = vcombine.high %v433_v53, %v441_v55 }
 0x188   : > { %v6779_v35 = vadd.f32 %v5361_v21, %v3130_v11  ;;  %v3133_v39 = vadd.f32 %v5252_v6, %v6504_v43  ;;  %3699 = vmatmul.mubr.bf16.gmra.mrb[176].mxu1 %v4655_v54  ;;  %3545 = vmatprep.mubr.bf16.mxu0 %v4670_v2  ;;  %v450_v11 = vld [vmem:[%s6172_s7 + $0x7a8] sm:$0xff] }
 0x189   : > { %3706 = vmatprep.mubr.bf16.mxu1 %v4672_v8  ;;  %v458_v6 = vld [vmem:[%s6172_s7 + $0x7e8] sm:$0xff] }
 0x18a   : > { %v6784_v17 = vadd.f32 %v5364_v16, %v3133_v39  ;;  %v5253_v20 = vpop.f32.mrb[72].mxu0  ;;  %v4685_v16 = vcombine.low %v433_v53, %v441_v55 }
 0x18b   : > { %v5365_v32 = vpop.f32.mrb[72].mxu1  ;;  %v5254_v41 = vpop.f32.mrb[73].mxu0 }
 0x18c   : > { %v5255_v5 = vadd.f32 %v5254_v41, %v5253_v20  ;;  %v5366_v36 = vpop.f32.mrb[73].mxu1  ;;  %v5256_v45 = vpop.f32.mrb[74].mxu0  ;;  %v4687_v41 = vcombine.low %v434_v22, %v442_v29  ;;  %v211_v22 = vld [vmem:[%s6172_s7 + $0x30] sm:$0xff] }
 0x18d   : > { %v5367_v43 = vadd.f32 %v5366_v36, %v5365_v32  ;;  %v5368_v51 = vpop.f32.mrb[74].mxu1  ;;  %v5257_v40 = vpop.f32.mrb[75].mxu0  ;;  %v219_v29 = vld [vmem:[%s6172_s7 + $0x70] sm:$0xff] }
 0x18e   : > { %v3138_v54 = vadd.f32 %v5255_v5, %v6510_v63  ;;  %v5258_v2 = vadd.f32 %v5257_v40, %v5256_v45  ;;  %v5369_v21 = vpop.f32.mrb[75].mxu1  ;;  %v4704_v45 = vcombine.high %v450_v11, %v458_v6 }
 0x18f   : > { %v5370_v4 = vadd.f32 %v5369_v21, %v5368_v51  ;;  %3546 = vmatmul.mubr.bf16.gmra.mrb[180].mxu0 %v4669_v34  ;;  %v4702_v34 = vcombine.high %v449_v42, %v457_v44 }
 0x190   : > { %v6789_v12 = vadd.f32 %v5367_v43, %v3138_v54  ;;  %v3141_v13 = vadd.f32 %v5258_v2, %v6512_v1  ;;  %3707 = vmatmul.mubr.bf16.gmra.mrb[180].mxu1 %v4671_v19  ;;  %3553 = vmatprep.mubr.bf16.mxu0 %v4686_v48  ;;  %v212_v54 = vld [vmem:[%s6172_s7 + $0x38] sm:$0xff] }
 0x191   : > { %3714 = vmatprep.mubr.bf16.mxu1 %v4688_v56  ;;  %v220_v2 = vld [vmem:[%s6172_s7 + $0x78] sm:$0xff] }
 0x192   : > { %v6794_v7 = vadd.f32 %v5370_v4, %v3141_v13  ;;  %v5259_v8 = vpop.f32.mrb[76].mxu0  ;;  %v4701_v4 = vcombine.low %v449_v42, %v457_v44 }
 0x193   : > { %v5371_v14 = vpop.f32.mrb[76].mxu1  ;;  %v5260_v63 = vpop.f32.mrb[77].mxu0 }
 0x194   : > { %v5261_v39 = vadd.f32 %v5260_v63, %v5259_v8  ;;  %v5372_v20 = vpop.f32.mrb[77].mxu1  ;;  %v5262_v32 = vpop.f32.mrb[78].mxu0  ;;  %v4703_v63 = vcombine.low %v450_v11, %v458_v6  ;;  %v227_v11 = vld [vmem:[%s6172_s7 + $0xb0] sm:$0xff] }
 0x195   : > { %v5373_v1 = vadd.f32 %v5372_v20, %v5371_v14  ;;  %v5374_v5 = vpop.f32.mrb[78].mxu1  ;;  %v5263_v36 = vpop.f32.mrb[79].mxu0  ;;  %v235_v6 = vld [vmem:[%s6172_s7 + $0xf0] sm:$0xff] }
 0x196   : > { %v3146_v19 = vadd.f32 %v5261_v39, %v6518_v23  ;;  %v5264_v48 = vadd.f32 %v5263_v36, %v5262_v32  ;;  %v5375_v43 = vpop.f32.mrb[79].mxu1  ;;  %v4468_v32 = vcombine.high %v212_v54, %v220_v2 }
 0x197   : > { %v5376_v51 = vadd.f32 %v5375_v43, %v5374_v5  ;;  %3554 = vmatmul.mubr.bf16.gmra.mrb[184].mxu0 %v4685_v16  ;;  %v4466_v16 = vcombine.high %v211_v22, %v219_v29 }
 0x198   : > { %v6799_v53 = vadd.f32 %v5373_v1, %v3146_v19  ;;  %v3149_v55 = vadd.f32 %v5264_v48, %v6520_v25  ;;  %3715 = vmatmul.mubr.bf16.gmra.mrb[184].mxu1 %v4687_v41  ;;  %3561 = vmatprep.mubr.bf16.mxu0 %v4702_v34  ;;  %v228_v19 = vld [vmem:[%s6172_s7 + $0xb8] sm:$0xff] }
 0x199   : > { %3722 = vmatprep.mubr.bf16.mxu1 %v4704_v45  ;;  %v236_v48 = vld [vmem:[%s6172_s7 + $0xf8] sm:$0xff] }
 0x19a   : > { %v6804_v40 = vadd.f32 %v5376_v51, %v3149_v55  ;;  %v5265_v56 = vpop.f32.mrb[80].mxu0  ;;  %v4465_v51 = vcombine.low %v211_v22, %v219_v29 }
 0x19b   : > { %v5377_v21 = vpop.f32.mrb[80].mxu1  ;;  %v5266_v23 = vpop.f32.mrb[81].mxu0 }
 0x19c   : > { %v5267_v13 = vadd.f32 %v5266_v23, %v5265_v56  ;;  %v5378_v8 = vpop.f32.mrb[81].mxu1  ;;  %v5268_v14 = vpop.f32.mrb[82].mxu0  ;;  %v4467_v23 = vcombine.low %v212_v54, %v220_v2  ;;  %v243_v54 = vld [vmem:[%s6172_s7 + $0x130] sm:$0xff] }
 0x19d   : > { %v5379_v25 = vadd.f32 %v5378_v8, %v5377_v21  ;;  %v5380_v39 = vpop.f32.mrb[82].mxu1  ;;  %v5269_v20 = vpop.f32.mrb[83].mxu0  ;;  %v251_v2 = vld [vmem:[%s6172_s7 + $0x170] sm:$0xff] }
 0x19e   : > { %v3154_v41 = vadd.f32 %v5267_v13, %v6526_v47  ;;  %v5270_v34 = vadd.f32 %v5269_v20, %v5268_v14  ;;  %v5381_v1 = vpop.f32.mrb[83].mxu1  ;;  %v4484_v14 = vcombine.high %v228_v19, %v236_v48 }
 0x19f   : > { %v5382_v5 = vadd.f32 %v5381_v1, %v5380_v39  ;;  %3562 = vmatmul.mubr.bf16.gmra.mrb[188].mxu0 %v4701_v4  ;;  %v4482_v4 = vcombine.high %v227_v11, %v235_v6 }
 0x1a0   : > { %v6809_v42 = vadd.f32 %v5379_v25, %v3154_v41  ;;  %v3157_v44 = vadd.f32 %v5270_v34, %v6528_v49  ;;  %3723 = vmatmul.mubr.bf16.gmra.mrb[188].mxu1 %v4703_v63  ;;  %3763 = vmatprep.mubr.bf16.mxu0 %v4466_v16  ;;  %v244_v41 = vld [vmem:[%s6172_s7 + $0x138] sm:$0xff] }
 0x1a1   : > { %3924 = vmatprep.mubr.bf16.mxu1 %v4468_v32  ;;  %v252_v34 = vld [vmem:[%s6172_s7 + $0x178] sm:$0xff] }
 0x1a2   : > { %v6814_v36 = vadd.f32 %v5382_v5, %v3157_v44  ;;  %v5271_v45 = vpop.f32.mrb[84].mxu0  ;;  %v4481_v5 = vcombine.low %v227_v11, %v235_v6 }
 0x1a3   : > { %v5383_v43 = vpop.f32.mrb[84].mxu1  ;;  %v5272_v47 = vpop.f32.mrb[85].mxu0 }
 0x1a4   : > { %v5273_v55 = vadd.f32 %v5272_v47, %v5271_v45  ;;  %v5384_v56 = vpop.f32.mrb[85].mxu1  ;;  %v5274_v21 = vpop.f32.mrb[86].mxu0  ;;  %v4483_v47 = vcombine.low %v228_v19, %v236_v48  ;;  %v259_v19 = vld [vmem:[%s6172_s7 + $0x1b0] sm:$0xff] }
 0x1a5   : > { %v5385_v49 = vadd.f32 %v5384_v56, %v5383_v43  ;;  %v5386_v13 = vpop.f32.mrb[86].mxu1  ;;  %v5275_v8 = vpop.f32.mrb[87].mxu0  ;;  %v267_v48 = vld [vmem:[%s6172_s7 + $0x1f0] sm:$0xff] }
 0x1a6   : > { %v3162_v63 = vadd.f32 %v5273_v55, %v6549_v10  ;;  %v5276_v16 = vadd.f32 %v5275_v8, %v5274_v21  ;;  %v5387_v25 = vpop.f32.mrb[87].mxu1  ;;  %v4500_v21 = vcombine.high %v244_v41, %v252_v34 }
 0x1a7   : > { %v5388_v39 = vadd.f32 %v5387_v25, %v5386_v13  ;;  %3764 = vmatmul.mubr.bf16.vlgmr.msra.gmra.mrb[192].mxu0 %v4465_v51  ;;  %v4498_v51 = vcombine.high %v243_v54, %v251_v2 }
 0x1a8   : > { %v6819_v22 = vadd.f32 %v5385_v49, %v3162_v63  ;;  %v3165_v29 = vadd.f32 %v5276_v16, %v6560_v15  ;;  %3925 = vmatmul.mubr.bf16.vlgmr.msra.gmra.mrb[192].mxu1 %v4467_v23  ;;  %3771 = vmatprep.mubr.bf16.mxu0 %v4482_v4  ;;  %v260_v63 = vld [vmem:[%s6172_s7 + $0x1b8] sm:$0xff] }
 0x1a9   : > { %3932 = vmatprep.mubr.bf16.mxu1 %v4484_v14  ;;  %v268_v16 = vld [vmem:[%s6172_s7 + $0x1f8] sm:$0xff] }
 0x1aa   : > { %v6824_v20 = vadd.f32 %v5388_v39, %v3165_v29  ;;  %v5277_v32 = vpop.f32.mrb[88].mxu0  ;;  %v4497_v39 = vcombine.low %v243_v54, %v251_v2 }
 0x1ab   : > { %v5389_v1 = vpop.f32.mrb[88].mxu1  ;;  %v5278_v10 = vpop.f32.mrb[89].mxu0 }
 0x1ac   : > { %v5279_v44 = vadd.f32 %v5278_v10, %v5277_v32  ;;  %v5390_v45 = vpop.f32.mrb[89].mxu1  ;;  %v5280_v43 = vpop.f32.mrb[90].mxu0  ;;  %v4499_v10 = vcombine.low %v244_v41, %v252_v34  ;;  %v275_v41 = vld [vmem:[%s6172_s7 + $0x230] sm:$0xff] }
 0x1ad   : > { %v5391_v15 = vadd.f32 %v5390_v45, %v5389_v1  ;;  %v5392_v55 = vpop.f32.mrb[90].mxu1  ;;  %v5281_v56 = vpop.f32.mrb[91].mxu0  ;;  %v283_v34 = vld [vmem:[%s6172_s7 + $0x270] sm:$0xff] }
 0x1ae   : > { %v3170_v23 = vadd.f32 %v5279_v44, %v6595_v46  ;;  %v5282_v4 = vadd.f32 %v5281_v56, %v5280_v43  ;;  %v5393_v49 = vpop.f32.mrb[91].mxu1  ;;  %v4516_v43 = vcombine.high %v260_v63, %v268_v16 }
 0x1af   : > { %v5394_v13 = vadd.f32 %v5393_v49, %v5392_v55  ;;  %3772 = vmatmul.mubr.bf16.gmra.mrb[196].mxu0 %v4481_v5  ;;  %v4514_v5 = vcombine.high %v259_v19, %v267_v48 }
 0x1b0   : > { %v6829_v11 = vadd.f32 %v5391_v15, %v3170_v23  ;;  %v3173_v6 = vadd.f32 %v5282_v4, %v6603_v52  ;;  %3933 = vmatmul.mubr.bf16.gmra.mrb[196].mxu1 %v4483_v47  ;;  %3779 = vmatprep.mubr.bf16.mxu0 %v4498_v51  ;;  %v276_v23 = vld [vmem:[%s6172_s7 + $0x238] sm:$0xff] }
 0x1b1   : > { %3940 = vmatprep.mubr.bf16.mxu1 %v4500_v21  ;;  %v284_v4 = vld [vmem:[%s6172_s7 + $0x278] sm:$0xff] }
 0x1b2   : > { %v6834_v8 = vadd.f32 %v5394_v13, %v3173_v6  ;;  %v5283_v14 = vpop.f32.mrb[92].mxu0  ;;  %v4513_v13 = vcombine.low %v259_v19, %v267_v48 }
 0x1b3   : > { %v5395_v25 = vpop.f32.mrb[92].mxu1  ;;  %v5284_v46 = vpop.f32.mrb[93].mxu0 }
 0x1b4   : > { %v5285_v29 = vadd.f32 %v5284_v46, %v5283_v14  ;;  %v5396_v32 = vpop.f32.mrb[93].mxu1  ;;  %v5286_v1 = vpop.f32.mrb[94].mxu0  ;;  %v4515_v46 = vcombine.low %v260_v63, %v268_v16  ;;  %v291_v63 = vld [vmem:[%s6172_s7 + $0x2b0] sm:$0xff] }
 0x1b5   : > { %v5397_v52 = vadd.f32 %v5396_v32, %v5395_v25  ;;  %v5398_v44 = vpop.f32.mrb[94].mxu1  ;;  %v5287_v45 = vpop.f32.mrb[95].mxu0  ;;  %v299_v16 = vld [vmem:[%s6172_s7 + $0x2f0] sm:$0xff] }
 0x1b6   : > { %v3178_v47 = vadd.f32 %v5285_v29, %v6643_v18  ;;  %v5288_v51 = vadd.f32 %v5287_v45, %v5286_v1  ;;  %v5399_v15 = vpop.f32.mrb[95].mxu1  ;;  %v4532_v1 = vcombine.high %v276_v23, %v284_v4 }
 0x1b7   : > { %v5400_v55 = vadd.f32 %v5399_v15, %v5398_v44  ;;  %3780 = vmatmul.mubr.bf16.gmra.mrb[200].mxu0 %v4497_v39  ;;  %v4530_v39 = vcombine.high %v275_v41, %v283_v34 }
 0x1b8   : > { %v6839_v54 = vadd.f32 %v5397_v52, %v3178_v47  ;;  %v3181_v2 = vadd.f32 %v5288_v51, %v6651_v26  ;;  %3941 = vmatmul.mubr.bf16.gmra.mrb[200].mxu1 %v4499_v10  ;;  %3787 = vmatprep.mubr.bf16.mxu0 %v4514_v5  ;;  %v292_v47 = vld [vmem:[%s6172_s7 + $0x2b8] sm:$0xff] }
 0x1b9   : > { %3948 = vmatprep.mubr.bf16.mxu1 %v4516_v43  ;;  %v300_v51 = vld [vmem:[%s6172_s7 + $0x2f8] sm:$0xff] }
 0x1ba   : > { %v6844_v56 = vadd.f32 %v5400_v55, %v3181_v2  ;;  %v5289_v21 = vpop.f32.mrb[96].mxu0  ;;  %v4529_v55 = vcombine.low %v275_v41, %v283_v34 }
 0x1bb   : > { %v5401_v49 = vpop.f32.mrb[96].mxu1  ;;  %v5290_v18 = vpop.f32.mrb[97].mxu0 }
 0x1bc   : > { %v5291_v6 = vadd.f32 %v5290_v18, %v5289_v21  ;;  %v5402_v14 = vpop.f32.mrb[97].mxu1  ;;  %v5292_v25 = vpop.f32.mrb[98].mxu0  ;;  %v4531_v18 = vcombine.low %v276_v23, %v284_v4  ;;  %v307_v23 = vld [vmem:[%s6172_s7 + $0x330] sm:$0xff] }
 0x1bd   : > { %v5403_v26 = vadd.f32 %v5402_v14, %v5401_v49  ;;  %v5404_v29 = vpop.f32.mrb[98].mxu1  ;;  %v5293_v32 = vpop.f32.mrb[99].mxu0  ;;  %v315_v4 = vld [vmem:[%s6172_s7 + $0x370] sm:$0xff] }
 0x1be   : > { %v3186_v10 = vadd.f32 %v5291_v6, %v6691_v58  ;;  %v5294_v5 = vadd.f32 %v5293_v32, %v5292_v25  ;;  %v5405_v52 = vpop.f32.mrb[99].mxu1  ;;  %v4548_v25 = vcombine.high %v292_v47, %v300_v51 }
 0x1bf   : > { %v5406_v44 = vadd.f32 %v5405_v52, %v5404_v29  ;;  %3788 = vmatmul.mubr.bf16.gmra.mrb[204].mxu0 %v4513_v13  ;;  %v4546_v13 = vcombine.high %v291_v63, %v299_v16 }
 0x1c0   : > { %v6849_v19 = vadd.f32 %v5403_v26, %v3186_v10  ;;  %v3189_v48 = vadd.f32 %v5294_v5, %v6696_v61  ;;  %3949 = vmatmul.mubr.bf16.gmra.mrb[204].mxu1 %v4515_v46  ;;  %3795 = vmatprep.mubr.bf16.mxu0 %v4530_v39  ;;  %v308_v10 = vld [vmem:[%s6172_s7 + $0x338] sm:$0xff] }
 0x1c1   : > { %3956 = vmatprep.mubr.bf16.mxu1 %v4532_v1  ;;  %v316_v5 = vld [vmem:[%s6172_s7 + $0x378] sm:$0xff] }
 0x1c2   : > { %v6854_v45 = vadd.f32 %v5406_v44, %v3189_v48  ;;  %v5295_v43 = vpop.f32.mrb[100].mxu0  ;;  %v4545_v44 = vcombine.low %v291_v63, %v299_v16 }
 0x1c3   : > { %v5407_v15 = vpop.f32.mrb[100].mxu1  ;;  %v5296_v58 = vpop.f32.mrb[101].mxu0 }
 0x1c4   : > { %v5297_v2 = vadd.f32 %v5296_v58, %v5295_v43  ;;  %v5408_v21 = vpop.f32.mrb[101].mxu1  ;;  %v5298_v49 = vpop.f32.mrb[102].mxu0  ;;  %v4547_v58 = vcombine.low %v292_v47, %v300_v51  ;;  %v323_v47 = vld [vmem:[%s6172_s7 + $0x3b0] sm:$0xff] }
 0x1c5   : > { %v5409_v61 = vadd.f32 %v5408_v21, %v5407_v15  ;;  %v5410_v6 = vpop.f32.mrb[102].mxu1  ;;  %v5299_v14 = vpop.f32.mrb[103].mxu0  ;;  %v331_v51 = vld [vmem:[%s6172_s7 + $0x3f0] sm:$0xff] }
 0x1c6   : > { %v3194_v46 = vadd.f32 %v5297_v2, %v6712_v24  ;;  %v5300_v39 = vadd.f32 %v5299_v14, %v5298_v49  ;;  %v5411_v26 = vpop.f32.mrb[103].mxu1  ;;  %v4564_v49 = vcombine.high %v308_v10, %v316_v5 }
 0x1c7   : > { %v5412_v29 = vadd.f32 %v5411_v26, %v5410_v6  ;;  %3796 = vmatmul.mubr.bf16.gmra.mrb[208].mxu0 %v4529_v55  ;;  %v4562_v55 = vcombine.high %v307_v23, %v315_v4 }
 0x1c8   : > { %v6859_v41 = vadd.f32 %v5409_v61, %v3194_v46  ;;  %v3197_v34 = vadd.f32 %v5300_v39, %v6714_v28  ;;  %3957 = vmatmul.mubr.bf16.gmra.mrb[208].mxu1 %v4531_v18  ;;  %3803 = vmatprep.mubr.bf16.mxu0 %v4546_v13  ;;  %v324_v46 = vld [vmem:[%s6172_s7 + $0x3b8] sm:$0xff] }
 0x1c9   : > { %3964 = vmatprep.mubr.bf16.mxu1 %v4548_v25  ;;  %v332_v39 = vld [vmem:[%s6172_s7 + $0x3f8] sm:$0xff] }
 0x1ca   : > { %v6864_v32 = vadd.f32 %v5412_v29, %v3197_v34  ;;  %v5301_v1 = vpop.f32.mrb[104].mxu0  ;;  %v4561_v29 = vcombine.low %v307_v23, %v315_v4 }
 0x1cb   : > { %v5413_v52 = vpop.f32.mrb[104].mxu1  ;;  %v5302_v24 = vpop.f32.mrb[105].mxu0 }
 0x1cc   : > { %v5303_v48 = vadd.f32 %v5302_v24, %v5301_v1  ;;  %v5414_v43 = vpop.f32.mrb[105].mxu1  ;;  %v5304_v15 = vpop.f32.mrb[106].mxu0  ;;  %v4563_v24 = vcombine.low %v308_v10, %v316_v5  ;;  %v339_v10 = vld [vmem:[%s6172_s7 + $0x430] sm:$0xff] }
 0x1cd   : > { %v5415_v28 = vadd.f32 %v5414_v43, %v5413_v52  ;;  %v5416_v2 = vpop.f32.mrb[106].mxu1  ;;  %v5305_v21 = vpop.f32.mrb[107].mxu0  ;;  %v347_v5 = vld [vmem:[%s6172_s7 + $0x470] sm:$0xff] }
 0x1ce   : > { %v3202_v18 = vadd.f32 %v5303_v48, %v6720_v57  ;;  %v5306_v13 = vadd.f32 %v5305_v21, %v5304_v15  ;;  %v5417_v61 = vpop.f32.mrb[107].mxu1  ;;  %v4580_v15 = vcombine.high %v324_v46, %v332_v39 }
 0x1cf   : > { %v5418_v6 = vadd.f32 %v5417_v61, %v5416_v2  ;;  %3804 = vmatmul.mubr.bf16.gmra.mrb[212].mxu0 %v4545_v44  ;;  %v4578_v44 = vcombine.high %v323_v47, %v331_v51 }
 0x1d0   : > { %v6869_v63 = vadd.f32 %v5415_v28, %v3202_v18  ;;  %v3205_v16 = vadd.f32 %v5306_v13, %v6722_v60  ;;  %3965 = vmatmul.mubr.bf16.gmra.mrb[212].mxu1 %v4547_v58  ;;  %3811 = vmatprep.mubr.bf16.mxu0 %v4562_v55  ;;  %v340_v18 = vld [vmem:[%s6172_s7 + $0x438] sm:$0xff] }
 0x1d1   : > { %3972 = vmatprep.mubr.bf16.mxu1 %v4564_v49  ;;  %v348_v13 = vld [vmem:[%s6172_s7 + $0x478] sm:$0xff] }
 0x1d2   : > { %v6874_v14 = vadd.f32 %v5418_v6, %v3205_v16  ;;  %v5307_v25 = vpop.f32.mrb[108].mxu0  ;;  %v4577_v6 = vcombine.low %v323_v47, %v331_v51 }
 0x1d3   : > { %v5419_v26 = vpop.f32.mrb[108].mxu1  ;;  %v5308_v57 = vpop.f32.mrb[109].mxu0 }
 0x1d4   : > { %v5309_v34 = vadd.f32 %v5308_v57, %v5307_v25  ;;  %v5420_v1 = vpop.f32.mrb[109].mxu1  ;;  %v5310_v52 = vpop.f32.mrb[110].mxu0  ;;  %v4579_v57 = vcombine.low %v324_v46, %v332_v39  ;;  %v355_v46 = vld [vmem:[%s6172_s7 + $0x4b0] sm:$0xff] }
 0x1d5   : > { %v5421_v60 = vadd.f32 %v5420_v1, %v5419_v26  ;;  %v5422_v48 = vpop.f32.mrb[110].mxu1  ;;  %v5311_v43 = vpop.f32.mrb[111].mxu0  ;;  %v363_v39 = vld [vmem:[%s6172_s7 + $0x4f0] sm:$0xff] }
 0x1d6   : > { %v3210_v58 = vadd.f32 %v5309_v34, %v6728_v30  ;;  %v5312_v55 = vadd.f32 %v5311_v43, %v5310_v52  ;;  %v5423_v28 = vpop.f32.mrb[111].mxu1  ;;  %v4596_v52 = vcombine.high %v340_v18, %v348_v13 }
 0x1d7   : > { %v5424_v2 = vadd.f32 %v5423_v28, %v5422_v48  ;;  %3812 = vmatmul.mubr.bf16.gmra.mrb[216].mxu0 %v4561_v29  ;;  %v4594_v29 = vcombine.high %v339_v10, %v347_v5 }
 0x1d8   : > { %v6879_v23 = vadd.f32 %v5421_v60, %v3210_v58  ;;  %v3213_v4 = vadd.f32 %v5312_v55, %v6730_v27  ;;  %3973 = vmatmul.mubr.bf16.gmra.mrb[216].mxu1 %v4563_v24  ;;  %3819 = vmatprep.mubr.bf16.mxu0 %v4578_v44  ;;  %v356_v58 = vld [vmem:[%s6172_s7 + $0x4b8] sm:$0xff] }
 0x1d9   : > { %3980 = vmatprep.mubr.bf16.mxu1 %v4580_v15  ;;  %v364_v55 = vld [vmem:[%s6172_s7 + $0x4f8] sm:$0xff] }
 0x1da   : > { %v6884_v21 = vadd.f32 %v5424_v2, %v3213_v4  ;;  %v5313_v49 = vpop.f32.mrb[112].mxu0  ;;  %v4593_v2 = vcombine.low %v339_v10, %v347_v5 }
 0x1db   : > { %v5425_v61 = vpop.f32.mrb[112].mxu1  ;;  %v5314_v30 = vpop.f32.mrb[113].mxu0 }
 0x1dc   : > { %v5315_v16 = vadd.f32 %v5314_v30, %v5313_v49  ;;  %v5426_v25 = vpop.f32.mrb[113].mxu1  ;;  %v5316_v26 = vpop.f32.mrb[114].mxu0  ;;  %v4595_v30 = vcombine.low %v340_v18, %v348_v13  ;;  %v371_v18 = vld [vmem:[%s6172_s7 + $0x530] sm:$0xff] }
 0x1dd   : > { %v5427_v27 = vadd.f32 %v5426_v25, %v5425_v61  ;;  %v5428_v34 = vpop.f32.mrb[114].mxu1  ;;  %v5317_v1 = vpop.f32.mrb[115].mxu0  ;;  %v379_v13 = vld [vmem:[%s6172_s7 + $0x570] sm:$0xff] }
 0x1de   : > { %v3218_v24 = vadd.f32 %v5315_v16, %v6736_v59  ;;  %v5318_v44 = vadd.f32 %v5317_v1, %v5316_v26  ;;  %v5429_v60 = vpop.f32.mrb[115].mxu1  ;;  %v4612_v26 = vcombine.high %v356_v58, %v364_v55 }
 0x1df   : > { %v5430_v48 = vadd.f32 %v5429_v60, %v5428_v34  ;;  %3820 = vmatmul.mubr.bf16.gmra.mrb[220].mxu0 %v4577_v6  ;;  %v4610_v6 = vcombine.high %v355_v46, %v363_v39 }
 0x1e0   : > { %v6889_v47 = vadd.f32 %v5427_v27, %v3218_v24  ;;  %v3221_v51 = vadd.f32 %v5318_v44, %v6738_v62  ;;  %3981 = vmatmul.mubr.bf16.gmra.mrb[220].mxu1 %v4579_v57  ;;  %3827 = vmatprep.mubr.bf16.mxu0 %v4594_v29  ;;  %v372_v24 = vld [vmem:[%s6172_s7 + $0x538] sm:$0xff] }
 0x1e1   : > { %3988 = vmatprep.mubr.bf16.mxu1 %v4596_v52  ;;  %v380_v44 = vld [vmem:[%s6172_s7 + $0x578] sm:$0xff] }
 0x1e2   : > { %v6894_v43 = vadd.f32 %v5430_v48, %v3221_v51  ;;  %v5319_v15 = vpop.f32.mrb[116].mxu0  ;;  %v4609_v48 = vcombine.low %v355_v46, %v363_v39 }
 0x1e3   : > { %v5431_v28 = vpop.f32.mrb[116].mxu1  ;;  %v5320_v59 = vpop.f32.mrb[117].mxu0 }
 0x1e4   : > { %v5321_v4 = vadd.f32 %v5320_v59, %v5319_v15  ;;  %v5432_v49 = vpop.f32.mrb[117].mxu1  ;;  %v5322_v61 = vpop.f32.mrb[118].mxu0  ;;  %v4611_v59 = vcombine.low %v356_v58, %v364_v55  ;;  %v387_v58 = vld [vmem:[%s6172_s7 + $0x5b0] sm:$0xff] }
 0x1e5   : > { %v5433_v62 = vadd.f32 %v5432_v49, %v5431_v28  ;;  %v5434_v16 = vpop.f32.mrb[118].mxu1  ;;  %v5323_v25 = vpop.f32.mrb[119].mxu0  ;;  %v395_v55 = vld [vmem:[%s6172_s7 + $0x5f0] sm:$0xff] }
 0x1e6   : > { %v3226_v57 = vadd.f32 %v5321_v4, %v6744_v37  ;;  %v5324_v29 = vadd.f32 %v5323_v25, %v5322_v61  ;;  %v5435_v27 = vpop.f32.mrb[119].mxu1  ;;  %v4628_v61 = vcombine.high %v372_v24, %v380_v44 }
 0x1e7   : > { %v5436_v34 = vadd.f32 %v5435_v27, %v5434_v16  ;;  %3828 = vmatmul.mubr.bf16.gmra.mrb[224].mxu0 %v4593_v2  ;;  %v4626_v2 = vcombine.high %v371_v18, %v379_v13 }
 0x1e8   : > { %v6899_v10 = vadd.f32 %v5433_v62, %v3226_v57  ;;  %v3229_v5 = vadd.f32 %v5324_v29, %v6746_v31  ;;  %3989 = vmatmul.mubr.bf16.gmra.mrb[224].mxu1 %v4595_v30  ;;  %3835 = vmatprep.mubr.bf16.mxu0 %v4610_v6  ;;  %v388_v57 = vld [vmem:[%s6172_s7 + $0x5b8] sm:$0xff] }
 0x1e9   : > { %3996 = vmatprep.mubr.bf16.mxu1 %v4612_v26  ;;  %v396_v29 = vld [vmem:[%s6172_s7 + $0x5f8] sm:$0xff] }
 0x1ea   : > { %v6904_v1 = vadd.f32 %v5436_v34, %v3229_v5  ;;  %v5325_v52 = vpop.f32.mrb[120].mxu0  ;;  %v4625_v34 = vcombine.low %v371_v18, %v379_v13 }
 0x1eb   : > { %v5437_v60 = vpop.f32.mrb[120].mxu1  ;;  %v5326_v37 = vpop.f32.mrb[121].mxu0 }
 0x1ec   : > { %v5327_v51 = vadd.f32 %v5326_v37, %v5325_v52  ;;  %v5438_v15 = vpop.f32.mrb[121].mxu1  ;;  %v5328_v28 = vpop.f32.mrb[122].mxu0  ;;  %v4627_v37 = vcombine.low %v372_v24, %v380_v44  ;;  %v403_v24 = vld [vmem:[%s6172_s7 + $0x630] sm:$0xff] }
 0x1ed   : > { %v5439_v31 = vadd.f32 %v5438_v15, %v5437_v60  ;;  %v5440_v4 = vpop.f32.mrb[122].mxu1  ;;  %v5329_v49 = vpop.f32.mrb[123].mxu0  ;;  %v411_v44 = vld [vmem:[%s6172_s7 + $0x670] sm:$0xff] }
 0x1ee   : > { %v3234_v30 = vadd.f32 %v5327_v51, %v6752_v9  ;;  %v5330_v6 = vadd.f32 %v5329_v49, %v5328_v28  ;;  %v5441_v62 = vpop.f32.mrb[123].mxu1  ;;  %v4644_v28 = vcombine.high %v388_v57, %v396_v29 }
 0x1ef   : > { %v5442_v16 = vadd.f32 %v5441_v62, %v5440_v4  ;;  %3836 = vmatmul.mubr.bf16.gmra.mrb[228].mxu0 %v4609_v48  ;;  %v4642_v48 = vcombine.high %v387_v58, %v395_v55 }
 0x1f0   : > { %v6909_v46 = vadd.f32 %v5439_v31, %v3234_v30  ;;  %v3237_v39 = vadd.f32 %v5330_v6, %v6754_v0  ;;  %3997 = vmatmul.mubr.bf16.gmra.mrb[228].mxu1 %v4611_v59  ;;  %3843 = vmatprep.mubr.bf16.mxu0 %v4626_v2  ;;  %v404_v30 = vld [vmem:[%s6172_s7 + $0x638] sm:$0xff] }
 0x1f1   : > { %4004 = vmatprep.mubr.bf16.mxu1 %v4628_v61  ;;  %v412_v6 = vld [vmem:[%s6172_s7 + $0x678] sm:$0xff] }
 0x1f2   : > { %v6914_v25 = vadd.f32 %v5442_v16, %v3237_v39  ;;  %v5331_v26 = vpop.f32.mrb[124].mxu0  ;;  %v4641_v16 = vcombine.low %v387_v58, %v395_v55 }
 0x1f3   : > { %v5443_v27 = vpop.f32.mrb[124].mxu1  ;;  %v5332_v9 = vpop.f32.mrb[125].mxu0 }
 0x1f4   : > { %v5333_v5 = vadd.f32 %v5332_v9, %v5331_v26  ;;  %v5444_v52 = vpop.f32.mrb[125].mxu1  ;;  %v5334_v60 = vpop.f32.mrb[126].mxu0  ;;  %v4643_v9 = vcombine.low %v388_v57, %v396_v29  ;;  %v419_v57 = vld [vmem:[%s6172_s7 + $0x6b0] sm:$0xff] }
 0x1f5   : > { %v5445_v0 = vadd.f32 %v5444_v52, %v5443_v27  ;;  %v5446_v51 = vpop.f32.mrb[126].mxu1  ;;  %v5335_v15 = vpop.f32.mrb[127].mxu0  ;;  %v427_v29 = vld [vmem:[%s6172_s7 + $0x6f0] sm:$0xff] }
 0x1f6   : > { %v3242_v59 = vadd.f32 %v5333_v5, %v6760_v50  ;;  %v5336_v2 = vadd.f32 %v5335_v15, %v5334_v60  ;;  %v5447_v31 = vpop.f32.mrb[127].mxu1  ;;  %v4660_v60 = vcombine.high %v404_v30, %v412_v6 }
 0x1f7   : > { %v5448_v4 = vadd.f32 %v5447_v31, %v5446_v51  ;;  %3844 = vmatmul.mubr.bf16.gmra.mrb[232].mxu0 %v4625_v34  ;;  %v4658_v34 = vcombine.high %v403_v24, %v411_v44 }
 0x1f8   : > { %v6919_v18 = vadd.f32 %v5445_v0, %v3242_v59  ;;  %v3245_v13 = vadd.f32 %v5336_v2, %v6762_v33  ;;  %4005 = vmatmul.mubr.bf16.gmra.mrb[232].mxu1 %v4627_v37  ;;  %3851 = vmatprep.mubr.bf16.mxu0 %v4642_v48  ;;  %v420_v59 = vld [vmem:[%s6172_s7 + $0x6b8] sm:$0xff] }
 0x1f9   : > { %4012 = vmatprep.mubr.bf16.mxu1 %v4644_v28  ;;  %v428_v2 = vld [vmem:[%s6172_s7 + $0x6f8] sm:$0xff] }
 0x1fa   : > { %v6924_v49 = vadd.f32 %v5448_v4, %v3245_v13  ;;  %v5465_v61 = vpop.f32.mrb[128].mxu0  ;;  %v4657_v4 = vcombine.low %v403_v24, %v411_v44 }
 0x1fb   : > { %v5577_v62 = vpop.f32.mrb[128].mxu1  ;;  %v5466_v50 = vpop.f32.mrb[129].mxu0 }
 0x1fc   : > { %v5467_v39 = vadd.f32 %v5466_v50, %v5465_v61  ;;  %v5578_v26 = vpop.f32.mrb[129].mxu1  ;;  %v5468_v27 = vpop.f32.mrb[130].mxu0  ;;  %v4659_v50 = vcombine.low %v404_v30, %v412_v6  ;;  %v435_v30 = vld [vmem:[%s6172_s7 + $0x730] sm:$0xff] }
 0x1fd   : > { %v5579_v33 = vadd.f32 %v5578_v26, %v5577_v62  ;;  %v5580_v5 = vpop.f32.mrb[130].mxu1  ;;  %v5469_v52 = vpop.f32.mrb[131].mxu0  ;;  %v443_v6 = vld [vmem:[%s6172_s7 + $0x770] sm:$0xff] }
 0x1fe   : > { %v3444_v37 = vadd.f32 %v5467_v39, %v6769_v3  ;;  %v5470_v48 = vadd.f32 %v5469_v52, %v5468_v27  ;;  %v5581_v0 = vpop.f32.mrb[131].mxu1  ;;  %v4676_v27 = vcombine.high %v420_v59, %v428_v2 }
 0x1ff   : > { %v5582_v51 = vadd.f32 %v5581_v0, %v5580_v5  ;;  %3852 = vmatmul.mubr.bf16.gmra.mrb[236].mxu0 %v4641_v16  ;;  %v4674_v16 = vcombine.high %v419_v57, %v427_v29 }
 0x200   : > { %v6929_v58 = vadd.f32 %v5579_v33, %v3444_v37  ;;  %v3447_v55 = vadd.f32 %v5470_v48, %v6774_v38  ;;  %4013 = vmatmul.mubr.bf16.gmra.mrb[236].mxu1 %v4643_v9  ;;  %3859 = vmatprep.mubr.bf16.mxu0 %v4658_v34  ;;  %v436_v37 = vld [vmem:[%s6172_s7 + $0x738] sm:$0xff] }
 0x201   : > { %4020 = vmatprep.mubr.bf16.mxu1 %v4660_v60  ;;  %v444_v48 = vld [vmem:[%s6172_s7 + $0x778] sm:$0xff] }
 0x202   : > { %v6934_v15 = vadd.f32 %v5582_v51, %v3447_v55  ;;  %v5471_v28 = vpop.f32.mrb[132].mxu0  ;;  %v4673_v51 = vcombine.low %v419_v57, %v427_v29 }
 0x203   : > { %v5583_v31 = vpop.f32.mrb[132].mxu1  ;;  %v5472_v3 = vpop.f32.mrb[133].mxu0 }
 0x204   : > { %v5473_v13 = vadd.f32 %v5472_v3, %v5471_v28  ;;  %v5584_v61 = vpop.f32.mrb[133].mxu1  ;;  %v5474_v62 = vpop.f32.mrb[134].mxu0  ;;  %v4675_v3 = vcombine.low %v420_v59, %v428_v2  ;;  %v451_v59 = vld [vmem:[%s6172_s7 + $0x7b0] sm:$0xff] }
 0x205   : > { %v5585_v38 = vadd.f32 %v5584_v61, %v5583_v31  ;;  %v5586_v39 = vpop.f32.mrb[134].mxu1  ;;  %v5475_v26 = vpop.f32.mrb[135].mxu0  ;;  %v459_v2 = vld [vmem:[%s6172_s7 + $0x7f0] sm:$0xff] }
 0x206   : > { %v3452_v9 = vadd.f32 %v5473_v13, %v6779_v35  ;;  %v5476_v34 = vadd.f32 %v5475_v26, %v5474_v62  ;;  %v5587_v33 = vpop.f32.mrb[135].mxu1  ;;  %v4692_v62 = vcombine.high %v436_v37, %v444_v48 }
 0x207   : > { %v5588_v5 = vadd.f32 %v5587_v33, %v5586_v39  ;;  %3860 = vmatmul.mubr.bf16.gmra.mrb[240].mxu0 %v4657_v4  ;;  %v4690_v4 = vcombine.high %v435_v30, %v443_v6 }
 0x208   : > { %v6939_v24 = vadd.f32 %v5585_v38, %v3452_v9  ;;  %v3455_v44 = vadd.f32 %v5476_v34, %v6784_v17  ;;  %4021 = vmatmul.mubr.bf16.gmra.mrb[240].mxu1 %v4659_v50  ;;  %3867 = vmatprep.mubr.bf16.mxu0 %v4674_v16  ;;  %v452_v9 = vld [vmem:[%s6172_s7 + $0x7b8] sm:$0xff] }
 0x209   : > { %4028 = vmatprep.mubr.bf16.mxu1 %v4676_v27  ;;  %v460_v34 = vld [vmem:[%s6172_s7 + $0x7f8] sm:$0xff] }
 0x20a   : > { %v6944_v52 = vadd.f32 %v5588_v5, %v3455_v44  ;;  %v5477_v60 = vpop.f32.mrb[136].mxu0  ;;  %v4689_v5 = vcombine.low %v435_v30, %v443_v6 }
 0x20b   : > { %v5589_v0 = vpop.f32.mrb[136].mxu1  ;;  %v5478_v35 = vpop.f32.mrb[137].mxu0 }
 0x20c   : > { %v5479_v55 = vadd.f32 %v5478_v35, %v5477_v60  ;;  %v5590_v28 = vpop.f32.mrb[137].mxu1  ;;  %v5480_v31 = vpop.f32.mrb[138].mxu0  ;;  %v4691_v35 = vcombine.low %v436_v37, %v444_v48 }
 0x20d   : > { %v5591_v17 = vadd.f32 %v5590_v28, %v5589_v0  ;;  %v5592_v13 = vpop.f32.mrb[138].mxu1  ;;  %v5481_v61 = vpop.f32.mrb[139].mxu0 }
 0x20e   : > { %v3460_v50 = vadd.f32 %v5479_v55, %v6789_v12  ;;  %v5482_v16 = vadd.f32 %v5481_v61, %v5480_v31  ;;  %v5593_v38 = vpop.f32.mrb[139].mxu1  ;;  %v4708_v31 = vcombine.high %v452_v9, %v460_v34 }
 0x20f   : > { %v5594_v39 = vadd.f32 %v5593_v38, %v5592_v13  ;;  %3868 = vmatmul.mubr.bf16.gmra.mrb[244].mxu0 %v4673_v51  ;;  %v4706_v51 = vcombine.high %v451_v59, %v459_v2 }
 0x210   : > { %v6949_v57 = vadd.f32 %v5591_v17, %v3460_v50  ;;  %v3463_v29 = vadd.f32 %v5482_v16, %v6794_v7  ;;  %4029 = vmatmul.mubr.bf16.gmra.mrb[244].mxu1 %v4675_v3  ;;  %3875 = vmatprep.mubr.bf16.mxu0 %v4690_v4  ;;  %v4705_v50 = vcombine.low %v451_v59, %v459_v2 }
 0x211   : > { %4036 = vmatprep.mubr.bf16.mxu1 %v4692_v62 }
 0x212   : > { %v6954_v26 = vadd.f32 %v5594_v39, %v3463_v29  ;;  %v5483_v27 = vpop.f32.mrb[140].mxu0  ;;  %v4707_v39 = vcombine.low %v452_v9, %v460_v34 }
 0x213   : > { %v5595_v33 = vpop.f32.mrb[140].mxu1  ;;  %v5484_v12 = vpop.f32.mrb[141].mxu0 }
 0x214   : > { %v5485_v44 = vadd.f32 %v5484_v12, %v5483_v27  ;;  %v5596_v60 = vpop.f32.mrb[141].mxu1  ;;  %v5486_v0 = vpop.f32.mrb[142].mxu0 }
 0x215   : > { %v5597_v55 = vadd.f32 %v5596_v60, %v5595_v33  ;;  %v5598_v7 = vpop.f32.mrb[142].mxu1  ;;  %v5487_v28 = vpop.f32.mrb[143].mxu0 }
 0x216   : > { %v3468_v3 = vadd.f32 %v5485_v44, %v6799_v53  ;;  %v5488_v4 = vadd.f32 %v5487_v28, %v5486_v0  ;;  %v5599_v17 = vpop.f32.mrb[143].mxu1 }
 0x217   : > { %v5600_v13 = vadd.f32 %v5599_v17, %v5598_v7  ;;  %3876 = vmatmul.mubr.bf16.gmra.mrb[248].mxu0 %v4689_v5 }
 0x218   : > { %v6959_v61 = vadd.f32 %v5597_v55, %v3468_v3  ;;  %v3471_v62 = vadd.f32 %v5488_v4, %v6804_v40  ;;  %4037 = vmatmul.mubr.bf16.gmra.mrb[248].mxu1 %v4691_v35  ;;  %3883 = vmatprep.mubr.bf16.mxu0 %v4706_v51 }
 0x219   : > { %4044 = vmatprep.mubr.bf16.mxu1 %v4708_v31 }
 0x21a   : > { %v6962_v30 = vadd.f32 %v5600_v13, %v3471_v62  ;;  %v5489_v6 = vpop.f32.mrb[144].mxu0 }
 0x21b   : > { %v5601_v37 = vpop.f32.mrb[144].mxu1  ;;  %v5490_v48 = vpop.f32.mrb[145].mxu0 }
 0x21c   : > { %v5491_v16 = vadd.f32 %v5490_v48, %v5489_v6  ;;  %v5602_v38 = vpop.f32.mrb[145].mxu1  ;;  %v5492_v53 = vpop.f32.mrb[146].mxu0 }
 0x21d   : > { %v5603_v29 = vadd.f32 %v5602_v38, %v5601_v37  ;;  %v5604_v27 = vpop.f32.mrb[146].mxu1  ;;  %v5493_v33 = vpop.f32.mrb[147].mxu0 }
 0x21e   : > { %v3476_v12 = vadd.f32 %v5491_v16, %v6809_v42  ;;  %v5494_v5 = vadd.f32 %v5493_v33, %v5492_v53  ;;  %v5605_v40 = vpop.f32.mrb[147].mxu1 }
 0x21f   : > { %v5606_v44 = vadd.f32 %v5605_v40, %v5604_v27  ;;  %3884 = vmatmul.mubr.bf16.gmra.mrb[252].mxu0 %v4705_v50 }
 0x220   : > { %v6965_v60 = vadd.f32 %v5603_v29, %v3476_v12  ;;  %v3479_v0 = vadd.f32 %v5494_v5, %v6814_v36  ;;  %4045 = vmatmul.mubr.bf16.gmra.mrb[252].mxu1 %v4707_v39 }
 0x222   : > { %v6968_v35 = vadd.f32 %v5606_v44, %v3479_v0  ;;  %v5495_v59 = vpop.f32.mrb[148].mxu0 }
 0x223   : > { %v5607_v2 = vpop.f32.mrb[148].mxu1  ;;  %v5496_v51 = vpop.f32.mrb[149].mxu0 }
 0x224   : > { %v5497_v9 = vadd.f32 %v5496_v51, %v5495_v59  ;;  %v5608_v34 = vpop.f32.mrb[149].mxu1  ;;  %v5498_v55 = vpop.f32.mrb[150].mxu0 }
 0x225   : > { %v5609_v7 = vadd.f32 %v5608_v34, %v5607_v2  ;;  %v5610_v28 = vpop.f32.mrb[150].mxu1  ;;  %v5499_v42 = vpop.f32.mrb[151].mxu0 }
 0x226   : > { %v3484_v31 = vadd.f32 %v5497_v9, %v6819_v22  ;;  %v5500_v3 = vadd.f32 %v5499_v42, %v5498_v55  ;;  %v5611_v4 = vpop.f32.mrb[151].mxu1 }
 0x227   : > { %v5612_v17 = vadd.f32 %v5611_v4, %v5610_v28 }
 0x228   : > { %v6971_v13 = vadd.f32 %v5609_v7, %v3484_v31  ;;  %v3487_v36 = vadd.f32 %v5500_v3, %v6824_v20 }
 0x22a   : > { %v6974_v62 = vadd.f32 %v5612_v17, %v3487_v36  ;;  %v5501_v6 = vpop.f32.mrb[152].mxu0 }
 0x22b   : > { %v5613_v37 = vpop.f32.mrb[152].mxu1  ;;  %v5502_v48 = vpop.f32.mrb[153].mxu0 }
 0x22c   : > { %v5503_v50 = vadd.f32 %v5502_v48, %v5501_v6  ;;  %v5614_v16 = vpop.f32.mrb[153].mxu1  ;;  %v5504_v38 = vpop.f32.mrb[154].mxu0 }
 0x22d   : > { %v5615_v53 = vadd.f32 %v5614_v16, %v5613_v37  ;;  %v5616_v39 = vpop.f32.mrb[154].mxu1  ;;  %v5505_v29 = vpop.f32.mrb[155].mxu0 }
 0x22e   : > { %v3492_v22 = vadd.f32 %v5503_v50, %v6829_v11  ;;  %v5506_v27 = vadd.f32 %v5505_v29, %v5504_v38  ;;  %v5617_v33 = vpop.f32.mrb[155].mxu1 }
 0x22f   : > { %v5618_v12 = vadd.f32 %v5617_v33, %v5616_v39 }
 0x230   : > { %v6977_v5 = vadd.f32 %v5615_v53, %v3492_v22  ;;  %v3495_v20 = vadd.f32 %v5506_v27, %v6834_v8 }
 0x232   : > { %v6980_v40 = vadd.f32 %v5618_v12, %v3495_v20  ;;  %v5507_v44 = vpop.f32.mrb[156].mxu0 }
 0x233   : > { %v5619_v0 = vpop.f32.mrb[156].mxu1  ;;  %v5508_v59 = vpop.f32.mrb[157].mxu0 }
 0x234   : > { %v5509_v2 = vadd.f32 %v5508_v59, %v5507_v44  ;;  %v5620_v51 = vpop.f32.mrb[157].mxu1  ;;  %v5510_v9 = vpop.f32.mrb[158].mxu0 }
 0x235   : > { %v5621_v34 = vadd.f32 %v5620_v51, %v5619_v0  ;;  %v5622_v55 = vpop.f32.mrb[158].mxu1  ;;  %v5511_v7 = vpop.f32.mrb[159].mxu0 }
 0x236   : > { %v3500_v11 = vadd.f32 %v5509_v2, %v6839_v54  ;;  %v5512_v28 = vadd.f32 %v5511_v7, %v5510_v9  ;;  %v5623_v42 = vpop.f32.mrb[159].mxu1 }
 0x237   : > { %v5624_v31 = vadd.f32 %v5623_v42, %v5622_v55 }
 0x238   : > { %v6983_v3 = vadd.f32 %v5621_v34, %v3500_v11  ;;  %v3503_v8 = vadd.f32 %v5512_v28, %v6844_v56 }
 0x23a   : > { %v6986_v4 = vadd.f32 %v5624_v31, %v3503_v8  ;;  %v5513_v17 = vpop.f32.mrb[160].mxu0 }
 0x23b   : > { %v5625_v36 = vpop.f32.mrb[160].mxu1  ;;  %v5514_v6 = vpop.f32.mrb[161].mxu0 }
 0x23c   : > { %v5515_v37 = vadd.f32 %v5514_v6, %v5513_v17  ;;  %v5626_v48 = vpop.f32.mrb[161].mxu1  ;;  %v5516_v50 = vpop.f32.mrb[162].mxu0 }
 0x23d   : > { %v5627_v16 = vadd.f32 %v5626_v48, %v5625_v36  ;;  %v5628_v38 = vpop.f32.mrb[162].mxu1  ;;  %v5517_v53 = vpop.f32.mrb[163].mxu0 }
 0x23e   : > { %v3508_v54 = vadd.f32 %v5515_v37, %v6849_v19  ;;  %v5518_v39 = vadd.f32 %v5517_v53, %v5516_v50  ;;  %v5629_v29 = vpop.f32.mrb[163].mxu1 }
 0x23f   : > { %v5630_v22 = vadd.f32 %v5629_v29, %v5628_v38 }
 0x240   : > { %v6989_v27 = vadd.f32 %v5627_v16, %v3508_v54  ;;  %v3511_v56 = vadd.f32 %v5518_v39, %v6854_v45 }
 0x242   : > { %v6992_v33 = vadd.f32 %v5630_v22, %v3511_v56  ;;  %v5519_v12 = vpop.f32.mrb[164].mxu0 }
 0x243   : > { %v5631_v20 = vpop.f32.mrb[164].mxu1  ;;  %v5520_v44 = vpop.f32.mrb[165].mxu0 }
 0x244   : > { %v5521_v0 = vadd.f32 %v5520_v44, %v5519_v12  ;;  %v5632_v59 = vpop.f32.mrb[165].mxu1  ;;  %v5522_v2 = vpop.f32.mrb[166].mxu0 }
 0x245   : > { %v5633_v51 = vadd.f32 %v5632_v59, %v5631_v20  ;;  %v5634_v9 = vpop.f32.mrb[166].mxu1  ;;  %v5523_v34 = vpop.f32.mrb[167].mxu0 }
 0x246   : > { %v3516_v19 = vadd.f32 %v5521_v0, %v6859_v41  ;;  %v5524_v55 = vadd.f32 %v5523_v34, %v5522_v2  ;;  %v5635_v7 = vpop.f32.mrb[167].mxu1 }
 0x247   : > { %v5636_v11 = vadd.f32 %v5635_v7, %v5634_v9 }
 0x248   : > { %v6995_v28 = vadd.f32 %v5633_v51, %v3516_v19  ;;  %v3519_v45 = vadd.f32 %v5524_v55, %v6864_v32 }
 0x24a   : > { %v6998_v42 = vadd.f32 %v5636_v11, %v3519_v45  ;;  %v5525_v31 = vpop.f32.mrb[168].mxu0 }
 0x24b   : > { %v5637_v8 = vpop.f32.mrb[168].mxu1  ;;  %v5526_v17 = vpop.f32.mrb[169].mxu0 }
 0x24c   : > { %v5527_v36 = vadd.f32 %v5526_v17, %v5525_v31  ;;  %v5638_v6 = vpop.f32.mrb[169].mxu1  ;;  %v5528_v37 = vpop.f32.mrb[170].mxu0 }
 0x24d   : > { %v5639_v48 = vadd.f32 %v5638_v6, %v5637_v8  ;;  %v5640_v50 = vpop.f32.mrb[170].mxu1  ;;  %v5529_v16 = vpop.f32.mrb[171].mxu0 }
 0x24e   : > { %v3524_v41 = vadd.f32 %v5527_v36, %v6869_v63  ;;  %v5530_v38 = vadd.f32 %v5529_v16, %v5528_v37  ;;  %v5641_v53 = vpop.f32.mrb[171].mxu1 }
 0x24f   : > { %v5642_v54 = vadd.f32 %v5641_v53, %v5640_v50 }
 0x250   : > { %v7001_v39 = vadd.f32 %v5639_v48, %v3524_v41  ;;  %v3527_v32 = vadd.f32 %v5530_v38, %v6874_v14 }
 0x252   : > { %v7004_v29 = vadd.f32 %v5642_v54, %v3527_v32  ;;  %v5531_v22 = vpop.f32.mrb[172].mxu0 }
 0x253   : > { %v5643_v56 = vpop.f32.mrb[172].mxu1  ;;  %v5532_v12 = vpop.f32.mrb[173].mxu0 }
 0x254   : > { %v5533_v20 = vadd.f32 %v5532_v12, %v5531_v22  ;;  %v5644_v44 = vpop.f32.mrb[173].mxu1  ;;  %v5534_v0 = vpop.f32.mrb[174].mxu0 }
 0x255   : > { %v5645_v59 = vadd.f32 %v5644_v44, %v5643_v56  ;;  %v5646_v2 = vpop.f32.mrb[174].mxu1  ;;  %v5535_v51 = vpop.f32.mrb[175].mxu0 }
 0x256   : > { %v3532_v63 = vadd.f32 %v5533_v20, %v6879_v23  ;;  %v5536_v9 = vadd.f32 %v5535_v51, %v5534_v0  ;;  %v5647_v34 = vpop.f32.mrb[175].mxu1 }
 0x257   : > { %v5648_v19 = vadd.f32 %v5647_v34, %v5646_v2 }
 0x258   : > { %v7007_v55 = vadd.f32 %v5645_v59, %v3532_v63  ;;  %v3535_v14 = vadd.f32 %v5536_v9, %v6884_v21 }
 0x25a   : > { %v7010_v7 = vadd.f32 %v5648_v19, %v3535_v14  ;;  %v5537_v11 = vpop.f32.mrb[176].mxu0 }
 0x25b   : > { %v5649_v45 = vpop.f32.mrb[176].mxu1  ;;  %v5538_v31 = vpop.f32.mrb[177].mxu0 }
 0x25c   : > { %v5539_v8 = vadd.f32 %v5538_v31, %v5537_v11  ;;  %v5650_v17 = vpop.f32.mrb[177].mxu1  ;;  %v5540_v36 = vpop.f32.mrb[178].mxu0 }
 0x25d   : > { %v5651_v6 = vadd.f32 %v5650_v17, %v5649_v45  ;;  %v5652_v37 = vpop.f32.mrb[178].mxu1  ;;  %v5541_v48 = vpop.f32.mrb[179].mxu0 }
 0x25e   : > { %v3540_v23 = vadd.f32 %v5539_v8, %v6889_v47  ;;  %v5542_v50 = vadd.f32 %v5541_v48, %v5540_v36  ;;  %v5653_v16 = vpop.f32.mrb[179].mxu1 }
 0x25f   : > { %v5654_v41 = vadd.f32 %v5653_v16, %v5652_v37 }
 0x260   : > { %v7013_v38 = vadd.f32 %v5651_v6, %v3540_v23  ;;  %v3543_v21 = vadd.f32 %v5542_v50, %v6894_v43 }
 0x262   : > { %v7016_v53 = vadd.f32 %v5654_v41, %v3543_v21  ;;  %v5543_v54 = vpop.f32.mrb[180].mxu0 }
 0x263   : > { %v5655_v32 = vpop.f32.mrb[180].mxu1  ;;  %v5544_v22 = vpop.f32.mrb[181].mxu0 }
 0x264   : > { %v5545_v56 = vadd.f32 %v5544_v22, %v5543_v54  ;;  %v5656_v12 = vpop.f32.mrb[181].mxu1  ;;  %v5546_v20 = vpop.f32.mrb[182].mxu0 }
 0x265   : > { %v5657_v44 = vadd.f32 %v5656_v12, %v5655_v32  ;;  %v5658_v0 = vpop.f32.mrb[182].mxu1  ;;  %v5547_v59 = vpop.f32.mrb[183].mxu0 }
 0x266   : > { %v3548_v47 = vadd.f32 %v5545_v56, %v6899_v10  ;;  %v5548_v2 = vadd.f32 %v5547_v59, %v5546_v20  ;;  %v5659_v51 = vpop.f32.mrb[183].mxu1 }
 0x267   : > { %v5660_v63 = vadd.f32 %v5659_v51, %v5658_v0 }
 0x268   : > { %v7019_v9 = vadd.f32 %v5657_v44, %v3548_v47  ;;  %v3551_v43 = vadd.f32 %v5548_v2, %v6904_v1 }
 0x26a   : > { %v7022_v34 = vadd.f32 %v5660_v63, %v3551_v43  ;;  %v5549_v19 = vpop.f32.mrb[184].mxu0 }
 0x26b   : > { %v5661_v14 = vpop.f32.mrb[184].mxu1  ;;  %v5550_v11 = vpop.f32.mrb[185].mxu0 }
 0x26c   : > { %v5551_v45 = vadd.f32 %v5550_v11, %v5549_v19  ;;  %v5662_v31 = vpop.f32.mrb[185].mxu1  ;;  %v5552_v8 = vpop.f32.mrb[186].mxu0 }
 0x26d   : > { %v5663_v17 = vadd.f32 %v5662_v31, %v5661_v14  ;;  %v5664_v36 = vpop.f32.mrb[186].mxu1  ;;  %v5553_v6 = vpop.f32.mrb[187].mxu0 }
 0x26e   : > { %v3556_v10 = vadd.f32 %v5551_v45, %v6909_v46  ;;  %v5554_v37 = vadd.f32 %v5553_v6, %v5552_v8  ;;  %v5665_v48 = vpop.f32.mrb[187].mxu1 }
 0x26f   : > { %v5666_v23 = vadd.f32 %v5665_v48, %v5664_v36 }
 0x270   : > { %v7025_v50 = vadd.f32 %v5663_v17, %v3556_v10  ;;  %v3559_v1 = vadd.f32 %v5554_v37, %v6914_v25  ;;  %v7040_v10 = vld [vmem:[%s7169_s2] ss:$0 sm:$0xff] }
 0x272   : > { %v7028_v16 = vadd.f32 %v5666_v23, %v3559_v1  ;;  %v5555_v41 = vpop.f32.mrb[188].mxu0  ;;  %v7046_v23 = vld [vmem:[%s7170_s3] ss:$0 sm:$0xff] }
 0x273   : > { %v5667_v21 = vpop.f32.mrb[188].mxu1  ;;  %v5556_v54 = vpop.f32.mrb[189].mxu0 }
 0x274   : > { %v5557_v32 = vadd.f32 %v5556_v54, %v5555_v41  ;;  %v5668_v22 = vpop.f32.mrb[189].mxu1  ;;  %v5558_v56 = vpop.f32.mrb[190].mxu0 }
 0x275   : > { %v5669_v12 = vadd.f32 %v5668_v22, %v5667_v21  ;;  %v5670_v20 = vpop.f32.mrb[190].mxu1  ;;  %v5559_v44 = vpop.f32.mrb[191].mxu0 }
 0x276   : > { %v3564_v46 = vadd.f32 %v5557_v32, %v6919_v18  ;;  %v5560_v0 = vadd.f32 %v5559_v44, %v5558_v56  ;;  %v5671_v59 = vpop.f32.mrb[191].mxu1 }
 0x277   : > { %v5672_v47 = vadd.f32 %v5671_v59, %v5670_v20 }
 0x278   : > { %v7031_v2 = vadd.f32 %v5669_v12, %v3564_v46  ;;  %v3567_v25 = vadd.f32 %v5560_v0, %v6924_v49 }
 0x27a   : > { %v7034_v51 = vadd.f32 %v5672_v47, %v3567_v25  ;;  %v5689_v63 = vpop.f32.mrb[192].mxu0 }
 0x27b   : > { %v5801_v43 = vpop.f32.mrb[192].mxu1  ;;  %v5690_v19 = vpop.f32.mrb[193].mxu0 }
 0x27c   : > { %v5691_v14 = vadd.f32 %v5690_v19, %v5689_v63  ;;  %v5802_v11 = vpop.f32.mrb[193].mxu1  ;;  %v5692_v45 = vpop.f32.mrb[194].mxu0 }
 0x27d   : > { %v5803_v31 = vadd.f32 %v5802_v11, %v5801_v43  ;;  %v5804_v8 = vpop.f32.mrb[194].mxu1  ;;  %v5693_v17 = vpop.f32.mrb[195].mxu0 }
 0x27e   : > { %v3766_v18 = vadd.f32 %v5691_v14, %v6929_v58  ;;  %v5694_v36 = vadd.f32 %v5693_v17, %v5692_v45  ;;  %v5805_v6 = vpop.f32.mrb[195].mxu1 }
 0x27f   : > { %v5806_v49 = vadd.f32 %v5805_v6, %v5804_v8 }
 0x280   : > { %v3927_v37 = vadd.f32 %v5803_v31, %v3766_v18  ;;  %v3769_v48 = vadd.f32 %v5694_v36, %v6934_v15 }
 0x282   : > { %v4060_v1 = vmul.f32 %v7040_v10, %v3927_v37  ;;  %v3930_v41 = vadd.f32 %v5806_v49, %v3769_v48  ;;  %v5695_v58 = vpop.f32.mrb[196].mxu0 }
 0x283   : > { %v5807_v21 = vpop.f32.mrb[196].mxu1  ;;  %v5696_v54 = vpop.f32.mrb[197].mxu0 }
 0x284   : > { %v4099_v32 = vadd.f32 %v7046_v23, %v4060_v1  ;;  %v4061_v22 = vmul.f32 %v7040_v10, %v3930_v41  ;;  %v5697_v56 = vadd.f32 %v5696_v54, %v5695_v58  ;;  %v5808_v12 = vpop.f32.mrb[197].mxu1  ;;  %v5698_v20 = vpop.f32.mrb[198].mxu0 }
 0x285   : > { %v5809_v15 = vadd.f32 %v5808_v12, %v5807_v21  ;;  %v5810_v44 = vpop.f32.mrb[198].mxu1  ;;  %v5699_v46 = vpop.f32.mrb[199].mxu0 }
 0x286   : > { %v4163_v0 = vmul.f32 0.1, %v4099_v32  ;;  %v4100_v59 = vadd.f32 %v7046_v23, %v4061_v22  ;;  %v3774_v47 = vadd.f32 %v5697_v56, %v6939_v24  ;;  %v5811_v25 = vpop.f32.mrb[199].mxu1  ;;  %vm4131_vm0 = vcmp.gt.f32.partialorder %v4099_v32, 0.0 }
 0x287   : > { %v5700_v63 = vadd.f32 %v5699_v46, %v5698_v20  ;;  %v5812_v43 = vadd.f32 %v5811_v25, %v5810_v44 }
 0x288   : > { %vm4132_vm1 = vcmp.gt.f32.partialorder %v4100_v59, 0.0  ;;  %v4164_v19 = vmul.f32 0.1, %v4100_v59  ;;  %v3935_v14 = vadd.f32 %v5809_v15, %v3774_v47  ;;  %v4195_v45 = vsel %vm4131_vm0, %v4099_v32, %v4163_v0 }
 0x289   : > { %v3777_v11 = vadd.f32 %v5700_v63, %v6944_v52 }
 0x28a   : > { %v4196_v31 = vsel %vm4132_vm1, %v4100_v59, %v4164_v19  ;;  %v4062_v24 = vmul.f32 %v7040_v10, %v3935_v14  ;;  %v5701_v8 = vpop.f32.mrb[200].mxu0 }
 0x28b   : > { %v4909_v17 = vpack.c.bf16 %v4196_v31, %v4195_v45  ;;  %v3938_v18 = vadd.f32 %v5812_v43, %v3777_v11  ;;  %v5813_v36 = vpop.f32.mrb[200].mxu1  ;;  %v5702_v6 = vpop.f32.mrb[201].mxu0 }
 0x28c   : > { %v4101_v49 = vadd.f32 %v7046_v23, %v4062_v24  ;;  %v5703_v37 = vadd.f32 %v5702_v6, %v5701_v8  ;;  %v5814_v48 = vpop.f32.mrb[201].mxu1  ;;  %v5704_v52 = vpop.f32.mrb[202].mxu0 }
 0x28d   : > { %4910 = vst [vmem:[%s7058_s28] sm:$0xff] %v4909_v17   ;;  %v4063_v1 = vmul.f32 %v7040_v10, %v3938_v18  ;;  %v5815_v41 = vadd.f32 %v5814_v48, %v5813_v36  ;;  %v5816_v58 = vpop.f32.mrb[202].mxu1  ;;  %v5705_v21 = vpop.f32.mrb[203].mxu0 }
 0x28e   : > { %v3782_v54 = vadd.f32 %v5703_v37, %v6949_v57  ;;  %v5706_v32 = vadd.f32 %v5705_v21, %v5704_v52  ;;  %v5817_v22 = vpop.f32.mrb[203].mxu1  ;;  %v4165_v56 = vmul.f32 0.1, %v4101_v49  ;;  %vm4133_vm2 = vcmp.gt.f32.partialorder %v4101_v49, 0.0 }
 0x28f   : > { %v4102_v12 = vadd.f32 %v7046_v23, %v4063_v1  ;;  %v5818_v20 = vadd.f32 %v5817_v22, %v5816_v58 }
 0x290   : > { %v3943_v15 = vadd.f32 %v5815_v41, %v3782_v54  ;;  %v3785_v44 = vadd.f32 %v5706_v32, %v6954_v26  ;;  %v4197_v25 = vsel %vm4133_vm2, %v4101_v49, %v4165_v56 }
 0x291   : > { %vm4134_vm3 = vcmp.gt.f32.partialorder %v4102_v12, 0.0  ;;  %v4166_v46 = vmul.f32 0.1, %v4102_v12 }
 0x292   : > { %v4064_v0 = vmul.f32 %v7040_v10, %v3943_v15  ;;  %v3946_v59 = vadd.f32 %v5818_v20, %v3785_v44  ;;  %v5707_v47 = vpop.f32.mrb[204].mxu0 }
 0x293   : > { %v4198_v63 = vsel %vm4134_vm3, %v4102_v12, %v4166_v46  ;;  %v5819_v57 = vpop.f32.mrb[204].mxu1  ;;  %v5708_v43 = vpop.f32.mrb[205].mxu0 }
 0x294   : > { %v4914_v19 = vpack.c.bf16 %v4198_v63, %v4197_v25  ;;  %v4103_v14 = vadd.f32 %v7046_v23, %v4064_v0  ;;  %v4065_v11 = vmul.f32 %v7040_v10, %v3946_v59  ;;  %v5709_v45 = vadd.f32 %v5708_v43, %v5707_v47  ;;  %v5820_v31 = vpop.f32.mrb[205].mxu1  ;;  %v5710_v24 = vpop.f32.mrb[206].mxu0 }
 0x295   : > { %v5821_v26 = vadd.f32 %v5820_v31, %v5819_v57  ;;  %v5822_v8 = vpop.f32.mrb[206].mxu1  ;;  %v5711_v17 = vpop.f32.mrb[207].mxu0 }
 0x296   : > { %4986 = vst [vmem:[%s7058_s28 + $0x8] sm:$0xff] %v4914_v19   ;;  %v4167_v18 = vmul.f32 0.1, %v4103_v14  ;;  %v4104_v36 = vadd.f32 %v7046_v23, %v4065_v11  ;;  %v3790_v6 = vadd.f32 %v5709_v45, %v6959_v61  ;;  %v5823_v49 = vpop.f32.mrb[207].mxu1  ;;  %vm4135_vm4 = vcmp.gt.f32.partialorder %v4103_v14, 0.0 }
 0x297   : > { %v5712_v37 = vadd.f32 %v5711_v17, %v5710_v24  ;;  %v5824_v48 = vadd.f32 %v5823_v49, %v5822_v8 }
 0x298   : > { %vm4136_vm5 = vcmp.gt.f32.partialorder %v4104_v36, 0.0  ;;  %v4168_v52 = vmul.f32 0.1, %v4104_v36  ;;  %v3951_v1 = vadd.f32 %v5821_v26, %v3790_v6  ;;  %v4199_v58 = vsel %vm4135_vm4, %v4103_v14, %v4167_v18 }
 0x299   : > { %v3793_v41 = vadd.f32 %v5712_v37, %v6962_v30 }
 0x29a   : > { %v4200_v21 = vsel %vm4136_vm5, %v4104_v36, %v4168_v52  ;;  %v4066_v54 = vmul.f32 %v7040_v10, %v3951_v1  ;;  %v5713_v32 = vpop.f32.mrb[208].mxu0 }
 0x29b   : > { %v4919_v22 = vpack.c.bf16 %v4200_v21, %v4199_v58  ;;  %v3954_v56 = vadd.f32 %v5824_v48, %v3793_v41  ;;  %v5825_v12 = vpop.f32.mrb[208].mxu1  ;;  %v5714_v20 = vpop.f32.mrb[209].mxu0 }
 0x29c   : > { %v4105_v61 = vadd.f32 %v7046_v23, %v4066_v54  ;;  %v5715_v15 = vadd.f32 %v5714_v20, %v5713_v32  ;;  %v5826_v44 = vpop.f32.mrb[209].mxu1  ;;  %v5716_v46 = vpop.f32.mrb[210].mxu0 }
 0x29d   : > { %4987 = vst [vmem:[%s7058_s28 + $0x10] sm:$0xff] %v4919_v22   ;;  %v4067_v0 = vmul.f32 %v7040_v10, %v3954_v56  ;;  %v5827_v59 = vadd.f32 %v5826_v44, %v5825_v12  ;;  %v5828_v47 = vpop.f32.mrb[210].mxu1  ;;  %v5717_v30 = vpop.f32.mrb[211].mxu0 }
 0x29e   : > { %v3798_v25 = vadd.f32 %v5715_v15, %v6965_v60  ;;  %v5718_v63 = vadd.f32 %v5717_v30, %v5716_v46  ;;  %v5829_v57 = vpop.f32.mrb[211].mxu1  ;;  %v4169_v43 = vmul.f32 0.1, %v4105_v61  ;;  %vm4137_vm6 = vcmp.gt.f32.partialorder %v4105_v61, 0.0 }
 0x29f   : > { %v4106_v19 = vadd.f32 %v7046_v23, %v4067_v0  ;;  %v5830_v14 = vadd.f32 %v5829_v57, %v5828_v47 }
 0x2a0   : > { %v3959_v11 = vadd.f32 %v5827_v59, %v3798_v25  ;;  %v3801_v45 = vadd.f32 %v5718_v63, %v6968_v35  ;;  %v4201_v17 = vsel %vm4137_vm6, %v4105_v61, %v4169_v43 }
 0x2a1   : > { %vm4138_vm7 = vcmp.gt.f32.partialorder %v4106_v19, 0.0  ;;  %v4170_v31 = vmul.f32 0.1, %v4106_v19 }
 0x2a2   : > { %v4068_v24 = vmul.f32 %v7040_v10, %v3959_v11  ;;  %v3962_v26 = vadd.f32 %v5830_v14, %v3801_v45  ;;  %v5719_v8 = vpop.f32.mrb[212].mxu0 }
 0x2a3   : > { %v4202_v18 = vsel %vm4138_vm7, %v4106_v19, %v4170_v31  ;;  %v5831_v60 = vpop.f32.mrb[212].mxu1  ;;  %v5720_v36 = vpop.f32.mrb[213].mxu0 }
 0x2a4   : > { %v4924_v6 = vpack.c.bf16 %v4202_v18, %v4201_v17  ;;  %v4107_v49 = vadd.f32 %v7046_v23, %v4068_v24  ;;  %v4069_v37 = vmul.f32 %v7040_v10, %v3962_v26  ;;  %v5721_v48 = vadd.f32 %v5720_v36, %v5719_v8  ;;  %v5832_v52 = vpop.f32.mrb[213].mxu1  ;;  %v5722_v1 = vpop.f32.mrb[214].mxu0 }
 0x2a5   : > { %v5833_v35 = vadd.f32 %v5832_v52, %v5831_v60  ;;  %v5834_v41 = vpop.f32.mrb[214].mxu1  ;;  %v5723_v58 = vpop.f32.mrb[215].mxu0 }
 0x2a6   : > { %4988 = vst [vmem:[%s7058_s28 + $0x18] sm:$0xff] %v4924_v6   ;;  %v4171_v21 = vmul.f32 0.1, %v4107_v49  ;;  %v4108_v54 = vadd.f32 %v7046_v23, %v4069_v37  ;;  %v3806_v32 = vadd.f32 %v5721_v48, %v6971_v13  ;;  %v5835_v22 = vpop.f32.mrb[215].mxu1  ;;  %vm4139_vm8 = vcmp.gt.f32.partialorder %v4107_v49, 0.0 }
 0x2a7   : > { %v5724_v56 = vadd.f32 %v5723_v58, %v5722_v1  ;;  %v5836_v12 = vadd.f32 %v5835_v22, %v5834_v41 }
 0x2a8   : > { %vm4140_vm9 = vcmp.gt.f32.partialorder %v4108_v54, 0.0  ;;  %v4172_v20 = vmul.f32 0.1, %v4108_v54  ;;  %v3967_v61 = vadd.f32 %v5833_v35, %v3806_v32  ;;  %v4203_v44 = vsel %vm4139_vm8, %v4107_v49, %v4171_v21 }
 0x2a9   : > { %v3809_v15 = vadd.f32 %v5724_v56, %v6974_v62 }
 0x2aa   : > { %v4204_v46 = vsel %vm4140_vm9, %v4108_v54, %v4172_v20  ;;  %v4070_v0 = vmul.f32 %v7040_v10, %v3967_v61  ;;  %v5725_v59 = vpop.f32.mrb[216].mxu0 }
 0x2ab   : > { %v4929_v47 = vpack.c.bf16 %v4204_v46, %v4203_v44  ;;  %v3970_v30 = vadd.f32 %v5836_v12, %v3809_v15  ;;  %v5837_v25 = vpop.f32.mrb[216].mxu1  ;;  %v5726_v63 = vpop.f32.mrb[217].mxu0 }
 0x2ac   : > { %v4109_v13 = vadd.f32 %v7046_v23, %v4070_v0  ;;  %v5727_v57 = vadd.f32 %v5726_v63, %v5725_v59  ;;  %v5838_v43 = vpop.f32.mrb[217].mxu1  ;;  %v5728_v19 = vpop.f32.mrb[218].mxu0 }
 0x2ad   : > { %4989 = vst [vmem:[%s7058_s28 + $0x20] sm:$0xff] %v4929_v47   ;;  %v4071_v14 = vmul.f32 %v7040_v10, %v3970_v30  ;;  %v5839_v11 = vadd.f32 %v5838_v43, %v5837_v25  ;;  %v5840_v45 = vpop.f32.mrb[218].mxu1  ;;  %v5729_v62 = vpop.f32.mrb[219].mxu0 }
 0x2ae   : > { %v3814_v31 = vadd.f32 %v5727_v57, %v6977_v5  ;;  %v5730_v24 = vadd.f32 %v5729_v62, %v5728_v19  ;;  %v5841_v26 = vpop.f32.mrb[219].mxu1  ;;  %v4173_v8 = vmul.f32 0.1, %v4109_v13  ;;  %vm4141_vm10 = vcmp.gt.f32.partialorder %v4109_v13, 0.0 }
 0x2af   : > { %v4110_v17 = vadd.f32 %v7046_v23, %v4071_v14  ;;  %v5842_v18 = vadd.f32 %v5841_v26, %v5840_v45 }
 0x2b0   : > { %v3975_v60 = vadd.f32 %v5839_v11, %v3814_v31  ;;  %v3817_v36 = vadd.f32 %v5730_v24, %v6980_v40  ;;  %v4205_v52 = vsel %vm4141_vm10, %v4109_v13, %v4173_v8 }
 0x2b1   : > { %vm4142_vm11 = vcmp.gt.f32.partialorder %v4110_v17, 0.0  ;;  %v4174_v6 = vmul.f32 0.1, %v4110_v17 }
 0x2b2   : > { %v4072_v49 = vmul.f32 %v7040_v10, %v3975_v60  ;;  %v3978_v37 = vadd.f32 %v5842_v18, %v3817_v36  ;;  %v5731_v48 = vpop.f32.mrb[220].mxu0 }
 0x2b3   : > { %v4206_v1 = vsel %vm4142_vm11, %v4110_v17, %v4174_v6  ;;  %v5843_v5 = vpop.f32.mrb[220].mxu1  ;;  %v5732_v35 = vpop.f32.mrb[221].mxu0 }
 0x2b4   : > { %v4934_v41 = vpack.c.bf16 %v4206_v1, %v4205_v52  ;;  %v4111_v58 = vadd.f32 %v7046_v23, %v4072_v49  ;;  %v4073_v21 = vmul.f32 %v7040_v10, %v3978_v37  ;;  %v5733_v54 = vadd.f32 %v5732_v35, %v5731_v48  ;;  %v5844_v32 = vpop.f32.mrb[221].mxu1  ;;  %v5734_v22 = vpop.f32.mrb[222].mxu0 }
 0x2b5   : > { %v5845_v40 = vadd.f32 %v5844_v32, %v5843_v5  ;;  %v5846_v56 = vpop.f32.mrb[222].mxu1  ;;  %v5735_v12 = vpop.f32.mrb[223].mxu0 }
 0x2b6   : > { %4990 = vst [vmem:[%s7058_s28 + $0x28] sm:$0xff] %v4934_v41   ;;  %v4175_v20 = vmul.f32 0.1, %v4111_v58  ;;  %v4112_v61 = vadd.f32 %v7046_v23, %v4073_v21  ;;  %v3822_v15 = vadd.f32 %v5733_v54, %v6983_v3  ;;  %v5847_v44 = vpop.f32.mrb[223].mxu1  ;;  %vm4143_vm12 = vcmp.gt.f32.partialorder %v4111_v58, 0.0 }
 0x2b7   : > { %v5736_v46 = vadd.f32 %v5735_v12, %v5734_v22  ;;  %v5848_v0 = vadd.f32 %v5847_v44, %v5846_v56 }
 0x2b8   : > { %vm4144_vm13 = vcmp.gt.f32.partialorder %v4112_v61, 0.0  ;;  %v4176_v59 = vmul.f32 0.1, %v4112_v61  ;;  %v3983_v47 = vadd.f32 %v5845_v40, %v3822_v15  ;;  %v4207_v25 = vsel %vm4143_vm12, %v4111_v58, %v4175_v20 }
 0x2b9   : > { %v3825_v30 = vadd.f32 %v5736_v46, %v6986_v4 }
 0x2ba   : > { %v4208_v63 = vsel %vm4144_vm13, %v4112_v61, %v4176_v59  ;;  %v4074_v13 = vmul.f32 %v7040_v10, %v3983_v47  ;;  %v5737_v57 = vpop.f32.mrb[224].mxu0 }
 0x2bb   : > { %v4939_v43 = vpack.c.bf16 %v4208_v63, %v4207_v25  ;;  %v3986_v19 = vadd.f32 %v5848_v0, %v3825_v30  ;;  %v5849_v14 = vpop.f32.mrb[224].mxu1  ;;  %v5738_v11 = vpop.f32.mrb[225].mxu0 }
 0x2bc   : > { %v4113_v3 = vadd.f32 %v7046_v23, %v4074_v13  ;;  %v5739_v45 = vadd.f32 %v5738_v11, %v5737_v57  ;;  %v5850_v62 = vpop.f32.mrb[225].mxu1  ;;  %v5740_v31 = vpop.f32.mrb[226].mxu0 }
 0x2bd   : > { %4991 = vst [vmem:[%s7058_s28 + $0x30] sm:$0xff] %v4939_v43   ;;  %v4075_v24 = vmul.f32 %v7040_v10, %v3986_v19  ;;  %v5851_v26 = vadd.f32 %v5850_v62, %v5849_v14  ;;  %v5852_v8 = vpop.f32.mrb[226].mxu1  ;;  %v5741_v4 = vpop.f32.mrb[227].mxu0 }
 0x2be   : > { %v3830_v17 = vadd.f32 %v5739_v45, %v6989_v27  ;;  %v5742_v18 = vadd.f32 %v5741_v4, %v5740_v31  ;;  %v5853_v60 = vpop.f32.mrb[227].mxu1  ;;  %v4177_v36 = vmul.f32 0.1, %v4113_v3  ;;  %vm4145_vm14 = vcmp.gt.f32.partialorder %v4113_v3, 0.0 }
 0x2bf   : > { %v4114_v6 = vadd.f32 %v7046_v23, %v4075_v24  ;;  %v5854_v49 = vadd.f32 %v5853_v60, %v5852_v8 }
 0x2c0   : > { %v3991_v37 = vadd.f32 %v5851_v26, %v3830_v17  ;;  %v3833_v48 = vadd.f32 %v5742_v18, %v6992_v33  ;;  %v4209_v41 = vsel %vm4145_vm14, %v4113_v3, %v4177_v36 }
 0x2c1   : > { %vm4146_vm15 = vcmp.gt.f32.partialorder %v4114_v6, 0.0  ;;  %v4178_v52 = vmul.f32 0.1, %v4114_v6 }
 0x2c2   : > { %v4076_v1 = vmul.f32 %v7040_v10, %v3991_v37  ;;  %v3994_v5 = vadd.f32 %v5854_v49, %v3833_v48  ;;  %v5743_v35 = vpop.f32.mrb[228].mxu0 }
 0x2c3   : > { %v4210_v58 = vsel %vm4146_vm15, %v4114_v6, %v4178_v52  ;;  %v5855_v27 = vpop.f32.mrb[228].mxu1  ;;  %v5744_v21 = vpop.f32.mrb[229].mxu0 }
 0x2c4   : > { %v4944_v54 = vpack.c.bf16 %v4210_v58, %v4209_v41  ;;  %v4115_v32 = vadd.f32 %v7046_v23, %v4076_v1  ;;  %v4077_v22 = vmul.f32 %v7040_v10, %v3994_v5  ;;  %v5745_v40 = vadd.f32 %v5744_v21, %v5743_v35  ;;  %v5856_v56 = vpop.f32.mrb[229].mxu1  ;;  %v5746_v12 = vpop.f32.mrb[230].mxu0 }
 0x2c5   : > { %v5857_v33 = vadd.f32 %v5856_v56, %v5855_v27  ;;  %v5858_v20 = vpop.f32.mrb[230].mxu1  ;;  %v5747_v61 = vpop.f32.mrb[231].mxu0 }
 0x2c6   : > { %4992 = vst [vmem:[%s7058_s28 + $0x38] sm:$0xff] %v4944_v54   ;;  %v4179_v15 = vmul.f32 0.1, %v4115_v32  ;;  %v4116_v44 = vadd.f32 %v7046_v23, %v4077_v22  ;;  %v3838_v46 = vadd.f32 %v5745_v40, %v6995_v28  ;;  %v5859_v0 = vpop.f32.mrb[231].mxu1  ;;  %vm4147_vm0 = vcmp.gt.f32.partialorder %v4115_v32, 0.0 }
 0x2c7   : > { %v5748_v59 = vadd.f32 %v5747_v61, %v5746_v12  ;;  %v5860_v47 = vadd.f32 %v5859_v0, %v5858_v20 }
 0x2c8   : > { %vm4148_vm1 = vcmp.gt.f32.partialorder %v4116_v44, 0.0  ;;  %v4180_v30 = vmul.f32 0.1, %v4116_v44  ;;  %v3999_v25 = vadd.f32 %v5857_v33, %v3838_v46  ;;  %v4211_v13 = vsel %vm4147_vm0, %v4115_v32, %v4179_v15 }
 0x2c9   : > { %v3841_v63 = vadd.f32 %v5748_v59, %v6998_v42 }
 0x2ca   : > { %v4212_v57 = vsel %vm4148_vm1, %v4116_v44, %v4180_v30  ;;  %v4078_v43 = vmul.f32 %v7040_v10, %v3999_v25  ;;  %v5749_v19 = vpop.f32.mrb[232].mxu0 }
 0x2cb   : > { %v4949_v14 = vpack.c.bf16 %v4212_v57, %v4211_v13  ;;  %v4002_v11 = vadd.f32 %v5860_v47, %v3841_v63  ;;  %v5861_v3 = vpop.f32.mrb[232].mxu1  ;;  %v5750_v45 = vpop.f32.mrb[233].mxu0 }
 0x2cc   : > { %v4117_v28 = vadd.f32 %v7046_v23, %v4078_v43  ;;  %v5751_v62 = vadd.f32 %v5750_v45, %v5749_v19  ;;  %v5862_v31 = vpop.f32.mrb[233].mxu1  ;;  %v5752_v24 = vpop.f32.mrb[234].mxu0 }
 0x2cd   : > { %4993 = vst [vmem:[%s7058_s28 + $0x40] sm:$0xff] %v4949_v14   ;;  %v4079_v26 = vmul.f32 %v7040_v10, %v4002_v11  ;;  %v5863_v8 = vadd.f32 %v5862_v31, %v5861_v3  ;;  %v5864_v4 = vpop.f32.mrb[234].mxu1  ;;  %v5753_v42 = vpop.f32.mrb[235].mxu0 }
 0x2ce   : > { %v3846_v17 = vadd.f32 %v5751_v62, %v7001_v39  ;;  %v5754_v18 = vadd.f32 %v5753_v42, %v5752_v24  ;;  %v5865_v60 = vpop.f32.mrb[235].mxu1  ;;  %v4181_v36 = vmul.f32 0.1, %v4117_v28  ;;  %vm4149_vm2 = vcmp.gt.f32.partialorder %v4117_v28, 0.0 }
 0x2cf   : > { %v4118_v6 = vadd.f32 %v7046_v23, %v4079_v26  ;;  %v5866_v49 = vadd.f32 %v5865_v60, %v5864_v4 }
 0x2d0   : > { %v4007_v37 = vadd.f32 %v5863_v8, %v3846_v17  ;;  %v3849_v48 = vadd.f32 %v5754_v18, %v7004_v29  ;;  %v4213_v41 = vsel %vm4149_vm2, %v4117_v28, %v4181_v36 }
 0x2d1   : > { %vm4150_vm3 = vcmp.gt.f32.partialorder %v4118_v6, 0.0  ;;  %v4182_v52 = vmul.f32 0.1, %v4118_v6 }
 0x2d2   : > { %v4080_v1 = vmul.f32 %v7040_v10, %v4007_v37  ;;  %v4010_v5 = vadd.f32 %v5866_v49, %v3849_v48  ;;  %v5755_v35 = vpop.f32.mrb[236].mxu0 }
 0x2d3   : > { %v4214_v58 = vsel %vm4150_vm3, %v4118_v6, %v4182_v52  ;;  %v5867_v39 = vpop.f32.mrb[236].mxu1  ;;  %v5756_v27 = vpop.f32.mrb[237].mxu0 }
 0x2d4   : > { %v4954_v21 = vpack.c.bf16 %v4214_v58, %v4213_v41  ;;  %v4119_v54 = vadd.f32 %v7046_v23, %v4080_v1  ;;  %v4081_v32 = vmul.f32 %v7040_v10, %v4010_v5  ;;  %v5757_v22 = vadd.f32 %v5756_v27, %v5755_v35  ;;  %v5868_v40 = vpop.f32.mrb[237].mxu1  ;;  %v5758_v56 = vpop.f32.mrb[238].mxu0 }
 0x2d5   : > { %v5869_v29 = vadd.f32 %v5868_v40, %v5867_v39  ;;  %v5870_v12 = vpop.f32.mrb[238].mxu1  ;;  %v5759_v33 = vpop.f32.mrb[239].mxu0 }
 0x2d6   : > { %4994 = vst [vmem:[%s7058_s28 + $0x48] sm:$0xff] %v4954_v21   ;;  %v4183_v20 = vmul.f32 0.1, %v4119_v54  ;;  %v4120_v61 = vadd.f32 %v7046_v23, %v4081_v32  ;;  %v3854_v15 = vadd.f32 %v5757_v22, %v7007_v55  ;;  %v5871_v44 = vpop.f32.mrb[239].mxu1  ;;  %vm4151_vm4 = vcmp.gt.f32.partialorder %v4119_v54, 0.0 }
 0x2d7   : > { %v5760_v46 = vadd.f32 %v5759_v33, %v5758_v56  ;;  %v5872_v0 = vadd.f32 %v5871_v44, %v5870_v12 }
 0x2d8   : > { %vm4152_vm5 = vcmp.gt.f32.partialorder %v4120_v61, 0.0  ;;  %v4184_v59 = vmul.f32 0.1, %v4120_v61  ;;  %v4015_v47 = vadd.f32 %v5869_v29, %v3854_v15  ;;  %v4215_v25 = vsel %vm4151_vm4, %v4119_v54, %v4183_v20 }
 0x2d9   : > { %v3857_v30 = vadd.f32 %v5760_v46, %v7010_v7 }
 0x2da   : > { %v4216_v63 = vsel %vm4152_vm5, %v4120_v61, %v4184_v59  ;;  %v4082_v13 = vmul.f32 %v7040_v10, %v4015_v47  ;;  %v5761_v57 = vpop.f32.mrb[240].mxu0 }
 0x2db   : > { %v4959_v43 = vpack.c.bf16 %v4216_v63, %v4215_v25  ;;  %v4018_v19 = vadd.f32 %v5872_v0, %v3857_v30  ;;  %v5873_v14 = vpop.f32.mrb[240].mxu1  ;;  %v5762_v11 = vpop.f32.mrb[241].mxu0 }
 0x2dc   : > { %v4121_v55 = vadd.f32 %v7046_v23, %v4082_v13  ;;  %v5763_v3 = vadd.f32 %v5762_v11, %v5761_v57  ;;  %v5874_v45 = vpop.f32.mrb[241].mxu1  ;;  %v5764_v28 = vpop.f32.mrb[242].mxu0 }
 0x2dd   : > { %4995 = vst [vmem:[%s7058_s28 + $0x50] sm:$0xff] %v4959_v43   ;;  %v4083_v62 = vmul.f32 %v7040_v10, %v4018_v19  ;;  %v5875_v31 = vadd.f32 %v5874_v45, %v5873_v14  ;;  %v5876_v24 = vpop.f32.mrb[242].mxu1  ;;  %v5765_v7 = vpop.f32.mrb[243].mxu0 }
 0x2de   : > { %v3862_v26 = vadd.f32 %v5763_v3, %v7013_v38  ;;  %v5766_v8 = vadd.f32 %v5765_v7, %v5764_v28  ;;  %v5877_v4 = vpop.f32.mrb[243].mxu1  ;;  %v4185_v42 = vmul.f32 0.1, %v4121_v55  ;;  %vm4153_vm6 = vcmp.gt.f32.partialorder %v4121_v55, 0.0 }
 0x2df   : > { %v4122_v17 = vadd.f32 %v7046_v23, %v4083_v62  ;;  %v5878_v18 = vadd.f32 %v5877_v4, %v5876_v24 }
 0x2e0   : > { %v4023_v60 = vadd.f32 %v5875_v31, %v3862_v26  ;;  %v3865_v36 = vadd.f32 %v5766_v8, %v7016_v53  ;;  %v4217_v52 = vsel %vm4153_vm6, %v4121_v55, %v4185_v42 }
 0x2e1   : > { %vm4154_vm7 = vcmp.gt.f32.partialorder %v4122_v17, 0.0  ;;  %v4186_v6 = vmul.f32 0.1, %v4122_v17 }
 0x2e2   : > { %v4084_v49 = vmul.f32 %v7040_v10, %v4023_v60  ;;  %v4026_v37 = vadd.f32 %v5878_v18, %v3865_v36  ;;  %v5767_v48 = vpop.f32.mrb[244].mxu0 }
 0x2e3   : > { %v4218_v1 = vsel %vm4154_vm7, %v4122_v17, %v4186_v6  ;;  %v5879_v38 = vpop.f32.mrb[244].mxu1  ;;  %v5768_v5 = vpop.f32.mrb[245].mxu0 }
 0x2e4   : > { %v4964_v35 = vpack.c.bf16 %v4218_v1, %v4217_v52  ;;  %v4123_v41 = vadd.f32 %v7046_v23, %v4084_v49  ;;  %v4085_v58 = vmul.f32 %v7040_v10, %v4026_v37  ;;  %v5769_v39 = vadd.f32 %v5768_v5, %v5767_v48  ;;  %v5880_v27 = vpop.f32.mrb[245].mxu1  ;;  %v5770_v21 = vpop.f32.mrb[246].mxu0 }
 0x2e5   : > { %v5881_v53 = vadd.f32 %v5880_v27, %v5879_v38  ;;  %v5882_v54 = vpop.f32.mrb[246].mxu1  ;;  %v5771_v32 = vpop.f32.mrb[247].mxu0 }
 0x2e6   : > { %4996 = vst [vmem:[%s7058_s28 + $0x58] sm:$0xff] %v4964_v35   ;;  %v4187_v22 = vmul.f32 0.1, %v4123_v41  ;;  %v4124_v40 = vadd.f32 %v7046_v23, %v4085_v58  ;;  %v3870_v56 = vadd.f32 %v5769_v39, %v7019_v9  ;;  %v5883_v29 = vpop.f32.mrb[247].mxu1  ;;  %vm4155_vm8 = vcmp.gt.f32.partialorder %v4123_v41, 0.0 }
 0x2e7   : > { %v5772_v12 = vadd.f32 %v5771_v32, %v5770_v21  ;;  %v5884_v33 = vadd.f32 %v5883_v29, %v5882_v54 }
 0x2e8   : > { %vm4156_vm9 = vcmp.gt.f32.partialorder %v4124_v40, 0.0  ;;  %v4188_v20 = vmul.f32 0.1, %v4124_v40  ;;  %v4031_v61 = vadd.f32 %v5881_v53, %v3870_v56  ;;  %v4219_v44 = vsel %vm4155_vm8, %v4123_v41, %v4187_v22 }
 0x2e9   : > { %v3873_v15 = vadd.f32 %v5772_v12, %v7022_v34 }
 0x2ea   : > { %v4220_v46 = vsel %vm4156_vm9, %v4124_v40, %v4188_v20  ;;  %v4086_v0 = vmul.f32 %v7040_v10, %v4031_v61  ;;  %v5773_v59 = vpop.f32.mrb[248].mxu0 }
 0x2eb   : > { %v4969_v47 = vpack.c.bf16 %v4220_v46, %v4219_v44  ;;  %v4034_v30 = vadd.f32 %v5884_v33, %v3873_v15  ;;  %v5885_v25 = vpop.f32.mrb[248].mxu1  ;;  %v5774_v63 = vpop.f32.mrb[249].mxu0 }
 0x2ec   : > { %v4125_v9 = vadd.f32 %v7046_v23, %v4086_v0  ;;  %v5775_v13 = vadd.f32 %v5774_v63, %v5773_v59  ;;  %v5886_v57 = vpop.f32.mrb[249].mxu1  ;;  %v5776_v43 = vpop.f32.mrb[250].mxu0 }
 0x2ed   : > { %4997 = vst [vmem:[%s7058_s28 + $0x60] sm:$0xff] %v4969_v47   ;;  %v4087_v19 = vmul.f32 %v7040_v10, %v4034_v30  ;;  %v5887_v14 = vadd.f32 %v5886_v57, %v5885_v25  ;;  %v5888_v11 = vpop.f32.mrb[250].mxu1  ;;  %v5777_v34 = vpop.f32.mrb[251].mxu0 }
 0x2ee   : > { %v3878_v55 = vadd.f32 %v5775_v13, %v7025_v50  ;;  %v5778_v3 = vadd.f32 %v5777_v34, %v5776_v43  ;;  %v5889_v45 = vpop.f32.mrb[251].mxu1  ;;  %v4189_v28 = vmul.f32 0.1, %v4125_v9  ;;  %vm4157_vm10 = vcmp.gt.f32.partialorder %v4125_v9, 0.0 }
 0x2ef   : > { %v4126_v62 = vadd.f32 %v7046_v23, %v4087_v19  ;;  %v5890_v31 = vadd.f32 %v5889_v45, %v5888_v11 }
 0x2f0   : > { %v4039_v24 = vadd.f32 %v5887_v14, %v3878_v55  ;;  %v3881_v7 = vadd.f32 %v5778_v3, %v7028_v16  ;;  %v4221_v17 = vsel %vm4157_vm10, %v4125_v9, %v4189_v28 }
 0x2f1   : > { %vm4158_vm11 = vcmp.gt.f32.partialorder %v4126_v62, 0.0  ;;  %v4190_v26 = vmul.f32 0.1, %v4126_v62 }
 0x2f2   : > { %v4088_v8 = vmul.f32 %v7040_v10, %v4039_v24  ;;  %v4042_v4 = vadd.f32 %v5890_v31, %v3881_v7  ;;  %v5779_v42 = vpop.f32.mrb[252].mxu0 }
 0x2f3   : > { %v4222_v18 = vsel %vm4158_vm11, %v4126_v62, %v4190_v26  ;;  %v5891_v50 = vpop.f32.mrb[252].mxu1  ;;  %v5780_v60 = vpop.f32.mrb[253].mxu0 }
 0x2f4   : > { %v4974_v36 = vpack.c.bf16 %v4222_v18, %v4221_v17  ;;  %v4127_v6 = vadd.f32 %v7046_v23, %v4088_v8  ;;  %v4089_v49 = vmul.f32 %v7040_v10, %v4042_v4  ;;  %v5781_v37 = vadd.f32 %v5780_v60, %v5779_v42  ;;  %v5892_v48 = vpop.f32.mrb[253].mxu1  ;;  %v5782_v52 = vpop.f32.mrb[254].mxu0 }
 0x2f5   : > { %v5893_v16 = vadd.f32 %v5892_v48, %v5891_v50  ;;  %v5894_v1 = vpop.f32.mrb[254].mxu1  ;;  %v5783_v38 = vpop.f32.mrb[255].mxu0 }
 0x2f6   : > { %4998 = vst [vmem:[%s7058_s28 + $0x68] sm:$0xff] %v4974_v36   ;;  %v4191_v5 = vmul.f32 0.1, %v4127_v6  ;;  %v4128_v35 = vadd.f32 %v7046_v23, %v4089_v49  ;;  %v3886_v41 = vadd.f32 %v5781_v37, %v7031_v2  ;;  %v5895_v58 = vpop.f32.mrb[255].mxu1  ;;  %vm4159_vm12 = vcmp.gt.f32.partialorder %v4127_v6, 0.0 }
 0x2f7   : > { %v5784_v39 = vadd.f32 %v5783_v38, %v5782_v52  ;;  %v5896_v27 = vadd.f32 %v5895_v58, %v5894_v1 }
 0x2f8   : > { %vm4160_vm13 = vcmp.gt.f32.partialorder %v4128_v35, 0.0  ;;  %v4192_v21 = vmul.f32 0.1, %v4128_v35  ;;  %v4047_v53 = vadd.f32 %v5893_v16, %v3886_v41  ;;  %v4223_v32 = vsel %vm4159_vm12, %v4127_v6, %v4191_v5 }
 0x2f9   : > { %v3889_v54 = vadd.f32 %v5784_v39, %v7034_v51 }
 0x2fa   : > { %v4224_v22 = vsel %vm4160_vm13, %v4128_v35, %v4192_v21  ;;  %v4090_v40 = vmul.f32 %v7040_v10, %v4047_v53 }
 0x2fb   : > { %v4979_v56 = vpack.c.bf16 %v4224_v22, %v4223_v32  ;;  %v4050_v29 = vadd.f32 %v5896_v27, %v3889_v54 }
 0x2fc   : > { %v4129_v12 = vadd.f32 %v7046_v23, %v4090_v40 }
 0x2fd   : > { %4999 = vst [vmem:[%s7058_s28 + $0x70] sm:$0xff] %v4979_v56   ;;  %v4091_v2 = vmul.f32 %v7040_v10, %v4050_v29 }
 0x2fe   : > { %v4193_v33 = vmul.f32 0.1, %v4129_v12  ;;  %vm4161_vm14 = vcmp.gt.f32.partialorder %v4129_v12, 0.0 }
 0x2ff   : > { %v4130_v20 = vadd.f32 %v7046_v23, %v4091_v2 }
 0x300   : > { %v4225_v15 = vsel %vm4161_vm14, %v4129_v12, %v4193_v33 }
 0x301   : > { %vm4162_vm15 = vcmp.gt.f32.partialorder %v4130_v20, 0.0  ;;  %v4194_v61 = vmul.f32 0.1, %v4130_v20 }
 0x303   : > { %v4226_v51 = vsel %vm4162_vm15, %v4130_v20, %v4194_v61 }
 0x304   : > { %v4984_v44 = vpack.c.bf16 %v4226_v51, %v4225_v15 }
 0x306   : > { %5000 = vst [vmem:[%s7058_s28 + $0x78] sm:$0xff] %v4984_v44  }
 0x307 PF: > { %s14_s15 = sadd.s32 1, %s6039_s15  }
 0x308   : > { %p11_p4 = scmp.ge.s32.totalorder %s14_s15, 4  }
 0x30a   :  { %13 = sbr.rel (!%p11_p4) target bundleno = 1 (0x1), region = 66 }

// kernel: discriminator_forward.5
= control target key start
LH: loop header
LB: loop body
LE: loop exit
PB: predicated region body
PF: predicated region fallthrough
CT: control target
= control target key end

     0   :  { %s9857_s1 = inlined_call_operand.vmem [shape: bf16[2048,128], index: 1, kind: input, shape index: {}]   ;;  %s9858_s0 = inlined_call_operand.vmem [shape: bf16[128,2048], index: 0, kind: input, shape index: {}]   ;;  %s9859_s4 = inlined_call_operand.vmem [shape: bf16[512,128], index: 4, kind: input, shape index: {}]   ;;  %s9860_s2 = inlined_call_operand.vmem [shape: f32[1,128], index: 2, kind: input, shape index: {}]   ;;  %s9861_s3 = inlined_call_operand.vmem [shape: f32[1,128], index: 3, kind: input, shape index: {}]   ;;  %s9862_s5 = inlined_call_operand.vmem [shape: bf16[2048,128], index: 5, kind: input, shape index: {}]   ;;  %s9863_s6 = inlined_call_operand.vmem [shape: f32[1,128], index: 6, kind: input, shape index: {}]   ;;  %s9864_s7 = inlined_call_operand.vmem [shape: f32[1,128], index: 7, kind: input, shape index: {}]   ;;  %s9865_s8 = inlined_call_operand.vmem [shape: f32[16,128], index: 8, kind: input, shape index: {}]   ;;  %s9866_s9 = inlined_call_operand.<no memory space> [shape: f32[1,1], index: 9, kind: input, shape index: {}]   ;;  %s9867_s10 = inlined_call_operand.vmem [shape: f32[2,1], index: 10, kind: output, shape index: {}]  }
   0x1   :  { %v7703_v0 = vld [vmem:[%s9857_s1 + $0x40] sm:$0xff]   ;;  %v7705_v2 = vld [vmem:[%s9857_s1 + $0x48] sm:$0xff]   ;;  %v7707_v4 = vld [vmem:[%s9857_s1 + $0x50] sm:$0xff]  }
   0x2   :  { %v7704_v1 = vld [vmem:[%s9857_s1] sm:$0xff]   ;;  %7623 = vmatprep.subr.bf16.mxu1 %v7703_v0  ;;  %6151 = vmatprep.subr.bf16.mxu0 %v7703_v0  ;;  %v7706_v3 = vld [vmem:[%s9857_s1 + $0x8] sm:$0xff]   ;;  %v7708_v5 = vld [vmem:[%s9857_s1 + $0x10] sm:$0xff]  }
   0x3   :  { %7631 = vmatpush3.bf16.msra.mxu1 %v7704_v1  ;;  %6152 = vmatpush3.bf16.msra.mxu0 %v7704_v1  ;;  %v7709_v6 = vld [vmem:[%s9857_s1 + $0x58] sm:$0xff]   ;;  %v7711_v8 = vld [vmem:[%s9857_s1 + $0x60] sm:$0xff]   ;;  %v7713_v10 = vld [vmem:[%s9857_s1 + $0x68] sm:$0xff]  }
   0x4   :  { %7624 = vmatprep.subr.bf16.mxu1 %v7705_v2  ;;  %6153 = vmatprep.subr.bf16.mxu0 %v7705_v2  ;;  %v7710_v7 = vld [vmem:[%s9857_s1 + $0x18] sm:$0xff]   ;;  %v7712_v9 = vld [vmem:[%s9857_s1 + $0x20] sm:$0xff]   ;;  %v7714_v16 = vld [vmem:[%s9857_s1 + $0x28] sm:$0xff]  }
   0x5   :  { %v102_v11 = vld [vmem:[%s9858_s0 + $0x200] sm:$0xff]  ;;  %v7715_v18 = vld [vmem:[%s9857_s1 + $0x70] sm:$0xff]   ;;  %v7717_v20 = vld [vmem:[%s9857_s1 + $0x78] sm:$0xff]  }
   0x6   :  { %v110_v12 = vld [vmem:[%s9858_s0 + $0x240] sm:$0xff]  ;;  %v7716_v19 = vld [vmem:[%s9857_s1 + $0x30] sm:$0xff]   ;;  %v7718_v21 = vld [vmem:[%s9857_s1 + $0x38] sm:$0xff]  }
   0x7   :  { %7632 = vmatpush3.bf16.msra.mxu1 %v7706_v3  ;;  %6154 = vmatpush3.bf16.msra.mxu0 %v7706_v3  ;;  %v5796_v13 = vcombine.high %v102_v11, %v110_v12  ;;  %v38_v14 = vld [vmem:[%s9858_s0] sm:$0xff]  ;;  %v5795_v29 = vcombine.low %v102_v11, %v110_v12  ;;  %v7723_v32 = vld [vmem:[%s9857_s1 + $0xc8] sm:$0xff]   ;;  %v7727_v38 = vld [vmem:[%s9857_s1 + $0xd0] sm:$0xff]  }
   0x8   :  { %7625 = vmatprep.subr.bf16.mxu1 %v7707_v4  ;;  %6155 = vmatprep.subr.bf16.mxu0 %v7707_v4  ;;  %v46_v15 = vld [vmem:[%s9858_s0 + $0x40] sm:$0xff]  ;;  %v7725_v33 = vld [vmem:[%s9857_s1 + $0x148] sm:$0xff]   ;;  %v7729_v39 = vld [vmem:[%s9857_s1 + $0x150] sm:$0xff]  }
   0x9   :  { %v5732_v17 = vcombine.high %v38_v14, %v46_v15  ;;  %1894 = vmatprep.mubr.bf16.mxu1 %v5796_v13  ;;  %v7719_v22 = vld [vmem:[%s9857_s1 + $0xc0] sm:$0xff]   ;;  %v5731_v30 = vcombine.low %v38_v14, %v46_v15  ;;  %v7724_v34 = vld [vmem:[%s9857_s1 + $0x88] sm:$0xff]   ;;  %v7728_v42 = vld [vmem:[%s9857_s1 + $0x90] sm:$0xff]  }
   0xa   :  { %v7721_v23 = vld [vmem:[%s9857_s1 + $0x140] sm:$0xff]   ;;  %v7726_v37 = vld [vmem:[%s9857_s1 + $0x108] sm:$0xff]   ;;  %v7730_v43 = vld [vmem:[%s9857_s1 + $0x110] sm:$0xff]  }
   0xb   :  { %7633 = vmatpush3.bf16.msra.mxu1 %v7708_v5  ;;  %6156 = vmatpush3.bf16.msra.mxu0 %v7708_v5  ;;  %v118_v24 = vld [vmem:[%s9858_s0 + $0x280] sm:$0xff]  ;;  %v7731_v48 = vld [vmem:[%s9857_s1 + $0xd8] sm:$0xff]   ;;  %v7739_v0 = vld [vmem:[%s9857_s1 + $0xe8] sm:$0xff]  }
   0xc   :  { %7626 = vmatprep.subr.bf16.mxu1 %v7709_v6  ;;  %6157 = vmatprep.subr.bf16.mxu0 %v7709_v6  ;;  %v126_v25 = vld [vmem:[%s9858_s0 + $0x2c0] sm:$0xff]  ;;  %v7733_v49 = vld [vmem:[%s9857_s1 + $0x158] sm:$0xff]   ;;  %v7741_v1 = vld [vmem:[%s9857_s1 + $0x168] sm:$0xff]  }
   0xd   :  { %1862 = vmatprep.mubr.bf16.mxu0 %v5732_v17  ;;  %v7720_v26 = vld [vmem:[%s9857_s1 + $0x80] sm:$0xff]   ;;  %v5812_v35 = vcombine.high %v118_v24, %v126_v25  ;;  %v5811_v45 = vcombine.low %v118_v24, %v126_v25  ;;  %v7732_v50 = vld [vmem:[%s9857_s1 + $0x98] sm:$0xff]   ;;  %v7740_v4 = vld [vmem:[%s9857_s1 + $0xa8] sm:$0xff]  }
   0xe   :  { %v7722_v27 = vld [vmem:[%s9857_s1 + $0x100] sm:$0xff]   ;;  %v7734_v53 = vld [vmem:[%s9857_s1 + $0x118] sm:$0xff]   ;;  %v7742_v5 = vld [vmem:[%s9857_s1 + $0x128] sm:$0xff]  }
   0xf   :  { %7634 = vmatpush3.bf16.msra.mxu1 %v7710_v7  ;;  %6158 = vmatpush3.bf16.msra.mxu0 %v7710_v7  ;;  %v54_v28 = vld [vmem:[%s9858_s0 + $0x80] sm:$0xff]  ;;  %v7743_v6 = vld [vmem:[%s9857_s1 + $0xf0] sm:$0xff]   ;;  %v7749_v17 = vld [vmem:[%s9857_s1 + $0x178] sm:$0xff]  }
  0x10   :  { %7627 = vmatprep.subr.bf16.mxu1 %v7711_v8  ;;  %6159 = vmatprep.subr.bf16.mxu0 %v7711_v8  ;;  %v62_v31 = vld [vmem:[%s9858_s0 + $0xc0] sm:$0xff]  ;;  %v7745_v7 = vld [vmem:[%s9857_s1 + $0x170] sm:$0xff]   ;;  %v39_v8 = vld [vmem:[%s9858_s0 + $0x8] sm:$0xff] }
  0x11   :  { %v5748_v36 = vcombine.high %v54_v28, %v62_v31  ;;  %v134_v40 = vld [vmem:[%s9858_s0 + $0x300] sm:$0xff]  ;;  %v5747_v46 = vcombine.low %v54_v28, %v62_v31  ;;  %v40_v13 = vld [vmem:[%s9858_s0 + $0x10] sm:$0xff]  ;;  %v63_v24 = vld [vmem:[%s9858_s0 + $0xc8] sm:$0xff] }
  0x12   :  { %v142_v41 = vld [vmem:[%s9858_s0 + $0x340] sm:$0xff]  ;;  %v48_v14 = vld [vmem:[%s9858_s0 + $0x50] sm:$0xff] }
  0x13   :  { %7635 = vmatpush3.bf16.msra.mxu1 %v7712_v9  ;;  %6160 = vmatpush3.bf16.msra.mxu0 %v7712_v9  ;;  %v70_v44 = vld [vmem:[%s9858_s0 + $0x100] sm:$0xff]  ;;  %v5828_v51 = vcombine.high %v134_v40, %v142_v41  ;;  %v5827_v61 = vcombine.low %v134_v40, %v142_v41  ;;  %v7744_v9 = vld [vmem:[%s9857_s1 + $0xb0] sm:$0xff]   ;;  %v5735_v28 = vcombine.low %v40_v13, %v48_v14 }
  0x14   :  { %7628 = vmatprep.subr.bf16.mxu1 %v7713_v10  ;;  %6161 = vmatprep.subr.bf16.mxu0 %v7713_v10  ;;  %v78_v47 = vld [vmem:[%s9858_s0 + $0x140] sm:$0xff]  ;;  %v47_v10 = vld [vmem:[%s9858_s0 + $0x48] sm:$0xff]  ;;  %v7746_v15 = vld [vmem:[%s9857_s1 + $0x130] sm:$0xff]  }
  0x15   :  { %v5764_v52 = vcombine.high %v70_v44, %v78_v47  ;;  %v7735_v54 = vld [vmem:[%s9857_s1 + $0xe0] sm:$0xff]   ;;  %v5763_v62 = vcombine.low %v70_v44, %v78_v47  ;;  %v56_v25 = vld [vmem:[%s9858_s0 + $0x90] sm:$0xff]  ;;  %v7757_v47 = vld [vmem:[%s9857_s1 + $0x1d8] sm:$0xff]  }
  0x16   :  { %v7737_v55 = vld [vmem:[%s9857_s1 + $0x160] sm:$0xff]  }
  0x17   :  { %7636 = vmatpush3.bf16.msra.mxu1 %v7714_v16  ;;  %6162 = vmatpush3.bf16.msra.mxu0 %v7714_v16  ;;  %v150_v56 = vld [vmem:[%s9858_s0 + $0x380] sm:$0xff]  ;;  %v7747_v16 = vld [vmem:[%s9857_s1 + $0xf8] sm:$0xff]  }
  0x18   :  { %7629 = vmatprep.subr.bf16.mxu1 %v7715_v18  ;;  %6163 = vmatprep.subr.bf16.mxu0 %v7715_v18  ;;  %v7736_v57 = vld [vmem:[%s9857_s1 + $0xa0] sm:$0xff]   ;;  %v7748_v18 = vld [vmem:[%s9857_s1 + $0xb8] sm:$0xff]  }
  0x19   :  { %v7738_v58 = vld [vmem:[%s9857_s1 + $0x120] sm:$0xff]  }
  0x1a   :  { %v158_v59 = vld [vmem:[%s9858_s0 + $0x3c0] sm:$0xff] }
  0x1b   :  { %7637 = vmatpush3.bf16.msra.mxu1 %v7716_v19  ;;  %6164 = vmatpush3.bf16.msra.mxu0 %v7716_v19  ;;  %v86_v60 = vld [vmem:[%s9858_s0 + $0x180] sm:$0xff]  ;;  %v5844_v2 = vcombine.high %v150_v56, %v158_v59  ;;  %v5843_v11 = vcombine.low %v150_v56, %v158_v59  ;;  %v5734_v19 = vcombine.high %v39_v8, %v47_v10  ;;  %v7766_v56 = vld [vmem:[%s9857_s1 + $0x210] sm:$0xff]  }
  0x1c   :  { %7630 = vmatprep.subr.bf16.mxu1 %v7717_v20  ;;  %6165 = vmatprep.subr.bf16.mxu0 %v7717_v20  ;;  %v94_v63 = vld [vmem:[%s9858_s0 + $0x1c0] sm:$0xff]  ;;  %v5736_v20 = vcombine.high %v40_v13, %v48_v14  ;;  %v7774_v13 = vld [vmem:[%s9857_s1 + $0x1b0] sm:$0xff]   ;;  %v7775_v14 = vld [vmem:[%s9857_s1 + $0x268] sm:$0xff]  }
  0x1d   :  { %v5780_v3 = vcombine.high %v86_v60, %v94_v63  ;;  %v5779_v12 = vcombine.low %v86_v60, %v94_v63  ;;  %v7760_v40 = vld [vmem:[%s9857_s1 + $0x200] sm:$0xff]   ;;  %v7769_v63 = vld [vmem:[%s9857_s1 + $0x258] sm:$0xff]  }
  0x1f   :  { %7638 = vmatpush3.bf16.msra.mxu1 %v7718_v21  ;;  %6166 = vmatpush3.bf16.msra.mxu0 %v7718_v21  ;;  %v7750_v21 = vld [vmem:[%s9857_s1 + $0x138] sm:$0xff]  }
  0x20   :  { %6215 = vmatprep.subr.bf16.mxu1 %v7719_v22  ;;  %6279 = vmatprep.subr.bf16.mxu0 %v7721_v23  ;;  %v7751_v22 = vld [vmem:[%s9857_s1 + $0x1c0] sm:$0xff]   ;;  %v55_v23 = vld [vmem:[%s9858_s0 + $0x88] sm:$0xff] }
  0x21   :  { %v5749_v41 = vcombine.low %v55_v23, %v63_v24 }
  0x22   :  { %1895 = vmatmul.mubr.bf16.vlgmr.msra.gmra.mrb[0].mxu1 %v5795_v29  ;;  %1863 = vmatmul.mubr.bf16.vlgmr.msra.gmra.mrb[0].mxu0 %v5731_v30  ;;  %v7752_v29 = vld [vmem:[%s9857_s1 + $0x180] sm:$0xff]   ;;  %v5750_v30 = vcombine.high %v55_v23, %v63_v24  ;;  %v7780_v23 = vld [vmem:[%s9857_s1 + $0x1b8] sm:$0xff]  }
  0x23   :  { %6216 = vmatpush3.bf16.msra.mxu1 %v7720_v26  ;;  %6280 = vmatpush3.bf16.msra.mxu0 %v7722_v27  ;;  %v64_v26 = vld [vmem:[%s9858_s0 + $0xd0] sm:$0xff]  ;;  %v5733_v27 = vcombine.low %v39_v8, %v47_v10 }
  0x24   :  { %6217 = vmatprep.subr.bf16.mxu1 %v7723_v32  ;;  %6281 = vmatprep.subr.bf16.mxu0 %v7725_v33  ;;  %v5752_v31 = vcombine.high %v56_v25, %v64_v26  ;;  %v7753_v32 = vld [vmem:[%s9857_s1 + $0x1c8] sm:$0xff]   ;;  %v7773_v8 = vld [vmem:[%s9857_s1 + $0x1f0] sm:$0xff]  }
  0x25   :  { %1902 = vmatprep.mubr.bf16.mxu1 %v5812_v35  ;;  %1870 = vmatprep.mubr.bf16.mxu0 %v5748_v36  ;;  %v7754_v33 = vld [vmem:[%s9857_s1 + $0x188] sm:$0xff]   ;;  %v72_v36 = vld [vmem:[%s9858_s0 + $0x110] sm:$0xff] }
  0x26   :  { %v79_v35 = vld [vmem:[%s9858_s0 + $0x148] sm:$0xff] }
  0x27   :  { %6218 = vmatpush3.bf16.msra.mxu1 %v7724_v34  ;;  %6282 = vmatpush3.bf16.msra.mxu0 %v7726_v37  ;;  %v71_v34 = vld [vmem:[%s9858_s0 + $0x108] sm:$0xff]  ;;  %v80_v37 = vld [vmem:[%s9858_s0 + $0x150] sm:$0xff] }
  0x28   :  { %6219 = vmatprep.subr.bf16.mxu1 %v7727_v38  ;;  %6283 = vmatprep.subr.bf16.mxu0 %v7729_v39  ;;  %v7755_v38 = vld [vmem:[%s9857_s1 + $0x1d0] sm:$0xff]   ;;  %v7759_v39 = vld [vmem:[%s9857_s1 + $0x240] sm:$0xff]   ;;  %v5768_v44 = vcombine.high %v72_v36, %v80_v37 }
  0x2a   :  { %1903 = vmatmul.mubr.bf16.gmra.mrb[4].mxu1 %v5811_v45  ;;  %1871 = vmatmul.mubr.bf16.gmra.mrb[4].mxu0 %v5747_v46  ;;  %v7756_v45 = vld [vmem:[%s9857_s1 + $0x190] sm:$0xff]   ;;  %v7763_v46 = vld [vmem:[%s9857_s1 + $0x248] sm:$0xff]  }
  0x2b   :  { %6220 = vmatpush3.bf16.msra.mxu1 %v7728_v42  ;;  %6284 = vmatpush3.bf16.msra.mxu0 %v7730_v43  ;;  %v5751_v42 = vcombine.low %v56_v25, %v64_v26  ;;  %v5766_v43 = vcombine.high %v71_v34, %v79_v35 }
  0x2c   :  { %6221 = vmatprep.subr.bf16.mxu1 %v7731_v48  ;;  %6285 = vmatprep.subr.bf16.mxu0 %v7733_v49  ;;  %v87_v48 = vld [vmem:[%s9858_s0 + $0x188] sm:$0xff] }
  0x2d   :  { %1910 = vmatprep.mubr.bf16.mxu1 %v5828_v51  ;;  %1878 = vmatprep.mubr.bf16.mxu0 %v5764_v52  ;;  %v95_v49 = vld [vmem:[%s9858_s0 + $0x1c8] sm:$0xff]  ;;  %v96_v51 = vld [vmem:[%s9858_s0 + $0x1d0] sm:$0xff]  ;;  %v7758_v52 = vld [vmem:[%s9857_s1 + $0x198] sm:$0xff]  }
  0x2e   :  { %v5782_v59 = vcombine.high %v87_v48, %v95_v49 }
  0x2f   :  { %6222 = vmatpush3.bf16.msra.mxu1 %v7732_v50  ;;  %6286 = vmatpush3.bf16.msra.mxu0 %v7734_v53  ;;  %v88_v50 = vld [vmem:[%s9858_s0 + $0x190] sm:$0xff]  ;;  %v7764_v53 = vld [vmem:[%s9857_s1 + $0x208] sm:$0xff]  }
  0x30   :  { %6223 = vmatprep.subr.bf16.mxu1 %v7735_v54  ;;  %6287 = vmatprep.subr.bf16.mxu0 %v7737_v55  ;;  %v7761_v54 = vld [vmem:[%s9857_s1 + $0x1e0] sm:$0xff]   ;;  %v7765_v55 = vld [vmem:[%s9857_s1 + $0x250] sm:$0xff]   ;;  %v5784_v60 = vcombine.high %v88_v50, %v96_v51  ;;  %v5783_v10 = vcombine.low %v88_v50, %v96_v51 }
  0x31   :  { %v42_v50 = vld [vmem:[%s9858_s0 + $0x20] sm:$0xff] }
  0x32   :  { %1911 = vmatmul.mubr.bf16.gmra.mrb[8].mxu1 %v5827_v61  ;;  %1879 = vmatmul.mubr.bf16.gmra.mrb[8].mxu0 %v5763_v62  ;;  %v7762_v61 = vld [vmem:[%s9857_s1 + $0x1a0] sm:$0xff]   ;;  %v7767_v62 = vld [vmem:[%s9857_s1 + $0x1e8] sm:$0xff]  }
  0x33   :  { %6224 = vmatpush3.bf16.msra.mxu1 %v7736_v57  ;;  %6288 = vmatpush3.bf16.msra.mxu0 %v7738_v58  ;;  %v5765_v57 = vcombine.low %v71_v34, %v79_v35  ;;  %v5767_v58 = vcombine.low %v72_v36, %v80_v37  ;;  %v144_v34 = vld [vmem:[%s9858_s0 + $0x350] sm:$0xff]  ;;  %v50_v51 = vld [vmem:[%s9858_s0 + $0x60] sm:$0xff] }
  0x34   :  { %6225 = vmatprep.subr.bf16.mxu1 %v7739_v0  ;;  %6289 = vmatprep.subr.bf16.mxu0 %v7741_v1  ;;  %v7770_v0 = vld [vmem:[%s9857_s1 + $0x218] sm:$0xff]   ;;  %v103_v1 = vld [vmem:[%s9858_s0 + $0x208] sm:$0xff] }
  0x35   :  { %1918 = vmatprep.mubr.bf16.mxu1 %v5844_v2  ;;  %1886 = vmatprep.mubr.bf16.mxu0 %v5780_v3  ;;  %v111_v2 = vld [vmem:[%s9858_s0 + $0x248] sm:$0xff]  ;;  %v104_v3 = vld [vmem:[%s9858_s0 + $0x210] sm:$0xff] }
  0x36   :  { %v5797_v24 = vcombine.low %v103_v1, %v111_v2 }
  0x37   :  { %6226 = vmatpush3.bf16.msra.mxu1 %v7740_v4  ;;  %6290 = vmatpush3.bf16.msra.mxu0 %v7742_v5  ;;  %v112_v4 = vld [vmem:[%s9858_s0 + $0x250] sm:$0xff]  ;;  %v7768_v5 = vld [vmem:[%s9857_s1 + $0x1a8] sm:$0xff]  }
  0x38   :  { %6227 = vmatprep.subr.bf16.mxu1 %v7743_v6  ;;  %6291 = vmatprep.subr.bf16.mxu0 %v7745_v7  ;;  %v7771_v6 = vld [vmem:[%s9857_s1 + $0x260] sm:$0xff]   ;;  %v5799_v25 = vcombine.low %v104_v3, %v112_v4 }
  0x39   :  { %v7772_v7 = vld [vmem:[%s9857_s1 + $0x220] sm:$0xff]  }
  0x3a   :  { %1919 = vmatmul.mubr.bf16.gmra.mrb[12].mxu1 %v5843_v11  ;;  %1887 = vmatmul.mubr.bf16.gmra.mrb[12].mxu0 %v5779_v12  ;;  %v5798_v11 = vcombine.high %v103_v1, %v111_v2  ;;  %v5800_v12 = vcombine.high %v104_v3, %v112_v4  ;;  %v7785_v1 = vld [vmem:[%s9857_s1 + $0x2c8] sm:$0xff]   ;;  %v7792_v3 = vld [vmem:[%s9857_s1 + $0x300] sm:$0xff]   ;;  %v73_v4 = vld [vmem:[%s9858_s0 + $0x118] sm:$0xff] }
  0x3b   :  { %6228 = vmatpush3.bf16.msra.mxu1 %v7744_v9  ;;  %6292 = vmatpush3.bf16.msra.mxu0 %v7746_v15  ;;  %v5781_v9 = vcombine.low %v87_v48, %v95_v49  ;;  %v7776_v15 = vld [vmem:[%s9857_s1 + $0x228] sm:$0xff]   ;;  %v41_v48 = vld [vmem:[%s9858_s0 + $0x18] sm:$0xff] }
  0x3c   :  { %6229 = vmatprep.subr.bf16.mxu1 %v7747_v16  ;;  %6293 = vmatprep.subr.bf16.mxu0 %v7749_v17  ;;  %v119_v16 = vld [vmem:[%s9858_s0 + $0x288] sm:$0xff]  ;;  %v49_v49 = vld [vmem:[%s9858_s0 + $0x58] sm:$0xff] }
  0x3d   :  { %1959 = vmatprep.mubr.bf16.mxu1 %v5734_v19  ;;  %2056 = vmatprep.mubr.bf16.mxu0 %v5736_v20  ;;  %v127_v17 = vld [vmem:[%s9858_s0 + $0x2c8] sm:$0xff]  ;;  %v128_v19 = vld [vmem:[%s9858_s0 + $0x2d0] sm:$0xff] }
  0x3e   :  { %v7777_v20 = vld [vmem:[%s9857_s1 + $0x270] sm:$0xff]   ;;  %v5814_v26 = vcombine.high %v119_v16, %v127_v17  ;;  %v5813_v35 = vcombine.low %v119_v16, %v127_v17  ;;  %v7786_v2 = vld [vmem:[%s9857_s1 + $0x288] sm:$0xff]   ;;  %v7789_v17 = vld [vmem:[%s9857_s1 + $0x2d8] sm:$0xff]  }
  0x3f   :  { %6230 = vmatpush3.bf16.msra.mxu1 %v7748_v18  ;;  %6294 = vmatpush3.bf16.msra.mxu0 %v7750_v21  ;;  %v120_v18 = vld [vmem:[%s9858_s0 + $0x290] sm:$0xff] }
  0x40   :  { %6343 = vmatprep.subr.bf16.mxu1 %v7751_v22  ;;  %6407 = vmatprep.subr.bf16.mxu0 %v7759_v39  ;;  %v7778_v21 = vld [vmem:[%s9857_s1 + $0x230] sm:$0xff]   ;;  %v7779_v22 = vld [vmem:[%s9857_s1 + $0x1f8] sm:$0xff]   ;;  %v5815_v36 = vcombine.low %v120_v18, %v128_v19  ;;  %v151_v39 = vld [vmem:[%s9858_s0 + $0x388] sm:$0xff] }
  0x41   :  { %v7797_v16 = vld [vmem:[%s9857_s1 + $0x350] sm:$0xff]  }
  0x42   :  { %1960 = vmatmul.mubr.bf16.vlgmr.msra.gmra.mrb[16].mxu1 %v5733_v27  ;;  %2057 = vmatmul.mubr.bf16.vlgmr.msra.gmra.mrb[16].mxu0 %v5735_v28  ;;  %v5816_v27 = vcombine.high %v120_v18, %v128_v19  ;;  %v7781_v28 = vld [vmem:[%s9857_s1 + $0x278] sm:$0xff]   ;;  %v7798_v18 = vld [vmem:[%s9857_s1 + $0x310] sm:$0xff]  }
  0x43   :  { %6344 = vmatpush3.bf16.msra.mxu1 %v7752_v29  ;;  %1967 = vmatprep.mubr.bf16.mxu1 %v5750_v30  ;;  %v7782_v29 = vld [vmem:[%s9857_s1 + $0x238] sm:$0xff]   ;;  %v7783_v30 = vld [vmem:[%s9857_s1 + $0x2c0] sm:$0xff]  }
  0x44   :  { %2064 = vmatprep.mubr.bf16.mxu0 %v5752_v31  ;;  %6345 = vmatprep.subr.bf16.mxu1 %v7753_v32  ;;  %v135_v31 = vld [vmem:[%s9858_s0 + $0x308] sm:$0xff]  ;;  %v89_v19 = vld [vmem:[%s9858_s0 + $0x198] sm:$0xff] }
  0x45   :  { %6408 = vmatpush3.bf16.msra.mxu0 %v7760_v40  ;;  %v143_v32 = vld [vmem:[%s9858_s0 + $0x348] sm:$0xff] }
  0x46   :  { %6409 = vmatprep.subr.bf16.mxu0 %v7763_v46  ;;  %v5830_v37 = vcombine.high %v135_v31, %v143_v32  ;;  %v159_v40 = vld [vmem:[%s9858_s0 + $0x3c8] sm:$0xff] }
  0x47   :  { %6346 = vmatpush3.bf16.msra.mxu1 %v7754_v33  ;;  %v136_v33 = vld [vmem:[%s9858_s0 + $0x310] sm:$0xff] }
  0x48   :  { %6347 = vmatprep.subr.bf16.mxu1 %v7755_v38  ;;  %v5832_v38 = vcombine.high %v136_v33, %v144_v34 }
  0x49   :  { %6410 = vmatpush3.bf16.msra.mxu0 %v7764_v53 }
  0x4a   :  { %1968 = vmatmul.mubr.bf16.gmra.mrb[20].mxu1 %v5749_v41  ;;  %2065 = vmatmul.mubr.bf16.gmra.mrb[20].mxu0 %v5751_v42  ;;  %v152_v41 = vld [vmem:[%s9858_s0 + $0x390] sm:$0xff] }
  0x4b   :  { %1975 = vmatprep.mubr.bf16.mxu1 %v5766_v43  ;;  %2072 = vmatprep.mubr.bf16.mxu0 %v5768_v44  ;;  %v160_v42 = vld [vmem:[%s9858_s0 + $0x3d0] sm:$0xff]  ;;  %v5829_v43 = vcombine.low %v135_v31, %v143_v32  ;;  %v5831_v44 = vcombine.low %v136_v33, %v144_v34  ;;  %v7794_v31 = vld [vmem:[%s9857_s1 + $0x2a0] sm:$0xff]   ;;  %v7799_v33 = vld [vmem:[%s9857_s1 + $0x2e8] sm:$0xff]  }
  0x4c   :  { %6348 = vmatpush3.bf16.msra.mxu1 %v7756_v45  ;;  %6411 = vmatprep.subr.bf16.mxu0 %v7765_v55  ;;  %v5846_v45 = vcombine.high %v151_v39, %v159_v40  ;;  %v5848_v46 = vcombine.high %v152_v41, %v160_v42  ;;  %v5847_v53 = vcombine.low %v152_v41, %v160_v42  ;;  %v7803_v32 = vld [vmem:[%s9857_s1 + $0x360] sm:$0xff]   ;;  %v7805_v41 = vld [vmem:[%s9857_s1 + $0x2f0] sm:$0xff]   ;;  %v7808_v42 = vld [vmem:[%s9857_s1 + $0x328] sm:$0xff]  }
  0x4d   :  { %6349 = vmatprep.subr.bf16.mxu1 %v7757_v47  ;;  %6412 = vmatpush3.bf16.msra.mxu0 %v7766_v56  ;;  %v7791_v47 = vld [vmem:[%s9857_s1 + $0x340] sm:$0xff]   ;;  %v5740_v55 = vcombine.high %v42_v50, %v50_v51  ;;  %v57_v56 = vld [vmem:[%s9858_s0 + $0x98] sm:$0xff] }
  0x4e   :  { %6413 = vmatprep.subr.bf16.mxu0 %v7769_v63  ;;  %v7804_v34 = vld [vmem:[%s9857_s1 + $0x320] sm:$0xff]  }
  0x50   :  { %6350 = vmatpush3.bf16.msra.mxu1 %v7758_v52  ;;  %v5845_v52 = vcombine.low %v151_v39, %v159_v40  ;;  %v114_v39 = vld [vmem:[%s9858_s0 + $0x260] sm:$0xff]  ;;  %v7800_v40 = vld [vmem:[%s9857_s1 + $0x2a8] sm:$0xff]  }
  0x51   :  { %6351 = vmatprep.subr.bf16.mxu1 %v7761_v54  ;;  %6414 = vmatpush3.bf16.msra.mxu0 %v7770_v0  ;;  %v5738_v54 = vcombine.high %v41_v48, %v49_v49 }
  0x52   :  { %1976 = vmatmul.mubr.bf16.gmra.mrb[24].mxu1 %v5765_v57  ;;  %2073 = vmatmul.mubr.bf16.gmra.mrb[24].mxu0 %v5767_v58  ;;  %v65_v57 = vld [vmem:[%s9858_s0 + $0xd8] sm:$0xff]  ;;  %v58_v58 = vld [vmem:[%s9858_s0 + $0xa0] sm:$0xff] }
  0x53   :  { %1983 = vmatprep.mubr.bf16.mxu1 %v5782_v59  ;;  %2080 = vmatprep.mubr.bf16.mxu0 %v5784_v60  ;;  %v66_v59 = vld [vmem:[%s9858_s0 + $0xe0] sm:$0xff]  ;;  %v5737_v60 = vcombine.low %v41_v48, %v49_v49  ;;  %v5754_v63 = vcombine.high %v57_v56, %v65_v57  ;;  %v7809_v48 = vld [vmem:[%s9857_s1 + $0x370] sm:$0xff]  }
  0x54   :  { %6352 = vmatpush3.bf16.msra.mxu1 %v7762_v61  ;;  %6415 = vmatprep.subr.bf16.mxu0 %v7771_v6  ;;  %v5739_v61 = vcombine.low %v42_v50, %v50_v51  ;;  %v5756_v0 = vcombine.high %v58_v58, %v66_v59  ;;  %v7795_v6 = vld [vmem:[%s9857_s1 + $0x348] sm:$0xff]   ;;  %v7810_v49 = vld [vmem:[%s9857_s1 + $0x330] sm:$0xff]   ;;  %v7811_v50 = vld [vmem:[%s9857_s1 + $0x2f8] sm:$0xff]  }
  0x55   :  { %6353 = vmatprep.subr.bf16.mxu1 %v7767_v62  ;;  %6416 = vmatpush3.bf16.msra.mxu0 %v7772_v7  ;;  %v7784_v62 = vld [vmem:[%s9857_s1 + $0x280] sm:$0xff]   ;;  %v121_v51 = vld [vmem:[%s9858_s0 + $0x298] sm:$0xff] }
  0x56   :  { %6417 = vmatprep.subr.bf16.mxu0 %v7775_v14  ;;  %v74_v7 = vld [vmem:[%s9858_s0 + $0x120] sm:$0xff] }
  0x58   :  { %6354 = vmatpush3.bf16.msra.mxu1 %v7768_v5  ;;  %v81_v5 = vld [vmem:[%s9858_s0 + $0x158] sm:$0xff] }
  0x59   :  { %6355 = vmatprep.subr.bf16.mxu1 %v7773_v8  ;;  %6418 = vmatpush3.bf16.msra.mxu0 %v7776_v15  ;;  %v82_v8 = vld [vmem:[%s9858_s0 + $0x160] sm:$0xff]  ;;  %v7788_v15 = vld [vmem:[%s9857_s1 + $0x290] sm:$0xff]  }
  0x5a   :  { %1984 = vmatmul.mubr.bf16.gmra.mrb[28].mxu1 %v5781_v9  ;;  %2081 = vmatmul.mubr.bf16.gmra.mrb[28].mxu0 %v5783_v10  ;;  %v7787_v9 = vld [vmem:[%s9857_s1 + $0x2d0] sm:$0xff]   ;;  %v7796_v10 = vld [vmem:[%s9857_s1 + $0x308] sm:$0xff]   ;;  %v5772_v14 = vcombine.high %v74_v7, %v82_v8 }
  0x5b   :  { %1991 = vmatprep.mubr.bf16.mxu1 %v5798_v11  ;;  %2088 = vmatprep.mubr.bf16.mxu0 %v5800_v12  ;;  %v5753_v11 = vcombine.low %v57_v56, %v65_v57  ;;  %v5755_v12 = vcombine.low %v58_v58, %v66_v59  ;;  %v7812_v56 = vld [vmem:[%s9857_s1 + $0x2b8] sm:$0xff]   ;;  %v7815_v58 = vld [vmem:[%s9857_s1 + $0x3c0] sm:$0xff]  }
  0x5c   :  { %6356 = vmatpush3.bf16.msra.mxu1 %v7774_v13  ;;  %6419 = vmatprep.subr.bf16.mxu0 %v7777_v20  ;;  %v5770_v13 = vcombine.high %v73_v4, %v81_v5  ;;  %v97_v20 = vld [vmem:[%s9858_s0 + $0x1d8] sm:$0xff] }
  0x5d   :  { %6357 = vmatprep.subr.bf16.mxu1 %v7779_v22  ;;  %6420 = vmatpush3.bf16.msra.mxu0 %v7778_v21  ;;  %v7801_v21 = vld [vmem:[%s9857_s1 + $0x358] sm:$0xff]   ;;  %v90_v22 = vld [vmem:[%s9858_s0 + $0x1a0] sm:$0xff] }
  0x5e   :  { %6421 = vmatprep.subr.bf16.mxu0 %v7781_v28  ;;  %v5771_v28 = vcombine.low %v74_v7, %v82_v8  ;;  %v7814_v57 = vld [vmem:[%s9857_s1 + $0x338] sm:$0xff]  }
  0x5f   :  { %v153_v7 = vld [vmem:[%s9858_s0 + $0x398] sm:$0xff] }
  0x60   :  { %6358 = vmatpush3.bf16.msra.mxu1 %v7780_v23  ;;  %v98_v23 = vld [vmem:[%s9858_s0 + $0x1e0] sm:$0xff]  ;;  %v161_v8 = vld [vmem:[%s9858_s0 + $0x3d8] sm:$0xff] }
  0x61   :  { %6471 = vmatprep.subr.bf16.mxu1 %v7783_v30  ;;  %6422 = vmatpush3.bf16.msra.mxu0 %v7782_v29  ;;  %v5786_v29 = vcombine.high %v89_v19, %v97_v20  ;;  %v5788_v30 = vcombine.high %v90_v22, %v98_v23 }
  0x62   :  { %1992 = vmatmul.mubr.bf16.gmra.mrb[32].mxu1 %v5797_v24  ;;  %2089 = vmatmul.mubr.bf16.gmra.mrb[32].mxu0 %v5799_v25  ;;  %v7790_v24 = vld [vmem:[%s9857_s1 + $0x298] sm:$0xff]   ;;  %v7793_v25 = vld [vmem:[%s9857_s1 + $0x2e0] sm:$0xff]  }
  0x63   :  { %1999 = vmatprep.mubr.bf16.mxu1 %v5814_v26  ;;  %2096 = vmatprep.mubr.bf16.mxu0 %v5816_v27  ;;  %v7802_v26 = vld [vmem:[%s9857_s1 + $0x318] sm:$0xff]   ;;  %v5769_v27 = vcombine.low %v73_v4, %v81_v5 }
  0x64   :  { %6535 = vmatprep.subr.bf16.mxu0 %v7791_v47  ;;  %v7806_v47 = vld [vmem:[%s9857_s1 + $0x2b0] sm:$0xff]  }
  0x6a   :  { %2000 = vmatmul.mubr.bf16.gmra.mrb[36].mxu1 %v5813_v35  ;;  %2097 = vmatmul.mubr.bf16.gmra.mrb[36].mxu0 %v5815_v36  ;;  %v105_v35 = vld [vmem:[%s9858_s0 + $0x218] sm:$0xff] }
  0x6b   :  { %2007 = vmatprep.mubr.bf16.mxu1 %v5830_v37  ;;  %2104 = vmatprep.mubr.bf16.mxu0 %v5832_v38  ;;  %v113_v36 = vld [vmem:[%s9858_s0 + $0x258] sm:$0xff]  ;;  %v7807_v37 = vld [vmem:[%s9857_s1 + $0x368] sm:$0xff]   ;;  %v106_v38 = vld [vmem:[%s9858_s0 + $0x220] sm:$0xff] }
  0x6c   :  { %v5801_v59 = vcombine.low %v105_v35, %v113_v36 }
  0x72   :  { %2008 = vmatmul.mubr.bf16.gmra.mrb[40].mxu1 %v5829_v43  ;;  %2105 = vmatmul.mubr.bf16.gmra.mrb[40].mxu0 %v5831_v44  ;;  %v5785_v43 = vcombine.low %v89_v19, %v97_v20  ;;  %v5787_v44 = vcombine.low %v90_v22, %v98_v23  ;;  %v5849_v19 = vcombine.low %v153_v7, %v161_v8  ;;  %v59_v23 = vld [vmem:[%s9858_s0 + $0xa8] sm:$0xff] }
  0x73   :  { %2015 = vmatprep.mubr.bf16.mxu1 %v5846_v45  ;;  %2112 = vmatprep.mubr.bf16.mxu0 %v5848_v46  ;;  %v5802_v45 = vcombine.high %v105_v35, %v113_v36  ;;  %v5804_v46 = vcombine.high %v106_v38, %v114_v39  ;;  %v83_v35 = vld [vmem:[%s9858_s0 + $0x168] sm:$0xff]  ;;  %v76_v36 = vld [vmem:[%s9858_s0 + $0x130] sm:$0xff] }
  0x7a   :  { %2016 = vmatmul.mubr.bf16.gmra.mrb[44].mxu1 %v5845_v52  ;;  %2113 = vmatmul.mubr.bf16.gmra.mrb[44].mxu0 %v5847_v53  ;;  %v7813_v52 = vld [vmem:[%s9857_s1 + $0x378] sm:$0xff]  }
  0x7b   :  { %2153 = vmatprep.mubr.bf16.mxu1 %v5738_v54  ;;  %2250 = vmatprep.mubr.bf16.mxu0 %v5740_v55  ;;  %v129_v53 = vld [vmem:[%s9858_s0 + $0x2d8] sm:$0xff]  ;;  %v122_v54 = vld [vmem:[%s9858_s0 + $0x2a0] sm:$0xff] }
  0x7c   :  { %v130_v55 = vld [vmem:[%s9858_s0 + $0x2e0] sm:$0xff] }
  0x7d   :  { %v5819_v4 = vcombine.low %v122_v54, %v130_v55 }
  0x82   :  { %2154 = vmatmul.mubr.bf16.vlgmr.msra.gmra.mrb[48].mxu1 %v5737_v60  ;;  %2251 = vmatmul.mubr.bf16.vlgmr.msra.gmra.mrb[48].mxu0 %v5739_v61  ;;  %v5803_v60 = vcombine.low %v106_v38, %v114_v39  ;;  %v5818_v61 = vcombine.high %v121_v51, %v129_v53  ;;  %v7819_v38 = vld [vmem:[%s9857_s1 + $0x3d0] sm:$0xff]  }
  0x83   :  { %6472 = vmatpush3.bf16.msra.mxu1 %v7784_v62  ;;  %2161 = vmatprep.mubr.bf16.mxu1 %v5754_v63  ;;  %v5820_v62 = vcombine.high %v122_v54, %v130_v55  ;;  %v137_v63 = vld [vmem:[%s9858_s0 + $0x318] sm:$0xff]  ;;  %v7824_v55 = vld [vmem:[%s9857_s1 + $0x3a0] sm:$0xff]  }
  0x84   :  { %2258 = vmatprep.mubr.bf16.mxu0 %v5756_v0  ;;  %6473 = vmatprep.subr.bf16.mxu1 %v7785_v1  ;;  %v145_v0 = vld [vmem:[%s9858_s0 + $0x358] sm:$0xff]  ;;  %v138_v1 = vld [vmem:[%s9858_s0 + $0x320] sm:$0xff] }
  0x85   :  { %6536 = vmatpush3.bf16.msra.mxu0 %v7792_v3  ;;  %v5817_v3 = vcombine.low %v121_v51, %v129_v53  ;;  %v5834_v5 = vcombine.high %v137_v63, %v145_v0 }
  0x86   :  { %6537 = vmatprep.subr.bf16.mxu0 %v7795_v6 }
  0x87   :  { %6474 = vmatpush3.bf16.msra.mxu1 %v7786_v2  ;;  %v146_v2 = vld [vmem:[%s9858_s0 + $0x360] sm:$0xff] }
  0x88   :  { %6475 = vmatprep.subr.bf16.mxu1 %v7787_v9  ;;  %v5836_v6 = vcombine.high %v138_v1, %v146_v2  ;;  %v154_v9 = vld [vmem:[%s9858_s0 + $0x3a0] sm:$0xff] }
  0x89   :  { %6538 = vmatpush3.bf16.msra.mxu0 %v7796_v10  ;;  %v162_v10 = vld [vmem:[%s9858_s0 + $0x3e0] sm:$0xff] }
  0x8a   :  { %2162 = vmatmul.mubr.bf16.gmra.mrb[52].mxu1 %v5753_v11  ;;  %2259 = vmatmul.mubr.bf16.gmra.mrb[52].mxu0 %v5755_v12  ;;  %v5833_v11 = vcombine.low %v137_v63, %v145_v0  ;;  %v5835_v12 = vcombine.low %v138_v1, %v146_v2  ;;  %v5851_v20 = vcombine.low %v154_v9, %v162_v10 }
  0x8b   :  { %2169 = vmatprep.mubr.bf16.mxu1 %v5770_v13  ;;  %2266 = vmatprep.mubr.bf16.mxu0 %v5772_v14  ;;  %v5850_v13 = vcombine.high %v153_v7, %v161_v8  ;;  %v5852_v14 = vcombine.high %v154_v9, %v162_v10  ;;  %v124_v7 = vld [vmem:[%s9858_s0 + $0x2b0] sm:$0xff]  ;;  %v7830_v9 = vld [vmem:[%s9857_s1 + $0x3b8] sm:$0xff]  }
  0x8c   :  { %6476 = vmatpush3.bf16.msra.mxu1 %v7788_v15  ;;  %6539 = vmatprep.subr.bf16.mxu0 %v7797_v16  ;;  %v43_v15 = vld [vmem:[%s9858_s0 + $0x28] sm:$0xff]  ;;  %v132_v8 = vld [vmem:[%s9858_s0 + $0x2f0] sm:$0xff] }
  0x8d   :  { %6477 = vmatprep.subr.bf16.mxu1 %v7789_v17  ;;  %6540 = vmatpush3.bf16.msra.mxu0 %v7798_v18  ;;  %v51_v16 = vld [vmem:[%s9858_s0 + $0x68] sm:$0xff]  ;;  %v44_v17 = vld [vmem:[%s9858_s0 + $0x30] sm:$0xff] }
  0x8e   :  { %6541 = vmatprep.subr.bf16.mxu0 %v7801_v21  ;;  %v52_v18 = vld [vmem:[%s9858_s0 + $0x70] sm:$0xff]  ;;  %v5742_v21 = vcombine.high %v43_v15, %v51_v16 }
  0x8f   :  { %v5744_v22 = vcombine.high %v44_v17, %v52_v18 }
  0x90   :  { %6478 = vmatpush3.bf16.msra.mxu1 %v7790_v24  ;;  %v67_v24 = vld [vmem:[%s9858_s0 + $0xe8] sm:$0xff] }
  0x91   :  { %6479 = vmatprep.subr.bf16.mxu1 %v7793_v25  ;;  %6542 = vmatpush3.bf16.msra.mxu0 %v7802_v26  ;;  %v60_v25 = vld [vmem:[%s9858_s0 + $0xb0] sm:$0xff]  ;;  %v5757_v39 = vcombine.low %v59_v23, %v67_v24 }
  0x92   :  { %2170 = vmatmul.mubr.bf16.gmra.mrb[56].mxu1 %v5769_v27  ;;  %2267 = vmatmul.mubr.bf16.gmra.mrb[56].mxu0 %v5771_v28  ;;  %v68_v26 = vld [vmem:[%s9858_s0 + $0xf0] sm:$0xff]  ;;  %v5741_v27 = vcombine.low %v43_v15, %v51_v16  ;;  %v5743_v28 = vcombine.low %v44_v17, %v52_v18  ;;  %v147_v15 = vld [vmem:[%s9858_s0 + $0x368] sm:$0xff] }
  0x93   :  { %2177 = vmatprep.mubr.bf16.mxu1 %v5786_v29  ;;  %2274 = vmatprep.mubr.bf16.mxu0 %v5788_v30  ;;  %v7816_v29 = vld [vmem:[%s9857_s1 + $0x380] sm:$0xff]   ;;  %v5758_v30 = vcombine.high %v59_v23, %v67_v24  ;;  %v140_v16 = vld [vmem:[%s9858_s0 + $0x330] sm:$0xff]  ;;  %v163_v23 = vld [vmem:[%s9858_s0 + $0x3e8] sm:$0xff] }
  0x94   :  { %6480 = vmatpush3.bf16.msra.mxu1 %v7794_v31  ;;  %6543 = vmatprep.subr.bf16.mxu0 %v7803_v32  ;;  %v5760_v31 = vcombine.high %v60_v25, %v68_v26  ;;  %v7817_v32 = vld [vmem:[%s9857_s1 + $0x3c8] sm:$0xff]   ;;  %v148_v17 = vld [vmem:[%s9858_s0 + $0x370] sm:$0xff] }
  0x95   :  { %6481 = vmatprep.subr.bf16.mxu1 %v7799_v33  ;;  %6544 = vmatpush3.bf16.msra.mxu0 %v7804_v34  ;;  %v7818_v33 = vld [vmem:[%s9857_s1 + $0x388] sm:$0xff]   ;;  %v156_v24 = vld [vmem:[%s9858_s0 + $0x3b0] sm:$0xff] }
  0x96   :  { %6545 = vmatprep.subr.bf16.mxu0 %v7807_v37  ;;  %v75_v34 = vld [vmem:[%s9858_s0 + $0x128] sm:$0xff]  ;;  %v84_v37 = vld [vmem:[%s9858_s0 + $0x170] sm:$0xff] }
  0x97   :  { %v5773_v51 = vcombine.low %v75_v34, %v83_v35 }
  0x98   :  { %6482 = vmatpush3.bf16.msra.mxu1 %v7800_v40  ;;  %v5759_v40 = vcombine.low %v60_v25, %v68_v26  ;;  %v164_v25 = vld [vmem:[%s9858_s0 + $0x3f0] sm:$0xff] }
  0x99   :  { %6483 = vmatprep.subr.bf16.mxu1 %v7805_v41  ;;  %6546 = vmatpush3.bf16.msra.mxu0 %v7808_v42  ;;  %v5774_v41 = vcombine.high %v75_v34, %v83_v35  ;;  %v5776_v42 = vcombine.high %v76_v36, %v84_v37 }
  0x9a   :  { %2178 = vmatmul.mubr.bf16.gmra.mrb[60].mxu1 %v5785_v43  ;;  %2275 = vmatmul.mubr.bf16.gmra.mrb[60].mxu0 %v5787_v44  ;;  %v7820_v43 = vld [vmem:[%s9857_s1 + $0x390] sm:$0xff]   ;;  %v7821_v44 = vld [vmem:[%s9857_s1 + $0x3d8] sm:$0xff]  }
  0x9b   :  { %2185 = vmatprep.mubr.bf16.mxu1 %v5802_v45  ;;  %2282 = vmatprep.mubr.bf16.mxu0 %v5804_v46  ;;  %v91_v45 = vld [vmem:[%s9858_s0 + $0x1a8] sm:$0xff] }
  0x9c   :  { %6484 = vmatpush3.bf16.msra.mxu1 %v7806_v47  ;;  %6547 = vmatprep.subr.bf16.mxu0 %v7809_v48  ;;  %v99_v46 = vld [vmem:[%s9858_s0 + $0x1e8] sm:$0xff]  ;;  %v92_v47 = vld [vmem:[%s9858_s0 + $0x1b0] sm:$0xff] }
  0x9d   :  { %6548 = vmatpush3.bf16.msra.mxu0 %v7810_v49  ;;  %6485 = vmatprep.subr.bf16.mxu1 %v7811_v50  ;;  %v100_v48 = vld [vmem:[%s9858_s0 + $0x1f0] sm:$0xff]  ;;  %v7822_v49 = vld [vmem:[%s9857_s1 + $0x398] sm:$0xff]   ;;  %v7823_v50 = vld [vmem:[%s9857_s1 + $0x3e0] sm:$0xff]   ;;  %v5790_v53 = vcombine.high %v91_v45, %v99_v46  ;;  %v5789_v63 = vcombine.low %v91_v45, %v99_v46 }
  0x9e   :  { %6549 = vmatprep.subr.bf16.mxu0 %v7813_v52  ;;  %v5775_v52 = vcombine.low %v76_v36, %v84_v37  ;;  %v5792_v54 = vcombine.high %v92_v47, %v100_v48  ;;  %v5791_v0 = vcombine.low %v92_v47, %v100_v48  ;;  %v5855_v36 = vcombine.low %v156_v24, %v164_v25  ;;  %v61_v47 = vld [vmem:[%s9858_s0 + $0xb8] sm:$0xff] }
  0x9f   :  { %v69_v48 = vld [vmem:[%s9858_s0 + $0xf8] sm:$0xff] }
  0xa0   :  { %6486 = vmatpush3.bf16.msra.mxu1 %v7812_v56  ;;  %v7825_v56 = vld [vmem:[%s9857_s1 + $0x3e8] sm:$0xff]  }
  0xa1   :  { %6550 = vmatpush3.bf16.msra.mxu0 %v7814_v57  ;;  %6599 = vmatprep.subr.bf16.mxu1 %v7815_v58  ;;  %v107_v57 = vld [vmem:[%s9858_s0 + $0x228] sm:$0xff] }
  0xa2   :  { %2186 = vmatmul.mubr.bf16.gmra.mrb[64].mxu1 %v5801_v59  ;;  %2283 = vmatmul.mubr.bf16.gmra.mrb[64].mxu0 %v5803_v60  ;;  %v115_v58 = vld [vmem:[%s9858_s0 + $0x268] sm:$0xff]  ;;  %v108_v59 = vld [vmem:[%s9858_s0 + $0x230] sm:$0xff] }
  0xa3   :  { %2193 = vmatprep.mubr.bf16.mxu1 %v5818_v61  ;;  %2290 = vmatprep.mubr.bf16.mxu0 %v5820_v62  ;;  %v116_v60 = vld [vmem:[%s9858_s0 + $0x270] sm:$0xff]  ;;  %v7826_v61 = vld [vmem:[%s9857_s1 + $0x3a8] sm:$0xff]   ;;  %v5806_v1 = vcombine.high %v107_v57, %v115_v58  ;;  %v5805_v10 = vcombine.low %v107_v57, %v115_v58 }
  0xa4   :  { %v7827_v62 = vld [vmem:[%s9857_s1 + $0x3f0] sm:$0xff]   ;;  %v5808_v2 = vcombine.high %v108_v59, %v116_v60 }
  0xaa   :  { %2194 = vmatmul.mubr.bf16.gmra.mrb[68].mxu1 %v5817_v3  ;;  %2291 = vmatmul.mubr.bf16.gmra.mrb[68].mxu0 %v5819_v4  ;;  %v7828_v3 = vld [vmem:[%s9857_s1 + $0x3b0] sm:$0xff]   ;;  %v7829_v4 = vld [vmem:[%s9857_s1 + $0x3f8] sm:$0xff]  }
  0xab   :  { %2201 = vmatprep.mubr.bf16.mxu1 %v5834_v5  ;;  %2298 = vmatprep.mubr.bf16.mxu0 %v5836_v6  ;;  %v123_v5 = vld [vmem:[%s9858_s0 + $0x2a8] sm:$0xff] }
  0xac   :  { %v131_v6 = vld [vmem:[%s9858_s0 + $0x2e8] sm:$0xff] }
  0xad   :  { %v5821_v18 = vcombine.low %v123_v5, %v131_v6 }
  0xb2   :  { %2202 = vmatmul.mubr.bf16.gmra.mrb[72].mxu1 %v5833_v11  ;;  %2299 = vmatmul.mubr.bf16.gmra.mrb[72].mxu0 %v5835_v12  ;;  %v5807_v11 = vcombine.low %v108_v59, %v116_v60  ;;  %v5822_v12 = vcombine.high %v123_v5, %v131_v6 }
  0xb3   :  { %2209 = vmatprep.mubr.bf16.mxu1 %v5850_v13  ;;  %2306 = vmatprep.mubr.bf16.mxu0 %v5852_v14  ;;  %v5824_v13 = vcombine.high %v124_v7, %v132_v8  ;;  %v139_v14 = vld [vmem:[%s9858_s0 + $0x328] sm:$0xff] }
  0xb4   :  { %v5837_v26 = vcombine.low %v139_v14, %v147_v15 }
  0xba   :  { %2210 = vmatmul.mubr.bf16.gmra.mrb[76].mxu1 %v5849_v19  ;;  %2307 = vmatmul.mubr.bf16.gmra.mrb[76].mxu0 %v5851_v20  ;;  %v5823_v19 = vcombine.low %v124_v7, %v132_v8  ;;  %v5838_v20 = vcombine.high %v139_v14, %v147_v15  ;;  %v93_v15 = vld [vmem:[%s9858_s0 + $0x1b8] sm:$0xff] }
  0xbb   :  { %2347 = vmatprep.mubr.bf16.mxu1 %v5742_v21  ;;  %2444 = vmatprep.mubr.bf16.mxu0 %v5744_v22  ;;  %v5840_v21 = vcombine.high %v140_v16, %v148_v17  ;;  %v155_v22 = vld [vmem:[%s9858_s0 + $0x3a8] sm:$0xff] }
  0xbc   :  { %v5853_v35 = vcombine.low %v155_v22, %v163_v23 }
  0xc2   :  { %2348 = vmatmul.mubr.bf16.vlgmr.msra.gmra.mrb[80].mxu1 %v5741_v27  ;;  %2445 = vmatmul.mubr.bf16.vlgmr.msra.gmra.mrb[80].mxu0 %v5743_v28  ;;  %v5839_v27 = vcombine.low %v140_v16, %v148_v17  ;;  %v5854_v28 = vcombine.high %v155_v22, %v163_v23  ;;  %v101_v16 = vld [vmem:[%s9858_s0 + $0x1f8] sm:$0xff] }
  0xc3   :  { %6600 = vmatpush3.bf16.msra.mxu1 %v7816_v29  ;;  %2355 = vmatprep.mubr.bf16.mxu1 %v5758_v30  ;;  %v5856_v29 = vcombine.high %v156_v24, %v164_v25  ;;  %v45_v30 = vld [vmem:[%s9858_s0 + $0x38] sm:$0xff] }
  0xc4   :  { %2452 = vmatprep.mubr.bf16.mxu0 %v5760_v31  ;;  %6601 = vmatprep.subr.bf16.mxu1 %v7817_v32  ;;  %v53_v31 = vld [vmem:[%s9858_s0 + $0x78] sm:$0xff] }
  0xc7   :  { %6602 = vmatpush3.bf16.msra.mxu1 %v7818_v33 }
  0xc8   :  { %6603 = vmatprep.subr.bf16.mxu1 %v7819_v38 }
  0xca   :  { %2356 = vmatmul.mubr.bf16.gmra.mrb[84].mxu1 %v5757_v39  ;;  %2453 = vmatmul.mubr.bf16.gmra.mrb[84].mxu0 %v5759_v40  ;;  %v5746_v40 = vcombine.high %v45_v30, %v53_v31 }
  0xcb   :  { %2363 = vmatprep.mubr.bf16.mxu1 %v5774_v41  ;;  %2460 = vmatprep.mubr.bf16.mxu0 %v5776_v42 }
  0xcc   :  { %6604 = vmatpush3.bf16.msra.mxu1 %v7820_v43 }
  0xcd   :  { %6605 = vmatprep.subr.bf16.mxu1 %v7821_v44 }
  0xd0   :  { %6606 = vmatpush3.bf16.msra.mxu1 %v7822_v49 }
  0xd1   :  { %6607 = vmatprep.subr.bf16.mxu1 %v7823_v50 }
  0xd2   :  { %2364 = vmatmul.mubr.bf16.gmra.mrb[88].mxu1 %v5773_v51  ;;  %2461 = vmatmul.mubr.bf16.gmra.mrb[88].mxu0 %v5775_v52  ;;  %v5745_v52 = vcombine.low %v45_v30, %v53_v31  ;;  %v109_v31 = vld [vmem:[%s9858_s0 + $0x238] sm:$0xff] }
  0xd3   :  { %2371 = vmatprep.mubr.bf16.mxu1 %v5790_v53  ;;  %2468 = vmatprep.mubr.bf16.mxu0 %v5792_v54 }
  0xd4   :  { %6608 = vmatpush3.bf16.msra.mxu1 %v7824_v55 }
  0xd5   :  { %6609 = vmatprep.subr.bf16.mxu1 %v7825_v56  ;;  %v5762_v56 = vcombine.high %v61_v47, %v69_v48 }
  0xd8   :  { %6610 = vmatpush3.bf16.msra.mxu1 %v7826_v61 }
  0xd9   :  { %6611 = vmatprep.subr.bf16.mxu1 %v7827_v62 }
  0xda   :  { %2372 = vmatmul.mubr.bf16.gmra.mrb[92].mxu1 %v5789_v63  ;;  %2469 = vmatmul.mubr.bf16.gmra.mrb[92].mxu0 %v5791_v0  ;;  %v77_v63 = vld [vmem:[%s9858_s0 + $0x138] sm:$0xff] }
  0xdb   :  { %2379 = vmatprep.mubr.bf16.mxu1 %v5806_v1  ;;  %2476 = vmatprep.mubr.bf16.mxu0 %v5808_v2  ;;  %v85_v0 = vld [vmem:[%s9858_s0 + $0x178] sm:$0xff] }
  0xdc   :  { %6612 = vmatpush3.bf16.msra.mxu1 %v7828_v3 }
  0xdd   :  { %6613 = vmatprep.subr.bf16.mxu1 %v7829_v4  ;;  %v5761_v4 = vcombine.low %v61_v47, %v69_v48 }
  0xe0   :  { %6614 = vmatpush3.bf16.msra.mxu1 %v7830_v9 }
  0xe2   :  { %2380 = vmatmul.mubr.bf16.gmra.mrb[96].mxu1 %v5805_v10  ;;  %2477 = vmatmul.mubr.bf16.gmra.mrb[96].mxu0 %v5807_v11  ;;  %v5778_v10 = vcombine.high %v77_v63, %v85_v0 }
  0xe3   :  { %2387 = vmatprep.mubr.bf16.mxu1 %v5822_v12  ;;  %2484 = vmatprep.mubr.bf16.mxu0 %v5824_v13 }
  0xea   :  { %2388 = vmatmul.mubr.bf16.gmra.mrb[100].mxu1 %v5821_v18  ;;  %2485 = vmatmul.mubr.bf16.gmra.mrb[100].mxu0 %v5823_v19 }
  0xeb   :  { %2395 = vmatprep.mubr.bf16.mxu1 %v5838_v20  ;;  %2492 = vmatprep.mubr.bf16.mxu0 %v5840_v21  ;;  %v5777_v20 = vcombine.low %v77_v63, %v85_v0 }
  0xf2   :  { %2396 = vmatmul.mubr.bf16.gmra.mrb[104].mxu1 %v5837_v26  ;;  %2493 = vmatmul.mubr.bf16.gmra.mrb[104].mxu0 %v5839_v27  ;;  %v5794_v26 = vcombine.high %v93_v15, %v101_v16 }
  0xf3   :  { %2403 = vmatprep.mubr.bf16.mxu1 %v5854_v28  ;;  %2500 = vmatprep.mubr.bf16.mxu0 %v5856_v29 }
  0xf5   :  { %v6191_v32 = vpop.f32.mrb[0].mxu1  ;;  %v6167_v33 = vpop.f32.mrb[0].mxu0 }
  0xf6   :  { %v6192_v34 = vpop.f32.mrb[1].mxu1  ;;  %v6168_v37 = vpop.f32.mrb[1].mxu0 }
  0xf7   :  { %v8780_v38 = vadd.f32 %v6192_v34, %v6191_v32  ;;  %v6194_v39 = vpop.f32.mrb[2].mxu1  ;;  %v8782_v41 = vadd.f32 %v6168_v37, %v6167_v33  ;;  %v6170_v42 = vpop.f32.mrb[2].mxu0  ;;  %v117_v32 = vld [vmem:[%s9858_s0 + $0x278] sm:$0xff]  ;;  %v5793_v37 = vcombine.low %v93_v15, %v101_v16 }
  0xf8   :  { %v6195_v43 = vpop.f32.mrb[3].mxu1  ;;  %v6171_v44 = vpop.f32.mrb[3].mxu0  ;;  %v5809_v0 = vcombine.low %v109_v31, %v117_v32  ;;  %v141_v16 = vld [vmem:[%s9858_s0 + $0x338] sm:$0xff] }
  0xf9   :  { %v8784_v45 = vadd.f32 %v6195_v43, %v6194_v39  ;;  %v8786_v46 = vadd.f32 %v6171_v44, %v6170_v42  ;;  %v5810_v44 = vcombine.high %v109_v31, %v117_v32 }
  0xfa   :  { %2404 = vmatmul.mubr.bf16.gmra.mrb[108].mxu1 %v5853_v35  ;;  %2501 = vmatmul.mubr.bf16.gmra.mrb[108].mxu0 %v5855_v36 }
  0xfb   :  { %2541 = vmatprep.mubr.bf16.mxu1 %v5746_v40 }
  0xfd   :  { %v6197_v49 = vpop.f32.mrb[4].mxu1  ;;  %v6173_v50 = vpop.f32.mrb[4].mxu0 }
  0xfe   :  { %v6198_v51 = vpop.f32.mrb[5].mxu1  ;;  %v6174_v53 = vpop.f32.mrb[5].mxu0 }
  0xff   :  { %v8794_v54 = vadd.f32 %v6198_v51, %v6197_v49  ;;  %v6200_v55 = vpop.f32.mrb[6].mxu1  ;;  %v8796_v57 = vadd.f32 %v6174_v53, %v6173_v50  ;;  %v6176_v58 = vpop.f32.mrb[6].mxu0 }
 0x100   :  { %v6201_v59 = vpop.f32.mrb[7].mxu1  ;;  %v6177_v60 = vpop.f32.mrb[7].mxu0 }
 0x101   :  { %v8798_v61 = vadd.f32 %v6201_v59, %v6200_v55  ;;  %v8800_v62 = vadd.f32 %v6177_v60, %v6176_v58  ;;  %v125_v55 = vld [vmem:[%s9858_s0 + $0x2b8] sm:$0xff] }
 0x102   :  { %2542 = vmatmul.mubr.bf16.vlgmr.msra.gmra.mrb[112].mxu1 %v5745_v52 }
 0x103   :  { %2549 = vmatprep.mubr.bf16.mxu1 %v5762_v56  ;;  %v133_v56 = vld [vmem:[%s9858_s0 + $0x2f8] sm:$0xff] }
 0x105   :  { %v6203_v1 = vpop.f32.mrb[8].mxu1  ;;  %v6179_v2 = vpop.f32.mrb[8].mxu0 }
 0x106   :  { %v6204_v3 = vpop.f32.mrb[9].mxu1  ;;  %v6180_v5 = vpop.f32.mrb[9].mxu0 }
 0x107   :  { %v8808_v6 = vadd.f32 %v6204_v3, %v6203_v1  ;;  %v6206_v7 = vpop.f32.mrb[10].mxu1  ;;  %v8810_v8 = vadd.f32 %v6180_v5, %v6179_v2  ;;  %v6182_v9 = vpop.f32.mrb[10].mxu0 }
 0x108   :  { %v6207_v11 = vpop.f32.mrb[11].mxu1  ;;  %v6183_v12 = vpop.f32.mrb[11].mxu0 }
 0x109   :  { %v8812_v13 = vadd.f32 %v6207_v11, %v6206_v7  ;;  %v8814_v14 = vadd.f32 %v6183_v12, %v6182_v9 }
 0x10a   :  { %2550 = vmatmul.mubr.bf16.gmra.mrb[116].mxu1 %v5761_v4  ;;  %v5826_v4 = vcombine.high %v125_v55, %v133_v56 }
 0x10b   :  { %2557 = vmatprep.mubr.bf16.mxu1 %v5778_v10 }
 0x10d   :  { %v6209_v17 = vpop.f32.mrb[12].mxu1  ;;  %v6185_v18 = vpop.f32.mrb[12].mxu0 }
 0x10e   :  { %v6210_v19 = vpop.f32.mrb[13].mxu1  ;;  %v6186_v21 = vpop.f32.mrb[13].mxu0 }
 0x10f   :  { %v8822_v22 = vadd.f32 %v6210_v19, %v6209_v17  ;;  %v6212_v23 = vpop.f32.mrb[14].mxu1  ;;  %v8824_v24 = vadd.f32 %v6186_v21, %v6185_v18  ;;  %v6188_v25 = vpop.f32.mrb[14].mxu0  ;;  %v149_v17 = vld [vmem:[%s9858_s0 + $0x378] sm:$0xff] }
 0x110   :  { %v6213_v27 = vpop.f32.mrb[15].mxu1  ;;  %v6189_v28 = vpop.f32.mrb[15].mxu0 }
 0x111   :  { %v8826_v29 = vadd.f32 %v6213_v27, %v6212_v23  ;;  %v8828_v30 = vadd.f32 %v6189_v28, %v6188_v25  ;;  %v5825_v23 = vcombine.low %v125_v55, %v133_v56  ;;  %v5842_v28 = vcombine.high %v141_v16, %v149_v17 }
 0x112   :  { %2558 = vmatmul.mubr.bf16.gmra.mrb[120].mxu1 %v5777_v20 }
 0x113   :  { %2565 = vmatprep.mubr.bf16.mxu1 %v5794_v26 }
 0x115   :  { %v6231_v33 = vpop.f32.mrb[16].mxu1  ;;  %v6295_v34 = vpop.f32.mrb[16].mxu0 }
 0x116   :  { %v6232_v35 = vpop.f32.mrb[17].mxu1  ;;  %v6296_v36 = vpop.f32.mrb[17].mxu0 }
 0x117   :  { %v6233_v39 = vadd.f32 %v6232_v35, %v6231_v33  ;;  %v6234_v40 = vpop.f32.mrb[18].mxu1  ;;  %v6297_v42 = vadd.f32 %v6296_v36, %v6295_v34  ;;  %v6298_v43 = vpop.f32.mrb[18].mxu0 }
 0x118   :  { %v6235_v47 = vpop.f32.mrb[19].mxu1  ;;  %v6299_v48 = vpop.f32.mrb[19].mxu0 }
 0x119   :  { %v1962_v49 = vadd.f32 %v6233_v39, %v8782_v41  ;;  %v6236_v50 = vadd.f32 %v6235_v47, %v6234_v40  ;;  %v6300_v51 = vadd.f32 %v6299_v48, %v6298_v43  ;;  %v157_v39 = vld [vmem:[%s9858_s0 + $0x3b8] sm:$0xff]  ;;  %v5841_v48 = vcombine.low %v141_v16, %v149_v17 }
 0x11a   :  { %2566 = vmatmul.mubr.bf16.gmra.mrb[124].mxu1 %v5793_v37  ;;  %v165_v40 = vld [vmem:[%s9858_s0 + $0x3f8] sm:$0xff] }
 0x11b   :  { %v1965_v52 = vadd.f32 %v6236_v50, %v8786_v46  ;;  %v8838_v53 = vadd.f32 %v6297_v42, %v1962_v49  ;;  %2573 = vmatprep.mubr.bf16.mxu1 %v5810_v44 }
 0x11d   :  { %v8846_v58 = vadd.f32 %v6300_v51, %v1965_v52  ;;  %v6237_v59 = vpop.f32.mrb[20].mxu1  ;;  %v6301_v41 = vpop.f32.mrb[20].mxu0  ;;  %v5858_v52 = vcombine.high %v157_v39, %v165_v40 }
 0x11e   :  { %v6238_v60 = vpop.f32.mrb[21].mxu1  ;;  %v6302_v63 = vpop.f32.mrb[21].mxu0 }
 0x11f   :  { %v6239_v1 = vadd.f32 %v6238_v60, %v6237_v59  ;;  %v6240_v46 = vpop.f32.mrb[22].mxu1  ;;  %v6303_v2 = vadd.f32 %v6302_v63, %v6301_v41  ;;  %v6304_v3 = vpop.f32.mrb[22].mxu0 }
 0x120   :  { %v6241_v5 = vpop.f32.mrb[23].mxu1  ;;  %v6305_v7 = vpop.f32.mrb[23].mxu0 }
 0x121   :  { %v1970_v9 = vadd.f32 %v6239_v1, %v8796_v57  ;;  %v6242_v10 = vadd.f32 %v6241_v5, %v6240_v46  ;;  %v6306_v11 = vadd.f32 %v6305_v7, %v6304_v3  ;;  %v5857_v5 = vcombine.low %v157_v39, %v165_v40 }
 0x122   :  { %2574 = vmatmul.mubr.bf16.gmra.mrb[128].mxu1 %v5809_v0 }
 0x123   :  { %v1973_v12 = vadd.f32 %v6242_v10, %v8800_v62  ;;  %v8850_v15 = vadd.f32 %v6303_v2, %v1970_v9  ;;  %2581 = vmatprep.mubr.bf16.mxu1 %v5826_v4 }
 0x125   :  { %v8858_v18 = vadd.f32 %v6306_v11, %v1973_v12  ;;  %v6243_v19 = vpop.f32.mrb[24].mxu1  ;;  %v6307_v57 = vpop.f32.mrb[24].mxu0 }
 0x126   :  { %v6244_v20 = vpop.f32.mrb[25].mxu1  ;;  %v6308_v21 = vpop.f32.mrb[25].mxu0 }
 0x127   :  { %v6245_v25 = vadd.f32 %v6244_v20, %v6243_v19  ;;  %v6246_v62 = vpop.f32.mrb[26].mxu1  ;;  %v6309_v26 = vadd.f32 %v6308_v21, %v6307_v57  ;;  %v6310_v27 = vpop.f32.mrb[26].mxu0 }
 0x128   :  { %v6247_v31 = vpop.f32.mrb[27].mxu1  ;;  %v6311_v32 = vpop.f32.mrb[27].mxu0 }
 0x129   :  { %v1978_v33 = vadd.f32 %v6245_v25, %v8810_v8  ;;  %v6248_v34 = vadd.f32 %v6247_v31, %v6246_v62  ;;  %v6312_v35 = vadd.f32 %v6311_v32, %v6310_v27 }
 0x12a   :  { %2582 = vmatmul.mubr.bf16.gmra.mrb[132].mxu1 %v5825_v23 }
 0x12b   :  { %v1981_v36 = vadd.f32 %v6248_v34, %v8814_v14  ;;  %v8862_v37 = vadd.f32 %v6309_v26, %v1978_v33  ;;  %2589 = vmatprep.mubr.bf16.mxu1 %v5842_v28 }
 0x12d   :  { %v8870_v42 = vadd.f32 %v6312_v35, %v1981_v36  ;;  %v6249_v43 = vpop.f32.mrb[28].mxu1  ;;  %v6313_v8 = vpop.f32.mrb[28].mxu0 }
 0x12e   :  { %v6250_v44 = vpop.f32.mrb[29].mxu1  ;;  %v6314_v47 = vpop.f32.mrb[29].mxu0 }
 0x12f   :  { %v6251_v49 = vadd.f32 %v6250_v44, %v6249_v43  ;;  %v6252_v14 = vpop.f32.mrb[30].mxu1  ;;  %v6315_v50 = vadd.f32 %v6314_v47, %v6313_v8  ;;  %v6316_v51 = vpop.f32.mrb[30].mxu0 }
 0x130   :  { %v6253_v55 = vpop.f32.mrb[31].mxu1  ;;  %v6317_v56 = vpop.f32.mrb[31].mxu0 }
 0x131   :  { %v1986_v59 = vadd.f32 %v6251_v49, %v8824_v24  ;;  %v6254_v41 = vadd.f32 %v6253_v55, %v6252_v14  ;;  %v6318_v60 = vadd.f32 %v6317_v56, %v6316_v51 }
 0x132   :  { %2590 = vmatmul.mubr.bf16.gmra.mrb[136].mxu1 %v5841_v48 }
 0x133   :  { %v1989_v63 = vadd.f32 %v6254_v41, %v8828_v30  ;;  %v8874_v0 = vadd.f32 %v6315_v50, %v1986_v59  ;;  %2597 = vmatprep.mubr.bf16.mxu1 %v5858_v52 }
 0x135   :  { %v8876_v1 = vadd.f32 %v6318_v60, %v1989_v63  ;;  %v6255_v46 = vpop.f32.mrb[32].mxu1  ;;  %v6319_v2 = vpop.f32.mrb[32].mxu0 }
 0x136   :  { %v6256_v3 = vpop.f32.mrb[33].mxu1  ;;  %v6320_v4 = vpop.f32.mrb[33].mxu0 }
 0x137   :  { %v6257_v7 = vadd.f32 %v6256_v3, %v6255_v46  ;;  %v6258_v9 = vpop.f32.mrb[34].mxu1  ;;  %v6321_v10 = vadd.f32 %v6320_v4, %v6319_v2  ;;  %v6322_v11 = vpop.f32.mrb[34].mxu0 }
 0x138   :  { %v6259_v24 = vpop.f32.mrb[35].mxu1  ;;  %v6323_v12 = vpop.f32.mrb[35].mxu0 }
 0x139   :  { %v1994_v16 = vadd.f32 %v6257_v7, %v8780_v38  ;;  %v6260_v17 = vadd.f32 %v6259_v24, %v6258_v9  ;;  %v6324_v30 = vadd.f32 %v6323_v12, %v6322_v11 }
 0x13a   :  { %2598 = vmatmul.mubr.bf16.gmra.mrb[140].mxu1 %v5857_v5 }
 0x13b   :  { %v1997_v19 = vadd.f32 %v6260_v17, %v8784_v45  ;;  %v8880_v57 = vadd.f32 %v6321_v10, %v1994_v16 }
 0x13d   :  { %v8882_v20 = vadd.f32 %v6324_v30, %v1997_v19  ;;  %v6261_v21 = vpop.f32.mrb[36].mxu1  ;;  %v6325_v23 = vpop.f32.mrb[36].mxu0 }
 0x13e   :  { %v6262_v25 = vpop.f32.mrb[37].mxu1  ;;  %v6326_v62 = vpop.f32.mrb[37].mxu0 }
 0x13f   :  { %v6263_v26 = vadd.f32 %v6262_v25, %v6261_v21  ;;  %v6264_v27 = vpop.f32.mrb[38].mxu1  ;;  %v6327_v28 = vadd.f32 %v6326_v62, %v6325_v23  ;;  %v6328_v31 = vpop.f32.mrb[38].mxu0 }
 0x140   :  { %v6265_v32 = vpop.f32.mrb[39].mxu1  ;;  %v6329_v33 = vpop.f32.mrb[39].mxu0 }
 0x141   :  { %v2002_v38 = vadd.f32 %v6263_v26, %v8794_v54  ;;  %v6266_v34 = vadd.f32 %v6265_v32, %v6264_v27  ;;  %v6330_v35 = vadd.f32 %v6329_v33, %v6328_v31 }
 0x143   :  { %v2005_v45 = vadd.f32 %v6266_v34, %v8798_v61  ;;  %v8886_v36 = vadd.f32 %v6327_v28, %v2002_v38 }
 0x145   :  { %v8888_v39 = vadd.f32 %v6330_v35, %v2005_v45  ;;  %v6267_v40 = vpop.f32.mrb[40].mxu1  ;;  %v6331_v43 = vpop.f32.mrb[40].mxu0 }
 0x146   :  { %v6268_v8 = vpop.f32.mrb[41].mxu1  ;;  %v6332_v44 = vpop.f32.mrb[41].mxu0 }
 0x147   :  { %v6269_v47 = vadd.f32 %v6268_v8, %v6267_v40  ;;  %v6270_v48 = vpop.f32.mrb[42].mxu1  ;;  %v6333_v49 = vadd.f32 %v6332_v44, %v6331_v43  ;;  %v6334_v14 = vpop.f32.mrb[42].mxu0 }
 0x148   :  { %v6271_v50 = vpop.f32.mrb[43].mxu1  ;;  %v6335_v51 = vpop.f32.mrb[43].mxu0 }
 0x149   :  { %v2010_v54 = vadd.f32 %v6269_v47, %v8808_v6  ;;  %v6272_v52 = vadd.f32 %v6271_v50, %v6270_v48  ;;  %v6336_v55 = vadd.f32 %v6335_v51, %v6334_v14 }
 0x14b   :  { %v2013_v61 = vadd.f32 %v6272_v52, %v8812_v13  ;;  %v8892_v56 = vadd.f32 %v6333_v49, %v2010_v54 }
 0x14d   :  { %v8894_v59 = vadd.f32 %v6336_v55, %v2013_v61  ;;  %v6273_v41 = vpop.f32.mrb[44].mxu1  ;;  %v6337_v60 = vpop.f32.mrb[44].mxu0 }
 0x14e   :  { %v6274_v63 = vpop.f32.mrb[45].mxu1  ;;  %v6338_v46 = vpop.f32.mrb[45].mxu0 }
 0x14f   :  { %v6275_v2 = vadd.f32 %v6274_v63, %v6273_v41  ;;  %v6276_v3 = vpop.f32.mrb[46].mxu1  ;;  %v6339_v4 = vadd.f32 %v6338_v46, %v6337_v60  ;;  %v6340_v5 = vpop.f32.mrb[46].mxu0 }
 0x150   :  { %v6277_v7 = vpop.f32.mrb[47].mxu1  ;;  %v6341_v9 = vpop.f32.mrb[47].mxu0 }
 0x151   :  { %v2018_v6 = vadd.f32 %v6275_v2, %v8822_v22  ;;  %v6278_v10 = vadd.f32 %v6277_v7, %v6276_v3  ;;  %v6342_v11 = vadd.f32 %v6341_v9, %v6340_v5 }
 0x153   :  { %v2021_v13 = vadd.f32 %v6278_v10, %v8826_v29  ;;  %v8898_v24 = vadd.f32 %v6339_v4, %v2018_v6 }
 0x155   :  { %v8900_v12 = vadd.f32 %v6342_v11, %v2021_v13  ;;  %v6359_v16 = vpop.f32.mrb[48].mxu1  ;;  %v6423_v17 = vpop.f32.mrb[48].mxu0 }
 0x156   :  { %v6360_v30 = vpop.f32.mrb[49].mxu1  ;;  %v6424_v19 = vpop.f32.mrb[49].mxu0 }
 0x157   :  { %v6361_v21 = vadd.f32 %v6360_v30, %v6359_v16  ;;  %v6362_v23 = vpop.f32.mrb[50].mxu1  ;;  %v6425_v25 = vadd.f32 %v6424_v19, %v6423_v17  ;;  %v6426_v62 = vpop.f32.mrb[50].mxu0 }
 0x158   :  { %v6363_v26 = vpop.f32.mrb[51].mxu1  ;;  %v6427_v27 = vpop.f32.mrb[51].mxu0 }
 0x159   :  { %v2156_v22 = vadd.f32 %v6361_v21, %v8838_v53  ;;  %v6364_v28 = vadd.f32 %v6363_v26, %v6362_v23  ;;  %v6428_v31 = vadd.f32 %v6427_v27, %v6426_v62 }
 0x15b   :  { %v2159_v29 = vadd.f32 %v6364_v28, %v8846_v58  ;;  %v8904_v32 = vadd.f32 %v6425_v25, %v2156_v22 }
 0x15d   :  { %v8906_v33 = vadd.f32 %v6428_v31, %v2159_v29  ;;  %v6365_v38 = vpop.f32.mrb[52].mxu1  ;;  %v6429_v34 = vpop.f32.mrb[52].mxu0 }
 0x15e   :  { %v6366_v35 = vpop.f32.mrb[53].mxu1  ;;  %v6430_v45 = vpop.f32.mrb[53].mxu0 }
 0x15f   :  { %v6367_v40 = vadd.f32 %v6366_v35, %v6365_v38  ;;  %v6368_v43 = vpop.f32.mrb[54].mxu1  ;;  %v6431_v8 = vadd.f32 %v6430_v45, %v6429_v34  ;;  %v6432_v44 = vpop.f32.mrb[54].mxu0 }
 0x160   :  { %v6369_v47 = vpop.f32.mrb[55].mxu1  ;;  %v6433_v48 = vpop.f32.mrb[55].mxu0 }
 0x161   :  { %v2164_v53 = vadd.f32 %v6367_v40, %v8850_v15  ;;  %v6370_v49 = vadd.f32 %v6369_v47, %v6368_v43  ;;  %v6434_v14 = vadd.f32 %v6433_v48, %v6432_v44 }
 0x163   :  { %v2167_v58 = vadd.f32 %v6370_v49, %v8858_v18  ;;  %v8910_v50 = vadd.f32 %v6431_v8, %v2164_v53 }
 0x165   :  { %v8912_v51 = vadd.f32 %v6434_v14, %v2167_v58  ;;  %v6371_v54 = vpop.f32.mrb[56].mxu1  ;;  %v6435_v52 = vpop.f32.mrb[56].mxu0 }
 0x166   :  { %v6372_v55 = vpop.f32.mrb[57].mxu1  ;;  %v6436_v61 = vpop.f32.mrb[57].mxu0 }
 0x167   :  { %v6373_v41 = vadd.f32 %v6372_v55, %v6371_v54  ;;  %v6374_v60 = vpop.f32.mrb[58].mxu1  ;;  %v6437_v63 = vadd.f32 %v6436_v61, %v6435_v52  ;;  %v6438_v46 = vpop.f32.mrb[58].mxu0 }
 0x168   :  { %v6375_v2 = vpop.f32.mrb[59].mxu1  ;;  %v6439_v3 = vpop.f32.mrb[59].mxu0 }
 0x169   :  { %v2172_v15 = vadd.f32 %v6373_v41, %v8862_v37  ;;  %v6376_v4 = vadd.f32 %v6375_v2, %v6374_v60  ;;  %v6440_v5 = vadd.f32 %v6439_v3, %v6438_v46 }
 0x16b   :  { %v2175_v18 = vadd.f32 %v6376_v4, %v8870_v42  ;;  %v8916_v7 = vadd.f32 %v6437_v63, %v2172_v15 }
 0x16d   :  { %v8918_v9 = vadd.f32 %v6440_v5, %v2175_v18  ;;  %v6377_v6 = vpop.f32.mrb[60].mxu1  ;;  %v6441_v10 = vpop.f32.mrb[60].mxu0 }
 0x16e   :  { %v6378_v11 = vpop.f32.mrb[61].mxu1  ;;  %v6442_v13 = vpop.f32.mrb[61].mxu0 }
 0x16f   :  { %v6379_v16 = vadd.f32 %v6378_v11, %v6377_v6  ;;  %v6380_v17 = vpop.f32.mrb[62].mxu1  ;;  %v6443_v30 = vadd.f32 %v6442_v13, %v6441_v10  ;;  %v6444_v19 = vpop.f32.mrb[62].mxu0 }
 0x170   :  { %v6381_v21 = vpop.f32.mrb[63].mxu1  ;;  %v6445_v23 = vpop.f32.mrb[63].mxu0 }
 0x171   :  { %v2180_v37 = vadd.f32 %v6379_v16, %v8874_v0  ;;  %v6382_v25 = vadd.f32 %v6381_v21, %v6380_v17  ;;  %v6446_v62 = vadd.f32 %v6445_v23, %v6444_v19 }
 0x173   :  { %v2183_v42 = vadd.f32 %v6382_v25, %v8876_v1  ;;  %v8922_v26 = vadd.f32 %v6443_v30, %v2180_v37 }
 0x175   :  { %v8924_v27 = vadd.f32 %v6446_v62, %v2183_v42  ;;  %v6383_v22 = vpop.f32.mrb[64].mxu1  ;;  %v6447_v28 = vpop.f32.mrb[64].mxu0 }
 0x176   :  { %v6384_v31 = vpop.f32.mrb[65].mxu1  ;;  %v6448_v29 = vpop.f32.mrb[65].mxu0 }
 0x177   :  { %v6385_v38 = vadd.f32 %v6384_v31, %v6383_v22  ;;  %v6386_v34 = vpop.f32.mrb[66].mxu1  ;;  %v6449_v35 = vadd.f32 %v6448_v29, %v6447_v28  ;;  %v6450_v45 = vpop.f32.mrb[66].mxu0 }
 0x178   :  { %v6387_v40 = vpop.f32.mrb[67].mxu1  ;;  %v6451_v43 = vpop.f32.mrb[67].mxu0 }
 0x179   :  { %v2188_v0 = vadd.f32 %v6385_v38, %v8880_v57  ;;  %v6388_v8 = vadd.f32 %v6387_v40, %v6386_v34  ;;  %v6452_v44 = vadd.f32 %v6451_v43, %v6450_v45 }
 0x17b   :  { %v2191_v1 = vadd.f32 %v6388_v8, %v8882_v20  ;;  %v8928_v47 = vadd.f32 %v6449_v35, %v2188_v0 }
 0x17d   :  { %v8930_v48 = vadd.f32 %v6452_v44, %v2191_v1  ;;  %v6389_v53 = vpop.f32.mrb[68].mxu1  ;;  %v6453_v49 = vpop.f32.mrb[68].mxu0 }
 0x17e   :  { %v6390_v14 = vpop.f32.mrb[69].mxu1  ;;  %v6454_v58 = vpop.f32.mrb[69].mxu0 }
 0x17f   :  { %v6391_v54 = vadd.f32 %v6390_v14, %v6389_v53  ;;  %v6392_v52 = vpop.f32.mrb[70].mxu1  ;;  %v6455_v55 = vadd.f32 %v6454_v58, %v6453_v49  ;;  %v6456_v61 = vpop.f32.mrb[70].mxu0 }
 0x180   :  { %v6393_v41 = vpop.f32.mrb[71].mxu1  ;;  %v6457_v60 = vpop.f32.mrb[71].mxu0 }
 0x181   :  { %v2196_v57 = vadd.f32 %v6391_v54, %v8886_v36  ;;  %v6394_v63 = vadd.f32 %v6393_v41, %v6392_v52  ;;  %v6458_v46 = vadd.f32 %v6457_v60, %v6456_v61 }
 0x183   :  { %v2199_v20 = vadd.f32 %v6394_v63, %v8888_v39  ;;  %v8934_v2 = vadd.f32 %v6455_v55, %v2196_v57 }
 0x185   :  { %v8936_v3 = vadd.f32 %v6458_v46, %v2199_v20  ;;  %v6395_v15 = vpop.f32.mrb[72].mxu1  ;;  %v6459_v4 = vpop.f32.mrb[72].mxu0 }
 0x186   :  { %v6396_v5 = vpop.f32.mrb[73].mxu1  ;;  %v6460_v18 = vpop.f32.mrb[73].mxu0 }
 0x187   :  { %v6397_v6 = vadd.f32 %v6396_v5, %v6395_v15  ;;  %v6398_v10 = vpop.f32.mrb[74].mxu1  ;;  %v6461_v11 = vadd.f32 %v6460_v18, %v6459_v4  ;;  %v6462_v13 = vpop.f32.mrb[74].mxu0 }
 0x188   :  { %v6399_v16 = vpop.f32.mrb[75].mxu1  ;;  %v6463_v17 = vpop.f32.mrb[75].mxu0 }
 0x189   :  { %v2204_v36 = vadd.f32 %v6397_v6, %v8892_v56  ;;  %v6400_v30 = vadd.f32 %v6399_v16, %v6398_v10  ;;  %v6464_v19 = vadd.f32 %v6463_v17, %v6462_v13 }
 0x18b   :  { %v2207_v39 = vadd.f32 %v6400_v30, %v8894_v59  ;;  %v8940_v21 = vadd.f32 %v6461_v11, %v2204_v36 }
 0x18d   :  { %v8942_v23 = vadd.f32 %v6464_v19, %v2207_v39  ;;  %v6401_v37 = vpop.f32.mrb[76].mxu1  ;;  %v6465_v25 = vpop.f32.mrb[76].mxu0 }
 0x18e   :  { %v6402_v62 = vpop.f32.mrb[77].mxu1  ;;  %v6466_v42 = vpop.f32.mrb[77].mxu0 }
 0x18f   :  { %v6403_v22 = vadd.f32 %v6402_v62, %v6401_v37  ;;  %v6404_v28 = vpop.f32.mrb[78].mxu1  ;;  %v6467_v31 = vadd.f32 %v6466_v42, %v6465_v25  ;;  %v6468_v29 = vpop.f32.mrb[78].mxu0 }
 0x190   :  { %v6405_v38 = vpop.f32.mrb[79].mxu1  ;;  %v6469_v34 = vpop.f32.mrb[79].mxu0 }
 0x191   :  { %v2212_v56 = vadd.f32 %v6403_v22, %v8898_v24  ;;  %v6406_v35 = vadd.f32 %v6405_v38, %v6404_v28  ;;  %v6470_v45 = vadd.f32 %v6469_v34, %v6468_v29 }
 0x193   :  { %v2215_v59 = vadd.f32 %v6406_v35, %v8900_v12  ;;  %v8946_v40 = vadd.f32 %v6467_v31, %v2212_v56 }
 0x195   :  { %v8948_v43 = vadd.f32 %v6470_v45, %v2215_v59  ;;  %v6487_v0 = vpop.f32.mrb[80].mxu1  ;;  %v6551_v8 = vpop.f32.mrb[80].mxu0 }
 0x196   :  { %v6488_v44 = vpop.f32.mrb[81].mxu1  ;;  %v6552_v1 = vpop.f32.mrb[81].mxu0 }
 0x197   :  { %v6489_v53 = vadd.f32 %v6488_v44, %v6487_v0  ;;  %v6490_v49 = vpop.f32.mrb[82].mxu1  ;;  %v6553_v14 = vadd.f32 %v6552_v1, %v6551_v8  ;;  %v6554_v58 = vpop.f32.mrb[82].mxu0 }
 0x198   :  { %v6491_v54 = vpop.f32.mrb[83].mxu1  ;;  %v6555_v52 = vpop.f32.mrb[83].mxu0 }
 0x199   :  { %v2350_v24 = vadd.f32 %v6489_v53, %v8904_v32  ;;  %v6492_v55 = vadd.f32 %v6491_v54, %v6490_v49  ;;  %v6556_v61 = vadd.f32 %v6555_v52, %v6554_v58 }
 0x19b   :  { %v2353_v12 = vadd.f32 %v6492_v55, %v8906_v33  ;;  %v8952_v41 = vadd.f32 %v6553_v14, %v2350_v24  ;;  %v7831_v33 = vld [vmem:[%s9859_s4 + $0x10] sm:$0xff]  }
 0x19c   :  { %7019 = vmatprep.mubr.bf16.mxu1 %v7831_v33  ;;  %v7833_v33 = vld [vmem:[%s9859_s4] sm:$0xff]  }
 0x19d   :  { %v8954_v60 = vadd.f32 %v6556_v61, %v2353_v12  ;;  %v6493_v57 = vpop.f32.mrb[84].mxu1  ;;  %v6557_v63 = vpop.f32.mrb[84].mxu0  ;;  %6999 = vmatprep.mubr.bf16.mxu0 %v7833_v33 }
 0x19e   :  { %v6494_v46 = vpop.f32.mrb[85].mxu1  ;;  %v6558_v20 = vpop.f32.mrb[85].mxu0 }
 0x19f   :  { %v6495_v15 = vadd.f32 %v6494_v46, %v6493_v57  ;;  %v6496_v4 = vpop.f32.mrb[86].mxu1  ;;  %v6559_v5 = vadd.f32 %v6558_v20, %v6557_v63  ;;  %v6560_v18 = vpop.f32.mrb[86].mxu0 }
 0x1a0   :  { %v6497_v6 = vpop.f32.mrb[87].mxu1  ;;  %v6561_v10 = vpop.f32.mrb[87].mxu0 }
 0x1a1   :  { %v2358_v32 = vadd.f32 %v6495_v15, %v8910_v50  ;;  %v6498_v11 = vadd.f32 %v6497_v6, %v6496_v4  ;;  %v6562_v13 = vadd.f32 %v6561_v10, %v6560_v18 }
 0x1a3   :  { %v2361_v16 = vadd.f32 %v6498_v11, %v8912_v51  ;;  %v8961_v17 = vadd.f32 %v6559_v5, %v2358_v32 }
 0x1a5   :  { %v8963_v36 = vadd.f32 %v6562_v13, %v2361_v16  ;;  %v6499_v30 = vpop.f32.mrb[88].mxu1  ;;  %v6563_v19 = vpop.f32.mrb[88].mxu0 }
 0x1a6   :  { %v6500_v39 = vpop.f32.mrb[89].mxu1  ;;  %v6564_v37 = vpop.f32.mrb[89].mxu0 }
 0x1a7   :  { %v6501_v25 = vadd.f32 %v6500_v39, %v6499_v30  ;;  %v6502_v62 = vpop.f32.mrb[90].mxu1  ;;  %v6565_v50 = vadd.f32 %v6564_v37, %v6563_v19  ;;  %v6566_v42 = vpop.f32.mrb[90].mxu0 }
 0x1a8   :  { %v6503_v22 = vpop.f32.mrb[91].mxu1  ;;  %v6567_v28 = vpop.f32.mrb[91].mxu0 }
 0x1a9   :  { %v2366_v31 = vadd.f32 %v6501_v25, %v8916_v7  ;;  %v6504_v29 = vadd.f32 %v6503_v22, %v6502_v62  ;;  %v6568_v38 = vadd.f32 %v6567_v28, %v6566_v42 }
 0x1ab   :  { %v2369_v51 = vadd.f32 %v6504_v29, %v8918_v9  ;;  %v8967_v34 = vadd.f32 %v6565_v50, %v2366_v31 }
 0x1ad   :  { %v8969_v56 = vadd.f32 %v6568_v38, %v2369_v51  ;;  %v6505_v35 = vpop.f32.mrb[92].mxu1  ;;  %v6569_v45 = vpop.f32.mrb[92].mxu0 }
 0x1ae   :  { %v6506_v59 = vpop.f32.mrb[93].mxu1  ;;  %v6570_v0 = vpop.f32.mrb[93].mxu0 }
 0x1af   :  { %v6507_v8 = vadd.f32 %v6506_v59, %v6505_v35  ;;  %v6508_v44 = vpop.f32.mrb[94].mxu1  ;;  %v6571_v1 = vadd.f32 %v6570_v0, %v6569_v45  ;;  %v6572_v53 = vpop.f32.mrb[94].mxu0 }
 0x1b0   :  { %v6509_v49 = vpop.f32.mrb[95].mxu1  ;;  %v6573_v14 = vpop.f32.mrb[95].mxu0 }
 0x1b1   :  { %v2374_v7 = vadd.f32 %v6507_v8, %v8922_v26  ;;  %v6510_v58 = vadd.f32 %v6509_v49, %v6508_v44  ;;  %v6574_v54 = vadd.f32 %v6573_v14, %v6572_v53 }
 0x1b3   :  { %v2377_v9 = vadd.f32 %v6510_v58, %v8924_v27  ;;  %v8973_v52 = vadd.f32 %v6571_v1, %v2374_v7 }
 0x1b5   :  { %v8975_v24 = vadd.f32 %v6574_v54, %v2377_v9  ;;  %v6511_v55 = vpop.f32.mrb[96].mxu1  ;;  %v6575_v61 = vpop.f32.mrb[96].mxu0 }
 0x1b6   :  { %v6512_v12 = vpop.f32.mrb[97].mxu1  ;;  %v6576_v57 = vpop.f32.mrb[97].mxu0 }
 0x1b7   :  { %v6513_v63 = vadd.f32 %v6512_v12, %v6511_v55  ;;  %v6514_v46 = vpop.f32.mrb[98].mxu1  ;;  %v6577_v20 = vadd.f32 %v6576_v57, %v6575_v61  ;;  %v6578_v15 = vpop.f32.mrb[98].mxu0 }
 0x1b8   :  { %v6515_v4 = vpop.f32.mrb[99].mxu1  ;;  %v6579_v5 = vpop.f32.mrb[99].mxu0 }
 0x1b9   :  { %v2382_v26 = vadd.f32 %v6513_v63, %v8928_v47  ;;  %v6516_v18 = vadd.f32 %v6515_v4, %v6514_v46  ;;  %v6580_v6 = vadd.f32 %v6579_v5, %v6578_v15 }
 0x1bb   :  { %v2385_v27 = vadd.f32 %v6516_v18, %v8930_v48  ;;  %v8979_v10 = vadd.f32 %v6577_v20, %v2382_v26 }
 0x1bd   :  { %v8981_v32 = vadd.f32 %v6580_v6, %v2385_v27  ;;  %v6517_v11 = vpop.f32.mrb[100].mxu1  ;;  %v6581_v13 = vpop.f32.mrb[100].mxu0 }
 0x1be   :  { %v6518_v16 = vpop.f32.mrb[101].mxu1  ;;  %v6582_v30 = vpop.f32.mrb[101].mxu0 }
 0x1bf   :  { %v6519_v19 = vadd.f32 %v6518_v16, %v6517_v11  ;;  %v6520_v39 = vpop.f32.mrb[102].mxu1  ;;  %v6583_v37 = vadd.f32 %v6582_v30, %v6581_v13  ;;  %v6584_v47 = vpop.f32.mrb[102].mxu0  ;;  %v9007_v13 = vld [vmem:[%s9860_s2] ss:$0 sm:$0xff] }
 0x1c0   :  { %v6521_v25 = vpop.f32.mrb[103].mxu1  ;;  %v6585_v62 = vpop.f32.mrb[103].mxu0 }
 0x1c1   :  { %v2390_v48 = vadd.f32 %v6519_v19, %v8934_v2  ;;  %v6522_v50 = vadd.f32 %v6521_v25, %v6520_v39  ;;  %v6586_v42 = vadd.f32 %v6585_v62, %v6584_v47 }
 0x1c3   :  { %v2393_v22 = vadd.f32 %v6522_v50, %v8936_v3  ;;  %v8988_v28 = vadd.f32 %v6583_v37, %v2390_v48 }
 0x1c5   :  { %v8990_v31 = vadd.f32 %v6586_v42, %v2393_v22  ;;  %v6523_v29 = vpop.f32.mrb[104].mxu1  ;;  %v6587_v38 = vpop.f32.mrb[104].mxu0 }
 0x1c6   :  { %v6524_v51 = vpop.f32.mrb[105].mxu1  ;;  %v6588_v35 = vpop.f32.mrb[105].mxu0 }
 0x1c7   :  { %v6525_v45 = vadd.f32 %v6524_v51, %v6523_v29  ;;  %v6526_v59 = vpop.f32.mrb[106].mxu1  ;;  %v6589_v0 = vadd.f32 %v6588_v35, %v6587_v38  ;;  %v6590_v8 = vpop.f32.mrb[106].mxu0 }
 0x1c8   :  { %v6527_v44 = vpop.f32.mrb[107].mxu1  ;;  %v6591_v1 = vpop.f32.mrb[107].mxu0 }
 0x1c9   :  { %v2398_v2 = vadd.f32 %v6525_v45, %v8940_v21  ;;  %v6528_v53 = vadd.f32 %v6527_v44, %v6526_v59  ;;  %v6592_v49 = vadd.f32 %v6591_v1, %v6590_v8 }
 0x1cb   :  { %v2401_v3 = vadd.f32 %v6528_v53, %v8942_v23  ;;  %v8994_v14 = vadd.f32 %v6589_v0, %v2398_v2 }
 0x1cd   :  { %v8996_v7 = vadd.f32 %v6592_v49, %v2401_v3  ;;  %v6529_v58 = vpop.f32.mrb[108].mxu1  ;;  %v6593_v54 = vpop.f32.mrb[108].mxu0 }
 0x1ce   :  { %v6530_v9 = vpop.f32.mrb[109].mxu1  ;;  %v6594_v55 = vpop.f32.mrb[109].mxu0 }
 0x1cf   :  { %v6531_v61 = vadd.f32 %v6530_v9, %v6529_v58  ;;  %v6532_v12 = vpop.f32.mrb[110].mxu1  ;;  %v6595_v57 = vadd.f32 %v6594_v55, %v6593_v54  ;;  %v6596_v63 = vpop.f32.mrb[110].mxu0 }
 0x1d0   :  { %v6533_v46 = vpop.f32.mrb[111].mxu1  ;;  %v6597_v20 = vpop.f32.mrb[111].mxu0 }
 0x1d1   :  { %v2406_v21 = vadd.f32 %v6531_v61, %v8946_v40  ;;  %v6534_v15 = vadd.f32 %v6533_v46, %v6532_v12  ;;  %v6598_v4 = vadd.f32 %v6597_v20, %v6596_v63 }
 0x1d3   :  { %v2409_v23 = vadd.f32 %v6534_v15, %v8948_v43  ;;  %v9000_v5 = vadd.f32 %v6595_v57, %v2406_v21  ;;  %v9013_v43 = vld [vmem:[%s9861_s3] ss:$0 sm:$0xff] }
 0x1d5   :  { %v9002_v26 = vadd.f32 %v6598_v4, %v2409_v23  ;;  %v6615_v18 = vpop.f32.mrb[112].mxu1 }
 0x1d6   :  { %v6616_v6 = vpop.f32.mrb[113].mxu1 }
 0x1d7   :  { %v6617_v27 = vadd.f32 %v6616_v6, %v6615_v18  ;;  %v6618_v11 = vpop.f32.mrb[114].mxu1 }
 0x1d8   :  { %v6619_v33 = vpop.f32.mrb[115].mxu1 }
 0x1d9   :  { %v2544_v40 = vadd.f32 %v6617_v27, %v8952_v41  ;;  %v6620_v16 = vadd.f32 %v6619_v33, %v6618_v11 }
 0x1db   :  { %v2613_v30 = vmul.f32 %v9007_v13, %v2544_v40  ;;  %v2547_v19 = vadd.f32 %v6620_v16, %v8954_v60 }
 0x1dd   :  { %v2636_v39 = vadd.f32 %v9013_v43, %v2613_v30  ;;  %v2614_v37 = vmul.f32 %v9007_v13, %v2547_v19  ;;  %v6621_v47 = vpop.f32.mrb[116].mxu1 }
 0x1de   :  { %v6622_v25 = vpop.f32.mrb[117].mxu1 }
 0x1df   :  { %v2668_v62 = vmul.f32 0.1, %v2636_v39  ;;  %v2637_v48 = vadd.f32 %v9013_v43, %v2614_v37  ;;  %v6623_v41 = vadd.f32 %v6622_v25, %v6621_v47  ;;  %v6624_v50 = vpop.f32.mrb[118].mxu1  ;;  %vm2652_vm0 = vcmp.gt.f32.partialorder %v2636_v39, 0.0 }
 0x1e0   :  { %v6625_v42 = vpop.f32.mrb[119].mxu1 }
 0x1e1   :  { %vm2653_vm1 = vcmp.gt.f32.partialorder %v2637_v48, 0.0  ;;  %v2669_v22 = vmul.f32 0.1, %v2637_v48  ;;  %v2552_v29 = vadd.f32 %v6623_v41, %v8961_v17  ;;  %v6626_v38 = vadd.f32 %v6625_v42, %v6624_v50 }
 0x1e2   :  { %v2684_v51 = vsel %vm2652_vm0, %v2636_v39, %v2668_v62 }
 0x1e3   :  { %v2685_v60 = vsel %vm2653_vm1, %v2637_v48, %v2669_v22  ;;  %v2615_v35 = vmul.f32 %v9007_v13, %v2552_v29  ;;  %v2555_v59 = vadd.f32 %v6626_v38, %v8963_v36 }
 0x1e4   :  { %v9022_v45 = vpack.c.bf16 %v2685_v60, %v2684_v51 }
 0x1e5   :  { %v2638_v0 = vadd.f32 %v9013_v43, %v2615_v35  ;;  %v6627_v8 = vpop.f32.mrb[120].mxu1  ;;  %v2616_v44 = vmul.f32 %v9007_v13, %v2555_v59 }
 0x1e6   :  { %v6628_v1 = vpop.f32.mrb[121].mxu1  ;;  %6983 = vmatprep.subr.bf16.mxu0 %v9022_v45  ;;  %7003 = vmatprep.subr.bf16.mxu1 %v9022_v45 }
 0x1e7   :  { %v6629_v17 = vadd.f32 %v6628_v1, %v6627_v8  ;;  %v6630_v2 = vpop.f32.mrb[122].mxu1  ;;  %6984 = vmatpush3.bf16.msra.mxu0 %v9022_v45  ;;  %7004 = vmatpush3.bf16.msra.mxu1 %v9022_v45  ;;  %v2670_v53 = vmul.f32 0.1, %v2638_v0  ;;  %v2639_v49 = vadd.f32 %v9013_v43, %v2616_v44  ;;  %vm2654_vm2 = vcmp.gt.f32.partialorder %v2638_v0, 0.0 }
 0x1e8   :  { %v6631_v36 = vpop.f32.mrb[123].mxu1 }
 0x1e9   :  { %v2560_v3 = vadd.f32 %v6629_v17, %v8967_v34  ;;  %v6632_v58 = vadd.f32 %v6631_v36, %v6630_v2  ;;  %vm2655_vm3 = vcmp.gt.f32.partialorder %v2639_v49, 0.0  ;;  %v2671_v54 = vmul.f32 0.1, %v2639_v49 }
 0x1ea   :  { %v2686_v61 = vsel %vm2654_vm2, %v2638_v0, %v2670_v53 }
 0x1eb   :  { %v2617_v9 = vmul.f32 %v9007_v13, %v2560_v3  ;;  %v2563_v55 = vadd.f32 %v6632_v58, %v8969_v56  ;;  %v2687_v12 = vsel %vm2655_vm3, %v2639_v49, %v2671_v54 }
 0x1ec   :  { %v9035_v57 = vpack.c.bf16 %v2687_v12, %v2686_v61 }
 0x1ed   :  { %v2640_v63 = vadd.f32 %v9013_v43, %v2617_v9  ;;  %v2618_v46 = vmul.f32 %v9007_v13, %v2563_v55  ;;  %v6633_v20 = vpop.f32.mrb[124].mxu1 }
 0x1ee   :  { %v6634_v21 = vpop.f32.mrb[125].mxu1  ;;  %6985 = vmatprep.subr.bf16.mxu0 %v9035_v57  ;;  %7005 = vmatprep.subr.bf16.mxu1 %v9035_v57 }
 0x1ef   :  { %v2672_v15 = vmul.f32 0.1, %v2640_v63  ;;  %v2641_v34 = vadd.f32 %v9013_v43, %v2618_v46  ;;  %v6635_v4 = vadd.f32 %v6634_v21, %v6633_v20  ;;  %v6636_v23 = vpop.f32.mrb[126].mxu1  ;;  %vm2656_vm4 = vcmp.gt.f32.partialorder %v2640_v63, 0.0  ;;  %6986 = vmatpush3.bf16.msra.mxu0 %v9035_v57  ;;  %7006 = vmatpush3.bf16.msra.mxu1 %v9035_v57 }
 0x1f0   :  { %v6637_v56 = vpop.f32.mrb[127].mxu1 }
 0x1f1   :  { %vm2657_vm5 = vcmp.gt.f32.partialorder %v2641_v34, 0.0  ;;  %v2673_v18 = vmul.f32 0.1, %v2641_v34  ;;  %v2568_v6 = vadd.f32 %v6635_v4, %v8973_v52  ;;  %v6638_v27 = vadd.f32 %v6637_v56, %v6636_v23 }
 0x1f2   :  { %v2688_v11 = vsel %vm2656_vm4, %v2640_v63, %v2672_v15  ;;  %vm5701_vm4 = vcmask 0  }
 0x1f3   :  { %v2689_v33 = vsel %vm2657_vm5, %v2641_v34, %v2673_v18  ;;  %v2619_v40 = vmul.f32 %v9007_v13, %v2568_v6  ;;  %v2571_v30 = vadd.f32 %v6638_v27, %v8975_v24 }
 0x1f4   :  { %v9046_v16 = vpack.c.bf16 %v2689_v33, %v2688_v11 }
 0x1f5   :  { %v2642_v19 = vadd.f32 %v9013_v43, %v2619_v40  ;;  %v6639_v39 = vpop.f32.mrb[128].mxu1  ;;  %v2620_v37 = vmul.f32 %v9007_v13, %v2571_v30 }
 0x1f6   :  { %v6640_v47 = vpop.f32.mrb[129].mxu1  ;;  %6987 = vmatprep.subr.bf16.mxu0 %v9046_v16  ;;  %7007 = vmatprep.subr.bf16.mxu1 %v9046_v16 }
 0x1f7   :  { %v6641_v52 = vadd.f32 %v6640_v47, %v6639_v39  ;;  %v6642_v25 = vpop.f32.mrb[130].mxu1  ;;  %6988 = vmatpush3.bf16.msra.mxu0 %v9046_v16  ;;  %7008 = vmatpush3.bf16.msra.mxu1 %v9046_v16  ;;  %v2674_v62 = vmul.f32 0.1, %v2642_v19  ;;  %v2643_v48 = vadd.f32 %v9013_v43, %v2620_v37  ;;  %vm2658_vm6 = vcmp.gt.f32.partialorder %v2642_v19, 0.0 }
 0x1f8   :  { %v6643_v24 = vpop.f32.mrb[131].mxu1 }
 0x1f9   :  { %v2576_v41 = vadd.f32 %v6641_v52, %v8979_v10  ;;  %v6644_v50 = vadd.f32 %v6643_v24, %v6642_v25  ;;  %vm2659_vm7 = vcmp.gt.f32.partialorder %v2643_v48, 0.0  ;;  %v2675_v42 = vmul.f32 0.1, %v2643_v48 }
 0x1fa   :  { %v2690_v38 = vsel %vm2658_vm6, %v2642_v19, %v2674_v62 }
 0x1fb   :  { %v2621_v22 = vmul.f32 %v9007_v13, %v2576_v41  ;;  %v2579_v29 = vadd.f32 %v6644_v50, %v8981_v32  ;;  %v2691_v51 = vsel %vm2659_vm7, %v2643_v48, %v2675_v42 }
 0x1fc   :  { %v9059_v60 = vpack.c.bf16 %v2691_v51, %v2690_v38 }
 0x1fd   :  { %v2644_v35 = vadd.f32 %v9013_v43, %v2621_v22  ;;  %v2622_v59 = vmul.f32 %v9007_v13, %v2579_v29  ;;  %v6645_v0 = vpop.f32.mrb[132].mxu1 }
 0x1fe   :  { %v6646_v8 = vpop.f32.mrb[133].mxu1  ;;  %6989 = vmatprep.subr.bf16.mxu0 %v9059_v60  ;;  %7009 = vmatprep.subr.bf16.mxu1 %v9059_v60 }
 0x1ff   :  { %v2676_v44 = vmul.f32 0.1, %v2644_v35  ;;  %v2645_v10 = vadd.f32 %v9013_v43, %v2622_v59  ;;  %v6647_v1 = vadd.f32 %v6646_v8, %v6645_v0  ;;  %v6648_v17 = vpop.f32.mrb[134].mxu1  ;;  %vm2660_vm8 = vcmp.gt.f32.partialorder %v2644_v35, 0.0  ;;  %6990 = vmatpush3.bf16.msra.mxu0 %v9059_v60  ;;  %7010 = vmatpush3.bf16.msra.mxu1 %v9059_v60  ;;  %v7834_v59 = vld [vmem:[%s9859_s4 + $0x8] sm:$0xff]   ;;  %v7837_v8 = vld [vmem:[%s9859_s4 + $0x30] sm:$0xff]  }
 0x200   :  { %v6649_v32 = vpop.f32.mrb[135].mxu1  ;;  %v7836_v0 = vld [vmem:[%s9859_s4 + $0x28] sm:$0xff]  }
 0x201   :  { %vm2661_vm9 = vcmp.gt.f32.partialorder %v2645_v10, 0.0  ;;  %v2677_v2 = vmul.f32 0.1, %v2645_v10  ;;  %v2584_v53 = vadd.f32 %v6647_v1, %v8988_v28  ;;  %v6650_v49 = vadd.f32 %v6649_v32, %v6648_v17  ;;  %v7846_v1 = vld [vmem:[%s9862_s5 + $0x48] sm:$0xff]   ;;  %v7839_v17 = vld [vmem:[%s9859_s4 + $0x40] sm:$0xff]   ;;  %v7848_v32 = vld [vmem:[%s9862_s5 + $0x50] sm:$0xff]  }
 0x202   :  { %v2692_v36 = vsel %vm2660_vm8, %v2644_v35, %v2676_v44  ;;  %v7845_v44 = vld [vmem:[%s9862_s5 + $0x40] sm:$0xff]  }
 0x203   :  { %v2693_v3 = vsel %vm2661_vm9, %v2645_v10, %v2677_v2  ;;  %v2623_v58 = vmul.f32 %v9007_v13, %v2584_v53  ;;  %v2587_v9 = vadd.f32 %v6650_v49, %v8990_v31  ;;  %v7838_v10 = vld [vmem:[%s9859_s4 + $0x38] sm:$0xff]   ;;  %v7851_v53 = vld [vmem:[%s9862_s5 + $0x60] sm:$0xff]   ;;  %v7852_v49 = vld [vmem:[%s9862_s5 + $0x68] sm:$0xff]  }
 0x204   :  { %v9070_v54 = vpack.c.bf16 %v2693_v3, %v2692_v36  ;;  %v7850_v2 = vld [vmem:[%s9862_s5 + $0x58] sm:$0xff]   ;;  %v7853_v36 = vld [vmem:[%s9862_s5 + $0x70] sm:$0xff]  }
 0x205   :  { %v2646_v55 = vadd.f32 %v9013_v43, %v2623_v58  ;;  %v6651_v61 = vpop.f32.mrb[136].mxu1  ;;  %v2624_v12 = vmul.f32 %v9007_v13, %v2587_v9  ;;  %v7854_v3 = vld [vmem:[%s9862_s5 + $0x78] sm:$0xff]   ;;  %v9203_v58 = vld [vmem:[%s9862_s5] sm:$0xff]   ;;  %v7840_v9 = vld [vmem:[%s9859_s4 + $0x48] sm:$0xff]  }
 0x206   :  { %v6652_v63 = vpop.f32.mrb[137].mxu1  ;;  %6991 = vmatprep.subr.bf16.mxu0 %v9070_v54  ;;  %7011 = vmatprep.subr.bf16.mxu1 %v9070_v54 }
 0x207   :  { %v6653_v28 = vadd.f32 %v6652_v63, %v6651_v61  ;;  %v6654_v46 = vpop.f32.mrb[138].mxu1  ;;  %6992 = vmatpush3.bf16.msra.mxu0 %v9070_v54  ;;  %7012 = vmatpush3.bf16.msra.mxu1 %v9070_v54  ;;  %v2678_v20 = vmul.f32 0.1, %v2646_v55  ;;  %v2647_v21 = vadd.f32 %v9013_v43, %v2624_v12  ;;  %vm2662_vm10 = vcmp.gt.f32.partialorder %v2646_v55, 0.0  ;;  %v7842_v61 = vld [vmem:[%s9859_s4 + $0x58] sm:$0xff]   ;;  %v7843_v12 = vld [vmem:[%s9859_s4 + $0x60] sm:$0xff]  }
 0x208   :  { %v6655_v31 = vpop.f32.mrb[139].mxu1  ;;  %v7844_v63 = vld [vmem:[%s9859_s4 + $0x68] sm:$0xff]  }
 0x209   :  { %v2592_v15 = vadd.f32 %v6653_v28, %v8994_v14  ;;  %v6656_v34 = vadd.f32 %v6655_v31, %v6654_v46  ;;  %vm2663_vm11 = vcmp.gt.f32.partialorder %v2647_v21, 0.0  ;;  %v2679_v4 = vmul.f32 0.1, %v2647_v21  ;;  %v7847_v28 = vld [vmem:[%s9859_s4 + $0x70] sm:$0xff]   ;;  %v7849_v46 = vld [vmem:[%s9859_s4 + $0x78] sm:$0xff]  }
 0x20a   :  { %v2694_v18 = vsel %vm2662_vm10, %v2646_v55, %v2678_v20  ;;  %v7841_v55 = vld [vmem:[%s9859_s4 + $0x50] sm:$0xff]   ;;  %v7857_v20 = vld [vmem:[%s9859_s4 + $0x80] sm:$0xff]  }
 0x20b   :  { %v2625_v23 = vmul.f32 %v9007_v13, %v2592_v15  ;;  %v2595_v56 = vadd.f32 %v6656_v34, %v8996_v7  ;;  %v2695_v6 = vsel %vm2663_vm11, %v2647_v21, %v2679_v4 }
 0x20c   :  { %v9083_v27 = vpack.c.bf16 %v2695_v6, %v2694_v18 }
 0x20d   :  { %v2648_v11 = vadd.f32 %v9013_v43, %v2625_v23  ;;  %v2626_v33 = vmul.f32 %v9007_v13, %v2595_v56  ;;  %v6657_v40 = vpop.f32.mrb[140].mxu1 }
 0x20e   :  { %v6658_v30 = vpop.f32.mrb[141].mxu1  ;;  %6993 = vmatprep.subr.bf16.mxu0 %v9083_v27  ;;  %7013 = vmatprep.subr.bf16.mxu1 %v9083_v27 }
 0x20f   :  { %v2680_v19 = vmul.f32 0.1, %v2648_v11  ;;  %v2649_v14 = vadd.f32 %v9013_v43, %v2626_v33  ;;  %v6659_v39 = vadd.f32 %v6658_v30, %v6657_v40  ;;  %v6660_v37 = vpop.f32.mrb[142].mxu1  ;;  %vm2664_vm12 = vcmp.gt.f32.partialorder %v2648_v11, 0.0  ;;  %6994 = vmatpush3.bf16.msra.mxu0 %v9083_v27  ;;  %7014 = vmatpush3.bf16.msra.mxu1 %v9083_v27  ;;  %v7856_v30 = vld [vmem:[%s9862_s5 + $0x8] sm:$0xff]  }
 0x210   :  { %v6661_v7 = vpop.f32.mrb[143].mxu1 }
 0x211   :  { %vm2665_vm13 = vcmp.gt.f32.partialorder %v2649_v14, 0.0  ;;  %v2681_v47 = vmul.f32 0.1, %v2649_v14  ;;  %v2600_v52 = vadd.f32 %v6659_v39, %v9000_v5  ;;  %v6662_v25 = vadd.f32 %v6661_v7, %v6660_v37  ;;  %v7867_v39 = vld [vmem:[%s9859_s4 + $0x90] sm:$0xff]   ;;  %v7860_v37 = vld [vmem:[%s9862_s5 + $0x18] sm:$0xff]   ;;  %v7861_v7 = vld [vmem:[%s9862_s5 + $0x20] sm:$0xff]  }
 0x212   :  { %v2696_v62 = vsel %vm2664_vm12, %v2648_v11, %v2680_v19  ;;  %v7858_v19 = vld [vmem:[%s9862_s5 + $0x10] sm:$0xff]  }
 0x213   :  { %v2697_v48 = vsel %vm2665_vm13, %v2649_v14, %v2681_v47  ;;  %v2627_v24 = vmul.f32 %v9007_v13, %v2600_v52  ;;  %v2603_v50 = vadd.f32 %v6662_v25, %v9002_v26  ;;  %v7859_v14 = vld [vmem:[%s9859_s4 + $0x88] sm:$0xff]   ;;  %v7863_v52 = vld [vmem:[%s9862_s5 + $0x30] sm:$0xff]   ;;  %v7864_v25 = vld [vmem:[%s9862_s5 + $0x38] sm:$0xff]  }
 0x214   :  { %v9094_v41 = vpack.c.bf16 %v2697_v48, %v2696_v62  ;;  %v7862_v47 = vld [vmem:[%s9862_s5 + $0x28] sm:$0xff]   ;;  %v7865_v48 = vld [vmem:[%s9862_s5 + $0x80] sm:$0xff]  }
 0x215   :  { %v2650_v42 = vadd.f32 %v9013_v43, %v2627_v24  ;;  %v2628_v22 = vmul.f32 %v9007_v13, %v2603_v50  ;;  %v7832_v13 = vld [vmem:[%s9859_s4 + $0x18] sm:$0xff]  }
 0x216   :  { %6995 = vmatprep.subr.bf16.mxu0 %v9094_v41  ;;  %7015 = vmatprep.subr.bf16.mxu1 %v9094_v41 }
 0x217   :  { %6996 = vmatpush3.bf16.msra.mxu0 %v9094_v41  ;;  %7016 = vmatpush3.bf16.msra.mxu1 %v9094_v41  ;;  %v2682_v5 = vmul.f32 0.1, %v2650_v42  ;;  %v2651_v29 = vadd.f32 %v9013_v43, %v2628_v22  ;;  %vm2666_vm14 = vcmp.gt.f32.partialorder %v2650_v42, 0.0  ;;  %v7835_v43 = vld [vmem:[%s9859_s4 + $0x20] sm:$0xff]  }
 0x219   :  { %vm2667_vm15 = vcmp.gt.f32.partialorder %v2651_v29, 0.0  ;;  %v2683_v38 = vmul.f32 0.1, %v2651_v29  ;;  %v2698_v51 = vsel %vm2666_vm14, %v2650_v42, %v2682_v5 }
 0x21b   :  { %v2699_v26 = vsel %vm2667_vm15, %v2651_v29, %v2683_v38  ;;  %v7866_v29 = vld [vmem:[%s9862_s5 + $0x88] sm:$0xff]   ;;  %v7868_v38 = vld [vmem:[%s9862_s5 + $0x90] sm:$0xff]  }
 0x21c   :  { %v9104_v35 = vpack.c.bf16 %v2699_v26, %v2698_v51  ;;  %v7869_v51 = vld [vmem:[%s9859_s4 + $0x98] sm:$0xff]   ;;  %v7877_v26 = vld [vmem:[%s9859_s4 + $0xa0] sm:$0xff]  }
 0x21e   :  { %6997 = vmatprep.subr.bf16.mxu0 %v9104_v35  ;;  %7017 = vmatprep.subr.bf16.mxu1 %v9104_v35 }
 0x21f   :  { %6998 = vmatpush3.bf16.msra.mxu0 %v9104_v35  ;;  %7018 = vmatpush3.bf16.msra.mxu1 %v9104_v35 }
 0x220   :  { %7063 = vmatprep.subr.bf16.mxu1 %v9022_v45  ;;  %7023 = vmatprep.subr.bf16.mxu0 %v7845_v44 }
 0x222   :  { %7020 = vmatmul.mubr.bf16.vlgmr.msra.gmra.mrb[144].mxu1 %v7832_v13  ;;  %7000 = vmatmul.mubr.bf16.vlgmr.msra.gmra.mrb[112].mxu0 %v7834_v59  ;;  %v7870_v13 = vld [vmem:[%s9862_s5 + $0x98] sm:$0xff]   ;;  %v7871_v59 = vld [vmem:[%s9862_s5 + $0xa0] sm:$0xff]  }
 0x223   :  { %7064 = vmatpush3.bf16.msra.mxu1 %v9022_v45  ;;  %7079 = vmatprep.mubr.bf16.mxu1 %v7835_v43  ;;  %v7872_v43 = vld [vmem:[%s9862_s5 + $0xa8] sm:$0xff]  }
 0x224   :  { %7065 = vmatprep.subr.bf16.mxu1 %v9035_v57  ;;  %7024 = vmatpush3.bf16.msra.mxu0 %v7845_v44 }
 0x225   :  { %7025 = vmatprep.subr.bf16.mxu0 %v7846_v1 }
 0x227   :  { %7066 = vmatpush3.bf16.msra.mxu1 %v9035_v57 }
 0x228   :  { %7067 = vmatprep.subr.bf16.mxu1 %v9046_v16  ;;  %7026 = vmatpush3.bf16.msra.mxu0 %v7846_v1 }
 0x229   :  { %7027 = vmatprep.subr.bf16.mxu0 %v7848_v32 }
 0x22b   :  { %7068 = vmatpush3.bf16.msra.mxu1 %v9046_v16 }
 0x22c   :  { %7069 = vmatprep.subr.bf16.mxu1 %v9059_v60  ;;  %7028 = vmatpush3.bf16.msra.mxu0 %v7848_v32 }
 0x22d   :  { %7029 = vmatprep.subr.bf16.mxu0 %v7850_v2 }
 0x22f   :  { %7070 = vmatpush3.bf16.msra.mxu1 %v9059_v60 }
 0x230   :  { %7071 = vmatprep.subr.bf16.mxu1 %v9070_v54  ;;  %7030 = vmatpush3.bf16.msra.mxu0 %v7850_v2 }
 0x231   :  { %7031 = vmatprep.subr.bf16.mxu0 %v7851_v53 }
 0x233   :  { %7072 = vmatpush3.bf16.msra.mxu1 %v9070_v54 }
 0x234   :  { %7073 = vmatprep.subr.bf16.mxu1 %v9083_v27  ;;  %7032 = vmatpush3.bf16.msra.mxu0 %v7851_v53 }
 0x235   :  { %7033 = vmatprep.subr.bf16.mxu0 %v7852_v49 }
 0x237   :  { %7074 = vmatpush3.bf16.msra.mxu1 %v9083_v27 }
 0x238   :  { %7075 = vmatprep.subr.bf16.mxu1 %v9094_v41  ;;  %7034 = vmatpush3.bf16.msra.mxu0 %v7852_v49  ;;  %v7876_v49 = vld [vmem:[%s9862_s5 + $0xc8] sm:$0xff]  }
 0x239   :  { %7035 = vmatprep.subr.bf16.mxu0 %v7853_v36 }
 0x23b   :  { %7076 = vmatpush3.bf16.msra.mxu1 %v9094_v41 }
 0x23c   :  { %7077 = vmatprep.subr.bf16.mxu1 %v9104_v35  ;;  %7036 = vmatpush3.bf16.msra.mxu0 %v7853_v36  ;;  %v7878_v36 = vld [vmem:[%s9862_s5 + $0xd0] sm:$0xff]  }
 0x23d   :  { %7037 = vmatprep.subr.bf16.mxu0 %v7854_v3 }
 0x23f   :  { %7078 = vmatpush3.bf16.msra.mxu1 %v9104_v35 }
 0x240   :  { %7103 = vmatprep.subr.bf16.mxu1 %v9022_v45  ;;  %7038 = vmatpush3.bf16.msra.mxu0 %v7854_v3  ;;  %v7879_v3 = vld [vmem:[%s9859_s4 + $0xa8] sm:$0xff]  }
 0x241   :  { %7043 = vmatprep.subr.bf16.mxu0 %v9203_v58 }
 0x242   :  { %7080 = vmatmul.mubr.bf16.vlgmr.msra.gmra.mrb[148].mxu1 %v7836_v0  ;;  %v7873_v0 = vld [vmem:[%s9862_s5 + $0xb0] sm:$0xff]  }
 0x243   :  { %7104 = vmatpush3.bf16.msra.mxu1 %v9022_v45  ;;  %7119 = vmatprep.mubr.bf16.mxu1 %v7837_v8  ;;  %v7874_v8 = vld [vmem:[%s9862_s5 + $0xb8] sm:$0xff]  }
 0x244   :  { %7105 = vmatprep.subr.bf16.mxu1 %v9035_v57 }
 0x247   :  { %7106 = vmatpush3.bf16.msra.mxu1 %v9035_v57 }
 0x248   :  { %7107 = vmatprep.subr.bf16.mxu1 %v9046_v16 }
 0x24b   :  { %7108 = vmatpush3.bf16.msra.mxu1 %v9046_v16 }
 0x24c   :  { %7109 = vmatprep.subr.bf16.mxu1 %v9059_v60 }
 0x24f   :  { %7110 = vmatpush3.bf16.msra.mxu1 %v9059_v60 }
 0x250   :  { %7111 = vmatprep.subr.bf16.mxu1 %v9070_v54 }
 0x253   :  { %7112 = vmatpush3.bf16.msra.mxu1 %v9070_v54 }
 0x254   :  { %7113 = vmatprep.subr.bf16.mxu1 %v9083_v27 }
 0x257   :  { %7114 = vmatpush3.bf16.msra.mxu1 %v9083_v27 }
 0x258   :  { %7115 = vmatprep.subr.bf16.mxu1 %v9094_v41 }
 0x25b   :  { %7116 = vmatpush3.bf16.msra.mxu1 %v9094_v41 }
 0x25c   :  { %7117 = vmatprep.subr.bf16.mxu1 %v9104_v35 }
 0x25f   :  { %7118 = vmatpush3.bf16.msra.mxu1 %v9104_v35 }
 0x260   :  { %7143 = vmatprep.subr.bf16.mxu1 %v9022_v45 }
 0x262   :  { %7120 = vmatmul.mubr.bf16.vlgmr.msra.gmra.mrb[152].mxu1 %v7838_v10  ;;  %v7875_v10 = vld [vmem:[%s9862_s5 + $0xc0] sm:$0xff]  }
 0x263   :  { %7144 = vmatpush3.bf16.msra.mxu1 %v9022_v45  ;;  %7159 = vmatprep.mubr.bf16.mxu1 %v7839_v17 }
 0x264   :  { %7145 = vmatprep.subr.bf16.mxu1 %v9035_v57 }
 0x267   :  { %7146 = vmatpush3.bf16.msra.mxu1 %v9035_v57 }
 0x268   :  { %7147 = vmatprep.subr.bf16.mxu1 %v9046_v16 }
 0x26b   :  { %7148 = vmatpush3.bf16.msra.mxu1 %v9046_v16 }
 0x26c   :  { %7149 = vmatprep.subr.bf16.mxu1 %v9059_v60 }
 0x26f   :  { %7150 = vmatpush3.bf16.msra.mxu1 %v9059_v60 }
 0x270   :  { %7151 = vmatprep.subr.bf16.mxu1 %v9070_v54 }
 0x273   :  { %7152 = vmatpush3.bf16.msra.mxu1 %v9070_v54 }
 0x274   :  { %7153 = vmatprep.subr.bf16.mxu1 %v9083_v27 }
 0x277   :  { %7154 = vmatpush3.bf16.msra.mxu1 %v9083_v27 }
 0x278   :  { %7155 = vmatprep.subr.bf16.mxu1 %v9094_v41 }
 0x27b   :  { %7156 = vmatpush3.bf16.msra.mxu1 %v9094_v41 }
 0x27c   :  { %7157 = vmatprep.subr.bf16.mxu1 %v9104_v35 }
 0x27f   :  { %7158 = vmatpush3.bf16.msra.mxu1 %v9104_v35 }
 0x280   :  { %7183 = vmatprep.subr.bf16.mxu1 %v9022_v45 }
 0x282   :  { %7160 = vmatmul.mubr.bf16.vlgmr.msra.gmra.mrb[156].mxu1 %v7840_v9  ;;  %v7880_v9 = vld [vmem:[%s9862_s5 + $0xd8] sm:$0xff]  }
 0x283   :  { %7184 = vmatpush3.bf16.msra.mxu1 %v9022_v45  ;;  %7199 = vmatprep.mubr.bf16.mxu1 %v7841_v55  ;;  %v7881_v55 = vld [vmem:[%s9862_s5 + $0xe0] sm:$0xff]  }
 0x284   :  { %7185 = vmatprep.subr.bf16.mxu1 %v9035_v57 }
 0x287   :  { %7186 = vmatpush3.bf16.msra.mxu1 %v9035_v57 }
 0x288   :  { %7187 = vmatprep.subr.bf16.mxu1 %v9046_v16 }
 0x28b   :  { %7188 = vmatpush3.bf16.msra.mxu1 %v9046_v16 }
 0x28c   :  { %7189 = vmatprep.subr.bf16.mxu1 %v9059_v60 }
 0x28f   :  { %7190 = vmatpush3.bf16.msra.mxu1 %v9059_v60 }
 0x290   :  { %7191 = vmatprep.subr.bf16.mxu1 %v9070_v54 }
 0x293   :  { %7192 = vmatpush3.bf16.msra.mxu1 %v9070_v54 }
 0x294   :  { %7193 = vmatprep.subr.bf16.mxu1 %v9083_v27 }
 0x297   :  { %7194 = vmatpush3.bf16.msra.mxu1 %v9083_v27 }
 0x298   :  { %7195 = vmatprep.subr.bf16.mxu1 %v9094_v41 }
 0x29b   :  { %7196 = vmatpush3.bf16.msra.mxu1 %v9094_v41 }
 0x29c   :  { %7197 = vmatprep.subr.bf16.mxu1 %v9104_v35 }
 0x29f   :  { %7198 = vmatpush3.bf16.msra.mxu1 %v9104_v35 }
 0x2a0   :  { %7223 = vmatprep.subr.bf16.mxu1 %v9022_v45 }
 0x2a2   :  { %7200 = vmatmul.mubr.bf16.vlgmr.msra.gmra.mrb[160].mxu1 %v7842_v61  ;;  %v7882_v61 = vld [vmem:[%s9862_s5 + $0xe8] sm:$0xff]  }
 0x2a3   :  { %7224 = vmatpush3.bf16.msra.mxu1 %v9022_v45  ;;  %7239 = vmatprep.mubr.bf16.mxu1 %v7843_v12  ;;  %v7883_v12 = vld [vmem:[%s9862_s5 + $0xf0] sm:$0xff]  }
 0x2a4   :  { %7225 = vmatprep.subr.bf16.mxu1 %v9035_v57 }
 0x2a7   :  { %7226 = vmatpush3.bf16.msra.mxu1 %v9035_v57 }
 0x2a8   :  { %7227 = vmatprep.subr.bf16.mxu1 %v9046_v16 }
 0x2ab   :  { %7228 = vmatpush3.bf16.msra.mxu1 %v9046_v16 }
 0x2ac   :  { %7229 = vmatprep.subr.bf16.mxu1 %v9059_v60 }
 0x2af   :  { %7230 = vmatpush3.bf16.msra.mxu1 %v9059_v60 }
 0x2b0   :  { %7231 = vmatprep.subr.bf16.mxu1 %v9070_v54 }
 0x2b3   :  { %7232 = vmatpush3.bf16.msra.mxu1 %v9070_v54 }
 0x2b4   :  { %7233 = vmatprep.subr.bf16.mxu1 %v9083_v27 }
 0x2b7   :  { %7234 = vmatpush3.bf16.msra.mxu1 %v9083_v27 }
 0x2b8   :  { %7235 = vmatprep.subr.bf16.mxu1 %v9094_v41 }
 0x2bb   :  { %7236 = vmatpush3.bf16.msra.mxu1 %v9094_v41 }
 0x2bc   :  { %7237 = vmatprep.subr.bf16.mxu1 %v9104_v35 }
 0x2bf   :  { %7238 = vmatpush3.bf16.msra.mxu1 %v9104_v35 }
 0x2c0   :  { %7263 = vmatprep.subr.bf16.mxu1 %v9022_v45 }
 0x2c2   :  { %7240 = vmatmul.mubr.bf16.vlgmr.msra.gmra.mrb[164].mxu1 %v7844_v63  ;;  %v7884_v63 = vld [vmem:[%s9862_s5 + $0xf8] sm:$0xff]  }
 0x2c3   :  { %7264 = vmatpush3.bf16.msra.mxu1 %v9022_v45  ;;  %7279 = vmatprep.mubr.bf16.mxu1 %v7847_v28 }
 0x2c4   :  { %7265 = vmatprep.subr.bf16.mxu1 %v9035_v57 }
 0x2c7   :  { %7266 = vmatpush3.bf16.msra.mxu1 %v9035_v57 }
 0x2c8   :  { %7267 = vmatprep.subr.bf16.mxu1 %v9046_v16 }
 0x2cb   :  { %7268 = vmatpush3.bf16.msra.mxu1 %v9046_v16 }
 0x2cc   :  { %7269 = vmatprep.subr.bf16.mxu1 %v9059_v60 }
 0x2cf   :  { %7270 = vmatpush3.bf16.msra.mxu1 %v9059_v60 }
 0x2d0   :  { %7271 = vmatprep.subr.bf16.mxu1 %v9070_v54 }
 0x2d3   :  { %7272 = vmatpush3.bf16.msra.mxu1 %v9070_v54 }
 0x2d4   :  { %7273 = vmatprep.subr.bf16.mxu1 %v9083_v27 }
 0x2d7   :  { %7274 = vmatpush3.bf16.msra.mxu1 %v9083_v27 }
 0x2d8   :  { %7275 = vmatprep.subr.bf16.mxu1 %v9094_v41 }
 0x2db   :  { %7276 = vmatpush3.bf16.msra.mxu1 %v9094_v41 }
 0x2dc   :  { %7277 = vmatprep.subr.bf16.mxu1 %v9104_v35 }
 0x2df   :  { %7278 = vmatpush3.bf16.msra.mxu1 %v9104_v35 }
 0x2e0   :  { %7303 = vmatprep.subr.bf16.mxu1 %v9022_v45 }
 0x2e2   :  { %7280 = vmatmul.mubr.bf16.vlgmr.msra.gmra.mrb[168].mxu1 %v7849_v46  ;;  %v7885_v46 = vld [vmem:[%s9862_s5 + $0x100] sm:$0xff]  }
 0x2e3   :  { %7304 = vmatpush3.bf16.msra.mxu1 %v9022_v45  ;;  %7319 = vmatprep.mubr.bf16.mxu1 %v7857_v20 }
 0x2e4   :  { %7305 = vmatprep.subr.bf16.mxu1 %v9035_v57 }
 0x2e7   :  { %7306 = vmatpush3.bf16.msra.mxu1 %v9035_v57 }
 0x2e8   :  { %7307 = vmatprep.subr.bf16.mxu1 %v9046_v16 }
 0x2eb   :  { %7308 = vmatpush3.bf16.msra.mxu1 %v9046_v16 }
 0x2ec   :  { %7309 = vmatprep.subr.bf16.mxu1 %v9059_v60 }
 0x2ef   :  { %7310 = vmatpush3.bf16.msra.mxu1 %v9059_v60 }
 0x2f0   :  { %7311 = vmatprep.subr.bf16.mxu1 %v9070_v54 }
 0x2f3   :  { %7312 = vmatpush3.bf16.msra.mxu1 %v9070_v54 }
 0x2f4   :  { %7313 = vmatprep.subr.bf16.mxu1 %v9083_v27 }
 0x2f5   :  { %v7021_v21 = vpop.f32.mrb[144].mxu1  ;;  %v9292_v31 = vpop.f32.mrb[112].mxu0 }
 0x2f6   :  { %v2841_v15 = vpop.f32.mrb[145].mxu1  ;;  %v2758_v34 = vpop.f32.mrb[113].mxu0 }
 0x2f7   :  { %v7022_v4 = vpop.f32.mrb[146].mxu1  ;;  %7314 = vmatpush3.bf16.msra.mxu1 %v9083_v27  ;;  %v9295_v23 = vpop.f32.mrb[114].mxu0 }
 0x2f8   :  { %v2873_v56 = vpack.c.bf16 %v7022_v4, %v7021_v21  ;;  %v2844_v18 = vpop.f32.mrb[147].mxu1  ;;  %7315 = vmatprep.subr.bf16.mxu1 %v9094_v41  ;;  %v2790_v6 = vpack.c.bf16 %v9295_v23, %v9292_v31  ;;  %v2761_v11 = vpop.f32.mrb[115].mxu0  ;;  %v7886_v4 = vld [vmem:[%s9862_s5 + $0x108] sm:$0xff]   ;;  %v7888_v23 = vld [vmem:[%s9862_s5 + $0x110] sm:$0xff]  }
 0x2f9   :  { %v2872_v33 = vpack.c.bf16 %v2844_v18, %v2841_v15  ;;  %v2789_v40 = vpack.c.bf16 %v2761_v11, %v2758_v34  ;;  %v7897_v18 = vld [vmem:[%s9859_s4 + $0xc0] sm:$0xff]  }
 0x2fa   :  { %v7891_v11 = vld [vmem:[%s9862_s5 + $0x120] sm:$0xff]  }
 0x2fb   :  { %7039 = vmatprep.mubr.bf16.mxu0 %v2872_v33  ;;  %7316 = vmatpush3.bf16.msra.mxu1 %v9094_v41  ;;  %v7892_v33 = vld [vmem:[%s9862_s5 + $0x128] sm:$0xff]  }
 0x2fc   :  { %7040 = vmatmul.mubr.bf16.vlgmr.msra.gmra.mrb[116].mxu0 %v2873_v56  ;;  %7317 = vmatprep.subr.bf16.mxu1 %v9104_v35  ;;  %v7889_v56 = vld [vmem:[%s9859_s4 + $0xb8] sm:$0xff]  }
 0x2fd   :  { %7044 = vmatpush3.bf16.msra.mxu0 %v9203_v58  ;;  %7059 = vmatprep.mubr.bf16.mxu0 %v2789_v40  ;;  %v7887_v58 = vld [vmem:[%s9859_s4 + $0xb0] sm:$0xff]  }
 0x2fe   :  { %7045 = vmatprep.subr.bf16.mxu0 %v7856_v30  ;;  %v7893_v40 = vld [vmem:[%s9862_s5 + $0x130] sm:$0xff]  }
 0x2ff   :  { %7318 = vmatpush3.bf16.msra.mxu1 %v9104_v35 }
 0x300   :  { %7343 = vmatprep.subr.bf16.mxu1 %v9022_v45 }
 0x301   :  { %7046 = vmatpush3.bf16.msra.mxu0 %v7856_v30  ;;  %v7894_v30 = vld [vmem:[%s9862_s5 + $0x138] sm:$0xff]  }
 0x302   :  { %7047 = vmatprep.subr.bf16.mxu0 %v7858_v19  ;;  %7320 = vmatmul.mubr.bf16.vlgmr.msra.gmra.mrb[172].mxu1 %v7859_v14  ;;  %v7895_v14 = vld [vmem:[%s9862_s5 + $0x140] sm:$0xff]  }
 0x303   :  { %7344 = vmatpush3.bf16.msra.mxu1 %v9022_v45  ;;  %7359 = vmatprep.mubr.bf16.mxu1 %v7867_v39 }
 0x304   :  { %7345 = vmatprep.subr.bf16.mxu1 %v9035_v57 }
 0x305   :  { %7048 = vmatpush3.bf16.msra.mxu0 %v7858_v19 }
 0x306   :  { %7049 = vmatprep.subr.bf16.mxu0 %v7860_v37 }
 0x307   :  { %7346 = vmatpush3.bf16.msra.mxu1 %v9035_v57 }
 0x308   :  { %7347 = vmatprep.subr.bf16.mxu1 %v9046_v16 }
 0x309   :  { %7050 = vmatpush3.bf16.msra.mxu0 %v7860_v37 }
 0x30a   :  { %7051 = vmatprep.subr.bf16.mxu0 %v7861_v7 }
 0x30b   :  { %7348 = vmatpush3.bf16.msra.mxu1 %v9046_v16 }
 0x30c   :  { %7349 = vmatprep.subr.bf16.mxu1 %v9059_v60 }
 0x30d   :  { %7052 = vmatpush3.bf16.msra.mxu0 %v7861_v7 }
 0x30e   :  { %7053 = vmatprep.subr.bf16.mxu0 %v7862_v47 }
 0x30f   :  { %7350 = vmatpush3.bf16.msra.mxu1 %v9059_v60 }
 0x310   :  { %7351 = vmatprep.subr.bf16.mxu1 %v9070_v54 }
 0x311   :  { %7054 = vmatpush3.bf16.msra.mxu0 %v7862_v47 }
 0x312   :  { %7055 = vmatprep.subr.bf16.mxu0 %v7863_v52 }
 0x313   :  { %7352 = vmatpush3.bf16.msra.mxu1 %v9070_v54 }
 0x314   :  { %7353 = vmatprep.subr.bf16.mxu1 %v9083_v27 }
 0x315   :  { %7056 = vmatpush3.bf16.msra.mxu0 %v7863_v52  ;;  %v9342_v62 = vpop.f32.mrb[148].mxu1 }
 0x316   :  { %7057 = vmatprep.subr.bf16.mxu0 %v7864_v25  ;;  %v3118_v24 = vpop.f32.mrb[149].mxu1 }
 0x317   :  { %7354 = vmatpush3.bf16.msra.mxu1 %v9083_v27  ;;  %v7082_v50 = vpop.f32.mrb[150].mxu1 }
 0x318   :  { %7355 = vmatprep.subr.bf16.mxu1 %v9094_v41  ;;  %v3150_v42 = vpack.c.bf16 %v7082_v50, %v9342_v62  ;;  %v3121_v22 = vpop.f32.mrb[151].mxu1  ;;  %v7898_v62 = vld [vmem:[%s9862_s5 + $0x150] sm:$0xff]   ;;  %v7900_v50 = vld [vmem:[%s9862_s5 + $0x158] sm:$0xff]  }
 0x319   :  { %7058 = vmatpush3.bf16.msra.mxu0 %v7864_v25  ;;  %v3149_v5 = vpack.c.bf16 %v3121_v22, %v3118_v24  ;;  %v7896_v25 = vld [vmem:[%s9862_s5 + $0x148] sm:$0xff]   ;;  %v7907_v24 = vld [vmem:[%s9859_s4 + $0xd0] sm:$0xff]  }
 0x31a   :  { %7083 = vmatprep.subr.bf16.mxu0 %v7865_v48  ;;  %v7902_v22 = vld [vmem:[%s9862_s5 + $0x168] sm:$0xff]  }
 0x31b   :  { %7356 = vmatpush3.bf16.msra.mxu1 %v9094_v41 }
 0x31c   :  { %7060 = vmatmul.mubr.bf16.vlgmr.msra.gmra.mrb[116].mxu0 %v2790_v6  ;;  %7357 = vmatprep.subr.bf16.mxu1 %v9104_v35  ;;  %v7890_v6 = vld [vmem:[%s9862_s5 + $0x118] sm:$0xff]  }
 0x31d   :  { %7084 = vmatpush3.bf16.msra.mxu0 %v7865_v48  ;;  %7099 = vmatprep.mubr.bf16.mxu0 %v3149_v5  ;;  %v7899_v48 = vld [vmem:[%s9859_s4 + $0xc8] sm:$0xff]   ;;  %v7903_v5 = vld [vmem:[%s9862_s5 + $0x170] sm:$0xff]  }
 0x31e   :  { %7085 = vmatprep.subr.bf16.mxu0 %v7866_v29 }
 0x31f   :  { %7358 = vmatpush3.bf16.msra.mxu1 %v9104_v35 }
 0x320   :  { %7383 = vmatprep.subr.bf16.mxu1 %v9022_v45 }
 0x321   :  { %7086 = vmatpush3.bf16.msra.mxu0 %v7866_v29  ;;  %v7904_v29 = vld [vmem:[%s9862_s5 + $0x178] sm:$0xff]  }
 0x322   :  { %7087 = vmatprep.subr.bf16.mxu0 %v7868_v38  ;;  %7360 = vmatmul.mubr.bf16.vlgmr.msra.gmra.mrb[176].mxu1 %v7869_v51  ;;  %v7905_v51 = vld [vmem:[%s9862_s5 + $0x180] sm:$0xff]  }
 0x323   :  { %7384 = vmatpush3.bf16.msra.mxu1 %v9022_v45  ;;  %7399 = vmatprep.mubr.bf16.mxu1 %v7877_v26 }
 0x324   :  { %7385 = vmatprep.subr.bf16.mxu1 %v9035_v57 }
 0x325   :  { %7088 = vmatpush3.bf16.msra.mxu0 %v7868_v38 }
 0x326   :  { %7089 = vmatprep.subr.bf16.mxu0 %v7870_v13 }
 0x327   :  { %7386 = vmatpush3.bf16.msra.mxu1 %v9035_v57 }
 0x328   :  { %7387 = vmatprep.subr.bf16.mxu1 %v9046_v16 }
 0x329   :  { %7090 = vmatpush3.bf16.msra.mxu0 %v7870_v13 }
 0x32a   :  { %7091 = vmatprep.subr.bf16.mxu0 %v7871_v59 }
 0x32b   :  { %7388 = vmatpush3.bf16.msra.mxu1 %v9046_v16 }
 0x32c   :  { %7389 = vmatprep.subr.bf16.mxu1 %v9059_v60 }
 0x32d   :  { %7092 = vmatpush3.bf16.msra.mxu0 %v7871_v59 }
 0x32e   :  { %7093 = vmatprep.subr.bf16.mxu0 %v7872_v43 }
 0x32f   :  { %7390 = vmatpush3.bf16.msra.mxu1 %v9059_v60 }
 0x330   :  { %7391 = vmatprep.subr.bf16.mxu1 %v9070_v54 }
 0x331   :  { %7094 = vmatpush3.bf16.msra.mxu0 %v7872_v43 }
 0x332   :  { %7095 = vmatprep.subr.bf16.mxu0 %v7873_v0 }
 0x333   :  { %7392 = vmatpush3.bf16.msra.mxu1 %v9070_v54 }
 0x334   :  { %7393 = vmatprep.subr.bf16.mxu1 %v9083_v27 }
 0x335   :  { %7096 = vmatpush3.bf16.msra.mxu0 %v7873_v0  ;;  %v9391_v44 = vpop.f32.mrb[152].mxu1 }
 0x336   :  { %7097 = vmatprep.subr.bf16.mxu0 %v7874_v8  ;;  %v3302_v1 = vpop.f32.mrb[153].mxu1 }
 0x337   :  { %7394 = vmatpush3.bf16.msra.mxu1 %v9083_v27  ;;  %v7122_v17 = vpop.f32.mrb[154].mxu1 }
 0x338   :  { %7395 = vmatprep.subr.bf16.mxu1 %v9094_v41  ;;  %v3334_v32 = vpack.c.bf16 %v7122_v17, %v9391_v44  ;;  %v3305_v2 = vpop.f32.mrb[155].mxu1  ;;  %v7908_v44 = vld [vmem:[%s9862_s5 + $0x190] sm:$0xff]   ;;  %v7910_v17 = vld [vmem:[%s9862_s5 + $0x198] sm:$0xff]  }
 0x339   :  { %7098 = vmatpush3.bf16.msra.mxu0 %v7874_v8  ;;  %v3333_v53 = vpack.c.bf16 %v3305_v2, %v3302_v1  ;;  %v7906_v8 = vld [vmem:[%s9862_s5 + $0x188] sm:$0xff]   ;;  %v7917_v1 = vld [vmem:[%s9859_s4 + $0xe0] sm:$0xff]  }
 0x33a   :  { %7123 = vmatprep.subr.bf16.mxu0 %v7875_v10  ;;  %v7912_v2 = vld [vmem:[%s9862_s5 + $0x1a8] sm:$0xff]  }
 0x33b   :  { %7396 = vmatpush3.bf16.msra.mxu1 %v9094_v41 }
 0x33c   :  { %7100 = vmatmul.mubr.bf16.vlgmr.msra.gmra.mrb[116].mxu0 %v3150_v42  ;;  %7397 = vmatprep.subr.bf16.mxu1 %v9104_v35  ;;  %v7901_v42 = vld [vmem:[%s9862_s5 + $0x160] sm:$0xff]  }
 0x33d   :  { %7124 = vmatpush3.bf16.msra.mxu0 %v7875_v10  ;;  %7139 = vmatprep.mubr.bf16.mxu0 %v3333_v53  ;;  %v7909_v10 = vld [vmem:[%s9859_s4 + $0xd8] sm:$0xff]   ;;  %v7913_v53 = vld [vmem:[%s9862_s5 + $0x1b0] sm:$0xff]  }
 0x33e   :  { %7125 = vmatprep.subr.bf16.mxu0 %v7876_v49 }
 0x33f   :  { %7398 = vmatpush3.bf16.msra.mxu1 %v9104_v35 }
 0x340   :  { %7423 = vmatprep.subr.bf16.mxu1 %v9022_v45 }
 0x341   :  { %7126 = vmatpush3.bf16.msra.mxu0 %v7876_v49  ;;  %v7914_v49 = vld [vmem:[%s9862_s5 + $0x1b8] sm:$0xff]  }
 0x342   :  { %7127 = vmatprep.subr.bf16.mxu0 %v7878_v36  ;;  %7400 = vmatmul.mubr.bf16.vlgmr.msra.gmra.mrb[180].mxu1 %v7879_v3  ;;  %v7915_v3 = vld [vmem:[%s9862_s5 + $0x1c0] sm:$0xff]  }
 0x343   :  { %7424 = vmatpush3.bf16.msra.mxu1 %v9022_v45  ;;  %7439 = vmatprep.mubr.bf16.mxu1 %v7887_v58 }
 0x344   :  { %7425 = vmatprep.subr.bf16.mxu1 %v9035_v57 }
 0x345   :  { %7128 = vmatpush3.bf16.msra.mxu0 %v7878_v36 }
 0x346   :  { %7129 = vmatprep.subr.bf16.mxu0 %v7880_v9 }
 0x347   :  { %7426 = vmatpush3.bf16.msra.mxu1 %v9035_v57 }
 0x348   :  { %7427 = vmatprep.subr.bf16.mxu1 %v9046_v16 }
 0x349   :  { %7130 = vmatpush3.bf16.msra.mxu0 %v7880_v9 }
 0x34a   :  { %7131 = vmatprep.subr.bf16.mxu0 %v7881_v55 }
 0x34b   :  { %7428 = vmatpush3.bf16.msra.mxu1 %v9046_v16 }
 0x34c   :  { %7429 = vmatprep.subr.bf16.mxu1 %v9059_v60 }
 0x34d   :  { %7132 = vmatpush3.bf16.msra.mxu0 %v7881_v55 }
 0x34e   :  { %7133 = vmatprep.subr.bf16.mxu0 %v7882_v61 }
 0x34f   :  { %7430 = vmatpush3.bf16.msra.mxu1 %v9059_v60 }
 0x350   :  { %7431 = vmatprep.subr.bf16.mxu1 %v9070_v54 }
 0x351   :  { %7134 = vmatpush3.bf16.msra.mxu0 %v7882_v61 }
 0x352   :  { %7135 = vmatprep.subr.bf16.mxu0 %v7883_v12 }
 0x353   :  { %7432 = vmatpush3.bf16.msra.mxu1 %v9070_v54 }
 0x354   :  { %7433 = vmatprep.subr.bf16.mxu1 %v9083_v27 }
 0x355   :  { %7136 = vmatpush3.bf16.msra.mxu0 %v7883_v12  ;;  %v9440_v28 = vpop.f32.mrb[156].mxu1 }
 0x356   :  { %7137 = vmatprep.subr.bf16.mxu0 %v7884_v63  ;;  %v3486_v20 = vpop.f32.mrb[157].mxu1 }
 0x357   :  { %7434 = vmatpush3.bf16.msra.mxu1 %v9083_v27  ;;  %v7162_v21 = vpop.f32.mrb[158].mxu1 }
 0x358   :  { %7435 = vmatprep.subr.bf16.mxu1 %v9094_v41  ;;  %v3518_v31 = vpack.c.bf16 %v7162_v21, %v9440_v28  ;;  %v3489_v15 = vpop.f32.mrb[159].mxu1  ;;  %v7918_v28 = vld [vmem:[%s9862_s5 + $0x1d0] sm:$0xff]   ;;  %v7920_v21 = vld [vmem:[%s9862_s5 + $0x1d8] sm:$0xff]  }
 0x359   :  { %7138 = vmatpush3.bf16.msra.mxu0 %v7884_v63  ;;  %v3517_v34 = vpack.c.bf16 %v3489_v15, %v3486_v20  ;;  %v7916_v63 = vld [vmem:[%s9862_s5 + $0x1c8] sm:$0xff]   ;;  %v7935_v20 = vld [vmem:[%s9859_s4 + $0xf0] sm:$0xff]  }
 0x35a   :  { %7163 = vmatprep.subr.bf16.mxu0 %v7885_v46  ;;  %v7922_v15 = vld [vmem:[%s9862_s5 + $0x1e8] sm:$0xff]  }
 0x35b   :  { %7436 = vmatpush3.bf16.msra.mxu1 %v9094_v41 }
 0x35c   :  { %7140 = vmatmul.mubr.bf16.vlgmr.msra.gmra.mrb[116].mxu0 %v3334_v32  ;;  %7437 = vmatprep.subr.bf16.mxu1 %v9104_v35  ;;  %v7911_v32 = vld [vmem:[%s9862_s5 + $0x1a0] sm:$0xff]  }
 0x35d   :  { %7164 = vmatpush3.bf16.msra.mxu0 %v7885_v46  ;;  %7179 = vmatprep.mubr.bf16.mxu0 %v3517_v34  ;;  %v7919_v46 = vld [vmem:[%s9859_s4 + $0xe8] sm:$0xff]   ;;  %v7925_v34 = vld [vmem:[%s9862_s5 + $0x200] sm:$0xff]  }
 0x35e   :  { %7165 = vmatprep.subr.bf16.mxu0 %v7886_v4 }
 0x35f   :  { %7438 = vmatpush3.bf16.msra.mxu1 %v9104_v35 }
 0x360   :  { %7463 = vmatprep.subr.bf16.mxu1 %v9022_v45 }
 0x361   :  { %7166 = vmatpush3.bf16.msra.mxu0 %v7886_v4 }
 0x362   :  { %7167 = vmatprep.subr.bf16.mxu0 %v7888_v23  ;;  %7440 = vmatmul.mubr.bf16.vlgmr.msra.gmra.mrb[184].mxu1 %v7889_v56 }
 0x363   :  { %7464 = vmatpush3.bf16.msra.mxu1 %v9022_v45  ;;  %7479 = vmatprep.mubr.bf16.mxu1 %v7897_v18 }
 0x364   :  { %7465 = vmatprep.subr.bf16.mxu1 %v9035_v57 }
 0x365   :  { %7168 = vmatpush3.bf16.msra.mxu0 %v7888_v23 }
 0x366   :  { %7169 = vmatprep.subr.bf16.mxu0 %v7890_v6 }
 0x367   :  { %7466 = vmatpush3.bf16.msra.mxu1 %v9035_v57 }
 0x368   :  { %7467 = vmatprep.subr.bf16.mxu1 %v9046_v16 }
 0x369   :  { %7170 = vmatpush3.bf16.msra.mxu0 %v7890_v6  ;;  %v7936_v6 = vld [vmem:[%s9859_s4 + $0xf8] sm:$0xff]  }
 0x36a   :  { %7171 = vmatprep.subr.bf16.mxu0 %v7891_v11 }
 0x36b   :  { %7468 = vmatpush3.bf16.msra.mxu1 %v9046_v16 }
 0x36c   :  { %7469 = vmatprep.subr.bf16.mxu1 %v9059_v60 }
 0x36d   :  { %7172 = vmatpush3.bf16.msra.mxu0 %v7891_v11  ;;  %v7929_v11 = vld [vmem:[%s9862_s5 + $0x220] sm:$0xff]  }
 0x36e   :  { %7173 = vmatprep.subr.bf16.mxu0 %v7892_v33 }
 0x36f   :  { %7470 = vmatpush3.bf16.msra.mxu1 %v9059_v60 }
 0x370   :  { %7471 = vmatprep.subr.bf16.mxu1 %v9070_v54 }
 0x371   :  { %7174 = vmatpush3.bf16.msra.mxu0 %v7892_v33  ;;  %v7930_v33 = vld [vmem:[%s9862_s5 + $0x228] sm:$0xff]  }
 0x372   :  { %7175 = vmatprep.subr.bf16.mxu0 %v7893_v40 }
 0x373   :  { %7472 = vmatpush3.bf16.msra.mxu1 %v9070_v54 }
 0x374   :  { %7473 = vmatprep.subr.bf16.mxu1 %v9083_v27 }
 0x375   :  { %7176 = vmatpush3.bf16.msra.mxu0 %v7893_v40  ;;  %v9489_v19 = vpop.f32.mrb[160].mxu1  ;;  %v7932_v40 = vld [vmem:[%s9862_s5 + $0x238] sm:$0xff]  }
 0x376   :  { %7177 = vmatprep.subr.bf16.mxu0 %v7894_v30  ;;  %v3670_v39 = vpop.f32.mrb[161].mxu1 }
 0x377   :  { %7474 = vmatpush3.bf16.msra.mxu1 %v9083_v27  ;;  %v7202_v37 = vpop.f32.mrb[162].mxu1 }
 0x378   :  { %7475 = vmatprep.subr.bf16.mxu1 %v9094_v41  ;;  %v3702_v7 = vpack.c.bf16 %v7202_v37, %v9489_v19  ;;  %v3673_v47 = vpop.f32.mrb[163].mxu1  ;;  %v7933_v19 = vld [vmem:[%s9862_s5 + $0x240] sm:$0xff]  }
 0x379   :  { %7178 = vmatpush3.bf16.msra.mxu0 %v7894_v30  ;;  %v3701_v52 = vpack.c.bf16 %v3673_v47, %v3670_v39 }
 0x37a   :  { %7203 = vmatprep.subr.bf16.mxu0 %v7895_v14 }
 0x37b   :  { %7476 = vmatpush3.bf16.msra.mxu1 %v9094_v41 }
 0x37c   :  { %7180 = vmatmul.mubr.bf16.vlgmr.msra.gmra.mrb[116].mxu0 %v3518_v31  ;;  %7477 = vmatprep.subr.bf16.mxu1 %v9104_v35  ;;  %v7921_v31 = vld [vmem:[%s9862_s5 + $0x1e0] sm:$0xff]  }
 0x37d   :  { %7204 = vmatpush3.bf16.msra.mxu0 %v7895_v14  ;;  %7219 = vmatprep.mubr.bf16.mxu0 %v3701_v52  ;;  %v7934_v52 = vld [vmem:[%s9862_s5 + $0x248] sm:$0xff]  }
 0x37e   :  { %7205 = vmatprep.subr.bf16.mxu0 %v7896_v25 }
 0x37f   :  { %7478 = vmatpush3.bf16.msra.mxu1 %v9104_v35 }
 0x380   :  { %7503 = vmatprep.subr.bf16.mxu1 %v9022_v45 }
 0x381   :  { %7206 = vmatpush3.bf16.msra.mxu0 %v7896_v25  ;;  %v7937_v25 = vld [vmem:[%s9862_s5 + $0x250] sm:$0xff]  }
 0x382   :  { %7207 = vmatprep.subr.bf16.mxu0 %v7898_v62  ;;  %7480 = vmatmul.mubr.bf16.vlgmr.msra.gmra.mrb[188].mxu1 %v7899_v48  ;;  %v7939_v48 = vld [vmem:[%s9862_s5 + $0x260] sm:$0xff]  }
 0x383   :  { %7504 = vmatpush3.bf16.msra.mxu1 %v9022_v45  ;;  %7519 = vmatprep.mubr.bf16.mxu1 %v7907_v24  ;;  %v7940_v24 = vld [vmem:[%s9862_s5 + $0x268] sm:$0xff]  }
 0x384   :  { %7505 = vmatprep.subr.bf16.mxu1 %v9035_v57 }
 0x385   :  { %7208 = vmatpush3.bf16.msra.mxu0 %v7898_v62  ;;  %v7938_v62 = vld [vmem:[%s9862_s5 + $0x258] sm:$0xff]  }
 0x386   :  { %7209 = vmatprep.subr.bf16.mxu0 %v7900_v50 }
 0x387   :  { %7506 = vmatpush3.bf16.msra.mxu1 %v9035_v57 }
 0x388   :  { %7507 = vmatprep.subr.bf16.mxu1 %v9046_v16 }
 0x389   :  { %7210 = vmatpush3.bf16.msra.mxu0 %v7900_v50  ;;  %v7941_v50 = vld [vmem:[%s9862_s5 + $0x270] sm:$0xff]  }
 0x38a   :  { %7211 = vmatprep.subr.bf16.mxu0 %v7901_v42 }
 0x38b   :  { %7508 = vmatpush3.bf16.msra.mxu1 %v9046_v16 }
 0x38c   :  { %7509 = vmatprep.subr.bf16.mxu1 %v9059_v60 }
 0x38d   :  { %7212 = vmatpush3.bf16.msra.mxu0 %v7901_v42  ;;  %v7942_v42 = vld [vmem:[%s9862_s5 + $0x278] sm:$0xff]  }
 0x38e   :  { %7213 = vmatprep.subr.bf16.mxu0 %v7902_v22 }
 0x38f   :  { %7510 = vmatpush3.bf16.msra.mxu1 %v9059_v60 }
 0x390   :  { %7511 = vmatprep.subr.bf16.mxu1 %v9070_v54 }
 0x391   :  { %7214 = vmatpush3.bf16.msra.mxu0 %v7902_v22 }
 0x392   :  { %7215 = vmatprep.subr.bf16.mxu0 %v7903_v5 }
 0x393   :  { %7512 = vmatpush3.bf16.msra.mxu1 %v9070_v54 }
 0x394   :  { %7513 = vmatprep.subr.bf16.mxu1 %v9083_v27 }
 0x395   :  { %7216 = vmatpush3.bf16.msra.mxu0 %v7903_v5  ;;  %v9538_v38 = vpop.f32.mrb[164].mxu1  ;;  %v7943_v5 = vld [vmem:[%s9862_s5 + $0x280] sm:$0xff]  }
 0x396   :  { %7217 = vmatprep.subr.bf16.mxu0 %v7904_v29  ;;  %v3854_v26 = vpop.f32.mrb[165].mxu1 }
 0x397   :  { %7514 = vmatpush3.bf16.msra.mxu1 %v9083_v27  ;;  %v7242_v13 = vpop.f32.mrb[166].mxu1 }
 0x398   :  { %7515 = vmatprep.subr.bf16.mxu1 %v9094_v41  ;;  %v3886_v59 = vpack.c.bf16 %v7242_v13, %v9538_v38  ;;  %v3857_v43 = vpop.f32.mrb[167].mxu1 }
 0x399   :  { %7218 = vmatpush3.bf16.msra.mxu0 %v7904_v29  ;;  %v3885_v0 = vpack.c.bf16 %v3857_v43, %v3854_v26  ;;  %v7945_v43 = vld [vmem:[%s9862_s5 + $0x290] sm:$0xff]  }
 0x39a   :  { %7243 = vmatprep.subr.bf16.mxu0 %v7905_v51 }
 0x39b   :  { %7516 = vmatpush3.bf16.msra.mxu1 %v9094_v41 }
 0x39c   :  { %7220 = vmatmul.mubr.bf16.vlgmr.msra.gmra.mrb[116].mxu0 %v3702_v7  ;;  %7517 = vmatprep.subr.bf16.mxu1 %v9104_v35 }
 0x39d   :  { %7244 = vmatpush3.bf16.msra.mxu0 %v7905_v51  ;;  %7259 = vmatprep.mubr.bf16.mxu0 %v3885_v0  ;;  %v7946_v0 = vld [vmem:[%s9862_s5 + $0x298] sm:$0xff]  }
 0x39e   :  { %7245 = vmatprep.subr.bf16.mxu0 %v7906_v8 }
 0x39f   :  { %7518 = vmatpush3.bf16.msra.mxu1 %v9104_v35 }
 0x3a0   :  { %7543 = vmatprep.subr.bf16.mxu1 %v9022_v45 }
 0x3a1   :  { %7246 = vmatpush3.bf16.msra.mxu0 %v7906_v8  ;;  %v7947_v8 = vld [vmem:[%s9862_s5 + $0x2a0] sm:$0xff]  }
 0x3a2   :  { %7247 = vmatprep.subr.bf16.mxu0 %v7908_v44  ;;  %7520 = vmatmul.mubr.bf16.vlgmr.msra.gmra.mrb[192].mxu1 %v7909_v10  ;;  %v7949_v10 = vld [vmem:[%s9862_s5 + $0x2b0] sm:$0xff]  }
 0x3a3   :  { %7544 = vmatpush3.bf16.msra.mxu1 %v9022_v45  ;;  %7559 = vmatprep.mubr.bf16.mxu1 %v7917_v1  ;;  %v7950_v1 = vld [vmem:[%s9862_s5 + $0x2b8] sm:$0xff]  }
 0x3a4   :  { %7545 = vmatprep.subr.bf16.mxu1 %v9035_v57 }
 0x3a5   :  { %7248 = vmatpush3.bf16.msra.mxu0 %v7908_v44  ;;  %v7948_v44 = vld [vmem:[%s9862_s5 + $0x2a8] sm:$0xff]  }
 0x3a6   :  { %7249 = vmatprep.subr.bf16.mxu0 %v7910_v17 }
 0x3a7   :  { %7546 = vmatpush3.bf16.msra.mxu1 %v9035_v57 }
 0x3a8   :  { %7547 = vmatprep.subr.bf16.mxu1 %v9046_v16 }
 0x3a9   :  { %7250 = vmatpush3.bf16.msra.mxu0 %v7910_v17 }
 0x3aa   :  { %7251 = vmatprep.subr.bf16.mxu0 %v7911_v32 }
 0x3ab   :  { %7548 = vmatpush3.bf16.msra.mxu1 %v9046_v16 }
 0x3ac   :  { %7549 = vmatprep.subr.bf16.mxu1 %v9059_v60 }
 0x3ad   :  { %7252 = vmatpush3.bf16.msra.mxu0 %v7911_v32  ;;  %v7951_v32 = vld [vmem:[%s9862_s5 + $0x2c0] sm:$0xff]  }
 0x3ae   :  { %7253 = vmatprep.subr.bf16.mxu0 %v7912_v2 }
 0x3af   :  { %7550 = vmatpush3.bf16.msra.mxu1 %v9059_v60 }
 0x3b0   :  { %7551 = vmatprep.subr.bf16.mxu1 %v9070_v54 }
 0x3b1   :  { %7254 = vmatpush3.bf16.msra.mxu0 %v7912_v2 }
 0x3b2   :  { %7255 = vmatprep.subr.bf16.mxu0 %v7913_v53 }
 0x3b3   :  { %7552 = vmatpush3.bf16.msra.mxu1 %v9070_v54 }
 0x3b4   :  { %7553 = vmatprep.subr.bf16.mxu1 %v9083_v27 }
 0x3b5   :  { %7256 = vmatpush3.bf16.msra.mxu0 %v7913_v53  ;;  %v9587_v36 = vpop.f32.mrb[168].mxu1 }
 0x3b6   :  { %7257 = vmatprep.subr.bf16.mxu0 %v7914_v49  ;;  %v4038_v58 = vpop.f32.mrb[169].mxu1 }
 0x3b7   :  { %7554 = vmatpush3.bf16.msra.mxu1 %v9083_v27  ;;  %v7282_v9 = vpop.f32.mrb[170].mxu1 }
 0x3b8   :  { %7555 = vmatprep.subr.bf16.mxu1 %v9094_v41  ;;  %v4070_v55 = vpack.c.bf16 %v7282_v9, %v9587_v36  ;;  %v4041_v61 = vpop.f32.mrb[171].mxu1  ;;  %v7953_v9 = vld [vmem:[%s9862_s5 + $0x2d0] sm:$0xff]  }
 0x3b9   :  { %7258 = vmatpush3.bf16.msra.mxu0 %v7914_v49  ;;  %v4069_v12 = vpack.c.bf16 %v4041_v61, %v4038_v58  ;;  %v7952_v58 = vld [vmem:[%s9862_s5 + $0x2c8] sm:$0xff]   ;;  %v7955_v61 = vld [vmem:[%s9862_s5 + $0x2e0] sm:$0xff]  }
 0x3ba   :  { %7283 = vmatprep.subr.bf16.mxu0 %v7915_v3 }
 0x3bb   :  { %7556 = vmatpush3.bf16.msra.mxu1 %v9094_v41 }
 0x3bc   :  { %7260 = vmatmul.mubr.bf16.vlgmr.msra.gmra.mrb[116].mxu0 %v3886_v59  ;;  %7557 = vmatprep.subr.bf16.mxu1 %v9104_v35  ;;  %v7944_v59 = vld [vmem:[%s9862_s5 + $0x288] sm:$0xff]  }
 0x3bd   :  { %7284 = vmatpush3.bf16.msra.mxu0 %v7915_v3  ;;  %7299 = vmatprep.mubr.bf16.mxu0 %v4069_v12  ;;  %v7956_v12 = vld [vmem:[%s9862_s5 + $0x2e8] sm:$0xff]  }
 0x3be   :  { %7285 = vmatprep.subr.bf16.mxu0 %v7916_v63 }
 0x3bf   :  { %7558 = vmatpush3.bf16.msra.mxu1 %v9104_v35 }
 0x3c0   :  { %7583 = vmatprep.subr.bf16.mxu1 %v9022_v45 }
 0x3c1   :  { %7286 = vmatpush3.bf16.msra.mxu0 %v7916_v63  ;;  %v7957_v63 = vld [vmem:[%s9862_s5 + $0x2f0] sm:$0xff]  }
 0x3c2   :  { %7287 = vmatprep.subr.bf16.mxu0 %v7918_v28  ;;  %7560 = vmatmul.mubr.bf16.vlgmr.msra.gmra.mrb[196].mxu1 %v7919_v46 }
 0x3c3   :  { %7584 = vmatpush3.bf16.msra.mxu1 %v9022_v45  ;;  %7599 = vmatprep.mubr.bf16.mxu1 %v7935_v20  ;;  %v7923_v45 = vld [vmem:[%s9862_s5 + $0x1f0] sm:$0xff]   ;;  %v7959_v20 = vld [vmem:[%s9862_s5 + $0x300] sm:$0xff]  }
 0x3c4   :  { %7585 = vmatprep.subr.bf16.mxu1 %v9035_v57 }
 0x3c5   :  { %7288 = vmatpush3.bf16.msra.mxu0 %v7918_v28  ;;  %v7958_v28 = vld [vmem:[%s9862_s5 + $0x2f8] sm:$0xff]  }
 0x3c6   :  { %7289 = vmatprep.subr.bf16.mxu0 %v7920_v21 }
 0x3c7   :  { %7586 = vmatpush3.bf16.msra.mxu1 %v9035_v57  ;;  %v7924_v57 = vld [vmem:[%s9862_s5 + $0x1f8] sm:$0xff]  }
 0x3c8   :  { %7587 = vmatprep.subr.bf16.mxu1 %v9046_v16 }
 0x3c9   :  { %7290 = vmatpush3.bf16.msra.mxu0 %v7920_v21 }
 0x3ca   :  { %7291 = vmatprep.subr.bf16.mxu0 %v7921_v31 }
 0x3cb   :  { %7588 = vmatpush3.bf16.msra.mxu1 %v9046_v16 }
 0x3cc   :  { %7589 = vmatprep.subr.bf16.mxu1 %v9059_v60 }
 0x3cd   :  { %7292 = vmatpush3.bf16.msra.mxu0 %v7921_v31 }
 0x3ce   :  { %7293 = vmatprep.subr.bf16.mxu0 %v7922_v15 }
 0x3cf   :  { %7590 = vmatpush3.bf16.msra.mxu1 %v9059_v60 }
 0x3d0   :  { %7591 = vmatprep.subr.bf16.mxu1 %v9070_v54 }
 0x3d1   :  { %7294 = vmatpush3.bf16.msra.mxu0 %v7922_v15 }
 0x3d2   :  { %7295 = vmatprep.subr.bf16.mxu0 %v7923_v45 }
 0x3d3   :  { %7592 = vmatpush3.bf16.msra.mxu1 %v9070_v54  ;;  %v7926_v54 = vld [vmem:[%s9862_s5 + $0x208] sm:$0xff]  }
 0x3d4   :  { %7593 = vmatprep.subr.bf16.mxu1 %v9083_v27 }
 0x3d5   :  { %7296 = vmatpush3.bf16.msra.mxu0 %v7923_v45  ;;  %v7321_v16 = vpop.f32.mrb[172].mxu1 }
 0x3d6   :  { %7297 = vmatprep.subr.bf16.mxu0 %v7924_v57  ;;  %v4222_v60 = vpop.f32.mrb[173].mxu1 }
 0x3d7   :  { %7594 = vmatpush3.bf16.msra.mxu1 %v9083_v27  ;;  %v7322_v4 = vpop.f32.mrb[174].mxu1  ;;  %v7927_v27 = vld [vmem:[%s9862_s5 + $0x210] sm:$0xff]  }
 0x3d8   :  { %7595 = vmatprep.subr.bf16.mxu1 %v9094_v41  ;;  %v4254_v23 = vpack.c.bf16 %v7322_v4, %v7321_v16  ;;  %v4225_v56 = vpop.f32.mrb[175].mxu1  ;;  %v7960_v16 = vld [vmem:[%s9862_s5 + $0x308] sm:$0xff]   ;;  %v7963_v4 = vld [vmem:[%s9862_s5 + $0x320] sm:$0xff]  }
 0x3d9   :  { %7298 = vmatpush3.bf16.msra.mxu0 %v7924_v57  ;;  %v4253_v18 = vpack.c.bf16 %v4225_v56, %v4222_v60  ;;  %v7962_v60 = vld [vmem:[%s9862_s5 + $0x318] sm:$0xff]   ;;  %v7965_v56 = vld [vmem:[%s9862_s5 + $0x330] sm:$0xff]  }
 0x3da   :  { %7323 = vmatprep.subr.bf16.mxu0 %v7925_v34 }
 0x3db   :  { %7596 = vmatpush3.bf16.msra.mxu1 %v9094_v41  ;;  %v7928_v41 = vld [vmem:[%s9862_s5 + $0x218] sm:$0xff]  }
 0x3dc   :  { %7300 = vmatmul.mubr.bf16.vlgmr.msra.gmra.mrb[116].mxu0 %v4070_v55  ;;  %7597 = vmatprep.subr.bf16.mxu1 %v9104_v35  ;;  %v7954_v55 = vld [vmem:[%s9862_s5 + $0x2d8] sm:$0xff]  }
 0x3dd   :  { %7324 = vmatpush3.bf16.msra.mxu0 %v7925_v34  ;;  %7339 = vmatprep.mubr.bf16.mxu0 %v4253_v18  ;;  %v7961_v34 = vld [vmem:[%s9862_s5 + $0x310] sm:$0xff]   ;;  %v7966_v18 = vld [vmem:[%s9862_s5 + $0x338] sm:$0xff]  }
 0x3de   :  { %7325 = vmatprep.subr.bf16.mxu0 %v7926_v54 }
 0x3df   :  { %7598 = vmatpush3.bf16.msra.mxu1 %v9104_v35  ;;  %v7931_v35 = vld [vmem:[%s9862_s5 + $0x230] sm:$0xff]  }
 0x3e1   :  { %7326 = vmatpush3.bf16.msra.mxu0 %v7926_v54 }
 0x3e2   :  { %7327 = vmatprep.subr.bf16.mxu0 %v7927_v27  ;;  %7600 = vmatmul.mubr.bf16.vlgmr.msra.gmra.mrb[200].mxu1 %v7936_v6 }
 0x3e5   :  { %7328 = vmatpush3.bf16.msra.mxu0 %v7927_v27  ;;  %v7967_v27 = vld [vmem:[%s9862_s5 + $0x340] sm:$0xff]  }
 0x3e6   :  { %7329 = vmatprep.subr.bf16.mxu0 %v7928_v41 }
 0x3e9   :  { %7330 = vmatpush3.bf16.msra.mxu0 %v7928_v41 }
 0x3ea   :  { %7331 = vmatprep.subr.bf16.mxu0 %v7929_v11 }
 0x3ed   :  { %7332 = vmatpush3.bf16.msra.mxu0 %v7929_v11 }
 0x3ee   :  { %7333 = vmatprep.subr.bf16.mxu0 %v7930_v33 }
 0x3f1   :  { %7334 = vmatpush3.bf16.msra.mxu0 %v7930_v33 }
 0x3f2   :  { %7335 = vmatprep.subr.bf16.mxu0 %v7931_v35 }
 0x3f5   :  { %7336 = vmatpush3.bf16.msra.mxu0 %v7931_v35  ;;  %v7361_v30 = vpop.f32.mrb[176].mxu1 }
 0x3f6   :  { %7337 = vmatprep.subr.bf16.mxu0 %v7932_v40  ;;  %v4406_v14 = vpop.f32.mrb[177].mxu1 }
 0x3f7   :  { %v7362_v39 = vpop.f32.mrb[178].mxu1 }
 0x3f8   :  { %v4438_v37 = vpack.c.bf16 %v7362_v39, %v7361_v30  ;;  %v4409_v7 = vpop.f32.mrb[179].mxu1  ;;  %v7969_v30 = vld [vmem:[%s9862_s5 + $0x350] sm:$0xff]   ;;  %v7972_v39 = vld [vmem:[%s9862_s5 + $0x368] sm:$0xff]  }
 0x3f9   :  { %7338 = vmatpush3.bf16.msra.mxu0 %v7932_v40  ;;  %v4437_v47 = vpack.c.bf16 %v4409_v7, %v4406_v14  ;;  %v7968_v40 = vld [vmem:[%s9862_s5 + $0x348] sm:$0xff]   ;;  %v7971_v14 = vld [vmem:[%s9862_s5 + $0x360] sm:$0xff]   ;;  %v7974_v7 = vld [vmem:[%s9862_s5 + $0x378] sm:$0xff]  }
 0x3fa   :  { %7363 = vmatprep.subr.bf16.mxu0 %v7933_v19 }
 0x3fc   :  { %7340 = vmatmul.mubr.bf16.vlgmr.msra.gmra.mrb[116].mxu0 %v4254_v23  ;;  %v7964_v23 = vld [vmem:[%s9862_s5 + $0x328] sm:$0xff]  }
 0x3fd   :  { %7364 = vmatpush3.bf16.msra.mxu0 %v7933_v19  ;;  %7379 = vmatprep.mubr.bf16.mxu0 %v4437_v47  ;;  %v7970_v19 = vld [vmem:[%s9862_s5 + $0x358] sm:$0xff]  }
 0x3fe   :  { %7365 = vmatprep.subr.bf16.mxu0 %v7934_v52 }
 0x401   :  { %7366 = vmatpush3.bf16.msra.mxu0 %v7934_v52  ;;  %v7975_v52 = vld [vmem:[%s9862_s5 + $0x380] sm:$0xff]  }
 0x402   :  { %7367 = vmatprep.subr.bf16.mxu0 %v7937_v25 }
 0x405   :  { %7368 = vmatpush3.bf16.msra.mxu0 %v7937_v25 }
 0x406   :  { %7369 = vmatprep.subr.bf16.mxu0 %v7938_v62 }
 0x409   :  { %7370 = vmatpush3.bf16.msra.mxu0 %v7938_v62 }
 0x40a   :  { %7371 = vmatprep.subr.bf16.mxu0 %v7939_v48 }
 0x40d   :  { %7372 = vmatpush3.bf16.msra.mxu0 %v7939_v48 }
 0x40e   :  { %7373 = vmatprep.subr.bf16.mxu0 %v7940_v24 }
 0x411   :  { %7374 = vmatpush3.bf16.msra.mxu0 %v7940_v24 }
 0x412   :  { %7375 = vmatprep.subr.bf16.mxu0 %v7941_v50 }
 0x415   :  { %7376 = vmatpush3.bf16.msra.mxu0 %v7941_v50  ;;  %v7401_v22 = vpop.f32.mrb[180].mxu1 }
 0x416   :  { %7377 = vmatprep.subr.bf16.mxu0 %v7942_v42  ;;  %v4590_v29 = vpop.f32.mrb[181].mxu1 }
 0x417   :  { %v7402_v38 = vpop.f32.mrb[182].mxu1 }
 0x418   :  { %v4622_v51 = vpack.c.bf16 %v7402_v38, %v7401_v22  ;;  %v4593_v26 = vpop.f32.mrb[183].mxu1  ;;  %v7977_v22 = vld [vmem:[%s9862_s5 + $0x390] sm:$0xff]   ;;  %v7980_v38 = vld [vmem:[%s9862_s5 + $0x3a8] sm:$0xff]  }
 0x419   :  { %7378 = vmatpush3.bf16.msra.mxu0 %v7942_v42  ;;  %v4621_v13 = vpack.c.bf16 %v4593_v26, %v4590_v29  ;;  %v7976_v42 = vld [vmem:[%s9862_s5 + $0x388] sm:$0xff]   ;;  %v7979_v29 = vld [vmem:[%s9862_s5 + $0x3a0] sm:$0xff]   ;;  %v7982_v26 = vld [vmem:[%s9862_s5 + $0x3b8] sm:$0xff]  }
 0x41a   :  { %7403 = vmatprep.subr.bf16.mxu0 %v7943_v5 }
 0x41c   :  { %7380 = vmatmul.mubr.bf16.vlgmr.msra.gmra.mrb[116].mxu0 %v4438_v37  ;;  %v7973_v37 = vld [vmem:[%s9862_s5 + $0x370] sm:$0xff]  }
 0x41d   :  { %7404 = vmatpush3.bf16.msra.mxu0 %v7943_v5  ;;  %7419 = vmatprep.mubr.bf16.mxu0 %v4621_v13  ;;  %v7978_v5 = vld [vmem:[%s9862_s5 + $0x398] sm:$0xff]  }
 0x41e   :  { %7405 = vmatprep.subr.bf16.mxu0 %v7944_v59 }
 0x421   :  { %7406 = vmatpush3.bf16.msra.mxu0 %v7944_v59  ;;  %v7983_v59 = vld [vmem:[%s9862_s5 + $0x3c0] sm:$0xff]  }
 0x422   :  { %7407 = vmatprep.subr.bf16.mxu0 %v7945_v43 }
 0x425   :  { %7408 = vmatpush3.bf16.msra.mxu0 %v7945_v43 }
 0x426   :  { %7409 = vmatprep.subr.bf16.mxu0 %v7946_v0 }
 0x429   :  { %7410 = vmatpush3.bf16.msra.mxu0 %v7946_v0 }
 0x42a   :  { %7411 = vmatprep.subr.bf16.mxu0 %v7947_v8 }
 0x42d   :  { %7412 = vmatpush3.bf16.msra.mxu0 %v7947_v8 }
 0x42e   :  { %7413 = vmatprep.subr.bf16.mxu0 %v7948_v44 }
 0x431   :  { %7414 = vmatpush3.bf16.msra.mxu0 %v7948_v44 }
 0x432   :  { %7415 = vmatprep.subr.bf16.mxu0 %v7949_v10 }
 0x435   :  { %7416 = vmatpush3.bf16.msra.mxu0 %v7949_v10  ;;  %v7441_v17 = vpop.f32.mrb[184].mxu1 }
 0x436   :  { %7417 = vmatprep.subr.bf16.mxu0 %v7950_v1  ;;  %v4774_v2 = vpop.f32.mrb[185].mxu1 }
 0x437   :  { %v7442_v53 = vpop.f32.mrb[186].mxu1 }
 0x438   :  { %v4806_v49 = vpack.c.bf16 %v7442_v53, %v7441_v17  ;;  %v4777_v36 = vpop.f32.mrb[187].mxu1  ;;  %v7985_v17 = vld [vmem:[%s9862_s5 + $0x3d0] sm:$0xff]   ;;  %v7988_v53 = vld [vmem:[%s9862_s5 + $0x3e8] sm:$0xff]  }
 0x439   :  { %7418 = vmatpush3.bf16.msra.mxu0 %v7950_v1  ;;  %v4805_v3 = vpack.c.bf16 %v4777_v36, %v4774_v2  ;;  %v7984_v1 = vld [vmem:[%s9862_s5 + $0x3c8] sm:$0xff]   ;;  %v7987_v2 = vld [vmem:[%s9862_s5 + $0x3e0] sm:$0xff]   ;;  %v7990_v36 = vld [vmem:[%s9862_s5 + $0x3f8] sm:$0xff]  }
 0x43a   :  { %7443 = vmatprep.subr.bf16.mxu0 %v7951_v32 }
 0x43c   :  { %7420 = vmatmul.mubr.bf16.vlgmr.msra.gmra.mrb[116].mxu0 %v4622_v51  ;;  %v7981_v51 = vld [vmem:[%s9862_s5 + $0x3b0] sm:$0xff]  }
 0x43d   :  { %7444 = vmatpush3.bf16.msra.mxu0 %v7951_v32  ;;  %7459 = vmatprep.mubr.bf16.mxu0 %v4805_v3  ;;  %v7986_v32 = vld [vmem:[%s9862_s5 + $0x3d8] sm:$0xff]   ;;  %v6149_v3 = vld [vmem:[%s9863_s6] ss:$0 sm:$0xff] }
 0x43e   :  { %7445 = vmatprep.subr.bf16.mxu0 %v7952_v58 }
 0x441   :  { %7446 = vmatpush3.bf16.msra.mxu0 %v7952_v58 }
 0x442   :  { %7447 = vmatprep.subr.bf16.mxu0 %v7953_v9 }
 0x445   :  { %7448 = vmatpush3.bf16.msra.mxu0 %v7953_v9  ;;  %v6150_v9 = vld [vmem:[%s9864_s7] ss:$0 sm:$0xff] }
 0x446   :  { %7449 = vmatprep.subr.bf16.mxu0 %v7954_v55 }
 0x449   :  { %7450 = vmatpush3.bf16.msra.mxu0 %v7954_v55 }
 0x44a   :  { %7451 = vmatprep.subr.bf16.mxu0 %v7955_v61 }
 0x44d   :  { %7452 = vmatpush3.bf16.msra.mxu0 %v7955_v61 }
 0x44e   :  { %7453 = vmatprep.subr.bf16.mxu0 %v7956_v12 }
 0x451   :  { %7454 = vmatpush3.bf16.msra.mxu0 %v7956_v12 }
 0x452   :  { %7455 = vmatprep.subr.bf16.mxu0 %v7957_v63 }
 0x455   :  { %7456 = vmatpush3.bf16.msra.mxu0 %v7957_v63  ;;  %v7481_v46 = vpop.f32.mrb[188].mxu1 }
 0x456   :  { %7457 = vmatprep.subr.bf16.mxu0 %v7958_v28  ;;  %v4958_v21 = vpop.f32.mrb[189].mxu1 }
 0x457   :  { %v7482_v31 = vpop.f32.mrb[190].mxu1 }
 0x458   :  { %v4990_v15 = vpack.c.bf16 %v7482_v31, %v7481_v46  ;;  %v4961_v45 = vpop.f32.mrb[191].mxu1 }
 0x459   :  { %7458 = vmatpush3.bf16.msra.mxu0 %v7958_v28  ;;  %v4989_v57 = vpack.c.bf16 %v4961_v45, %v4958_v21 }
 0x45a   :  { %7483 = vmatprep.subr.bf16.mxu0 %v7959_v20 }
 0x45c   :  { %7460 = vmatmul.mubr.bf16.vlgmr.msra.gmra.mrb[116].mxu0 %v4806_v49  ;;  %v7989_v49 = vld [vmem:[%s9862_s5 + $0x3f0] sm:$0xff]  }
 0x45d   :  { %7484 = vmatpush3.bf16.msra.mxu0 %v7959_v20  ;;  %7499 = vmatprep.mubr.bf16.mxu0 %v4989_v57 }
 0x45e   :  { %7485 = vmatprep.subr.bf16.mxu0 %v7960_v16 }
 0x461   :  { %7486 = vmatpush3.bf16.msra.mxu0 %v7960_v16 }
 0x462   :  { %7487 = vmatprep.subr.bf16.mxu0 %v7961_v34 }
 0x465   :  { %7488 = vmatpush3.bf16.msra.mxu0 %v7961_v34 }
 0x466   :  { %7489 = vmatprep.subr.bf16.mxu0 %v7962_v60 }
 0x469   :  { %7490 = vmatpush3.bf16.msra.mxu0 %v7962_v60  ;;  %v5678_v60 = vld [vmem:[%s9865_s8] sm:$0xff] }
 0x46a   :  { %7491 = vmatprep.subr.bf16.mxu0 %v7963_v4 }
 0x46d   :  { %7492 = vmatpush3.bf16.msra.mxu0 %v7963_v4  ;;  %v5679_v4 = vld [vmem:[%s9865_s8 + $0x8] sm:$0xff] }
 0x46e   :  { %7493 = vmatprep.subr.bf16.mxu0 %v7964_v23 }
 0x471   :  { %7494 = vmatpush3.bf16.msra.mxu0 %v7964_v23 }
 0x472   :  { %7495 = vmatprep.subr.bf16.mxu0 %v7965_v56 }
 0x475   :  { %7496 = vmatpush3.bf16.msra.mxu0 %v7965_v56  ;;  %v7521_v54 = vpop.f32.mrb[192].mxu1 }
 0x476   :  { %7497 = vmatprep.subr.bf16.mxu0 %v7966_v18  ;;  %v5142_v6 = vpop.f32.mrb[193].mxu1 }
 0x477   :  { %v7522_v41 = vpop.f32.mrb[194].mxu1 }
 0x478   :  { %v5174_v11 = vpack.c.bf16 %v7522_v41, %v7521_v54  ;;  %v5145_v33 = vpop.f32.mrb[195].mxu1 }
 0x479   :  { %7498 = vmatpush3.bf16.msra.mxu0 %v7966_v18  ;;  %v5173_v35 = vpack.c.bf16 %v5145_v33, %v5142_v6 }
 0x47a   :  { %7523 = vmatprep.subr.bf16.mxu0 %v7967_v27 }
 0x47c   :  { %7500 = vmatmul.mubr.bf16.vlgmr.msra.gmra.mrb[116].mxu0 %v4990_v15 }
 0x47d   :  { %7524 = vmatpush3.bf16.msra.mxu0 %v7967_v27  ;;  %7539 = vmatprep.mubr.bf16.mxu0 %v5173_v35 }
 0x47e   :  { %7525 = vmatprep.subr.bf16.mxu0 %v7968_v40 }
 0x481   :  { %7526 = vmatpush3.bf16.msra.mxu0 %v7968_v40 }
 0x482   :  { %7527 = vmatprep.subr.bf16.mxu0 %v7969_v30 }
 0x485   :  { %7528 = vmatpush3.bf16.msra.mxu0 %v7969_v30  ;;  %v15_v30 = vstv %s9866_s9 }
 0x486   :  { %7529 = vmatprep.subr.bf16.mxu0 %v7970_v19  ;;  %16 = vst [vmem:[#allocation2] sm:$0x1] %v15_v30 }
 0x489   :  { %7530 = vmatpush3.bf16.msra.mxu0 %v7970_v19 }
 0x48a   :  { %7531 = vmatprep.subr.bf16.mxu0 %v7971_v14 }
 0x48d   :  { %7532 = vmatpush3.bf16.msra.mxu0 %v7971_v14 }
 0x48e   :  { %7533 = vmatprep.subr.bf16.mxu0 %v7972_v39 }
 0x491   :  { %7534 = vmatpush3.bf16.msra.mxu0 %v7972_v39 }
 0x492   :  { %7535 = vmatprep.subr.bf16.mxu0 %v7973_v37 }
 0x495   :  { %7536 = vmatpush3.bf16.msra.mxu0 %v7973_v37  ;;  %v7561_v47 = vpop.f32.mrb[196].mxu1 }
 0x496   :  { %7537 = vmatprep.subr.bf16.mxu0 %v7974_v7  ;;  %v5326_v25 = vpop.f32.mrb[197].mxu1 }
 0x497   :  { %v7562_v62 = vpop.f32.mrb[198].mxu1 }
 0x498   :  { %v5358_v48 = vpack.c.bf16 %v7562_v62, %v7561_v47  ;;  %v5329_v24 = vpop.f32.mrb[199].mxu1 }
 0x499   :  { %7538 = vmatpush3.bf16.msra.mxu0 %v7974_v7  ;;  %v5357_v50 = vpack.c.bf16 %v5329_v24, %v5326_v25 }
 0x49a   :  { %7563 = vmatprep.subr.bf16.mxu0 %v7975_v52 }
 0x49c   :  { %7540 = vmatmul.mubr.bf16.vlgmr.msra.gmra.mrb[116].mxu0 %v5174_v11 }
 0x49d   :  { %7564 = vmatpush3.bf16.msra.mxu0 %v7975_v52  ;;  %7579 = vmatprep.mubr.bf16.mxu0 %v5357_v50 }
 0x49e   :  { %7565 = vmatprep.subr.bf16.mxu0 %v7976_v42 }
 0x4a1   :  { %7566 = vmatpush3.bf16.msra.mxu0 %v7976_v42 }
 0x4a2   :  { %7567 = vmatprep.subr.bf16.mxu0 %v7977_v22 }
 0x4a5   :  { %7568 = vmatpush3.bf16.msra.mxu0 %v7977_v22 }
 0x4a6   :  { %7569 = vmatprep.subr.bf16.mxu0 %v7978_v5 }
 0x4a9   :  { %7570 = vmatpush3.bf16.msra.mxu0 %v7978_v5  ;;  %v5693_v5 = vld [vmem:[#allocation2] sm:$0x1] }
 0x4aa   :  { %7571 = vmatprep.subr.bf16.mxu0 %v7979_v29 }
 0x4ad   :  { %7572 = vmatpush3.bf16.msra.mxu0 %v7979_v29 }
 0x4ae   :  { %7573 = vmatprep.subr.bf16.mxu0 %v7980_v38 }
 0x4b1   :  { %7574 = vmatpush3.bf16.msra.mxu0 %v7980_v38 }
 0x4b2   :  { %7575 = vmatprep.subr.bf16.mxu0 %v7981_v51 }
 0x4b5   :  { %7576 = vmatpush3.bf16.msra.mxu0 %v7981_v51  ;;  %v7601_v13 = vpop.f32.mrb[200].mxu1  ;;  %v5718_v51 = vld [vmem:[#allocation2] sm:$0x1] }
 0x4b6   :  { %7577 = vmatprep.subr.bf16.mxu0 %v7982_v26  ;;  %v5510_v43 = vpop.f32.mrb[201].mxu1 }
 0x4b7   :  { %v7602_v0 = vpop.f32.mrb[202].mxu1 }
 0x4b8   :  { %v5542_v8 = vpack.c.bf16 %v7602_v0, %v7601_v13  ;;  %v5513_v44 = vpop.f32.mrb[203].mxu1 }
 0x4b9   :  { %7578 = vmatpush3.bf16.msra.mxu0 %v7982_v26  ;;  %v5541_v10 = vpack.c.bf16 %v5513_v44, %v5510_v43 }
 0x4ba   :  { %7603 = vmatprep.subr.bf16.mxu0 %v7983_v59 }
 0x4bc   :  { %7580 = vmatmul.mubr.bf16.vlgmr.msra.gmra.mrb[116].mxu0 %v5358_v48 }
 0x4bd   :  { %7604 = vmatpush3.bf16.msra.mxu0 %v7983_v59  ;;  %7619 = vmatprep.mubr.bf16.mxu0 %v5541_v10 }
 0x4be   :  { %7605 = vmatprep.subr.bf16.mxu0 %v7984_v1 }
 0x4c1   :  { %7606 = vmatpush3.bf16.msra.mxu0 %v7984_v1 }
 0x4c2   :  { %7607 = vmatprep.subr.bf16.mxu0 %v7985_v17 }
 0x4c5   :  { %7608 = vmatpush3.bf16.msra.mxu0 %v7985_v17 }
 0x4c6   :  { %7609 = vmatprep.subr.bf16.mxu0 %v7986_v32 }
 0x4c9   :  { %7610 = vmatpush3.bf16.msra.mxu0 %v7986_v32 }
 0x4ca   :  { %7611 = vmatprep.subr.bf16.mxu0 %v7987_v2 }
 0x4cd   :  { %7612 = vmatpush3.bf16.msra.mxu0 %v7987_v2 }
 0x4ce   :  { %7613 = vmatprep.subr.bf16.mxu0 %v7988_v53 }
 0x4d1   :  { %7614 = vmatpush3.bf16.msra.mxu0 %v7988_v53 }
 0x4d2   :  { %7615 = vmatprep.subr.bf16.mxu0 %v7989_v49 }
 0x4d5   :  { %7616 = vmatpush3.bf16.msra.mxu0 %v7989_v49 }
 0x4d6   :  { %7617 = vmatprep.subr.bf16.mxu0 %v7990_v36 }
 0x4d9   :  { %7618 = vmatpush3.bf16.msra.mxu0 %v7990_v36 }
 0x4dc   :  { %7620 = vmatmul.mubr.bf16.vlgmr.msra.gmra.mrb[116].mxu0 %v5542_v8 }
 0x5af   :  { %v7621_v58 = vpop.f32.mrb[116].mxu0 }
 0x5b0   :  { %v5653_v55 = vmul.f32 %v7621_v58, %v6149_v3  ;;  %v5625_v61 = vpop.f32.mrb[117].mxu0 }
 0x5b1   :  { %v5651_v12 = vmul.f32 %v6149_v3, %v5625_v61  ;;  %v7622_v63 = vpop.f32.mrb[118].mxu0 }
 0x5b2   :  { %v5664_v28 = vadd.f32 %v6150_v9, %v5653_v55  ;;  %v5654_v46 = vmul.f32 %v7622_v63, %v6149_v3  ;;  %v5628_v20 = vpop.f32.mrb[119].mxu0 }
 0x5b3   :  { %v5662_v21 = vadd.f32 %v6150_v9, %v5651_v12  ;;  %v5652_v31 = vmul.f32 %v6149_v3, %v5628_v20 }
 0x5b4   :  { %v5672_v15 = vmul.f32 0.1, %v5664_v28  ;;  %v5665_v45 = vadd.f32 %v6150_v9, %v5654_v46  ;;  %vm5668_vm0 = vcmp.gt.f32.partialorder %v5664_v28, 0.0 }
 0x5b5   :  { %v5670_v57 = vmul.f32 0.1, %v5662_v21  ;;  %v5663_v16 = vadd.f32 %v6150_v9, %v5652_v31  ;;  %vm5666_vm1 = vcmp.gt.f32.partialorder %v5662_v21, 0.0 }
 0x5b6   :  { %v5673_v34 = vmul.f32 0.1, %v5665_v45  ;;  %vm5669_vm2 = vcmp.gt.f32.partialorder %v5665_v45, 0.0  ;;  %v5676_v23 = vsel %vm5668_vm0, %v5664_v28, %v5672_v15 }
 0x5b7   :  { %v5671_v56 = vmul.f32 0.1, %v5663_v16  ;;  %vm5667_vm3 = vcmp.gt.f32.partialorder %v5663_v16, 0.0  ;;  %v5674_v18 = vsel %vm5666_vm1, %v5662_v21, %v5670_v57  ;;  %v5705_v6 = vmul.f32 %v5678_v60, %v5676_v23 }
 0x5b8   :  { %v5677_v54 = vsel %vm5669_vm2, %v5665_v45, %v5673_v34  ;;  %v5680_v11 = vmul.f32 %v5678_v60, %v5674_v18 }
 0x5b9   :  { %v5675_v27 = vsel %vm5667_vm3, %v5663_v16, %v5671_v56  ;;  %v5706_v41 = vmul.f32 %v5679_v4, %v5677_v54 }
 0x5ba   :  { %v5681_v33 = vmul.f32 %v5679_v4, %v5675_v27 }
 0x5bb   :  { %v5707_v35 = vadd.f32 %v5706_v41, %v5705_v6 }
 0x5bc   :  { %v5682_v40 = vadd.f32 %v5681_v33, %v5680_v11 }
 0x5be   :  { %5683 = vadd.xlane.f32.xlu0 %v5682_v40 }
 0x5c2   :  { %5708 = vadd.xlane.f32.xlu0 %v5707_v35 }
 0x64b   :  { %v5684_v19 = vpop.xlane.xlu0 %5683 }
 0x64c   :  { %v5685_v14 = vrot.slane %v5684_v19, 4 }
 0x64e   :  { %v5686_v39 = vadd.f32 %v5685_v14, %v5684_v19 }
 0x64f   :  { %v5709_v37 = vpop.xlane.xlu0 %5708 }
 0x650   :  { %v5687_v7 = vrot.slane %v5686_v39, 2  ;;  %v5710_v47 = vrot.slane %v5709_v37, 4 }
 0x652   :  { %v5711_v52 = vadd.f32 %v5710_v47, %v5709_v37  ;;  %v5688_v25 = vadd.f32 %v5687_v7, %v5686_v39 }
 0x654   :  { %v5712_v62 = vrot.slane %v5711_v52, 2  ;;  %v5689_v48 = vrot.slane %v5688_v25, 1 }
 0x656   :  { %v5713_v24 = vadd.f32 %v5712_v62, %v5711_v52  ;;  %v5690_v50 = vadd.f32 %v5689_v48, %v5688_v25 }
 0x658   :  { %7699 = vpush %v5690_v50  ;;  %v5714_v42 = vrot.slane %v5713_v24, 1 }
 0x65a   :  { %v5715_v22 = vadd.f32 %v5714_v42, %v5713_v24 }
 0x65c   :  { %7701 = vpush %v5715_v22 }
 0x689   :  { %s7700_s8 = spop %7699 }
 0x68a   :  { %v5692_v29 = vstv %s7700_s8 }
 0x68b   :  { %v5694_v38 = vadd.f32 %v5693_v5, %v5692_v29 }
 0x68d   :  { %v5695_v26 = vsub.f32 0.0, %v5694_v38  ;;  %s7702_s9 = spop %7701 }
 0x68e   :  { %v5717_v13 = vstv %s7702_s9 }
 0x68f   :  { %v5696_v59 = vmul.f32 1.442695, %v5695_v26  ;;  %v5719_v43 = vadd.f32 %v5718_v51, %v5717_v13 }
 0x691   :  { %7991 = vpow2.f32 %v5696_v59  ;;  %v5720_v0 = vsub.f32 0.0, %v5719_v43 }
 0x693   :  { %v5721_v8 = vmul.f32 1.442695, %v5720_v0 }
 0x695   :  { %7993 = vpow2.f32 %v5721_v8 }
 0x69b   :  { %v7992_v44 = vpop.eup %7991 }
 0x69c   :  { %v5698_v10 = vadd.f32 1.0, %v7992_v44 }
 0x69e   :  { %7995 = vrcp.f32 %v5698_v10 }
 0x69f   :  { %v7994_v1 = vpop.eup %7993 }
 0x6a0   :  { %v5723_v17 = vadd.f32 1.0, %v7994_v1 }
 0x6a2   :  { %7997 = vrcp.f32 %v5723_v17 }
 0x6a8   :  { %v7996_v32 = vpop.eup %7995 }
 0x6a9   :  { %5702 = vst.msk [vmem:[%s9867_s10] sm:$0x1] %vm5701_vm4, %v7996_v32 }
 0x6ac   :  { %v7998_v2 = vpop.eup %7997 }
 0x6ad   :  { %5726 = vst.msk [vmem:[%s9867_s10 + $0x1] sm:$0x1] %vm5701_vm4, %v7998_v2 }

</bundles_post_ra>
